<compile_context>
chip_gen: v7x
topology: tpu7x:2x2x1
jax: 0.10.0
libtpu: 0.0.40
codegen_flags: <defaults>
</compile_context>

<pallas_src>
import numpy as np
import jax
import jax.numpy as jnp
from jax import lax
from jax.experimental import pallas as pl
from jax.experimental.pallas import tpu as pltpu


def _round_up(x, m):
    return ((x + m - 1) // m) * m


# ----------------------------------------------------------------------------
# Fused kernel: num_layers LSTM layers + dense -> tanh -> out_proj head.
# Time-major (T, B, *) layout; all dynamic indexing is on the leading (time)
# axis only. GP = round_up(E, 128), LP = round_up(num_labels, 128).
# ----------------------------------------------------------------------------
def _sentence_lstm_kernel(len_ref, x_ref, wih_ref, whh_ref, b_ref,
                          wd_ref, bd_ref, wo_ref, bo_ref, out_ref,
                          buf, gin, h_sc, hb_sc, c_sc):
    T, B, GP = buf.shape
    num_layers = wih_ref.shape[0]
    unroll = min(T, 8)

    lengths = len_ref[...]                       # (B, 1) int32

    for layer in range(num_layers):              # static unroll over layers
        src = x_ref if layer == 0 else buf       # no initial slab copy
        b_l = b_ref[layer]                       # (1, 4*GP) f32  (b_ih + b_hh)

        # ---- (1) Hoisted, non-recurrent input projection (off the serial path)
        # TODO(synk): at large T, chunk this precompute (32-64 steps) to bound
        # the (T, B, 4*GP) gin slab and batch it as one (chunk*B, GP) matmul.
        def pre_step(t, carry, layer=layer, b_l=b_l, src=src):
            gin[t] = jnp.dot(src[t], wih_ref[layer],
                             preferred_element_type=jnp.float32) + b_l
            return carry
        lax.fori_loop(0, T, pre_step, 0, unroll=unroll)

        h_sc[...] = jnp.zeros_like(h_sc)         # f32 state
        hb_sc[...] = jnp.zeros_like(hb_sc)       # bf16 copy for the MXU
        c_sc[...] = jnp.zeros_like(c_sc)         # f32 state

        # ---- (2) Serial recurrence: only h_{t-1} @ W_hh^T + gate math remain
        def step(t, carry, layer=layer):
            gates = gin[t] + jnp.dot(hb_sc[...], whh_ref[layer],
                                     preferred_element_type=jnp.float32)
            # PyTorch gate order i, f, g, o; each block is 128-lane aligned.
            i_g = jax.nn.sigmoid(gates[:, 0 * GP:1 * GP])
            f_g = jax.nn.sigmoid(gates[:, 1 * GP:2 * GP])
            g_g = jnp.tanh(gates[:, 2 * GP:3 * GP])
            o_g = jax.nn.sigmoid(gates[:, 3 * GP:4 * GP])

            c_new = f_g * c_sc[...] + i_g * g_g
            h_new = o_g * jnp.tanh(c_new)

            # pack_padded_sequence: freeze state past each row's length;
            # pad_packed_sequence: padded output positions are zero.
            mask = lengths > t                   # (B, 1) bool
            c_sc[...] = jnp.where(mask, c_new, c_sc[...])
            h_upd = jnp.where(mask, h_new, h_sc[...])
            h_sc[...] = h_upd
            hb_sc[...] = h_upd.astype(hb_sc.dtype)
            buf[t] = jnp.where(mask, h_new, 0.0).astype(buf.dtype)
            return carry
        lax.fori_loop(0, T, step, 0, unroll=unroll)

    # ---- (3) Hoisted head: dense -> tanh -> out_proj over the whole slab.
    # TODO(synk): dropout is identity in eval mode; training-mode dropout (and
    # inter-layer LSTM dropout) not implemented.
    def head_step(t, carry):
        hdn = jnp.tanh(jnp.dot(buf[t], wd_ref[...],
                               preferred_element_type=jnp.float32) + bd_ref[...])
        out_ref[t] = (jnp.dot(hdn.astype(wo_ref.dtype), wo_ref[...],
                              preferred_element_type=jnp.float32)
                      + bo_ref[...]).astype(out_ref.dtype)
        return carry
    lax.fori_loop(0, T, head_step, 0, unroll=unroll)


# ----------------------------------------------------------------------------
# Weight packing helpers (lane-aligned, per-gate padded, bf16 matmul operands)
# ----------------------------------------------------------------------------
def _pad_2d(a, rows, cols):
    out = jnp.zeros((rows, cols), a.dtype)
    return out.at[:a.shape[0], :a.shape[1]].set(a)


def _pack_gate_matrix(w_t, E, GP):
    """(in_dim, 4E) -> (GP, 4*GP): each gate gets a 128-lane-aligned block."""
    blocks = [_pad_2d(w_t[:, k * E:(k + 1) * E], GP, GP) for k in range(4)]
    return jnp.concatenate(blocks, axis=1)


def _pack_gate_bias(b, E, GP):
    """(4E,) -> (1, 4*GP) with per-gate zero padding."""
    blocks = [jnp.zeros((GP,), b.dtype).at[:E].set(b[k * E:(k + 1) * E])
              for k in range(4)]
    return jnp.concatenate(blocks).reshape(1, 4 * GP)


# ----------------------------------------------------------------------------
# Wrapper
# ----------------------------------------------------------------------------
def sentence_lstm_forward(inputs, seq_lengths, params, max_length=None):
    """inputs: (B, T, E) batch-first; seq_lengths: (B,) int.

    Returns (B, T_eff, num_labels) with T_eff = min(T, max_length).  Pass
    max_length = max(seq_lengths) as a static Python int to exactly match
    pad_packed_sequence (defaults to T).
    """
    B, T, E = inputs.shape
    num_layers = len(params["w_ih"])
    L = params["w_out"].shape[0]
    GP = _round_up(E, 128)
    LP = _round_up(L, 128)
    T_eff = T if max_length is None else min(T, int(max_length))

    f32, bf16 = jnp.float32, jnp.bfloat16

    # Time-major, lane-padded, bf16 matmul operands (accumulation stays f32).
    x = jnp.transpose(inputs.astype(f32), (1, 0, 2))[:T_eff]          # (T_eff,B,E)
    x = jnp.zeros((T_eff, B, GP), f32).at[:, :, :E].set(x).astype(bf16)
    lengths = seq_lengths.astype(jnp.int32).reshape(B, 1)

    wih = jnp.stack([_pack_gate_matrix(params["w_ih"][l].T.astype(f32), E, GP)
                     for l in range(num_layers)]).astype(bf16)        # (nl,GP,4GP)
    whh = jnp.stack([_pack_gate_matrix(params["w_hh"][l].T.astype(f32), E, GP)
                     for l in range(num_layers)]).astype(bf16)        # (nl,GP,4GP)
    bias = jnp.stack([_pack_gate_bias(
        (params["b_ih"][l] + params["b_hh"][l]).astype(f32), E, GP)
        for l in range(num_layers)])                                  # (nl,1,4GP)

    wd = _pad_2d(params["w_dense"].T.astype(f32), GP, GP).astype(bf16)
    bd = jnp.zeros((1, GP), f32).at[0, :E].set(params["b_dense"].astype(f32))
    wo = _pad_2d(params["w_out"].T.astype(f32), GP, LP).astype(bf16)
    bo = jnp.zeros((1, LP), f32).at[0, :L].set(params["b_out"].astype(f32))

    # VMEM budget ~ resident footprint (accounting for sublane/lane tile
    # padding of the small B dim) + headroom, clamped to a v7x-safe ceiling.
    def _padded_bytes(shape, dtype):
        itemsize = np.dtype(dtype).itemsize
        s = list(shape)
        if len(s) >= 2:
            sub = 8 * (4 // itemsize) if itemsize < 4 else 8
            s[-2] = _round_up(s[-2], sub)
            s[-1] = _round_up(s[-1], 128)
        return int(np.prod(s)) * itemsize

    footprint = (
        _padded_bytes((T_eff, B, GP), bf16)            # x input
        + _padded_bytes((T_eff, B, GP), bf16)          # buf scratch
        + _padded_bytes((T_eff, B, 4 * GP), f32)       # gates_in scratch
        + _padded_bytes((T_eff, B, LP), f32)           # logits output
        + 2 * _padded_bytes((num_layers, GP, 4 * GP), bf16)  # W_ih, W_hh
        + _padded_bytes((num_layers, 1, 4 * GP), f32)
        + _padded_bytes((GP, GP), bf16) + _padded_bytes((GP, LP), bf16)
        + 3 * _padded_bytes((B, GP), f32)
    )
    vmem_limit = int(min(max(2 * footprint + (8 << 20), 32 << 20), 64 << 20))

    vmem = pl.BlockSpec(memory_space=pltpu.MemorySpace.VMEM)
    out = pl.pallas_call(
        _sentence_lstm_kernel,
        out_shape=jax.ShapeDtypeStruct((T_eff, B, LP), f32),
        in_specs=[vmem] * 9,
        out_specs=vmem,
        scratch_shapes=[
            pltpu.VMEM((T_eff, B, GP), bf16),        # current layer output slab
            pltpu.VMEM((T_eff, B, 4 * GP), f32),     # hoisted input-proj gates
            pltpu.VMEM((B, GP), f32),                # h state (f32)
            pltpu.VMEM((B, GP), bf16),               # h state (bf16 MXU copy)
            pltpu.VMEM((B, GP), f32),                # c state (f32)
        ],
        compiler_params=pltpu.CompilerParams(vmem_limit_bytes=vmem_limit),
    )(lengths, x, wih, whh, bias, wd, bd, wo, bo)

    # (T_eff, B, LP) -> (B, T_eff, L): tiny transpose + un-pad outside kernel.
    return jnp.transpose(out, (1, 0, 2))[:, :, :L]


def init_params(key, num_layers, embedding_size, num_labels):
    """PyTorch-layout params: LSTM uniform(+-1/sqrt(E)); dense/out N(0,1), b=0."""
    E, L = embedding_size, num_labels
    stdv = 1.0 / np.sqrt(E)
    w_ih, w_hh, b_ih, b_hh = [], [], [], []
    for _ in range(num_layers):
        key, k1, k2, k3, k4 = jax.random.split(key, 5)
        w_ih.append(jax.random.uniform(k1, (4 * E, E), jnp.float32, -stdv, stdv))
        w_hh.append(jax.random.uniform(k2, (4 * E, E), jnp.float32, -stdv, stdv))
        b_ih.append(jax.random.uniform(k3, (4 * E,), jnp.float32, -stdv, stdv))
        b_hh.append(jax.random.uniform(k4, (4 * E,), jnp.float32, -stdv, stdv))
    key, kd, ko = jax.random.split(key, 3)
    return {
        "w_ih": w_ih, "w_hh": w_hh, "b_ih": b_ih, "b_hh": b_hh,
        "w_dense": jax.random.normal(kd, (E, E), jnp.float32),
        "b_dense": jnp.zeros((E,), jnp.float32),
        "w_out": jax.random.normal(ko, (L, E), jnp.float32),
        "b_out": jnp.zeros((L,), jnp.float32),
    }


if __name__ == "__main__":
    num_layers = 2
    embedding_size = 32
    num_labels = 4
    B, T = 2, 8

    key = jax.random.PRNGKey(0)
    key, kx = jax.random.split(key)
    inputs = jax.random.normal(kx, (B, T, embedding_size), jnp.float32)
    seq_len_list = [8, 5]                      # max == T
    seq_lengths = jnp.array(seq_len_list, dtype=jnp.int32)

    params = init_params(key, num_layers, embedding_size, num_labels)

    out = sentence_lstm_forward(inputs, seq_lengths, params,
                                max_length=max(seq_len_list))
    jax.block_until_ready(out)
    assert out.shape == (B, max(seq_len_list), num_labels)
    print("KERNEL_OK")
</pallas_src>

<mosaic_0001>
module attributes {stable_mosaic.version = 11 : i64} {
  func.func @_sentence_lstm_kernel(%arg0: memref<2x1xi32, #tpu.memory_space<vmem>>, %arg1: memref<8x2x128xbf16, #tpu.memory_space<vmem>>, %arg2: memref<2x128x512xbf16, #tpu.memory_space<vmem>>, %arg3: memref<2x128x512xbf16, #tpu.memory_space<vmem>>, %arg4: memref<2x1x512xf32, #tpu.memory_space<vmem>>, %arg5: memref<128x128xbf16, #tpu.memory_space<vmem>>, %arg6: memref<1x128xf32, #tpu.memory_space<vmem>>, %arg7: memref<128x128xbf16, #tpu.memory_space<vmem>>, %arg8: memref<1x128xf32, #tpu.memory_space<vmem>>, %arg9: memref<8x2x128xf32, #tpu.memory_space<vmem>>, %arg10: memref<8x2x128xbf16, #tpu.memory_space<vmem>>, %arg11: memref<8x2x512xf32, #tpu.memory_space<vmem>>, %arg12: memref<2x128xf32, #tpu.memory_space<vmem>>, %arg13: memref<2x128xbf16, #tpu.memory_space<vmem>>, %arg14: memref<2x128xf32, #tpu.memory_space<vmem>>) attributes {dimension_semantics = [], scalar_prefetch = 0 : i64, scratch_operands = 5 : i64, tpu.core_type = #tpu.core_type<tc>} {
    %c0 = arith.constant 0 : index
    %c0_0 = arith.constant 0 : index
    %0 = vector.load %arg0[%c0, %c0_0] : memref<2x1xi32, #tpu.memory_space<vmem>>, vector<2x1xi32>
    %c0_1 = arith.constant 0 : index
    %c0_2 = arith.constant 0 : index
    %c0_3 = arith.constant 0 : index
    %1 = vector.load %arg4[%c0_1, %c0_2, %c0_3] : memref<2x1x512xf32, #tpu.memory_space<vmem>>, vector<1x1x512xf32>
    %2 = vector.shape_cast %1 : vector<1x1x512xf32> to vector<1x512xf32>
    %c0_i32 = arith.constant 0 : i32
    %3 = arith.index_cast %c0_i32 : i32 to index
    %c0_4 = arith.constant 0 : index
    %c0_5 = arith.constant 0 : index
    %4 = vector.load %arg1[%3, %c0_4, %c0_5] : memref<8x2x128xbf16, #tpu.memory_space<vmem>>, vector<1x2x128xbf16>
    %5 = vector.shape_cast %4 : vector<1x2x128xbf16> to vector<2x128xbf16>
    %c0_6 = arith.constant 0 : index
    %c0_7 = arith.constant 0 : index
    %c0_8 = arith.constant 0 : index
    %6 = vector.load %arg2[%c0_6, %c0_7, %c0_8] : memref<2x128x512xbf16, #tpu.memory_space<vmem>>, vector<1x128x512xbf16>
    %7 = vector.shape_cast %6 : vector<1x128x512xbf16> to vector<128x512xbf16>
    %cst = arith.constant dense<0.000000e+00> : vector<2x512xf32>
    %8 = tpu.matmul %5, %7, %cst {dimension_numbers = #tpu.dot_dimension_numbers<[1], [0], [0], [1], [0, 0, 1, 1], [], []>} : vector<2x128xbf16>, vector<128x512xbf16>, vector<2x512xf32> -> vector<2x512xf32>
    %9 = vector.broadcast %2 : vector<1x512xf32> to vector<2x512xf32>
    %10 = arith.addf %8, %9 : vector<2x512xf32>
    %11 = arith.index_cast %c0_i32 : i32 to index
    %c0_9 = arith.constant 0 : index
    %c0_10 = arith.constant 0 : index
    %12 = vector.load %arg11[%11, %c0_9, %c0_10] : memref<8x2x512xf32, #tpu.memory_space<vmem>>, vector<1x2x512xf32>
    %13 = vector.shape_cast %12 : vector<1x2x512xf32> to vector<2x512xf32>
    %14 = vector.shape_cast %10 : vector<2x512xf32> to vector<1x2x512xf32>
    tpu.vector_store %arg11[%11, %c0_9, %c0_10], %14 {strides = array<i32>} : memref<8x2x512xf32, #tpu.memory_space<vmem>>, vector<1x2x512xf32>,
    %c1_i32 = arith.constant 1 : i32
    %15 = arith.index_cast %c1_i32 : i32 to index
    %c0_11 = arith.constant 0 : index
    %c0_12 = arith.constant 0 : index
    %16 = vector.load %arg1[%15, %c0_11, %c0_12] : memref<8x2x128xbf16, #tpu.memory_space<vmem>>, vector<1x2x128xbf16>
    %17 = vector.shape_cast %16 : vector<1x2x128xbf16> to vector<2x128xbf16>
    %c0_13 = arith.constant 0 : index
    %c0_14 = arith.constant 0 : index
    %c0_15 = arith.constant 0 : index
    %18 = vector.load %arg2[%c0_13, %c0_14, %c0_15] : memref<2x128x512xbf16, #tpu.memory_space<vmem>>, vector<1x128x512xbf16>
    %19 = vector.shape_cast %18 : vector<1x128x512xbf16> to vector<128x512xbf16>
    %cst_16 = arith.constant dense<0.000000e+00> : vector<2x512xf32>
    %20 = tpu.matmul %17, %19, %cst_16 {dimension_numbers = #tpu.dot_dimension_numbers<[1], [0], [0], [1], [0, 0, 1, 1], [], []>} : vector<2x128xbf16>, vector<128x512xbf16>, vector<2x512xf32> -> vector<2x512xf32>
    %21 = vector.broadcast %2 : vector<1x512xf32> to vector<2x512xf32>
    %22 = arith.addf %20, %21 : vector<2x512xf32>
    %23 = arith.index_cast %c1_i32 : i32 to index
    %c0_17 = arith.constant 0 : index
    %c0_18 = arith.constant 0 : index
    %24 = vector.load %arg11[%23, %c0_17, %c0_18] : memref<8x2x512xf32, #tpu.memory_space<vmem>>, vector<1x2x512xf32>
    %25 = vector.shape_cast %24 : vector<1x2x512xf32> to vector<2x512xf32>
    %26 = vector.shape_cast %22 : vector<2x512xf32> to vector<1x2x512xf32>
    tpu.vector_store %arg11[%23, %c0_17, %c0_18], %26 {strides = array<i32>} : memref<8x2x512xf32, #tpu.memory_space<vmem>>, vector<1x2x512xf32>,
    %c2_i32 = arith.constant 2 : i32
    %27 = arith.index_cast %c2_i32 : i32 to index
    %c0_19 = arith.constant 0 : index
    %c0_20 = arith.constant 0 : index
    %28 = vector.load %arg1[%27, %c0_19, %c0_20] : memref<8x2x128xbf16, #tpu.memory_space<vmem>>, vector<1x2x128xbf16>
    %29 = vector.shape_cast %28 : vector<1x2x128xbf16> to vector<2x128xbf16>
    %c0_21 = arith.constant 0 : index
    %c0_22 = arith.constant 0 : index
    %c0_23 = arith.constant 0 : index
    %30 = vector.load %arg2[%c0_21, %c0_22, %c0_23] : memref<2x128x512xbf16, #tpu.memory_space<vmem>>, vector<1x128x512xbf16>
    %31 = vector.shape_cast %30 : vector<1x128x512xbf16> to vector<128x512xbf16>
    %cst_24 = arith.constant dense<0.000000e+00> : vector<2x512xf32>
    %32 = tpu.matmul %29, %31, %cst_24 {dimension_numbers = #tpu.dot_dimension_numbers<[1], [0], [0], [1], [0, 0, 1, 1], [], []>} : vector<2x128xbf16>, vector<128x512xbf16>, vector<2x512xf32> -> vector<2x512xf32>
    %33 = vector.broadcast %2 : vector<1x512xf32> to vector<2x512xf32>
    %34 = arith.addf %32, %33 : vector<2x512xf32>
    %35 = arith.index_cast %c2_i32 : i32 to index
    %c0_25 = arith.constant 0 : index
    %c0_26 = arith.constant 0 : index
    %36 = vector.load %arg11[%35, %c0_25, %c0_26] : memref<8x2x512xf32, #tpu.memory_space<vmem>>, vector<1x2x512xf32>
    %37 = vector.shape_cast %36 : vector<1x2x512xf32> to vector<2x512xf32>
    %38 = vector.shape_cast %34 : vector<2x512xf32> to vector<1x2x512xf32>
    tpu.vector_store %arg11[%35, %c0_25, %c0_26], %38 {strides = array<i32>} : memref<8x2x512xf32, #tpu.memory_space<vmem>>, vector<1x2x512xf32>,
    %c3_i32 = arith.constant 3 : i32
    %39 = arith.index_cast %c3_i32 : i32 to index
    %c0_27 = arith.constant 0 : index
    %c0_28 = arith.constant 0 : index
    %40 = vector.load %arg1[%39, %c0_27, %c0_28] : memref<8x2x128xbf16, #tpu.memory_space<vmem>>, vector<1x2x128xbf16>
    %41 = vector.shape_cast %40 : vector<1x2x128xbf16> to vector<2x128xbf16>
    %c0_29 = arith.constant 0 : index
    %c0_30 = arith.constant 0 : index
    %c0_31 = arith.constant 0 : index
    %42 = vector.load %arg2[%c0_29, %c0_30, %c0_31] : memref<2x128x512xbf16, #tpu.memory_space<vmem>>, vector<1x128x512xbf16>
    %43 = vector.shape_cast %42 : vector<1x128x512xbf16> to vector<128x512xbf16>
    %cst_32 = arith.constant dense<0.000000e+00> : vector<2x512xf32>
    %44 = tpu.matmul %41, %43, %cst_32 {dimension_numbers = #tpu.dot_dimension_numbers<[1], [0], [0], [1], [0, 0, 1, 1], [], []>} : vector<2x128xbf16>, vector<128x512xbf16>, vector<2x512xf32> -> vector<2x512xf32>
    %45 = vector.broadcast %2 : vector<1x512xf32> to vector<2x512xf32>
    %46 = arith.addf %44, %45 : vector<2x512xf32>
    %47 = arith.index_cast %c3_i32 : i32 to index
    %c0_33 = arith.constant 0 : index
    %c0_34 = arith.constant 0 : index
    %48 = vector.load %arg11[%47, %c0_33, %c0_34] : memref<8x2x512xf32, #tpu.memory_space<vmem>>, vector<1x2x512xf32>
    %49 = vector.shape_cast %48 : vector<1x2x512xf32> to vector<2x512xf32>
    %50 = vector.shape_cast %46 : vector<2x512xf32> to vector<1x2x512xf32>
    tpu.vector_store %arg11[%47, %c0_33, %c0_34], %50 {strides = array<i32>} : memref<8x2x512xf32, #tpu.memory_space<vmem>>, vector<1x2x512xf32>,
    %c4_i32 = arith.constant 4 : i32
    %51 = arith.index_cast %c4_i32 : i32 to index
    %c0_35 = arith.constant 0 : index
    %c0_36 = arith.constant 0 : index
    %52 = vector.load %arg1[%51, %c0_35, %c0_36] : memref<8x2x128xbf16, #tpu.memory_space<vmem>>, vector<1x2x128xbf16>
    %53 = vector.shape_cast %52 : vector<1x2x128xbf16> to vector<2x128xbf16>
    %c0_37 = arith.constant 0 : index
    %c0_38 = arith.constant 0 : index
    %c0_39 = arith.constant 0 : index
    %54 = vector.load %arg2[%c0_37, %c0_38, %c0_39] : memref<2x128x512xbf16, #tpu.memory_space<vmem>>, vector<1x128x512xbf16>
    %55 = vector.shape_cast %54 : vector<1x128x512xbf16> to vector<128x512xbf16>
    %cst_40 = arith.constant dense<0.000000e+00> : vector<2x512xf32>
    %56 = tpu.matmul %53, %55, %cst_40 {dimension_numbers = #tpu.dot_dimension_numbers<[1], [0], [0], [1], [0, 0, 1, 1], [], []>} : vector<2x128xbf16>, vector<128x512xbf16>, vector<2x512xf32> -> vector<2x512xf32>
    %57 = vector.broadcast %2 : vector<1x512xf32> to vector<2x512xf32>
    %58 = arith.addf %56, %57 : vector<2x512xf32>
    %59 = arith.index_cast %c4_i32 : i32 to index
    %c0_41 = arith.constant 0 : index
    %c0_42 = arith.constant 0 : index
    %60 = vector.load %arg11[%59, %c0_41, %c0_42] : memref<8x2x512xf32, #tpu.memory_space<vmem>>, vector<1x2x512xf32>
    %61 = vector.shape_cast %60 : vector<1x2x512xf32> to vector<2x512xf32>
    %62 = vector.shape_cast %58 : vector<2x512xf32> to vector<1x2x512xf32>
    tpu.vector_store %arg11[%59, %c0_41, %c0_42], %62 {strides = array<i32>} : memref<8x2x512xf32, #tpu.memory_space<vmem>>, vector<1x2x512xf32>,
    %c5_i32 = arith.constant 5 : i32
    %63 = arith.index_cast %c5_i32 : i32 to index
    %c0_43 = arith.constant 0 : index
    %c0_44 = arith.constant 0 : index
    %64 = vector.load %arg1[%63, %c0_43, %c0_44] : memref<8x2x128xbf16, #tpu.memory_space<vmem>>, vector<1x2x128xbf16>
    %65 = vector.shape_cast %64 : vector<1x2x128xbf16> to vector<2x128xbf16>
    %c0_45 = arith.constant 0 : index
    %c0_46 = arith.constant 0 : index
    %c0_47 = arith.constant 0 : index
    %66 = vector.load %arg2[%c0_45, %c0_46, %c0_47] : memref<2x128x512xbf16, #tpu.memory_space<vmem>>, vector<1x128x512xbf16>
    %67 = vector.shape_cast %66 : vector<1x128x512xbf16> to vector<128x512xbf16>
    %cst_48 = arith.constant dense<0.000000e+00> : vector<2x512xf32>
    %68 = tpu.matmul %65, %67, %cst_48 {dimension_numbers = #tpu.dot_dimension_numbers<[1], [0], [0], [1], [0, 0, 1, 1], [], []>} : vector<2x128xbf16>, vector<128x512xbf16>, vector<2x512xf32> -> vector<2x512xf32>
    %69 = vector.broadcast %2 : vector<1x512xf32> to vector<2x512xf32>
    %70 = arith.addf %68, %69 : vector<2x512xf32>
    %71 = arith.index_cast %c5_i32 : i32 to index
    %c0_49 = arith.constant 0 : index
    %c0_50 = arith.constant 0 : index
    %72 = vector.load %arg11[%71, %c0_49, %c0_50] : memref<8x2x512xf32, #tpu.memory_space<vmem>>, vector<1x2x512xf32>
    %73 = vector.shape_cast %72 : vector<1x2x512xf32> to vector<2x512xf32>
    %74 = vector.shape_cast %70 : vector<2x512xf32> to vector<1x2x512xf32>
    tpu.vector_store %arg11[%71, %c0_49, %c0_50], %74 {strides = array<i32>} : memref<8x2x512xf32, #tpu.memory_space<vmem>>, vector<1x2x512xf32>,
    %c6_i32 = arith.constant 6 : i32
    %75 = arith.index_cast %c6_i32 : i32 to index
    %c0_51 = arith.constant 0 : index
    %c0_52 = arith.constant 0 : index
    %76 = vector.load %arg1[%75, %c0_51, %c0_52] : memref<8x2x128xbf16, #tpu.memory_space<vmem>>, vector<1x2x128xbf16>
    %77 = vector.shape_cast %76 : vector<1x2x128xbf16> to vector<2x128xbf16>
    %c0_53 = arith.constant 0 : index
    %c0_54 = arith.constant 0 : index
    %c0_55 = arith.constant 0 : index
    %78 = vector.load %arg2[%c0_53, %c0_54, %c0_55] : memref<2x128x512xbf16, #tpu.memory_space<vmem>>, vector<1x128x512xbf16>
    %79 = vector.shape_cast %78 : vector<1x128x512xbf16> to vector<128x512xbf16>
    %cst_56 = arith.constant dense<0.000000e+00> : vector<2x512xf32>
    %80 = tpu.matmul %77, %79, %cst_56 {dimension_numbers = #tpu.dot_dimension_numbers<[1], [0], [0], [1], [0, 0, 1, 1], [], []>} : vector<2x128xbf16>, vector<128x512xbf16>, vector<2x512xf32> -> vector<2x512xf32>
    %81 = vector.broadcast %2 : vector<1x512xf32> to vector<2x512xf32>
    %82 = arith.addf %80, %81 : vector<2x512xf32>
    %83 = arith.index_cast %c6_i32 : i32 to index
    %c0_57 = arith.constant 0 : index
    %c0_58 = arith.constant 0 : index
    %84 = vector.load %arg11[%83, %c0_57, %c0_58] : memref<8x2x512xf32, #tpu.memory_space<vmem>>, vector<1x2x512xf32>
    %85 = vector.shape_cast %84 : vector<1x2x512xf32> to vector<2x512xf32>
    %86 = vector.shape_cast %82 : vector<2x512xf32> to vector<1x2x512xf32>
    tpu.vector_store %arg11[%83, %c0_57, %c0_58], %86 {strides = array<i32>} : memref<8x2x512xf32, #tpu.memory_space<vmem>>, vector<1x2x512xf32>,
    %c7_i32 = arith.constant 7 : i32
    %87 = arith.index_cast %c7_i32 : i32 to index
    %c0_59 = arith.constant 0 : index
    %c0_60 = arith.constant 0 : index
    %88 = vector.load %arg1[%87, %c0_59, %c0_60] : memref<8x2x128xbf16, #tpu.memory_space<vmem>>, vector<1x2x128xbf16>
    %89 = vector.shape_cast %88 : vector<1x2x128xbf16> to vector<2x128xbf16>
    %c0_61 = arith.constant 0 : index
    %c0_62 = arith.constant 0 : index
    %c0_63 = arith.constant 0 : index
    %90 = vector.load %arg2[%c0_61, %c0_62, %c0_63] : memref<2x128x512xbf16, #tpu.memory_space<vmem>>, vector<1x128x512xbf16>
    %91 = vector.shape_cast %90 : vector<1x128x512xbf16> to vector<128x512xbf16>
    %cst_64 = arith.constant dense<0.000000e+00> : vector<2x512xf32>
    %92 = tpu.matmul %89, %91, %cst_64 {dimension_numbers = #tpu.dot_dimension_numbers<[1], [0], [0], [1], [0, 0, 1, 1], [], []>} : vector<2x128xbf16>, vector<128x512xbf16>, vector<2x512xf32> -> vector<2x512xf32>
    %93 = vector.broadcast %2 : vector<1x512xf32> to vector<2x512xf32>
    %94 = arith.addf %92, %93 : vector<2x512xf32>
    %95 = arith.index_cast %c7_i32 : i32 to index
    %c0_65 = arith.constant 0 : index
    %c0_66 = arith.constant 0 : index
    %96 = vector.load %arg11[%95, %c0_65, %c0_66] : memref<8x2x512xf32, #tpu.memory_space<vmem>>, vector<1x2x512xf32>
    %97 = vector.shape_cast %96 : vector<1x2x512xf32> to vector<2x512xf32>
    %98 = vector.shape_cast %94 : vector<2x512xf32> to vector<1x2x512xf32>
    tpu.vector_store %arg11[%95, %c0_65, %c0_66], %98 {strides = array<i32>} : memref<8x2x512xf32, #tpu.memory_space<vmem>>, vector<1x2x512xf32>,
    %c8_i32 = arith.constant 8 : i32
    %cst_67 = arith.constant 0.000000e+00 : f32
    %99 = vector.broadcast %cst_67 : f32 to vector<2x128xf32>
    %c0_68 = arith.constant 0 : index
    %c0_69 = arith.constant 0 : index
    %100 = vector.load %arg12[%c0_68, %c0_69] : memref<2x128xf32, #tpu.memory_space<vmem>>, vector<2x128xf32>
    tpu.vector_store %arg12[%c0_68, %c0_69], %99 {strides = array<i32>} : memref<2x128xf32, #tpu.memory_space<vmem>>, vector<2x128xf32>,
    %cst_70 = arith.constant 0.000000e+00 : bf16
    %101 = vector.broadcast %cst_70 : bf16 to vector<2x128xbf16>
    %c0_71 = arith.constant 0 : index
    %c0_72 = arith.constant 0 : index
    %102 = vector.load %arg13[%c0_71, %c0_72] : memref<2x128xbf16, #tpu.memory_space<vmem>>, vector<2x128xbf16>
    tpu.vector_store %arg13[%c0_71, %c0_72], %101 {strides = array<i32>} : memref<2x128xbf16, #tpu.memory_space<vmem>>, vector<2x128xbf16>,
    %cst_73 = arith.constant 0.000000e+00 : f32
    %103 = vector.broadcast %cst_73 : f32 to vector<2x128xf32>
    %c0_74 = arith.constant 0 : index
    %c0_75 = arith.constant 0 : index
    %104 = vector.load %arg14[%c0_74, %c0_75] : memref<2x128xf32, #tpu.memory_space<vmem>>, vector<2x128xf32>
    tpu.vector_store %arg14[%c0_74, %c0_75], %103 {strides = array<i32>} : memref<2x128xf32, #tpu.memory_space<vmem>>, vector<2x128xf32>,
    %c0_i32_76 = arith.constant 0 : i32
    %105 = arith.index_cast %c0_i32_76 : i32 to index
    %c0_77 = arith.constant 0 : index
    %c0_78 = arith.constant 0 : index
    %106 = vector.load %arg11[%105, %c0_77, %c0_78] : memref<8x2x512xf32, #tpu.memory_space<vmem>>, vector<1x2x512xf32>
    %107 = vector.shape_cast %106 : vector<1x2x512xf32> to vector<2x512xf32>
    %c0_79 = arith.constant 0 : index
    %c0_80 = arith.constant 0 : index
    %108 = vector.load %arg13[%c0_79, %c0_80] : memref<2x128xbf16, #tpu.memory_space<vmem>>, vector<2x128xbf16>
    %c0_81 = arith.constant 0 : index
    %c0_82 = arith.constant 0 : index
    %c0_83 = arith.constant 0 : index
    %109 = vector.load %arg3[%c0_81, %c0_82, %c0_83] : memref<2x128x512xbf16, #tpu.memory_space<vmem>>, vector<1x128x512xbf16>
    %110 = vector.shape_cast %109 : vector<1x128x512xbf16> to vector<128x512xbf16>
    %cst_84 = arith.constant dense<0.000000e+00> : vector<2x512xf32>
    %111 = tpu.matmul %108, %110, %cst_84 {dimension_numbers = #tpu.dot_dimension_numbers<[1], [0], [0], [1], [0, 0, 1, 1], [], []>} : vector<2x128xbf16>, vector<128x512xbf16>, vector<2x512xf32> -> vector<2x512xf32>
    %112 = arith.addf %107, %111 : vector<2x512xf32>
    %113 = vector.extract_strided_slice %112 {offsets = [0, 0], sizes = [2, 128], strides = [1, 1]} : vector<2x512xf32> to vector<2x128xf32>
    %114 = arith.negf %113 : vector<2x128xf32>
    %115 = math.exp %114 : vector<2x128xf32>
    %cst_85 = arith.constant 1.000000e+00 : f32
    %116 = vector.broadcast %cst_85 : f32 to vector<2x128xf32>
    %117 = arith.addf %116, %115 : vector<2x128xf32>
    %118 = arith.divf %116, %117 : vector<2x128xf32>
    %119 = vector.extract_strided_slice %112 {offsets = [0, 128], sizes = [2, 128], strides = [1, 1]} : vector<2x512xf32> to vector<2x128xf32>
    %120 = arith.negf %119 : vector<2x128xf32>
    %121 = math.exp %120 : vector<2x128xf32>
    %cst_86 = arith.constant 1.000000e+00 : f32
    %122 = vector.broadcast %cst_86 : f32 to vector<2x128xf32>
    %123 = arith.addf %122, %121 : vector<2x128xf32>
    %124 = arith.divf %122, %123 : vector<2x128xf32>
    %125 = vector.extract_strided_slice %112 {offsets = [0, 256], sizes = [2, 128], strides = [1, 1]} : vector<2x512xf32> to vector<2x128xf32>
    %126 = math.tanh %125 : vector<2x128xf32>
    %127 = vector.extract_strided_slice %112 {offsets = [0, 384], sizes = [2, 128], strides = [1, 1]} : vector<2x512xf32> to vector<2x128xf32>
    %128 = arith.negf %127 : vector<2x128xf32>
    %129 = math.exp %128 : vector<2x128xf32>
    %cst_87 = arith.constant 1.000000e+00 : f32
    %130 = vector.broadcast %cst_87 : f32 to vector<2x128xf32>
    %131 = arith.addf %130, %129 : vector<2x128xf32>
    %132 = arith.divf %130, %131 : vector<2x128xf32>
    %c0_88 = arith.constant 0 : index
    %c0_89 = arith.constant 0 : index
    %133 = vector.load %arg14[%c0_88, %c0_89] : memref<2x128xf32, #tpu.memory_space<vmem>>, vector<2x128xf32>
    %134 = arith.mulf %124, %133 : vector<2x128xf32>
    %135 = arith.mulf %118, %126 : vector<2x128xf32>
    %136 = arith.addf %134, %135 : vector<2x128xf32>
    %137 = math.tanh %136 : vector<2x128xf32>
    %138 = arith.mulf %132, %137 : vector<2x128xf32>
    %139 = vector.broadcast %c0_i32_76 : i32 to vector<2x1xi32>
    %140 = arith.cmpi sgt, %0, %139 : vector<2x1xi32>
    %c0_90 = arith.constant 0 : index
    %c0_91 = arith.constant 0 : index
    %141 = vector.load %arg14[%c0_90, %c0_91] : memref<2x128xf32, #tpu.memory_space<vmem>>, vector<2x128xf32>
    %142 = vector.shape_cast %140 : vector<2x1xi1> to vector<2x1xi1>
    %143 = vector.broadcast %142 : vector<2x1xi1> to vector<2x128xi1>
    %144 = arith.select %143, %136, %141 : vector<2x128xi1>, vector<2x128xf32>
    %c0_92 = arith.constant 0 : index
    %c0_93 = arith.constant 0 : index
    %145 = vector.load %arg14[%c0_92, %c0_93] : memref<2x128xf32, #tpu.memory_space<vmem>>, vector<2x128xf32>
    tpu.vector_store %arg14[%c0_92, %c0_93], %144 {strides = array<i32>} : memref<2x128xf32, #tpu.memory_space<vmem>>, vector<2x128xf32>,
    %c0_94 = arith.constant 0 : index
    %c0_95 = arith.constant 0 : index
    %146 = vector.load %arg12[%c0_94, %c0_95] : memref<2x128xf32, #tpu.memory_space<vmem>>, vector<2x128xf32>
    %147 = vector.shape_cast %140 : vector<2x1xi1> to vector<2x1xi1>
    %148 = vector.broadcast %147 : vector<2x1xi1> to vector<2x128xi1>
    %149 = arith.select %148, %138, %146 : vector<2x128xi1>, vector<2x128xf32>
    %c0_96 = arith.constant 0 : index
    %c0_97 = arith.constant 0 : index
    %150 = vector.load %arg12[%c0_96, %c0_97] : memref<2x128xf32, #tpu.memory_space<vmem>>, vector<2x128xf32>
    tpu.vector_store %arg12[%c0_96, %c0_97], %149 {strides = array<i32>} : memref<2x128xf32, #tpu.memory_space<vmem>>, vector<2x128xf32>,
    %151 = arith.truncf %149 : vector<2x128xf32> to vector<2x128xbf16>
    %c0_98 = arith.constant 0 : index
    %c0_99 = arith.constant 0 : index
    %152 = vector.load %arg13[%c0_98, %c0_99] : memref<2x128xbf16, #tpu.memory_space<vmem>>, vector<2x128xbf16>
    tpu.vector_store %arg13[%c0_98, %c0_99], %151 {strides = array<i32>} : memref<2x128xbf16, #tpu.memory_space<vmem>>, vector<2x128xbf16>,
    %cst_100 = arith.constant 0.000000e+00 : f32
    %153 = vector.shape_cast %140 : vector<2x1xi1> to vector<2x1xi1>
    %154 = vector.broadcast %153 : vector<2x1xi1> to vector<2x128xi1>
    %155 = vector.broadcast %cst_100 : f32 to vector<2x128xf32>
    %156 = arith.select %154, %138, %155 : vector<2x128xi1>, vector<2x128xf32>
    %157 = arith.truncf %156 : vector<2x128xf32> to vector<2x128xbf16>
    %158 = arith.index_cast %c0_i32_76 : i32 to index
    %c0_101 = arith.constant 0 : index
    %c0_102 = arith.constant 0 : index
    %159 = vector.load %arg10[%158, %c0_101, %c0_102] : memref<8x2x128xbf16, #tpu.memory_space<vmem>>, vector<1x2x128xbf16>
    %160 = vector.shape_cast %159 : vector<1x2x128xbf16> to vector<2x128xbf16>
    %161 = vector.shape_cast %157 : vector<2x128xbf16> to vector<1x2x128xbf16>
    tpu.vector_store %arg10[%158, %c0_101, %c0_102], %161 {strides = array<i32>} : memref<8x2x128xbf16, #tpu.memory_space<vmem>>, vector<1x2x128xbf16>,
    %c1_i32_103 = arith.constant 1 : i32
    %162 = arith.index_cast %c1_i32_103 : i32 to index
    %c0_104 = arith.constant 0 : index
    %c0_105 = arith.constant 0 : index
    %163 = vector.load %arg11[%162, %c0_104, %c0_105] : memref<8x2x512xf32, #tpu.memory_space<vmem>>, vector<1x2x512xf32>
    %164 = vector.shape_cast %163 : vector<1x2x512xf32> to vector<2x512xf32>
    %c0_106 = arith.constant 0 : index
    %c0_107 = arith.constant 0 : index
    %165 = vector.load %arg13[%c0_106, %c0_107] : memref<2x128xbf16, #tpu.memory_space<vmem>>, vector<2x128xbf16>
    %c0_108 = arith.constant 0 : index
    %c0_109 = arith.constant 0 : index
    %c0_110 = arith.constant 0 : index
    %166 = vector.load %arg3[%c0_108, %c0_109, %c0_110] : memref<2x128x512xbf16, #tpu.memory_space<vmem>>, vector<1x128x512xbf16>
    %167 = vector.shape_cast %166 : vector<1x128x512xbf16> to vector<128x512xbf16>
    %cst_111 = arith.constant dense<0.000000e+00> : vector<2x512xf32>
    %168 = tpu.matmul %165, %167, %cst_111 {dimension_numbers = #tpu.dot_dimension_numbers<[1], [0], [0], [1], [0, 0, 1, 1], [], []>} : vector<2x128xbf16>, vector<128x512xbf16>, vector<2x512xf32> -> vector<2x512xf32>
    %169 = arith.addf %164, %168 : vector<2x512xf32>
    %170 = vector.extract_strided_slice %169 {offsets = [0, 0], sizes = [2, 128], strides = [1, 1]} : vector<2x512xf32> to vector<2x128xf32>
    %171 = arith.negf %170 : vector<2x128xf32>
    %172 = math.exp %171 : vector<2x128xf32>
    %cst_112 = arith.constant 1.000000e+00 : f32
    %173 = vector.broadcast %cst_112 : f32 to vector<2x128xf32>
    %174 = arith.addf %173, %172 : vector<2x128xf32>
    %175 = arith.divf %173, %174 : vector<2x128xf32>
    %176 = vector.extract_strided_slice %169 {offsets = [0, 128], sizes = [2, 128], strides = [1, 1]} : vector<2x512xf32> to vector<2x128xf32>
    %177 = arith.negf %176 : vector<2x128xf32>
    %178 = math.exp %177 : vector<2x128xf32>
    %cst_113 = arith.constant 1.000000e+00 : f32
    %179 = vector.broadcast %cst_113 : f32 to vector<2x128xf32>
    %180 = arith.addf %179, %178 : vector<2x128xf32>
    %181 = arith.divf %179, %180 : vector<2x128xf32>
    %182 = vector.extract_strided_slice %169 {offsets = [0, 256], sizes = [2, 128], strides = [1, 1]} : vector<2x512xf32> to vector<2x128xf32>
    %183 = math.tanh %182 : vector<2x128xf32>
    %184 = vector.extract_strided_slice %169 {offsets = [0, 384], sizes = [2, 128], strides = [1, 1]} : vector<2x512xf32> to vector<2x128xf32>
    %185 = arith.negf %184 : vector<2x128xf32>
    %186 = math.exp %185 : vector<2x128xf32>
    %cst_114 = arith.constant 1.000000e+00 : f32
    %187 = vector.broadcast %cst_114 : f32 to vector<2x128xf32>
    %188 = arith.addf %187, %186 : vector<2x128xf32>
    %189 = arith.divf %187, %188 : vector<2x128xf32>
    %c0_115 = arith.constant 0 : index
    %c0_116 = arith.constant 0 : index
    %190 = vector.load %arg14[%c0_115, %c0_116] : memref<2x128xf32, #tpu.memory_space<vmem>>, vector<2x128xf32>
    %191 = arith.mulf %181, %190 : vector<2x128xf32>
    %192 = arith.mulf %175, %183 : vector<2x128xf32>
    %193 = arith.addf %191, %192 : vector<2x128xf32>
    %194 = math.tanh %193 : vector<2x128xf32>
    %195 = arith.mulf %189, %194 : vector<2x128xf32>
    %196 = vector.broadcast %c1_i32_103 : i32 to vector<2x1xi32>
    %197 = arith.cmpi sgt, %0, %196 : vector<2x1xi32>
    %c0_117 = arith.constant 0 : index
    %c0_118 = arith.constant 0 : index
    %198 = vector.load %arg14[%c0_117, %c0_118] : memref<2x128xf32, #tpu.memory_space<vmem>>, vector<2x128xf32>
    %199 = vector.shape_cast %197 : vector<2x1xi1> to vector<2x1xi1>
    %200 = vector.broadcast %199 : vector<2x1xi1> to vector<2x128xi1>
    %201 = arith.select %200, %193, %198 : vector<2x128xi1>, vector<2x128xf32>
    %c0_119 = arith.constant 0 : index
    %c0_120 = arith.constant 0 : index
    %202 = vector.load %arg14[%c0_119, %c0_120] : memref<2x128xf32, #tpu.memory_space<vmem>>, vector<2x128xf32>
    tpu.vector_store %arg14[%c0_119, %c0_120], %201 {strides = array<i32>} : memref<2x128xf32, #tpu.memory_space<vmem>>, vector<2x128xf32>,
    %c0_121 = arith.constant 0 : index
    %c0_122 = arith.constant 0 : index
    %203 = vector.load %arg12[%c0_121, %c0_122] : memref<2x128xf32, #tpu.memory_space<vmem>>, vector<2x128xf32>
    %204 = vector.shape_cast %197 : vector<2x1xi1> to vector<2x1xi1>
    %205 = vector.broadcast %204 : vector<2x1xi1> to vector<2x128xi1>
    %206 = arith.select %205, %195, %203 : vector<2x128xi1>, vector<2x128xf32>
    %c0_123 = arith.constant 0 : index
    %c0_124 = arith.constant 0 : index
    %207 = vector.load %arg12[%c0_123, %c0_124] : memref<2x128xf32, #tpu.memory_space<vmem>>, vector<2x128xf32>
    tpu.vector_store %arg12[%c0_123, %c0_124], %206 {strides = array<i32>} : memref<2x128xf32, #tpu.memory_space<vmem>>, vector<2x128xf32>,
    %208 = arith.truncf %206 : vector<2x128xf32> to vector<2x128xbf16>
    %c0_125 = arith.constant 0 : index
    %c0_126 = arith.constant 0 : index
    %209 = vector.load %arg13[%c0_125, %c0_126] : memref<2x128xbf16, #tpu.memory_space<vmem>>, vector<2x128xbf16>
    tpu.vector_store %arg13[%c0_125, %c0_126], %208 {strides = array<i32>} : memref<2x128xbf16, #tpu.memory_space<vmem>>, vector<2x128xbf16>,
    %cst_127 = arith.constant 0.000000e+00 : f32
    %210 = vector.shape_cast %197 : vector<2x1xi1> to vector<2x1xi1>
    %211 = vector.broadcast %210 : vector<2x1xi1> to vector<2x128xi1>
    %212 = vector.broadcast %cst_127 : f32 to vector<2x128xf32>
    %213 = arith.select %211, %195, %212 : vector<2x128xi1>, vector<2x128xf32>
    %214 = arith.truncf %213 : vector<2x128xf32> to vector<2x128xbf16>
    %215 = arith.index_cast %c1_i32_103 : i32 to index
    %c0_128 = arith.constant 0 : index
    %c0_129 = arith.constant 0 : index
    %216 = vector.load %arg10[%215, %c0_128, %c0_129] : memref<8x2x128xbf16, #tpu.memory_space<vmem>>, vector<1x2x128xbf16>
    %217 = vector.shape_cast %216 : vector<1x2x128xbf16> to vector<2x128xbf16>
    %218 = vector.shape_cast %214 : vector<2x128xbf16> to vector<1x2x128xbf16>
    tpu.vector_store %arg10[%215, %c0_128, %c0_129], %218 {strides = array<i32>} : memref<8x2x128xbf16, #tpu.memory_space<vmem>>, vector<1x2x128xbf16>,
    %c2_i32_130 = arith.constant 2 : i32
    %219 = arith.index_cast %c2_i32_130 : i32 to index
    %c0_131 = arith.constant 0 : index
    %c0_132 = arith.constant 0 : index
    %220 = vector.load %arg11[%219, %c0_131, %c0_132] : memref<8x2x512xf32, #tpu.memory_space<vmem>>, vector<1x2x512xf32>
    %221 = vector.shape_cast %220 : vector<1x2x512xf32> to vector<2x512xf32>
    %c0_133 = arith.constant 0 : index
    %c0_134 = arith.constant 0 : index
    %222 = vector.load %arg13[%c0_133, %c0_134] : memref<2x128xbf16, #tpu.memory_space<vmem>>, vector<2x128xbf16>
    %c0_135 = arith.constant 0 : index
    %c0_136 = arith.constant 0 : index
    %c0_137 = arith.constant 0 : index
    %223 = vector.load %arg3[%c0_135, %c0_136, %c0_137] : memref<2x128x512xbf16, #tpu.memory_space<vmem>>, vector<1x128x512xbf16>
    %224 = vector.shape_cast %223 : vector<1x128x512xbf16> to vector<128x512xbf16>
    %cst_138 = arith.constant dense<0.000000e+00> : vector<2x512xf32>
    %225 = tpu.matmul %222, %224, %cst_138 {dimension_numbers = #tpu.dot_dimension_numbers<[1], [0], [0], [1], [0, 0, 1, 1], [], []>} : vector<2x128xbf16>, vector<128x512xbf16>, vector<2x512xf32> -> vector<2x512xf32>
    %226 = arith.addf %221, %225 : vector<2x512xf32>
    %227 = vector.extract_strided_slice %226 {offsets = [0, 0], sizes = [2, 128], strides = [1, 1]} : vector<2x512xf32> to vector<2x128xf32>
    %228 = arith.negf %227 : vector<2x128xf32>
    %229 = math.exp %228 : vector<2x128xf32>
    %cst_139 = arith.constant 1.000000e+00 : f32
    %230 = vector.broadcast %cst_139 : f32 to vector<2x128xf32>
    %231 = arith.addf %230, %229 : vector<2x128xf32>
    %232 = arith.divf %230, %231 : vector<2x128xf32>
    %233 = vector.extract_strided_slice %226 {offsets = [0, 128], sizes = [2, 128], strides = [1, 1]} : vector<2x512xf32> to vector<2x128xf32>
    %234 = arith.negf %233 : vector<2x128xf32>
    %235 = math.exp %234 : vector<2x128xf32>
    %cst_140 = arith.constant 1.000000e+00 : f32
    %236 = vector.broadcast %cst_140 : f32 to vector<2x128xf32>
    %237 = arith.addf %236, %235 : vector<2x128xf32>
    %238 = arith.divf %236, %237 : vector<2x128xf32>
    %239 = vector.extract_strided_slice %226 {offsets = [0, 256], sizes = [2, 128], strides = [1, 1]} : vector<2x512xf32> to vector<2x128xf32>
    %240 = math.tanh %239 : vector<2x128xf32>
    %241 = vector.extract_strided_slice %226 {offsets = [0, 384], sizes = [2, 128], strides = [1, 1]} : vector<2x512xf32> to vector<2x128xf32>
    %242 = arith.negf %241 : vector<2x128xf32>
    %243 = math.exp %242 : vector<2x128xf32>
    %cst_141 = arith.constant 1.000000e+00 : f32
    %244 = vector.broadcast %cst_141 : f32 to vector<2x128xf32>
    %245 = arith.addf %244, %243 : vector<2x128xf32>
    %246 = arith.divf %244, %245 : vector<2x128xf32>
    %c0_142 = arith.constant 0 : index
    %c0_143 = arith.constant 0 : index
    %247 = vector.load %arg14[%c0_142, %c0_143] : memref<2x128xf32, #tpu.memory_space<vmem>>, vector<2x128xf32>
    %248 = arith.mulf %238, %247 : vector<2x128xf32>
    %249 = arith.mulf %232, %240 : vector<2x128xf32>
    %250 = arith.addf %248, %249 : vector<2x128xf32>
    %251 = math.tanh %250 : vector<2x128xf32>
    %252 = arith.mulf %246, %251 : vector<2x128xf32>
    %253 = vector.broadcast %c2_i32_130 : i32 to vector<2x1xi32>
    %254 = arith.cmpi sgt, %0, %253 : vector<2x1xi32>
    %c0_144 = arith.constant 0 : index
    %c0_145 = arith.constant 0 : index
    %255 = vector.load %arg14[%c0_144, %c0_145] : memref<2x128xf32, #tpu.memory_space<vmem>>, vector<2x128xf32>
    %256 = vector.shape_cast %254 : vector<2x1xi1> to vector<2x1xi1>
    %257 = vector.broadcast %256 : vector<2x1xi1> to vector<2x128xi1>
    %258 = arith.select %257, %250, %255 : vector<2x128xi1>, vector<2x128xf32>
    %c0_146 = arith.constant 0 : index
    %c0_147 = arith.constant 0 : index
    %259 = vector.load %arg14[%c0_146, %c0_147] : memref<2x128xf32, #tpu.memory_space<vmem>>, vector<2x128xf32>
    tpu.vector_store %arg14[%c0_146, %c0_147], %258 {strides = array<i32>} : memref<2x128xf32, #tpu.memory_space<vmem>>, vector<2x128xf32>,
    %c0_148 = arith.constant 0 : index
    %c0_149 = arith.constant 0 : index
    %260 = vector.load %arg12[%c0_148, %c0_149] : memref<2x128xf32, #tpu.memory_space<vmem>>, vector<2x128xf32>
    %261 = vector.shape_cast %254 : vector<2x1xi1> to vector<2x1xi1>
    %262 = vector.broadcast %261 : vector<2x1xi1> to vector<2x128xi1>
    %263 = arith.select %262, %252, %260 : vector<2x128xi1>, vector<2x128xf32>
    %c0_150 = arith.constant 0 : index
    %c0_151 = arith.constant 0 : index
    %264 = vector.load %arg12[%c0_150, %c0_151] : memref<2x128xf32, #tpu.memory_space<vmem>>, vector<2x128xf32>
    tpu.vector_store %arg12[%c0_150, %c0_151], %263 {strides = array<i32>} : memref<2x128xf32, #tpu.memory_space<vmem>>, vector<2x128xf32>,
    %265 = arith.truncf %263 : vector<2x128xf32> to vector<2x128xbf16>
    %c0_152 = arith.constant 0 : index
    %c0_153 = arith.constant 0 : index
    %266 = vector.load %arg13[%c0_152, %c0_153] : memref<2x128xbf16, #tpu.memory_space<vmem>>, vector<2x128xbf16>
    tpu.vector_store %arg13[%c0_152, %c0_153], %265 {strides = array<i32>} : memref<2x128xbf16, #tpu.memory_space<vmem>>, vector<2x128xbf16>,
    %cst_154 = arith.constant 0.000000e+00 : f32
    %267 = vector.shape_cast %254 : vector<2x1xi1> to vector<2x1xi1>
    %268 = vector.broadcast %267 : vector<2x1xi1> to vector<2x128xi1>
    %269 = vector.broadcast %cst_154 : f32 to vector<2x128xf32>
    %270 = arith.select %268, %252, %269 : vector<2x128xi1>, vector<2x128xf32>
    %271 = arith.truncf %270 : vector<2x128xf32> to vector<2x128xbf16>
    %272 = arith.index_cast %c2_i32_130 : i32 to index
    %c0_155 = arith.constant 0 : index
    %c0_156 = arith.constant 0 : index
    %273 = vector.load %arg10[%272, %c0_155, %c0_156] : memref<8x2x128xbf16, #tpu.memory_space<vmem>>, vector<1x2x128xbf16>
    %274 = vector.shape_cast %273 : vector<1x2x128xbf16> to vector<2x128xbf16>
    %275 = vector.shape_cast %271 : vector<2x128xbf16> to vector<1x2x128xbf16>
    tpu.vector_store %arg10[%272, %c0_155, %c0_156], %275 {strides = array<i32>} : memref<8x2x128xbf16, #tpu.memory_space<vmem>>, vector<1x2x128xbf16>,
    %c3_i32_157 = arith.constant 3 : i32
    %276 = arith.index_cast %c3_i32_157 : i32 to index
    %c0_158 = arith.constant 0 : index
    %c0_159 = arith.constant 0 : index
    %277 = vector.load %arg11[%276, %c0_158, %c0_159] : memref<8x2x512xf32, #tpu.memory_space<vmem>>, vector<1x2x512xf32>
    %278 = vector.shape_cast %277 : vector<1x2x512xf32> to vector<2x512xf32>
    %c0_160 = arith.constant 0 : index
    %c0_161 = arith.constant 0 : index
    %279 = vector.load %arg13[%c0_160, %c0_161] : memref<2x128xbf16, #tpu.memory_space<vmem>>, vector<2x128xbf16>
    %c0_162 = arith.constant 0 : index
    %c0_163 = arith.constant 0 : index
    %c0_164 = arith.constant 0 : index
    %280 = vector.load %arg3[%c0_162, %c0_163, %c0_164] : memref<2x128x512xbf16, #tpu.memory_space<vmem>>, vector<1x128x512xbf16>
    %281 = vector.shape_cast %280 : vector<1x128x512xbf16> to vector<128x512xbf16>
    %cst_165 = arith.constant dense<0.000000e+00> : vector<2x512xf32>
    %282 = tpu.matmul %279, %281, %cst_165 {dimension_numbers = #tpu.dot_dimension_numbers<[1], [0], [0], [1], [0, 0, 1, 1], [], []>} : vector<2x128xbf16>, vector<128x512xbf16>, vector<2x512xf32> -> vector<2x512xf32>
    %283 = arith.addf %278, %282 : vector<2x512xf32>
    %284 = vector.extract_strided_slice %283 {offsets = [0, 0], sizes = [2, 128], strides = [1, 1]} : vector<2x512xf32> to vector<2x128xf32>
    %285 = arith.negf %284 : vector<2x128xf32>
    %286 = math.exp %285 : vector<2x128xf32>
    %cst_166 = arith.constant 1.000000e+00 : f32
    %287 = vector.broadcast %cst_166 : f32 to vector<2x128xf32>
    %288 = arith.addf %287, %286 : vector<2x128xf32>
    %289 = arith.divf %287, %288 : vector<2x128xf32>
    %290 = vector.extract_strided_slice %283 {offsets = [0, 128], sizes = [2, 128], strides = [1, 1]} : vector<2x512xf32> to vector<2x128xf32>
    %291 = arith.negf %290 : vector<2x128xf32>
    %292 = math.exp %291 : vector<2x128xf32>
    %cst_167 = arith.constant 1.000000e+00 : f32
    %293 = vector.broadcast %cst_167 : f32 to vector<2x128xf32>
    %294 = arith.addf %293, %292 : vector<2x128xf32>
    %295 = arith.divf %293, %294 : vector<2x128xf32>
    %296 = vector.extract_strided_slice %283 {offsets = [0, 256], sizes = [2, 128], strides = [1, 1]} : vector<2x512xf32> to vector<2x128xf32>
    %297 = math.tanh %296 : vector<2x128xf32>
    %298 = vector.extract_strided_slice %283 {offsets = [0, 384], sizes = [2, 128], strides = [1, 1]} : vector<2x512xf32> to vector<2x128xf32>
    %299 = arith.negf %298 : vector<2x128xf32>
    %300 = math.exp %299 : vector<2x128xf32>
    %cst_168 = arith.constant 1.000000e+00 : f32
    %301 = vector.broadcast %cst_168 : f32 to vector<2x128xf32>
    %302 = arith.addf %301, %300 : vector<2x128xf32>
    %303 = arith.divf %301, %302 : vector<2x128xf32>
    %c0_169 = arith.constant 0 : index
    %c0_170 = arith.constant 0 : index
    %304 = vector.load %arg14[%c0_169, %c0_170] : memref<2x128xf32, #tpu.memory_space<vmem>>, vector<2x128xf32>
    %305 = arith.mulf %295, %304 : vector<2x128xf32>
    %306 = arith.mulf %289, %297 : vector<2x128xf32>
    %307 = arith.addf %305, %306 : vector<2x128xf32>
    %308 = math.tanh %307 : vector<2x128xf32>
    %309 = arith.mulf %303, %308 : vector<2x128xf32>
    %310 = vector.broadcast %c3_i32_157 : i32 to vector<2x1xi32>
    %311 = arith.cmpi sgt, %0, %310 : vector<2x1xi32>
    %c0_171 = arith.constant 0 : index
    %c0_172 = arith.constant 0 : index
    %312 = vector.load %arg14[%c0_171, %c0_172] : memref<2x128xf32, #tpu.memory_space<vmem>>, vector<2x128xf32>
    %313 = vector.shape_cast %311 : vector<2x1xi1> to vector<2x1xi1>
    %314 = vector.broadcast %313 : vector<2x1xi1> to vector<2x128xi1>
    %315 = arith.select %314, %307, %312 : vector<2x128xi1>, vector<2x128xf32>
    %c0_173 = arith.constant 0 : index
    %c0_174 = arith.constant 0 : index
    %316 = vector.load %arg14[%c0_173, %c0_174] : memref<2x128xf32, #tpu.memory_space<vmem>>, vector<2x128xf32>
    tpu.vector_store %arg14[%c0_173, %c0_174], %315 {strides = array<i32>} : memref<2x128xf32, #tpu.memory_space<vmem>>, vector<2x128xf32>,
    %c0_175 = arith.constant 0 : index
    %c0_176 = arith.constant 0 : index
    %317 = vector.load %arg12[%c0_175, %c0_176] : memref<2x128xf32, #tpu.memory_space<vmem>>, vector<2x128xf32>
    %318 = vector.shape_cast %311 : vector<2x1xi1> to vector<2x1xi1>
    %319 = vector.broadcast %318 : vector<2x1xi1> to vector<2x128xi1>
    %320 = arith.select %319, %309, %317 : vector<2x128xi1>, vector<2x128xf32>
    %c0_177 = arith.constant 0 : index
    %c0_178 = arith.constant 0 : index
    %321 = vector.load %arg12[%c0_177, %c0_178] : memref<2x128xf32, #tpu.memory_space<vmem>>, vector<2x128xf32>
    tpu.vector_store %arg12[%c0_177, %c0_178], %320 {strides = array<i32>} : memref<2x128xf32, #tpu.memory_space<vmem>>, vector<2x128xf32>,
    %322 = arith.truncf %320 : vector<2x128xf32> to vector<2x128xbf16>
    %c0_179 = arith.constant 0 : index
    %c0_180 = arith.constant 0 : index
    %323 = vector.load %arg13[%c0_179, %c0_180] : memref<2x128xbf16, #tpu.memory_space<vmem>>, vector<2x128xbf16>
    tpu.vector_store %arg13[%c0_179, %c0_180], %322 {strides = array<i32>} : memref<2x128xbf16, #tpu.memory_space<vmem>>, vector<2x128xbf16>,
    %cst_181 = arith.constant 0.000000e+00 : f32
    %324 = vector.shape_cast %311 : vector<2x1xi1> to vector<2x1xi1>
    %325 = vector.broadcast %324 : vector<2x1xi1> to vector<2x128xi1>
    %326 = vector.broadcast %cst_181 : f32 to vector<2x128xf32>
    %327 = arith.select %325, %309, %326 : vector<2x128xi1>, vector<2x128xf32>
    %328 = arith.truncf %327 : vector<2x128xf32> to vector<2x128xbf16>
    %329 = arith.index_cast %c3_i32_157 : i32 to index
    %c0_182 = arith.constant 0 : index
    %c0_183 = arith.constant 0 : index
    %330 = vector.load %arg10[%329, %c0_182, %c0_183] : memref<8x2x128xbf16, #tpu.memory_space<vmem>>, vector<1x2x128xbf16>
    %331 = vector.shape_cast %330 : vector<1x2x128xbf16> to vector<2x128xbf16>
    %332 = vector.shape_cast %328 : vector<2x128xbf16> to vector<1x2x128xbf16>
    tpu.vector_store %arg10[%329, %c0_182, %c0_183], %332 {strides = array<i32>} : memref<8x2x128xbf16, #tpu.memory_space<vmem>>, vector<1x2x128xbf16>,
    %c4_i32_184 = arith.constant 4 : i32
    %333 = arith.index_cast %c4_i32_184 : i32 to index
    %c0_185 = arith.constant 0 : index
    %c0_186 = arith.constant 0 : index
    %334 = vector.load %arg11[%333, %c0_185, %c0_186] : memref<8x2x512xf32, #tpu.memory_space<vmem>>, vector<1x2x512xf32>
    %335 = vector.shape_cast %334 : vector<1x2x512xf32> to vector<2x512xf32>
    %c0_187 = arith.constant 0 : index
    %c0_188 = arith.constant 0 : index
    %336 = vector.load %arg13[%c0_187, %c0_188] : memref<2x128xbf16, #tpu.memory_space<vmem>>, vector<2x128xbf16>
    %c0_189 = arith.constant 0 : index
    %c0_190 = arith.constant 0 : index
    %c0_191 = arith.constant 0 : index
    %337 = vector.load %arg3[%c0_189, %c0_190, %c0_191] : memref<2x128x512xbf16, #tpu.memory_space<vmem>>, vector<1x128x512xbf16>
    %338 = vector.shape_cast %337 : vector<1x128x512xbf16> to vector<128x512xbf16>
    %cst_192 = arith.constant dense<0.000000e+00> : vector<2x512xf32>
    %339 = tpu.matmul %336, %338, %cst_192 {dimension_numbers = #tpu.dot_dimension_numbers<[1], [0], [0], [1], [0, 0, 1, 1], [], []>} : vector<2x128xbf16>, vector<128x512xbf16>, vector<2x512xf32> -> vector<2x512xf32>
    %340 = arith.addf %335, %339 : vector<2x512xf32>
    %341 = vector.extract_strided_slice %340 {offsets = [0, 0], sizes = [2, 128], strides = [1, 1]} : vector<2x512xf32> to vector<2x128xf32>
    %342 = arith.negf %341 : vector<2x128xf32>
    %343 = math.exp %342 : vector<2x128xf32>
    %cst_193 = arith.constant 1.000000e+00 : f32
    %344 = vector.broadcast %cst_193 : f32 to vector<2x128xf32>
    %345 = arith.addf %344, %343 : vector<2x128xf32>
    %346 = arith.divf %344, %345 : vector<2x128xf32>
    %347 = vector.extract_strided_slice %340 {offsets = [0, 128], sizes = [2, 128], strides = [1, 1]} : vector<2x512xf32> to vector<2x128xf32>
    %348 = arith.negf %347 : vector<2x128xf32>
    %349 = math.exp %348 : vector<2x128xf32>
    %cst_194 = arith.constant 1.000000e+00 : f32
    %350 = vector.broadcast %cst_194 : f32 to vector<2x128xf32>
    %351 = arith.addf %350, %349 : vector<2x128xf32>
    %352 = arith.divf %350, %351 : vector<2x128xf32>
    %353 = vector.extract_strided_slice %340 {offsets = [0, 256], sizes = [2, 128], strides = [1, 1]} : vector<2x512xf32> to vector<2x128xf32>
    %354 = math.tanh %353 : vector<2x128xf32>
    %355 = vector.extract_strided_slice %340 {offsets = [0, 384], sizes = [2, 128], strides = [1, 1]} : vector<2x512xf32> to vector<2x128xf32>
    %356 = arith.negf %355 : vector<2x128xf32>
    %357 = math.exp %356 : vector<2x128xf32>
    %cst_195 = arith.constant 1.000000e+00 : f32
    %358 = vector.broadcast %cst_195 : f32 to vector<2x128xf32>
    %359 = arith.addf %358, %357 : vector<2x128xf32>
    %360 = arith.divf %358, %359 : vector<2x128xf32>
    %c0_196 = arith.constant 0 : index
    %c0_197 = arith.constant 0 : index
    %361 = vector.load %arg14[%c0_196, %c0_197] : memref<2x128xf32, #tpu.memory_space<vmem>>, vector<2x128xf32>
    %362 = arith.mulf %352, %361 : vector<2x128xf32>
    %363 = arith.mulf %346, %354 : vector<2x128xf32>
    %364 = arith.addf %362, %363 : vector<2x128xf32>
    %365 = math.tanh %364 : vector<2x128xf32>
    %366 = arith.mulf %360, %365 : vector<2x128xf32>
    %367 = vector.broadcast %c4_i32_184 : i32 to vector<2x1xi32>
    %368 = arith.cmpi sgt, %0, %367 : vector<2x1xi32>
    %c0_198 = arith.constant 0 : index
    %c0_199 = arith.constant 0 : index
    %369 = vector.load %arg14[%c0_198, %c0_199] : memref<2x128xf32, #tpu.memory_space<vmem>>, vector<2x128xf32>
    %370 = vector.shape_cast %368 : vector<2x1xi1> to vector<2x1xi1>
    %371 = vector.broadcast %370 : vector<2x1xi1> to vector<2x128xi1>
    %372 = arith.select %371, %364, %369 : vector<2x128xi1>, vector<2x128xf32>
    %c0_200 = arith.constant 0 : index
    %c0_201 = arith.constant 0 : index
    %373 = vector.load %arg14[%c0_200, %c0_201] : memref<2x128xf32, #tpu.memory_space<vmem>>, vector<2x128xf32>
    tpu.vector_store %arg14[%c0_200, %c0_201], %372 {strides = array<i32>} : memref<2x128xf32, #tpu.memory_space<vmem>>, vector<2x128xf32>,
    %c0_202 = arith.constant 0 : index
    %c0_203 = arith.constant 0 : index
    %374 = vector.load %arg12[%c0_202, %c0_203] : memref<2x128xf32, #tpu.memory_space<vmem>>, vector<2x128xf32>
    %375 = vector.shape_cast %368 : vector<2x1xi1> to vector<2x1xi1>
    %376 = vector.broadcast %375 : vector<2x1xi1> to vector<2x128xi1>
    %377 = arith.select %376, %366, %374 : vector<2x128xi1>, vector<2x128xf32>
    %c0_204 = arith.constant 0 : index
    %c0_205 = arith.constant 0 : index
    %378 = vector.load %arg12[%c0_204, %c0_205] : memref<2x128xf32, #tpu.memory_space<vmem>>, vector<2x128xf32>
    tpu.vector_store %arg12[%c0_204, %c0_205], %377 {strides = array<i32>} : memref<2x128xf32, #tpu.memory_space<vmem>>, vector<2x128xf32>,
    %379 = arith.truncf %377 : vector<2x128xf32> to vector<2x128xbf16>
    %c0_206 = arith.constant 0 : index
    %c0_207 = arith.constant 0 : index
    %380 = vector.load %arg13[%c0_206, %c0_207] : memref<2x128xbf16, #tpu.memory_space<vmem>>, vector<2x128xbf16>
    tpu.vector_store %arg13[%c0_206, %c0_207], %379 {strides = array<i32>} : memref<2x128xbf16, #tpu.memory_space<vmem>>, vector<2x128xbf16>,
    %cst_208 = arith.constant 0.000000e+00 : f32
    %381 = vector.shape_cast %368 : vector<2x1xi1> to vector<2x1xi1>
    %382 = vector.broadcast %381 : vector<2x1xi1> to vector<2x128xi1>
    %383 = vector.broadcast %cst_208 : f32 to vector<2x128xf32>
    %384 = arith.select %382, %366, %383 : vector<2x128xi1>, vector<2x128xf32>
    %385 = arith.truncf %384 : vector<2x128xf32> to vector<2x128xbf16>
    %386 = arith.index_cast %c4_i32_184 : i32 to index
    %c0_209 = arith.constant 0 : index
    %c0_210 = arith.constant 0 : index
    %387 = vector.load %arg10[%386, %c0_209, %c0_210] : memref<8x2x128xbf16, #tpu.memory_space<vmem>>, vector<1x2x128xbf16>
    %388 = vector.shape_cast %387 : vector<1x2x128xbf16> to vector<2x128xbf16>
    %389 = vector.shape_cast %385 : vector<2x128xbf16> to vector<1x2x128xbf16>
    tpu.vector_store %arg10[%386, %c0_209, %c0_210], %389 {strides = array<i32>} : memref<8x2x128xbf16, #tpu.memory_space<vmem>>, vector<1x2x128xbf16>,
    %c5_i32_211 = arith.constant 5 : i32
    %390 = arith.index_cast %c5_i32_211 : i32 to index
    %c0_212 = arith.constant 0 : index
    %c0_213 = arith.constant 0 : index
    %391 = vector.load %arg11[%390, %c0_212, %c0_213] : memref<8x2x512xf32, #tpu.memory_space<vmem>>, vector<1x2x512xf32>
    %392 = vector.shape_cast %391 : vector<1x2x512xf32> to vector<2x512xf32>
    %c0_214 = arith.constant 0 : index
    %c0_215 = arith.constant 0 : index
    %393 = vector.load %arg13[%c0_214, %c0_215] : memref<2x128xbf16, #tpu.memory_space<vmem>>, vector<2x128xbf16>
    %c0_216 = arith.constant 0 : index
    %c0_217 = arith.constant 0 : index
    %c0_218 = arith.constant 0 : index
    %394 = vector.load %arg3[%c0_216, %c0_217, %c0_218] : memref<2x128x512xbf16, #tpu.memory_space<vmem>>, vector<1x128x512xbf16>
    %395 = vector.shape_cast %394 : vector<1x128x512xbf16> to vector<128x512xbf16>
    %cst_219 = arith.constant dense<0.000000e+00> : vector<2x512xf32>
    %396 = tpu.matmul %393, %395, %cst_219 {dimension_numbers = #tpu.dot_dimension_numbers<[1], [0], [0], [1], [0, 0, 1, 1], [], []>} : vector<2x128xbf16>, vector<128x512xbf16>, vector<2x512xf32> -> vector<2x512xf32>
    %397 = arith.addf %392, %396 : vector<2x512xf32>
    %398 = vector.extract_strided_slice %397 {offsets = [0, 0], sizes = [2, 128], strides = [1, 1]} : vector<2x512xf32> to vector<2x128xf32>
    %399 = arith.negf %398 : vector<2x128xf32>
    %400 = math.exp %399 : vector<2x128xf32>
    %cst_220 = arith.constant 1.000000e+00 : f32
    %401 = vector.broadcast %cst_220 : f32 to vector<2x128xf32>
    %402 = arith.addf %401, %400 : vector<2x128xf32>
    %403 = arith.divf %401, %402 : vector<2x128xf32>
    %404 = vector.extract_strided_slice %397 {offsets = [0, 128], sizes = [2, 128], strides = [1, 1]} : vector<2x512xf32> to vector<2x128xf32>
    %405 = arith.negf %404 : vector<2x128xf32>
    %406 = math.exp %405 : vector<2x128xf32>
    %cst_221 = arith.constant 1.000000e+00 : f32
    %407 = vector.broadcast %cst_221 : f32 to vector<2x128xf32>
    %408 = arith.addf %407, %406 : vector<2x128xf32>
    %409 = arith.divf %407, %408 : vector<2x128xf32>
    %410 = vector.extract_strided_slice %397 {offsets = [0, 256], sizes = [2, 128], strides = [1, 1]} : vector<2x512xf32> to vector<2x128xf32>
    %411 = math.tanh %410 : vector<2x128xf32>
    %412 = vector.extract_strided_slice %397 {offsets = [0, 384], sizes = [2, 128], strides = [1, 1]} : vector<2x512xf32> to vector<2x128xf32>
    %413 = arith.negf %412 : vector<2x128xf32>
    %414 = math.exp %413 : vector<2x128xf32>
    %cst_222 = arith.constant 1.000000e+00 : f32
    %415 = vector.broadcast %cst_222 : f32 to vector<2x128xf32>
    %416 = arith.addf %415, %414 : vector<2x128xf32>
    %417 = arith.divf %415, %416 : vector<2x128xf32>
    %c0_223 = arith.constant 0 : index
    %c0_224 = arith.constant 0 : index
    %418 = vector.load %arg14[%c0_223, %c0_224] : memref<2x128xf32, #tpu.memory_space<vmem>>, vector<2x128xf32>
    %419 = arith.mulf %409, %418 : vector<2x128xf32>
    %420 = arith.mulf %403, %411 : vector<2x128xf32>
    %421 = arith.addf %419, %420 : vector<2x128xf32>
    %422 = math.tanh %421 : vector<2x128xf32>
    %423 = arith.mulf %417, %422 : vector<2x128xf32>
    %424 = vector.broadcast %c5_i32_211 : i32 to vector<2x1xi32>
    %425 = arith.cmpi sgt, %0, %424 : vector<2x1xi32>
    %c0_225 = arith.constant 0 : index
    %c0_226 = arith.constant 0 : index
    %426 = vector.load %arg14[%c0_225, %c0_226] : memref<2x128xf32, #tpu.memory_space<vmem>>, vector<2x128xf32>
    %427 = vector.shape_cast %425 : vector<2x1xi1> to vector<2x1xi1>
    %428 = vector.broadcast %427 : vector<2x1xi1> to vector<2x128xi1>
    %429 = arith.select %428, %421, %426 : vector<2x128xi1>, vector<2x128xf32>
    %c0_227 = arith.constant 0 : index
    %c0_228 = arith.constant 0 : index
    %430 = vector.load %arg14[%c0_227, %c0_228] : memref<2x128xf32, #tpu.memory_space<vmem>>, vector<2x128xf32>
    tpu.vector_store %arg14[%c0_227, %c0_228], %429 {strides = array<i32>} : memref<2x128xf32, #tpu.memory_space<vmem>>, vector<2x128xf32>,
    %c0_229 = arith.constant 0 : index
    %c0_230 = arith.constant 0 : index
    %431 = vector.load %arg12[%c0_229, %c0_230] : memref<2x128xf32, #tpu.memory_space<vmem>>, vector<2x128xf32>
    %432 = vector.shape_cast %425 : vector<2x1xi1> to vector<2x1xi1>
    %433 = vector.broadcast %432 : vector<2x1xi1> to vector<2x128xi1>
    %434 = arith.select %433, %423, %431 : vector<2x128xi1>, vector<2x128xf32>
    %c0_231 = arith.constant 0 : index
    %c0_232 = arith.constant 0 : index
    %435 = vector.load %arg12[%c0_231, %c0_232] : memref<2x128xf32, #tpu.memory_space<vmem>>, vector<2x128xf32>
    tpu.vector_store %arg12[%c0_231, %c0_232], %434 {strides = array<i32>} : memref<2x128xf32, #tpu.memory_space<vmem>>, vector<2x128xf32>,
    %436 = arith.truncf %434 : vector<2x128xf32> to vector<2x128xbf16>
    %c0_233 = arith.constant 0 : index
    %c0_234 = arith.constant 0 : index
    %437 = vector.load %arg13[%c0_233, %c0_234] : memref<2x128xbf16, #tpu.memory_space<vmem>>, vector<2x128xbf16>
    tpu.vector_store %arg13[%c0_233, %c0_234], %436 {strides = array<i32>} : memref<2x128xbf16, #tpu.memory_space<vmem>>, vector<2x128xbf16>,
    %cst_235 = arith.constant 0.000000e+00 : f32
    %438 = vector.shape_cast %425 : vector<2x1xi1> to vector<2x1xi1>
    %439 = vector.broadcast %438 : vector<2x1xi1> to vector<2x128xi1>
    %440 = vector.broadcast %cst_235 : f32 to vector<2x128xf32>
    %441 = arith.select %439, %423, %440 : vector<2x128xi1>, vector<2x128xf32>
    %442 = arith.truncf %441 : vector<2x128xf32> to vector<2x128xbf16>
    %443 = arith.index_cast %c5_i32_211 : i32 to index
    %c0_236 = arith.constant 0 : index
    %c0_237 = arith.constant 0 : index
    %444 = vector.load %arg10[%443, %c0_236, %c0_237] : memref<8x2x128xbf16, #tpu.memory_space<vmem>>, vector<1x2x128xbf16>
    %445 = vector.shape_cast %444 : vector<1x2x128xbf16> to vector<2x128xbf16>
    %446 = vector.shape_cast %442 : vector<2x128xbf16> to vector<1x2x128xbf16>
    tpu.vector_store %arg10[%443, %c0_236, %c0_237], %446 {strides = array<i32>} : memref<8x2x128xbf16, #tpu.memory_space<vmem>>, vector<1x2x128xbf16>,
    %c6_i32_238 = arith.constant 6 : i32
    %447 = arith.index_cast %c6_i32_238 : i32 to index
    %c0_239 = arith.constant 0 : index
    %c0_240 = arith.constant 0 : index
    %448 = vector.load %arg11[%447, %c0_239, %c0_240] : memref<8x2x512xf32, #tpu.memory_space<vmem>>, vector<1x2x512xf32>
    %449 = vector.shape_cast %448 : vector<1x2x512xf32> to vector<2x512xf32>
    %c0_241 = arith.constant 0 : index
    %c0_242 = arith.constant 0 : index
    %450 = vector.load %arg13[%c0_241, %c0_242] : memref<2x128xbf16, #tpu.memory_space<vmem>>, vector<2x128xbf16>
    %c0_243 = arith.constant 0 : index
    %c0_244 = arith.constant 0 : index
    %c0_245 = arith.constant 0 : index
    %451 = vector.load %arg3[%c0_243, %c0_244, %c0_245] : memref<2x128x512xbf16, #tpu.memory_space<vmem>>, vector<1x128x512xbf16>
    %452 = vector.shape_cast %451 : vector<1x128x512xbf16> to vector<128x512xbf16>
    %cst_246 = arith.constant dense<0.000000e+00> : vector<2x512xf32>
    %453 = tpu.matmul %450, %452, %cst_246 {dimension_numbers = #tpu.dot_dimension_numbers<[1], [0], [0], [1], [0, 0, 1, 1], [], []>} : vector<2x128xbf16>, vector<128x512xbf16>, vector<2x512xf32> -> vector<2x512xf32>
    %454 = arith.addf %449, %453 : vector<2x512xf32>
    %455 = vector.extract_strided_slice %454 {offsets = [0, 0], sizes = [2, 128], strides = [1, 1]} : vector<2x512xf32> to vector<2x128xf32>
    %456 = arith.negf %455 : vector<2x128xf32>
    %457 = math.exp %456 : vector<2x128xf32>
    %cst_247 = arith.constant 1.000000e+00 : f32
    %458 = vector.broadcast %cst_247 : f32 to vector<2x128xf32>
    %459 = arith.addf %458, %457 : vector<2x128xf32>
    %460 = arith.divf %458, %459 : vector<2x128xf32>
    %461 = vector.extract_strided_slice %454 {offsets = [0, 128], sizes = [2, 128], strides = [1, 1]} : vector<2x512xf32> to vector<2x128xf32>
    %462 = arith.negf %461 : vector<2x128xf32>
    %463 = math.exp %462 : vector<2x128xf32>
    %cst_248 = arith.constant 1.000000e+00 : f32
    %464 = vector.broadcast %cst_248 : f32 to vector<2x128xf32>
    %465 = arith.addf %464, %463 : vector<2x128xf32>
    %466 = arith.divf %464, %465 : vector<2x128xf32>
    %467 = vector.extract_strided_slice %454 {offsets = [0, 256], sizes = [2, 128], strides = [1, 1]} : vector<2x512xf32> to vector<2x128xf32>
    %468 = math.tanh %467 : vector<2x128xf32>
    %469 = vector.extract_strided_slice %454 {offsets = [0, 384], sizes = [2, 128], strides = [1, 1]} : vector<2x512xf32> to vector<2x128xf32>
    %470 = arith.negf %469 : vector<2x128xf32>
    %471 = math.exp %470 : vector<2x128xf32>
    %cst_249 = arith.constant 1.000000e+00 : f32
    %472 = vector.broadcast %cst_249 : f32 to vector<2x128xf32>
    %473 = arith.addf %472, %471 : vector<2x128xf32>
    %474 = arith.divf %472, %473 : vector<2x128xf32>
    %c0_250 = arith.constant 0 : index
    %c0_251 = arith.constant 0 : index
    %475 = vector.load %arg14[%c0_250, %c0_251] : memref<2x128xf32, #tpu.memory_space<vmem>>, vector<2x128xf32>
    %476 = arith.mulf %466, %475 : vector<2x128xf32>
    %477 = arith.mulf %460, %468 : vector<2x128xf32>
    %478 = arith.addf %476, %477 : vector<2x128xf32>
    %479 = math.tanh %478 : vector<2x128xf32>
    %480 = arith.mulf %474, %479 : vector<2x128xf32>
    %481 = vector.broadcast %c6_i32_238 : i32 to vector<2x1xi32>
    %482 = arith.cmpi sgt, %0, %481 : vector<2x1xi32>
    %c0_252 = arith.constant 0 : index
    %c0_253 = arith.constant 0 : index
    %483 = vector.load %arg14[%c0_252, %c0_253] : memref<2x128xf32, #tpu.memory_space<vmem>>, vector<2x128xf32>
    %484 = vector.shape_cast %482 : vector<2x1xi1> to vector<2x1xi1>
    %485 = vector.broadcast %484 : vector<2x1xi1> to vector<2x128xi1>
    %486 = arith.select %485, %478, %483 : vector<2x128xi1>, vector<2x128xf32>
    %c0_254 = arith.constant 0 : index
    %c0_255 = arith.constant 0 : index
    %487 = vector.load %arg14[%c0_254, %c0_255] : memref<2x128xf32, #tpu.memory_space<vmem>>, vector<2x128xf32>
    tpu.vector_store %arg14[%c0_254, %c0_255], %486 {strides = array<i32>} : memref<2x128xf32, #tpu.memory_space<vmem>>, vector<2x128xf32>,
    %c0_256 = arith.constant 0 : index
    %c0_257 = arith.constant 0 : index
    %488 = vector.load %arg12[%c0_256, %c0_257] : memref<2x128xf32, #tpu.memory_space<vmem>>, vector<2x128xf32>
    %489 = vector.shape_cast %482 : vector<2x1xi1> to vector<2x1xi1>
    %490 = vector.broadcast %489 : vector<2x1xi1> to vector<2x128xi1>
    %491 = arith.select %490, %480, %488 : vector<2x128xi1>, vector<2x128xf32>
    %c0_258 = arith.constant 0 : index
    %c0_259 = arith.constant 0 : index
    %492 = vector.load %arg12[%c0_258, %c0_259] : memref<2x128xf32, #tpu.memory_space<vmem>>, vector<2x128xf32>
    tpu.vector_store %arg12[%c0_258, %c0_259], %491 {strides = array<i32>} : memref<2x128xf32, #tpu.memory_space<vmem>>, vector<2x128xf32>,
    %493 = arith.truncf %491 : vector<2x128xf32> to vector<2x128xbf16>
    %c0_260 = arith.constant 0 : index
    %c0_261 = arith.constant 0 : index
    %494 = vector.load %arg13[%c0_260, %c0_261] : memref<2x128xbf16, #tpu.memory_space<vmem>>, vector<2x128xbf16>
    tpu.vector_store %arg13[%c0_260, %c0_261], %493 {strides = array<i32>} : memref<2x128xbf16, #tpu.memory_space<vmem>>, vector<2x128xbf16>,
    %cst_262 = arith.constant 0.000000e+00 : f32
    %495 = vector.shape_cast %482 : vector<2x1xi1> to vector<2x1xi1>
    %496 = vector.broadcast %495 : vector<2x1xi1> to vector<2x128xi1>
    %497 = vector.broadcast %cst_262 : f32 to vector<2x128xf32>
    %498 = arith.select %496, %480, %497 : vector<2x128xi1>, vector<2x128xf32>
    %499 = arith.truncf %498 : vector<2x128xf32> to vector<2x128xbf16>
    %500 = arith.index_cast %c6_i32_238 : i32 to index
    %c0_263 = arith.constant 0 : index
    %c0_264 = arith.constant 0 : index
    %501 = vector.load %arg10[%500, %c0_263, %c0_264] : memref<8x2x128xbf16, #tpu.memory_space<vmem>>, vector<1x2x128xbf16>
    %502 = vector.shape_cast %501 : vector<1x2x128xbf16> to vector<2x128xbf16>
    %503 = vector.shape_cast %499 : vector<2x128xbf16> to vector<1x2x128xbf16>
    tpu.vector_store %arg10[%500, %c0_263, %c0_264], %503 {strides = array<i32>} : memref<8x2x128xbf16, #tpu.memory_space<vmem>>, vector<1x2x128xbf16>,
    %c7_i32_265 = arith.constant 7 : i32
    %504 = arith.index_cast %c7_i32_265 : i32 to index
    %c0_266 = arith.constant 0 : index
    %c0_267 = arith.constant 0 : index
    %505 = vector.load %arg11[%504, %c0_266, %c0_267] : memref<8x2x512xf32, #tpu.memory_space<vmem>>, vector<1x2x512xf32>
    %506 = vector.shape_cast %505 : vector<1x2x512xf32> to vector<2x512xf32>
    %c0_268 = arith.constant 0 : index
    %c0_269 = arith.constant 0 : index
    %507 = vector.load %arg13[%c0_268, %c0_269] : memref<2x128xbf16, #tpu.memory_space<vmem>>, vector<2x128xbf16>
    %c0_270 = arith.constant 0 : index
    %c0_271 = arith.constant 0 : index
    %c0_272 = arith.constant 0 : index
    %508 = vector.load %arg3[%c0_270, %c0_271, %c0_272] : memref<2x128x512xbf16, #tpu.memory_space<vmem>>, vector<1x128x512xbf16>
    %509 = vector.shape_cast %508 : vector<1x128x512xbf16> to vector<128x512xbf16>
    %cst_273 = arith.constant dense<0.000000e+00> : vector<2x512xf32>
    %510 = tpu.matmul %507, %509, %cst_273 {dimension_numbers = #tpu.dot_dimension_numbers<[1], [0], [0], [1], [0, 0, 1, 1], [], []>} : vector<2x128xbf16>, vector<128x512xbf16>, vector<2x512xf32> -> vector<2x512xf32>
    %511 = arith.addf %506, %510 : vector<2x512xf32>
    %512 = vector.extract_strided_slice %511 {offsets = [0, 0], sizes = [2, 128], strides = [1, 1]} : vector<2x512xf32> to vector<2x128xf32>
    %513 = arith.negf %512 : vector<2x128xf32>
    %514 = math.exp %513 : vector<2x128xf32>
    %cst_274 = arith.constant 1.000000e+00 : f32
    %515 = vector.broadcast %cst_274 : f32 to vector<2x128xf32>
    %516 = arith.addf %515, %514 : vector<2x128xf32>
    %517 = arith.divf %515, %516 : vector<2x128xf32>
    %518 = vector.extract_strided_slice %511 {offsets = [0, 128], sizes = [2, 128], strides = [1, 1]} : vector<2x512xf32> to vector<2x128xf32>
    %519 = arith.negf %518 : vector<2x128xf32>
    %520 = math.exp %519 : vector<2x128xf32>
    %cst_275 = arith.constant 1.000000e+00 : f32
    %521 = vector.broadcast %cst_275 : f32 to vector<2x128xf32>
    %522 = arith.addf %521, %520 : vector<2x128xf32>
    %523 = arith.divf %521, %522 : vector<2x128xf32>
    %524 = vector.extract_strided_slice %511 {offsets = [0, 256], sizes = [2, 128], strides = [1, 1]} : vector<2x512xf32> to vector<2x128xf32>
    %525 = math.tanh %524 : vector<2x128xf32>
    %526 = vector.extract_strided_slice %511 {offsets = [0, 384], sizes = [2, 128], strides = [1, 1]} : vector<2x512xf32> to vector<2x128xf32>
    %527 = arith.negf %526 : vector<2x128xf32>
    %528 = math.exp %527 : vector<2x128xf32>
    %cst_276 = arith.constant 1.000000e+00 : f32
    %529 = vector.broadcast %cst_276 : f32 to vector<2x128xf32>
    %530 = arith.addf %529, %528 : vector<2x128xf32>
    %531 = arith.divf %529, %530 : vector<2x128xf32>
    %c0_277 = arith.constant 0 : index
    %c0_278 = arith.constant 0 : index
    %532 = vector.load %arg14[%c0_277, %c0_278] : memref<2x128xf32, #tpu.memory_space<vmem>>, vector<2x128xf32>
    %533 = arith.mulf %523, %532 : vector<2x128xf32>
    %534 = arith.mulf %517, %525 : vector<2x128xf32>
    %535 = arith.addf %533, %534 : vector<2x128xf32>
    %536 = math.tanh %535 : vector<2x128xf32>
    %537 = arith.mulf %531, %536 : vector<2x128xf32>
    %538 = vector.broadcast %c7_i32_265 : i32 to vector<2x1xi32>
    %539 = arith.cmpi sgt, %0, %538 : vector<2x1xi32>
    %c0_279 = arith.constant 0 : index
    %c0_280 = arith.constant 0 : index
    %540 = vector.load %arg14[%c0_279, %c0_280] : memref<2x128xf32, #tpu.memory_space<vmem>>, vector<2x128xf32>
    %541 = vector.shape_cast %539 : vector<2x1xi1> to vector<2x1xi1>
    %542 = vector.broadcast %541 : vector<2x1xi1> to vector<2x128xi1>
    %543 = arith.select %542, %535, %540 : vector<2x128xi1>, vector<2x128xf32>
    %c0_281 = arith.constant 0 : index
    %c0_282 = arith.constant 0 : index
    %544 = vector.load %arg14[%c0_281, %c0_282] : memref<2x128xf32, #tpu.memory_space<vmem>>, vector<2x128xf32>
    tpu.vector_store %arg14[%c0_281, %c0_282], %543 {strides = array<i32>} : memref<2x128xf32, #tpu.memory_space<vmem>>, vector<2x128xf32>,
    %c0_283 = arith.constant 0 : index
    %c0_284 = arith.constant 0 : index
    %545 = vector.load %arg12[%c0_283, %c0_284] : memref<2x128xf32, #tpu.memory_space<vmem>>, vector<2x128xf32>
    %546 = vector.shape_cast %539 : vector<2x1xi1> to vector<2x1xi1>
    %547 = vector.broadcast %546 : vector<2x1xi1> to vector<2x128xi1>
    %548 = arith.select %547, %537, %545 : vector<2x128xi1>, vector<2x128xf32>
    %c0_285 = arith.constant 0 : index
    %c0_286 = arith.constant 0 : index
    %549 = vector.load %arg12[%c0_285, %c0_286] : memref<2x128xf32, #tpu.memory_space<vmem>>, vector<2x128xf32>
    tpu.vector_store %arg12[%c0_285, %c0_286], %548 {strides = array<i32>} : memref<2x128xf32, #tpu.memory_space<vmem>>, vector<2x128xf32>,
    %550 = arith.truncf %548 : vector<2x128xf32> to vector<2x128xbf16>
    %c0_287 = arith.constant 0 : index
    %c0_288 = arith.constant 0 : index
    %551 = vector.load %arg13[%c0_287, %c0_288] : memref<2x128xbf16, #tpu.memory_space<vmem>>, vector<2x128xbf16>
    tpu.vector_store %arg13[%c0_287, %c0_288], %550 {strides = array<i32>} : memref<2x128xbf16, #tpu.memory_space<vmem>>, vector<2x128xbf16>,
    %cst_289 = arith.constant 0.000000e+00 : f32
    %552 = vector.shape_cast %539 : vector<2x1xi1> to vector<2x1xi1>
    %553 = vector.broadcast %552 : vector<2x1xi1> to vector<2x128xi1>
    %554 = vector.broadcast %cst_289 : f32 to vector<2x128xf32>
    %555 = arith.select %553, %537, %554 : vector<2x128xi1>, vector<2x128xf32>
    %556 = arith.truncf %555 : vector<2x128xf32> to vector<2x128xbf16>
    %557 = arith.index_cast %c7_i32_265 : i32 to index
    %c0_290 = arith.constant 0 : index
    %c0_291 = arith.constant 0 : index
    %558 = vector.load %arg10[%557, %c0_290, %c0_291] : memref<8x2x128xbf16, #tpu.memory_space<vmem>>, vector<1x2x128xbf16>
    %559 = vector.shape_cast %558 : vector<1x2x128xbf16> to vector<2x128xbf16>
    %560 = vector.shape_cast %556 : vector<2x128xbf16> to vector<1x2x128xbf16>
    tpu.vector_store %arg10[%557, %c0_290, %c0_291], %560 {strides = array<i32>} : memref<8x2x128xbf16, #tpu.memory_space<vmem>>, vector<1x2x128xbf16>,
    %c8_i32_292 = arith.constant 8 : i32
    %c1 = arith.constant 1 : index
    %c0_293 = arith.constant 0 : index
    %c0_294 = arith.constant 0 : index
    %561 = vector.load %arg4[%c1, %c0_293, %c0_294] : memref<2x1x512xf32, #tpu.memory_space<vmem>>, vector<1x1x512xf32>
    %562 = vector.shape_cast %561 : vector<1x1x512xf32> to vector<1x512xf32>
    %c0_i32_295 = arith.constant 0 : i32
    %563 = arith.index_cast %c0_i32_295 : i32 to index
    %c0_296 = arith.constant 0 : index
    %c0_297 = arith.constant 0 : index
    %564 = vector.load %arg10[%563, %c0_296, %c0_297] : memref<8x2x128xbf16, #tpu.memory_space<vmem>>, vector<1x2x128xbf16>
    %565 = vector.shape_cast %564 : vector<1x2x128xbf16> to vector<2x128xbf16>
    %c1_298 = arith.constant 1 : index
    %c0_299 = arith.constant 0 : index
    %c0_300 = arith.constant 0 : index
    %566 = vector.load %arg2[%c1_298, %c0_299, %c0_300] : memref<2x128x512xbf16, #tpu.memory_space<vmem>>, vector<1x128x512xbf16>
    %567 = vector.shape_cast %566 : vector<1x128x512xbf16> to vector<128x512xbf16>
    %cst_301 = arith.constant dense<0.000000e+00> : vector<2x512xf32>
    %568 = tpu.matmul %565, %567, %cst_301 {dimension_numbers = #tpu.dot_dimension_numbers<[1], [0], [0], [1], [0, 0, 1, 1], [], []>} : vector<2x128xbf16>, vector<128x512xbf16>, vector<2x512xf32> -> vector<2x512xf32>
    %569 = vector.broadcast %562 : vector<1x512xf32> to vector<2x512xf32>
    %570 = arith.addf %568, %569 : vector<2x512xf32>
    %571 = arith.index_cast %c0_i32_295 : i32 to index
    %c0_302 = arith.constant 0 : index
    %c0_303 = arith.constant 0 : index
    %572 = vector.load %arg11[%571, %c0_302, %c0_303] : memref<8x2x512xf32, #tpu.memory_space<vmem>>, vector<1x2x512xf32>
    %573 = vector.shape_cast %572 : vector<1x2x512xf32> to vector<2x512xf32>
    %574 = vector.shape_cast %570 : vector<2x512xf32> to vector<1x2x512xf32>
    tpu.vector_store %arg11[%571, %c0_302, %c0_303], %574 {strides = array<i32>} : memref<8x2x512xf32, #tpu.memory_space<vmem>>, vector<1x2x512xf32>,
    %c1_i32_304 = arith.constant 1 : i32
    %575 = arith.index_cast %c1_i32_304 : i32 to index
    %c0_305 = arith.constant 0 : index
    %c0_306 = arith.constant 0 : index
    %576 = vector.load %arg10[%575, %c0_305, %c0_306] : memref<8x2x128xbf16, #tpu.memory_space<vmem>>, vector<1x2x128xbf16>
    %577 = vector.shape_cast %576 : vector<1x2x128xbf16> to vector<2x128xbf16>
    %c1_307 = arith.constant 1 : index
    %c0_308 = arith.constant 0 : index
    %c0_309 = arith.constant 0 : index
    %578 = vector.load %arg2[%c1_307, %c0_308, %c0_309] : memref<2x128x512xbf16, #tpu.memory_space<vmem>>, vector<1x128x512xbf16>
    %579 = vector.shape_cast %578 : vector<1x128x512xbf16> to vector<128x512xbf16>
    %cst_310 = arith.constant dense<0.000000e+00> : vector<2x512xf32>
    %580 = tpu.matmul %577, %579, %cst_310 {dimension_numbers = #tpu.dot_dimension_numbers<[1], [0], [0], [1], [0, 0, 1, 1], [], []>} : vector<2x128xbf16>, vector<128x512xbf16>, vector<2x512xf32> -> vector<2x512xf32>
    %581 = vector.broadcast %562 : vector<1x512xf32> to vector<2x512xf32>
    %582 = arith.addf %580, %581 : vector<2x512xf32>
    %583 = arith.index_cast %c1_i32_304 : i32 to index
    %c0_311 = arith.constant 0 : index
    %c0_312 = arith.constant 0 : index
    %584 = vector.load %arg11[%583, %c0_311, %c0_312] : memref<8x2x512xf32, #tpu.memory_space<vmem>>, vector<1x2x512xf32>
    %585 = vector.shape_cast %584 : vector<1x2x512xf32> to vector<2x512xf32>
    %586 = vector.shape_cast %582 : vector<2x512xf32> to vector<1x2x512xf32>
    tpu.vector_store %arg11[%583, %c0_311, %c0_312], %586 {strides = array<i32>} : memref<8x2x512xf32, #tpu.memory_space<vmem>>, vector<1x2x512xf32>,
    %c2_i32_313 = arith.constant 2 : i32
    %587 = arith.index_cast %c2_i32_313 : i32 to index
    %c0_314 = arith.constant 0 : index
    %c0_315 = arith.constant 0 : index
    %588 = vector.load %arg10[%587, %c0_314, %c0_315] : memref<8x2x128xbf16, #tpu.memory_space<vmem>>, vector<1x2x128xbf16>
    %589 = vector.shape_cast %588 : vector<1x2x128xbf16> to vector<2x128xbf16>
    %c1_316 = arith.constant 1 : index
    %c0_317 = arith.constant 0 : index
    %c0_318 = arith.constant 0 : index
    %590 = vector.load %arg2[%c1_316, %c0_317, %c0_318] : memref<2x128x512xbf16, #tpu.memory_space<vmem>>, vector<1x128x512xbf16>
    %591 = vector.shape_cast %590 : vector<1x128x512xbf16> to vector<128x512xbf16>
    %cst_319 = arith.constant dense<0.000000e+00> : vector<2x512xf32>
    %592 = tpu.matmul %589, %591, %cst_319 {dimension_numbers = #tpu.dot_dimension_numbers<[1], [0], [0], [1], [0, 0, 1, 1], [], []>} : vector<2x128xbf16>, vector<128x512xbf16>, vector<2x512xf32> -> vector<2x512xf32>
    %593 = vector.broadcast %562 : vector<1x512xf32> to vector<2x512xf32>
    %594 = arith.addf %592, %593 : vector<2x512xf32>
    %595 = arith.index_cast %c2_i32_313 : i32 to index
    %c0_320 = arith.constant 0 : index
    %c0_321 = arith.constant 0 : index
    %596 = vector.load %arg11[%595, %c0_320, %c0_321] : memref<8x2x512xf32, #tpu.memory_space<vmem>>, vector<1x2x512xf32>
    %597 = vector.shape_cast %596 : vector<1x2x512xf32> to vector<2x512xf32>
    %598 = vector.shape_cast %594 : vector<2x512xf32> to vector<1x2x512xf32>
    tpu.vector_store %arg11[%595, %c0_320, %c0_321], %598 {strides = array<i32>} : memref<8x2x512xf32, #tpu.memory_space<vmem>>, vector<1x2x512xf32>,
    %c3_i32_322 = arith.constant 3 : i32
    %599 = arith.index_cast %c3_i32_322 : i32 to index
    %c0_323 = arith.constant 0 : index
    %c0_324 = arith.constant 0 : index
    %600 = vector.load %arg10[%599, %c0_323, %c0_324] : memref<8x2x128xbf16, #tpu.memory_space<vmem>>, vector<1x2x128xbf16>
    %601 = vector.shape_cast %600 : vector<1x2x128xbf16> to vector<2x128xbf16>
    %c1_325 = arith.constant 1 : index
    %c0_326 = arith.constant 0 : index
    %c0_327 = arith.constant 0 : index
    %602 = vector.load %arg2[%c1_325, %c0_326, %c0_327] : memref<2x128x512xbf16, #tpu.memory_space<vmem>>, vector<1x128x512xbf16>
    %603 = vector.shape_cast %602 : vector<1x128x512xbf16> to vector<128x512xbf16>
    %cst_328 = arith.constant dense<0.000000e+00> : vector<2x512xf32>
    %604 = tpu.matmul %601, %603, %cst_328 {dimension_numbers = #tpu.dot_dimension_numbers<[1], [0], [0], [1], [0, 0, 1, 1], [], []>} : vector<2x128xbf16>, vector<128x512xbf16>, vector<2x512xf32> -> vector<2x512xf32>
    %605 = vector.broadcast %562 : vector<1x512xf32> to vector<2x512xf32>
    %606 = arith.addf %604, %605 : vector<2x512xf32>
    %607 = arith.index_cast %c3_i32_322 : i32 to index
    %c0_329 = arith.constant 0 : index
    %c0_330 = arith.constant 0 : index
    %608 = vector.load %arg11[%607, %c0_329, %c0_330] : memref<8x2x512xf32, #tpu.memory_space<vmem>>, vector<1x2x512xf32>
    %609 = vector.shape_cast %608 : vector<1x2x512xf32> to vector<2x512xf32>
    %610 = vector.shape_cast %606 : vector<2x512xf32> to vector<1x2x512xf32>
    tpu.vector_store %arg11[%607, %c0_329, %c0_330], %610 {strides = array<i32>} : memref<8x2x512xf32, #tpu.memory_space<vmem>>, vector<1x2x512xf32>,
    %c4_i32_331 = arith.constant 4 : i32
    %611 = arith.index_cast %c4_i32_331 : i32 to index
    %c0_332 = arith.constant 0 : index
    %c0_333 = arith.constant 0 : index
    %612 = vector.load %arg10[%611, %c0_332, %c0_333] : memref<8x2x128xbf16, #tpu.memory_space<vmem>>, vector<1x2x128xbf16>
    %613 = vector.shape_cast %612 : vector<1x2x128xbf16> to vector<2x128xbf16>
    %c1_334 = arith.constant 1 : index
    %c0_335 = arith.constant 0 : index
    %c0_336 = arith.constant 0 : index
    %614 = vector.load %arg2[%c1_334, %c0_335, %c0_336] : memref<2x128x512xbf16, #tpu.memory_space<vmem>>, vector<1x128x512xbf16>
    %615 = vector.shape_cast %614 : vector<1x128x512xbf16> to vector<128x512xbf16>
    %cst_337 = arith.constant dense<0.000000e+00> : vector<2x512xf32>
    %616 = tpu.matmul %613, %615, %cst_337 {dimension_numbers = #tpu.dot_dimension_numbers<[1], [0], [0], [1], [0, 0, 1, 1], [], []>} : vector<2x128xbf16>, vector<128x512xbf16>, vector<2x512xf32> -> vector<2x512xf32>
    %617 = vector.broadcast %562 : vector<1x512xf32> to vector<2x512xf32>
    %618 = arith.addf %616, %617 : vector<2x512xf32>
    %619 = arith.index_cast %c4_i32_331 : i32 to index
    %c0_338 = arith.constant 0 : index
    %c0_339 = arith.constant 0 : index
    %620 = vector.load %arg11[%619, %c0_338, %c0_339] : memref<8x2x512xf32, #tpu.memory_space<vmem>>, vector<1x2x512xf32>
    %621 = vector.shape_cast %620 : vector<1x2x512xf32> to vector<2x512xf32>
    %622 = vector.shape_cast %618 : vector<2x512xf32> to vector<1x2x512xf32>
    tpu.vector_store %arg11[%619, %c0_338, %c0_339], %622 {strides = array<i32>} : memref<8x2x512xf32, #tpu.memory_space<vmem>>, vector<1x2x512xf32>,
    %c5_i32_340 = arith.constant 5 : i32
    %623 = arith.index_cast %c5_i32_340 : i32 to index
    %c0_341 = arith.constant 0 : index
    %c0_342 = arith.constant 0 : index
    %624 = vector.load %arg10[%623, %c0_341, %c0_342] : memref<8x2x128xbf16, #tpu.memory_space<vmem>>, vector<1x2x128xbf16>
    %625 = vector.shape_cast %624 : vector<1x2x128xbf16> to vector<2x128xbf16>
    %c1_343 = arith.constant 1 : index
    %c0_344 = arith.constant 0 : index
    %c0_345 = arith.constant 0 : index
    %626 = vector.load %arg2[%c1_343, %c0_344, %c0_345] : memref<2x128x512xbf16, #tpu.memory_space<vmem>>, vector<1x128x512xbf16>
    %627 = vector.shape_cast %626 : vector<1x128x512xbf16> to vector<128x512xbf16>
    %cst_346 = arith.constant dense<0.000000e+00> : vector<2x512xf32>
    %628 = tpu.matmul %625, %627, %cst_346 {dimension_numbers = #tpu.dot_dimension_numbers<[1], [0], [0], [1], [0, 0, 1, 1], [], []>} : vector<2x128xbf16>, vector<128x512xbf16>, vector<2x512xf32> -> vector<2x512xf32>
    %629 = vector.broadcast %562 : vector<1x512xf32> to vector<2x512xf32>
    %630 = arith.addf %628, %629 : vector<2x512xf32>
    %631 = arith.index_cast %c5_i32_340 : i32 to index
    %c0_347 = arith.constant 0 : index
    %c0_348 = arith.constant 0 : index
    %632 = vector.load %arg11[%631, %c0_347, %c0_348] : memref<8x2x512xf32, #tpu.memory_space<vmem>>, vector<1x2x512xf32>
    %633 = vector.shape_cast %632 : vector<1x2x512xf32> to vector<2x512xf32>
    %634 = vector.shape_cast %630 : vector<2x512xf32> to vector<1x2x512xf32>
    tpu.vector_store %arg11[%631, %c0_347, %c0_348], %634 {strides = array<i32>} : memref<8x2x512xf32, #tpu.memory_space<vmem>>, vector<1x2x512xf32>,
    %c6_i32_349 = arith.constant 6 : i32
    %635 = arith.index_cast %c6_i32_349 : i32 to index
    %c0_350 = arith.constant 0 : index
    %c0_351 = arith.constant 0 : index
    %636 = vector.load %arg10[%635, %c0_350, %c0_351] : memref<8x2x128xbf16, #tpu.memory_space<vmem>>, vector<1x2x128xbf16>
    %637 = vector.shape_cast %636 : vector<1x2x128xbf16> to vector<2x128xbf16>
    %c1_352 = arith.constant 1 : index
    %c0_353 = arith.constant 0 : index
    %c0_354 = arith.constant 0 : index
    %638 = vector.load %arg2[%c1_352, %c0_353, %c0_354] : memref<2x128x512xbf16, #tpu.memory_space<vmem>>, vector<1x128x512xbf16>
    %639 = vector.shape_cast %638 : vector<1x128x512xbf16> to vector<128x512xbf16>
    %cst_355 = arith.constant dense<0.000000e+00> : vector<2x512xf32>
    %640 = tpu.matmul %637, %639, %cst_355 {dimension_numbers = #tpu.dot_dimension_numbers<[1], [0], [0], [1], [0, 0, 1, 1], [], []>} : vector<2x128xbf16>, vector<128x512xbf16>, vector<2x512xf32> -> vector<2x512xf32>
    %641 = vector.broadcast %562 : vector<1x512xf32> to vector<2x512xf32>
    %642 = arith.addf %640, %641 : vector<2x512xf32>
    %643 = arith.index_cast %c6_i32_349 : i32 to index
    %c0_356 = arith.constant 0 : index
    %c0_357 = arith.constant 0 : index
    %644 = vector.load %arg11[%643, %c0_356, %c0_357] : memref<8x2x512xf32, #tpu.memory_space<vmem>>, vector<1x2x512xf32>
    %645 = vector.shape_cast %644 : vector<1x2x512xf32> to vector<2x512xf32>
    %646 = vector.shape_cast %642 : vector<2x512xf32> to vector<1x2x512xf32>
    tpu.vector_store %arg11[%643, %c0_356, %c0_357], %646 {strides = array<i32>} : memref<8x2x512xf32, #tpu.memory_space<vmem>>, vector<1x2x512xf32>,
    %c7_i32_358 = arith.constant 7 : i32
    %647 = arith.index_cast %c7_i32_358 : i32 to index
    %c0_359 = arith.constant 0 : index
    %c0_360 = arith.constant 0 : index
    %648 = vector.load %arg10[%647, %c0_359, %c0_360] : memref<8x2x128xbf16, #tpu.memory_space<vmem>>, vector<1x2x128xbf16>
    %649 = vector.shape_cast %648 : vector<1x2x128xbf16> to vector<2x128xbf16>
    %c1_361 = arith.constant 1 : index
    %c0_362 = arith.constant 0 : index
    %c0_363 = arith.constant 0 : index
    %650 = vector.load %arg2[%c1_361, %c0_362, %c0_363] : memref<2x128x512xbf16, #tpu.memory_space<vmem>>, vector<1x128x512xbf16>
    %651 = vector.shape_cast %650 : vector<1x128x512xbf16> to vector<128x512xbf16>
    %cst_364 = arith.constant dense<0.000000e+00> : vector<2x512xf32>
    %652 = tpu.matmul %649, %651, %cst_364 {dimension_numbers = #tpu.dot_dimension_numbers<[1], [0], [0], [1], [0, 0, 1, 1], [], []>} : vector<2x128xbf16>, vector<128x512xbf16>, vector<2x512xf32> -> vector<2x512xf32>
    %653 = vector.broadcast %562 : vector<1x512xf32> to vector<2x512xf32>
    %654 = arith.addf %652, %653 : vector<2x512xf32>
    %655 = arith.index_cast %c7_i32_358 : i32 to index
    %c0_365 = arith.constant 0 : index
    %c0_366 = arith.constant 0 : index
    %656 = vector.load %arg11[%655, %c0_365, %c0_366] : memref<8x2x512xf32, #tpu.memory_space<vmem>>, vector<1x2x512xf32>
    %657 = vector.shape_cast %656 : vector<1x2x512xf32> to vector<2x512xf32>
    %658 = vector.shape_cast %654 : vector<2x512xf32> to vector<1x2x512xf32>
    tpu.vector_store %arg11[%655, %c0_365, %c0_366], %658 {strides = array<i32>} : memref<8x2x512xf32, #tpu.memory_space<vmem>>, vector<1x2x512xf32>,
    %c8_i32_367 = arith.constant 8 : i32
    %cst_368 = arith.constant 0.000000e+00 : f32
    %659 = vector.broadcast %cst_368 : f32 to vector<2x128xf32>
    %c0_369 = arith.constant 0 : index
    %c0_370 = arith.constant 0 : index
    %660 = vector.load %arg12[%c0_369, %c0_370] : memref<2x128xf32, #tpu.memory_space<vmem>>, vector<2x128xf32>
    tpu.vector_store %arg12[%c0_369, %c0_370], %659 {strides = array<i32>} : memref<2x128xf32, #tpu.memory_space<vmem>>, vector<2x128xf32>,
    %cst_371 = arith.constant 0.000000e+00 : bf16
    %661 = vector.broadcast %cst_371 : bf16 to vector<2x128xbf16>
    %c0_372 = arith.constant 0 : index
    %c0_373 = arith.constant 0 : index
    %662 = vector.load %arg13[%c0_372, %c0_373] : memref<2x128xbf16, #tpu.memory_space<vmem>>, vector<2x128xbf16>
    tpu.vector_store %arg13[%c0_372, %c0_373], %661 {strides = array<i32>} : memref<2x128xbf16, #tpu.memory_space<vmem>>, vector<2x128xbf16>,
    %cst_374 = arith.constant 0.000000e+00 : f32
    %663 = vector.broadcast %cst_374 : f32 to vector<2x128xf32>
    %c0_375 = arith.constant 0 : index
    %c0_376 = arith.constant 0 : index
    %664 = vector.load %arg14[%c0_375, %c0_376] : memref<2x128xf32, #tpu.memory_space<vmem>>, vector<2x128xf32>
    tpu.vector_store %arg14[%c0_375, %c0_376], %663 {strides = array<i32>} : memref<2x128xf32, #tpu.memory_space<vmem>>, vector<2x128xf32>,
    %c0_i32_377 = arith.constant 0 : i32
    %665 = arith.index_cast %c0_i32_377 : i32 to index
    %c0_378 = arith.constant 0 : index
    %c0_379 = arith.constant 0 : index
    %666 = vector.load %arg11[%665, %c0_378, %c0_379] : memref<8x2x512xf32, #tpu.memory_space<vmem>>, vector<1x2x512xf32>
    %667 = vector.shape_cast %666 : vector<1x2x512xf32> to vector<2x512xf32>
    %c0_380 = arith.constant 0 : index
    %c0_381 = arith.constant 0 : index
    %668 = vector.load %arg13[%c0_380, %c0_381] : memref<2x128xbf16, #tpu.memory_space<vmem>>, vector<2x128xbf16>
    %c1_382 = arith.constant 1 : index
    %c0_383 = arith.constant 0 : index
    %c0_384 = arith.constant 0 : index
    %669 = vector.load %arg3[%c1_382, %c0_383, %c0_384] : memref<2x128x512xbf16, #tpu.memory_space<vmem>>, vector<1x128x512xbf16>
    %670 = vector.shape_cast %669 : vector<1x128x512xbf16> to vector<128x512xbf16>
    %cst_385 = arith.constant dense<0.000000e+00> : vector<2x512xf32>
    %671 = tpu.matmul %668, %670, %cst_385 {dimension_numbers = #tpu.dot_dimension_numbers<[1], [0], [0], [1], [0, 0, 1, 1], [], []>} : vector<2x128xbf16>, vector<128x512xbf16>, vector<2x512xf32> -> vector<2x512xf32>
    %672 = arith.addf %667, %671 : vector<2x512xf32>
    %673 = vector.extract_strided_slice %672 {offsets = [0, 0], sizes = [2, 128], strides = [1, 1]} : vector<2x512xf32> to vector<2x128xf32>
    %674 = arith.negf %673 : vector<2x128xf32>
    %675 = math.exp %674 : vector<2x128xf32>
    %cst_386 = arith.constant 1.000000e+00 : f32
    %676 = vector.broadcast %cst_386 : f32 to vector<2x128xf32>
    %677 = arith.addf %676, %675 : vector<2x128xf32>
    %678 = arith.divf %676, %677 : vector<2x128xf32>
    %679 = vector.extract_strided_slice %672 {offsets = [0, 128], sizes = [2, 128], strides = [1, 1]} : vector<2x512xf32> to vector<2x128xf32>
    %680 = arith.negf %679 : vector<2x128xf32>
    %681 = math.exp %680 : vector<2x128xf32>
    %cst_387 = arith.constant 1.000000e+00 : f32
    %682 = vector.broadcast %cst_387 : f32 to vector<2x128xf32>
    %683 = arith.addf %682, %681 : vector<2x128xf32>
    %684 = arith.divf %682, %683 : vector<2x128xf32>
    %685 = vector.extract_strided_slice %672 {offsets = [0, 256], sizes = [2, 128], strides = [1, 1]} : vector<2x512xf32> to vector<2x128xf32>
    %686 = math.tanh %685 : vector<2x128xf32>
    %687 = vector.extract_strided_slice %672 {offsets = [0, 384], sizes = [2, 128], strides = [1, 1]} : vector<2x512xf32> to vector<2x128xf32>
    %688 = arith.negf %687 : vector<2x128xf32>
    %689 = math.exp %688 : vector<2x128xf32>
    %cst_388 = arith.constant 1.000000e+00 : f32
    %690 = vector.broadcast %cst_388 : f32 to vector<2x128xf32>
    %691 = arith.addf %690, %689 : vector<2x128xf32>
    %692 = arith.divf %690, %691 : vector<2x128xf32>
    %c0_389 = arith.constant 0 : index
    %c0_390 = arith.constant 0 : index
    %693 = vector.load %arg14[%c0_389, %c0_390] : memref<2x128xf32, #tpu.memory_space<vmem>>, vector<2x128xf32>
    %694 = arith.mulf %684, %693 : vector<2x128xf32>
    %695 = arith.mulf %678, %686 : vector<2x128xf32>
    %696 = arith.addf %694, %695 : vector<2x128xf32>
    %697 = math.tanh %696 : vector<2x128xf32>
    %698 = arith.mulf %692, %697 : vector<2x128xf32>
    %699 = vector.broadcast %c0_i32_377 : i32 to vector<2x1xi32>
    %700 = arith.cmpi sgt, %0, %699 : vector<2x1xi32>
    %c0_391 = arith.constant 0 : index
    %c0_392 = arith.constant 0 : index
    %701 = vector.load %arg14[%c0_391, %c0_392] : memref<2x128xf32, #tpu.memory_space<vmem>>, vector<2x128xf32>
    %702 = vector.shape_cast %700 : vector<2x1xi1> to vector<2x1xi1>
    %703 = vector.broadcast %702 : vector<2x1xi1> to vector<2x128xi1>
    %704 = arith.select %703, %696, %701 : vector<2x128xi1>, vector<2x128xf32>
    %c0_393 = arith.constant 0 : index
    %c0_394 = arith.constant 0 : index
    %705 = vector.load %arg14[%c0_393, %c0_394] : memref<2x128xf32, #tpu.memory_space<vmem>>, vector<2x128xf32>
    tpu.vector_store %arg14[%c0_393, %c0_394], %704 {strides = array<i32>} : memref<2x128xf32, #tpu.memory_space<vmem>>, vector<2x128xf32>,
    %c0_395 = arith.constant 0 : index
    %c0_396 = arith.constant 0 : index
    %706 = vector.load %arg12[%c0_395, %c0_396] : memref<2x128xf32, #tpu.memory_space<vmem>>, vector<2x128xf32>
    %707 = vector.shape_cast %700 : vector<2x1xi1> to vector<2x1xi1>
    %708 = vector.broadcast %707 : vector<2x1xi1> to vector<2x128xi1>
    %709 = arith.select %708, %698, %706 : vector<2x128xi1>, vector<2x128xf32>
    %c0_397 = arith.constant 0 : index
    %c0_398 = arith.constant 0 : index
    %710 = vector.load %arg12[%c0_397, %c0_398] : memref<2x128xf32, #tpu.memory_space<vmem>>, vector<2x128xf32>
    tpu.vector_store %arg12[%c0_397, %c0_398], %709 {strides = array<i32>} : memref<2x128xf32, #tpu.memory_space<vmem>>, vector<2x128xf32>,
    %711 = arith.truncf %709 : vector<2x128xf32> to vector<2x128xbf16>
    %c0_399 = arith.constant 0 : index
    %c0_400 = arith.constant 0 : index
    %712 = vector.load %arg13[%c0_399, %c0_400] : memref<2x128xbf16, #tpu.memory_space<vmem>>, vector<2x128xbf16>
    tpu.vector_store %arg13[%c0_399, %c0_400], %711 {strides = array<i32>} : memref<2x128xbf16, #tpu.memory_space<vmem>>, vector<2x128xbf16>,
    %cst_401 = arith.constant 0.000000e+00 : f32
    %713 = vector.shape_cast %700 : vector<2x1xi1> to vector<2x1xi1>
    %714 = vector.broadcast %713 : vector<2x1xi1> to vector<2x128xi1>
    %715 = vector.broadcast %cst_401 : f32 to vector<2x128xf32>
    %716 = arith.select %714, %698, %715 : vector<2x128xi1>, vector<2x128xf32>
    %717 = arith.truncf %716 : vector<2x128xf32> to vector<2x128xbf16>
    %718 = arith.index_cast %c0_i32_377 : i32 to index
    %c0_402 = arith.constant 0 : index
    %c0_403 = arith.constant 0 : index
    %719 = vector.load %arg10[%718, %c0_402, %c0_403] : memref<8x2x128xbf16, #tpu.memory_space<vmem>>, vector<1x2x128xbf16>
    %720 = vector.shape_cast %719 : vector<1x2x128xbf16> to vector<2x128xbf16>
    %721 = vector.shape_cast %717 : vector<2x128xbf16> to vector<1x2x128xbf16>
    tpu.vector_store %arg10[%718, %c0_402, %c0_403], %721 {strides = array<i32>} : memref<8x2x128xbf16, #tpu.memory_space<vmem>>, vector<1x2x128xbf16>,
    %c1_i32_404 = arith.constant 1 : i32
    %722 = arith.index_cast %c1_i32_404 : i32 to index
    %c0_405 = arith.constant 0 : index
    %c0_406 = arith.constant 0 : index
    %723 = vector.load %arg11[%722, %c0_405, %c0_406] : memref<8x2x512xf32, #tpu.memory_space<vmem>>, vector<1x2x512xf32>
    %724 = vector.shape_cast %723 : vector<1x2x512xf32> to vector<2x512xf32>
    %c0_407 = arith.constant 0 : index
    %c0_408 = arith.constant 0 : index
    %725 = vector.load %arg13[%c0_407, %c0_408] : memref<2x128xbf16, #tpu.memory_space<vmem>>, vector<2x128xbf16>
    %c1_409 = arith.constant 1 : index
    %c0_410 = arith.constant 0 : index
    %c0_411 = arith.constant 0 : index
    %726 = vector.load %arg3[%c1_409, %c0_410, %c0_411] : memref<2x128x512xbf16, #tpu.memory_space<vmem>>, vector<1x128x512xbf16>
    %727 = vector.shape_cast %726 : vector<1x128x512xbf16> to vector<128x512xbf16>
    %cst_412 = arith.constant dense<0.000000e+00> : vector<2x512xf32>
    %728 = tpu.matmul %725, %727, %cst_412 {dimension_numbers = #tpu.dot_dimension_numbers<[1], [0], [0], [1], [0, 0, 1, 1], [], []>} : vector<2x128xbf16>, vector<128x512xbf16>, vector<2x512xf32> -> vector<2x512xf32>
    %729 = arith.addf %724, %728 : vector<2x512xf32>
    %730 = vector.extract_strided_slice %729 {offsets = [0, 0], sizes = [2, 128], strides = [1, 1]} : vector<2x512xf32> to vector<2x128xf32>
    %731 = arith.negf %730 : vector<2x128xf32>
    %732 = math.exp %731 : vector<2x128xf32>
    %cst_413 = arith.constant 1.000000e+00 : f32
    %733 = vector.broadcast %cst_413 : f32 to vector<2x128xf32>
    %734 = arith.addf %733, %732 : vector<2x128xf32>
    %735 = arith.divf %733, %734 : vector<2x128xf32>
    %736 = vector.extract_strided_slice %729 {offsets = [0, 128], sizes = [2, 128], strides = [1, 1]} : vector<2x512xf32> to vector<2x128xf32>
    %737 = arith.negf %736 : vector<2x128xf32>
    %738 = math.exp %737 : vector<2x128xf32>
    %cst_414 = arith.constant 1.000000e+00 : f32
    %739 = vector.broadcast %cst_414 : f32 to vector<2x128xf32>
    %740 = arith.addf %739, %738 : vector<2x128xf32>
    %741 = arith.divf %739, %740 : vector<2x128xf32>
    %742 = vector.extract_strided_slice %729 {offsets = [0, 256], sizes = [2, 128], strides = [1, 1]} : vector<2x512xf32> to vector<2x128xf32>
    %743 = math.tanh %742 : vector<2x128xf32>
    %744 = vector.extract_strided_slice %729 {offsets = [0, 384], sizes = [2, 128], strides = [1, 1]} : vector<2x512xf32> to vector<2x128xf32>
    %745 = arith.negf %744 : vector<2x128xf32>
    %746 = math.exp %745 : vector<2x128xf32>
    %cst_415 = arith.constant 1.000000e+00 : f32
    %747 = vector.broadcast %cst_415 : f32 to vector<2x128xf32>
    %748 = arith.addf %747, %746 : vector<2x128xf32>
    %749 = arith.divf %747, %748 : vector<2x128xf32>
    %c0_416 = arith.constant 0 : index
    %c0_417 = arith.constant 0 : index
    %750 = vector.load %arg14[%c0_416, %c0_417] : memref<2x128xf32, #tpu.memory_space<vmem>>, vector<2x128xf32>
    %751 = arith.mulf %741, %750 : vector<2x128xf32>
    %752 = arith.mulf %735, %743 : vector<2x128xf32>
    %753 = arith.addf %751, %752 : vector<2x128xf32>
    %754 = math.tanh %753 : vector<2x128xf32>
    %755 = arith.mulf %749, %754 : vector<2x128xf32>
    %756 = vector.broadcast %c1_i32_404 : i32 to vector<2x1xi32>
    %757 = arith.cmpi sgt, %0, %756 : vector<2x1xi32>
    %c0_418 = arith.constant 0 : index
    %c0_419 = arith.constant 0 : index
    %758 = vector.load %arg14[%c0_418, %c0_419] : memref<2x128xf32, #tpu.memory_space<vmem>>, vector<2x128xf32>
    %759 = vector.shape_cast %757 : vector<2x1xi1> to vector<2x1xi1>
    %760 = vector.broadcast %759 : vector<2x1xi1> to vector<2x128xi1>
    %761 = arith.select %760, %753, %758 : vector<2x128xi1>, vector<2x128xf32>
    %c0_420 = arith.constant 0 : index
    %c0_421 = arith.constant 0 : index
    %762 = vector.load %arg14[%c0_420, %c0_421] : memref<2x128xf32, #tpu.memory_space<vmem>>, vector<2x128xf32>
    tpu.vector_store %arg14[%c0_420, %c0_421], %761 {strides = array<i32>} : memref<2x128xf32, #tpu.memory_space<vmem>>, vector<2x128xf32>,
    %c0_422 = arith.constant 0 : index
    %c0_423 = arith.constant 0 : index
    %763 = vector.load %arg12[%c0_422, %c0_423] : memref<2x128xf32, #tpu.memory_space<vmem>>, vector<2x128xf32>
    %764 = vector.shape_cast %757 : vector<2x1xi1> to vector<2x1xi1>
    %765 = vector.broadcast %764 : vector<2x1xi1> to vector<2x128xi1>
    %766 = arith.select %765, %755, %763 : vector<2x128xi1>, vector<2x128xf32>
    %c0_424 = arith.constant 0 : index
    %c0_425 = arith.constant 0 : index
    %767 = vector.load %arg12[%c0_424, %c0_425] : memref<2x128xf32, #tpu.memory_space<vmem>>, vector<2x128xf32>
    tpu.vector_store %arg12[%c0_424, %c0_425], %766 {strides = array<i32>} : memref<2x128xf32, #tpu.memory_space<vmem>>, vector<2x128xf32>,
    %768 = arith.truncf %766 : vector<2x128xf32> to vector<2x128xbf16>
    %c0_426 = arith.constant 0 : index
    %c0_427 = arith.constant 0 : index
    %769 = vector.load %arg13[%c0_426, %c0_427] : memref<2x128xbf16, #tpu.memory_space<vmem>>, vector<2x128xbf16>
    tpu.vector_store %arg13[%c0_426, %c0_427], %768 {strides = array<i32>} : memref<2x128xbf16, #tpu.memory_space<vmem>>, vector<2x128xbf16>,
    %cst_428 = arith.constant 0.000000e+00 : f32
    %770 = vector.shape_cast %757 : vector<2x1xi1> to vector<2x1xi1>
    %771 = vector.broadcast %770 : vector<2x1xi1> to vector<2x128xi1>
    %772 = vector.broadcast %cst_428 : f32 to vector<2x128xf32>
    %773 = arith.select %771, %755, %772 : vector<2x128xi1>, vector<2x128xf32>
    %774 = arith.truncf %773 : vector<2x128xf32> to vector<2x128xbf16>
    %775 = arith.index_cast %c1_i32_404 : i32 to index
    %c0_429 = arith.constant 0 : index
    %c0_430 = arith.constant 0 : index
    %776 = vector.load %arg10[%775, %c0_429, %c0_430] : memref<8x2x128xbf16, #tpu.memory_space<vmem>>, vector<1x2x128xbf16>
    %777 = vector.shape_cast %776 : vector<1x2x128xbf16> to vector<2x128xbf16>
    %778 = vector.shape_cast %774 : vector<2x128xbf16> to vector<1x2x128xbf16>
    tpu.vector_store %arg10[%775, %c0_429, %c0_430], %778 {strides = array<i32>} : memref<8x2x128xbf16, #tpu.memory_space<vmem>>, vector<1x2x128xbf16>,
    %c2_i32_431 = arith.constant 2 : i32
    %779 = arith.index_cast %c2_i32_431 : i32 to index
    %c0_432 = arith.constant 0 : index
    %c0_433 = arith.constant 0 : index
    %780 = vector.load %arg11[%779, %c0_432, %c0_433] : memref<8x2x512xf32, #tpu.memory_space<vmem>>, vector<1x2x512xf32>
    %781 = vector.shape_cast %780 : vector<1x2x512xf32> to vector<2x512xf32>
    %c0_434 = arith.constant 0 : index
    %c0_435 = arith.constant 0 : index
    %782 = vector.load %arg13[%c0_434, %c0_435] : memref<2x128xbf16, #tpu.memory_space<vmem>>, vector<2x128xbf16>
    %c1_436 = arith.constant 1 : index
    %c0_437 = arith.constant 0 : index
    %c0_438 = arith.constant 0 : index
    %783 = vector.load %arg3[%c1_436, %c0_437, %c0_438] : memref<2x128x512xbf16, #tpu.memory_space<vmem>>, vector<1x128x512xbf16>
    %784 = vector.shape_cast %783 : vector<1x128x512xbf16> to vector<128x512xbf16>
    %cst_439 = arith.constant dense<0.000000e+00> : vector<2x512xf32>
    %785 = tpu.matmul %782, %784, %cst_439 {dimension_numbers = #tpu.dot_dimension_numbers<[1], [0], [0], [1], [0, 0, 1, 1], [], []>} : vector<2x128xbf16>, vector<128x512xbf16>, vector<2x512xf32> -> vector<2x512xf32>
    %786 = arith.addf %781, %785 : vector<2x512xf32>
    %787 = vector.extract_strided_slice %786 {offsets = [0, 0], sizes = [2, 128], strides = [1, 1]} : vector<2x512xf32> to vector<2x128xf32>
    %788 = arith.negf %787 : vector<2x128xf32>
    %789 = math.exp %788 : vector<2x128xf32>
    %cst_440 = arith.constant 1.000000e+00 : f32
    %790 = vector.broadcast %cst_440 : f32 to vector<2x128xf32>
    %791 = arith.addf %790, %789 : vector<2x128xf32>
    %792 = arith.divf %790, %791 : vector<2x128xf32>
    %793 = vector.extract_strided_slice %786 {offsets = [0, 128], sizes = [2, 128], strides = [1, 1]} : vector<2x512xf32> to vector<2x128xf32>
    %794 = arith.negf %793 : vector<2x128xf32>
    %795 = math.exp %794 : vector<2x128xf32>
    %cst_441 = arith.constant 1.000000e+00 : f32
    %796 = vector.broadcast %cst_441 : f32 to vector<2x128xf32>
    %797 = arith.addf %796, %795 : vector<2x128xf32>
    %798 = arith.divf %796, %797 : vector<2x128xf32>
    %799 = vector.extract_strided_slice %786 {offsets = [0, 256], sizes = [2, 128], strides = [1, 1]} : vector<2x512xf32> to vector<2x128xf32>
    %800 = math.tanh %799 : vector<2x128xf32>
    %801 = vector.extract_strided_slice %786 {offsets = [0, 384], sizes = [2, 128], strides = [1, 1]} : vector<2x512xf32> to vector<2x128xf32>
    %802 = arith.negf %801 : vector<2x128xf32>
    %803 = math.exp %802 : vector<2x128xf32>
    %cst_442 = arith.constant 1.000000e+00 : f32
    %804 = vector.broadcast %cst_442 : f32 to vector<2x128xf32>
    %805 = arith.addf %804, %803 : vector<2x128xf32>
    %806 = arith.divf %804, %805 : vector<2x128xf32>
    %c0_443 = arith.constant 0 : index
    %c0_444 = arith.constant 0 : index
    %807 = vector.load %arg14[%c0_443, %c0_444] : memref<2x128xf32, #tpu.memory_space<vmem>>, vector<2x128xf32>
    %808 = arith.mulf %798, %807 : vector<2x128xf32>
    %809 = arith.mulf %792, %800 : vector<2x128xf32>
    %810 = arith.addf %808, %809 : vector<2x128xf32>
    %811 = math.tanh %810 : vector<2x128xf32>
    %812 = arith.mulf %806, %811 : vector<2x128xf32>
    %813 = vector.broadcast %c2_i32_431 : i32 to vector<2x1xi32>
    %814 = arith.cmpi sgt, %0, %813 : vector<2x1xi32>
    %c0_445 = arith.constant 0 : index
    %c0_446 = arith.constant 0 : index
    %815 = vector.load %arg14[%c0_445, %c0_446] : memref<2x128xf32, #tpu.memory_space<vmem>>, vector<2x128xf32>
    %816 = vector.shape_cast %814 : vector<2x1xi1> to vector<2x1xi1>
    %817 = vector.broadcast %816 : vector<2x1xi1> to vector<2x128xi1>
    %818 = arith.select %817, %810, %815 : vector<2x128xi1>, vector<2x128xf32>
    %c0_447 = arith.constant 0 : index
    %c0_448 = arith.constant 0 : index
    %819 = vector.load %arg14[%c0_447, %c0_448] : memref<2x128xf32, #tpu.memory_space<vmem>>, vector<2x128xf32>
    tpu.vector_store %arg14[%c0_447, %c0_448], %818 {strides = array<i32>} : memref<2x128xf32, #tpu.memory_space<vmem>>, vector<2x128xf32>,
    %c0_449 = arith.constant 0 : index
    %c0_450 = arith.constant 0 : index
    %820 = vector.load %arg12[%c0_449, %c0_450] : memref<2x128xf32, #tpu.memory_space<vmem>>, vector<2x128xf32>
    %821 = vector.shape_cast %814 : vector<2x1xi1> to vector<2x1xi1>
    %822 = vector.broadcast %821 : vector<2x1xi1> to vector<2x128xi1>
    %823 = arith.select %822, %812, %820 : vector<2x128xi1>, vector<2x128xf32>
    %c0_451 = arith.constant 0 : index
    %c0_452 = arith.constant 0 : index
    %824 = vector.load %arg12[%c0_451, %c0_452] : memref<2x128xf32, #tpu.memory_space<vmem>>, vector<2x128xf32>
    tpu.vector_store %arg12[%c0_451, %c0_452], %823 {strides = array<i32>} : memref<2x128xf32, #tpu.memory_space<vmem>>, vector<2x128xf32>,
    %825 = arith.truncf %823 : vector<2x128xf32> to vector<2x128xbf16>
    %c0_453 = arith.constant 0 : index
    %c0_454 = arith.constant 0 : index
    %826 = vector.load %arg13[%c0_453, %c0_454] : memref<2x128xbf16, #tpu.memory_space<vmem>>, vector<2x128xbf16>
    tpu.vector_store %arg13[%c0_453, %c0_454], %825 {strides = array<i32>} : memref<2x128xbf16, #tpu.memory_space<vmem>>, vector<2x128xbf16>,
    %cst_455 = arith.constant 0.000000e+00 : f32
    %827 = vector.shape_cast %814 : vector<2x1xi1> to vector<2x1xi1>
    %828 = vector.broadcast %827 : vector<2x1xi1> to vector<2x128xi1>
    %829 = vector.broadcast %cst_455 : f32 to vector<2x128xf32>
    %830 = arith.select %828, %812, %829 : vector<2x128xi1>, vector<2x128xf32>
    %831 = arith.truncf %830 : vector<2x128xf32> to vector<2x128xbf16>
    %832 = arith.index_cast %c2_i32_431 : i32 to index
    %c0_456 = arith.constant 0 : index
    %c0_457 = arith.constant 0 : index
    %833 = vector.load %arg10[%832, %c0_456, %c0_457] : memref<8x2x128xbf16, #tpu.memory_space<vmem>>, vector<1x2x128xbf16>
    %834 = vector.shape_cast %833 : vector<1x2x128xbf16> to vector<2x128xbf16>
    %835 = vector.shape_cast %831 : vector<2x128xbf16> to vector<1x2x128xbf16>
    tpu.vector_store %arg10[%832, %c0_456, %c0_457], %835 {strides = array<i32>} : memref<8x2x128xbf16, #tpu.memory_space<vmem>>, vector<1x2x128xbf16>,
    %c3_i32_458 = arith.constant 3 : i32
    %836 = arith.index_cast %c3_i32_458 : i32 to index
    %c0_459 = arith.constant 0 : index
    %c0_460 = arith.constant 0 : index
    %837 = vector.load %arg11[%836, %c0_459, %c0_460] : memref<8x2x512xf32, #tpu.memory_space<vmem>>, vector<1x2x512xf32>
    %838 = vector.shape_cast %837 : vector<1x2x512xf32> to vector<2x512xf32>
    %c0_461 = arith.constant 0 : index
    %c0_462 = arith.constant 0 : index
    %839 = vector.load %arg13[%c0_461, %c0_462] : memref<2x128xbf16, #tpu.memory_space<vmem>>, vector<2x128xbf16>
    %c1_463 = arith.constant 1 : index
    %c0_464 = arith.constant 0 : index
    %c0_465 = arith.constant 0 : index
    %840 = vector.load %arg3[%c1_463, %c0_464, %c0_465] : memref<2x128x512xbf16, #tpu.memory_space<vmem>>, vector<1x128x512xbf16>
    %841 = vector.shape_cast %840 : vector<1x128x512xbf16> to vector<128x512xbf16>
    %cst_466 = arith.constant dense<0.000000e+00> : vector<2x512xf32>
    %842 = tpu.matmul %839, %841, %cst_466 {dimension_numbers = #tpu.dot_dimension_numbers<[1], [0], [0], [1], [0, 0, 1, 1], [], []>} : vector<2x128xbf16>, vector<128x512xbf16>, vector<2x512xf32> -> vector<2x512xf32>
    %843 = arith.addf %838, %842 : vector<2x512xf32>
    %844 = vector.extract_strided_slice %843 {offsets = [0, 0], sizes = [2, 128], strides = [1, 1]} : vector<2x512xf32> to vector<2x128xf32>
    %845 = arith.negf %844 : vector<2x128xf32>
    %846 = math.exp %845 : vector<2x128xf32>
    %cst_467 = arith.constant 1.000000e+00 : f32
    %847 = vector.broadcast %cst_467 : f32 to vector<2x128xf32>
    %848 = arith.addf %847, %846 : vector<2x128xf32>
    %849 = arith.divf %847, %848 : vector<2x128xf32>
    %850 = vector.extract_strided_slice %843 {offsets = [0, 128], sizes = [2, 128], strides = [1, 1]} : vector<2x512xf32> to vector<2x128xf32>
    %851 = arith.negf %850 : vector<2x128xf32>
    %852 = math.exp %851 : vector<2x128xf32>
    %cst_468 = arith.constant 1.000000e+00 : f32
    %853 = vector.broadcast %cst_468 : f32 to vector<2x128xf32>
    %854 = arith.addf %853, %852 : vector<2x128xf32>
    %855 = arith.divf %853, %854 : vector<2x128xf32>
    %856 = vector.extract_strided_slice %843 {offsets = [0, 256], sizes = [2, 128], strides = [1, 1]} : vector<2x512xf32> to vector<2x128xf32>
    %857 = math.tanh %856 : vector<2x128xf32>
    %858 = vector.extract_strided_slice %843 {offsets = [0, 384], sizes = [2, 128], strides = [1, 1]} : vector<2x512xf32> to vector<2x128xf32>
    %859 = arith.negf %858 : vector<2x128xf32>
    %860 = math.exp %859 : vector<2x128xf32>
    %cst_469 = arith.constant 1.000000e+00 : f32
    %861 = vector.broadcast %cst_469 : f32 to vector<2x128xf32>
    %862 = arith.addf %861, %860 : vector<2x128xf32>
    %863 = arith.divf %861, %862 : vector<2x128xf32>
    %c0_470 = arith.constant 0 : index
    %c0_471 = arith.constant 0 : index
    %864 = vector.load %arg14[%c0_470, %c0_471] : memref<2x128xf32, #tpu.memory_space<vmem>>, vector<2x128xf32>
    %865 = arith.mulf %855, %864 : vector<2x128xf32>
    %866 = arith.mulf %849, %857 : vector<2x128xf32>
    %867 = arith.addf %865, %866 : vector<2x128xf32>
    %868 = math.tanh %867 : vector<2x128xf32>
    %869 = arith.mulf %863, %868 : vector<2x128xf32>
    %870 = vector.broadcast %c3_i32_458 : i32 to vector<2x1xi32>
    %871 = arith.cmpi sgt, %0, %870 : vector<2x1xi32>
    %c0_472 = arith.constant 0 : index
    %c0_473 = arith.constant 0 : index
    %872 = vector.load %arg14[%c0_472, %c0_473] : memref<2x128xf32, #tpu.memory_space<vmem>>, vector<2x128xf32>
    %873 = vector.shape_cast %871 : vector<2x1xi1> to vector<2x1xi1>
    %874 = vector.broadcast %873 : vector<2x1xi1> to vector<2x128xi1>
    %875 = arith.select %874, %867, %872 : vector<2x128xi1>, vector<2x128xf32>
    %c0_474 = arith.constant 0 : index
    %c0_475 = arith.constant 0 : index
    %876 = vector.load %arg14[%c0_474, %c0_475] : memref<2x128xf32, #tpu.memory_space<vmem>>, vector<2x128xf32>
    tpu.vector_store %arg14[%c0_474, %c0_475], %875 {strides = array<i32>} : memref<2x128xf32, #tpu.memory_space<vmem>>, vector<2x128xf32>,
    %c0_476 = arith.constant 0 : index
    %c0_477 = arith.constant 0 : index
    %877 = vector.load %arg12[%c0_476, %c0_477] : memref<2x128xf32, #tpu.memory_space<vmem>>, vector<2x128xf32>
    %878 = vector.shape_cast %871 : vector<2x1xi1> to vector<2x1xi1>
    %879 = vector.broadcast %878 : vector<2x1xi1> to vector<2x128xi1>
    %880 = arith.select %879, %869, %877 : vector<2x128xi1>, vector<2x128xf32>
    %c0_478 = arith.constant 0 : index
    %c0_479 = arith.constant 0 : index
    %881 = vector.load %arg12[%c0_478, %c0_479] : memref<2x128xf32, #tpu.memory_space<vmem>>, vector<2x128xf32>
    tpu.vector_store %arg12[%c0_478, %c0_479], %880 {strides = array<i32>} : memref<2x128xf32, #tpu.memory_space<vmem>>, vector<2x128xf32>,
    %882 = arith.truncf %880 : vector<2x128xf32> to vector<2x128xbf16>
    %c0_480 = arith.constant 0 : index
    %c0_481 = arith.constant 0 : index
    %883 = vector.load %arg13[%c0_480, %c0_481] : memref<2x128xbf16, #tpu.memory_space<vmem>>, vector<2x128xbf16>
    tpu.vector_store %arg13[%c0_480, %c0_481], %882 {strides = array<i32>} : memref<2x128xbf16, #tpu.memory_space<vmem>>, vector<2x128xbf16>,
    %cst_482 = arith.constant 0.000000e+00 : f32
    %884 = vector.shape_cast %871 : vector<2x1xi1> to vector<2x1xi1>
    %885 = vector.broadcast %884 : vector<2x1xi1> to vector<2x128xi1>
    %886 = vector.broadcast %cst_482 : f32 to vector<2x128xf32>
    %887 = arith.select %885, %869, %886 : vector<2x128xi1>, vector<2x128xf32>
    %888 = arith.truncf %887 : vector<2x128xf32> to vector<2x128xbf16>
    %889 = arith.index_cast %c3_i32_458 : i32 to index
    %c0_483 = arith.constant 0 : index
    %c0_484 = arith.constant 0 : index
    %890 = vector.load %arg10[%889, %c0_483, %c0_484] : memref<8x2x128xbf16, #tpu.memory_space<vmem>>, vector<1x2x128xbf16>
    %891 = vector.shape_cast %890 : vector<1x2x128xbf16> to vector<2x128xbf16>
    %892 = vector.shape_cast %888 : vector<2x128xbf16> to vector<1x2x128xbf16>
    tpu.vector_store %arg10[%889, %c0_483, %c0_484], %892 {strides = array<i32>} : memref<8x2x128xbf16, #tpu.memory_space<vmem>>, vector<1x2x128xbf16>,
    %c4_i32_485 = arith.constant 4 : i32
    %893 = arith.index_cast %c4_i32_485 : i32 to index
    %c0_486 = arith.constant 0 : index
    %c0_487 = arith.constant 0 : index
    %894 = vector.load %arg11[%893, %c0_486, %c0_487] : memref<8x2x512xf32, #tpu.memory_space<vmem>>, vector<1x2x512xf32>
    %895 = vector.shape_cast %894 : vector<1x2x512xf32> to vector<2x512xf32>
    %c0_488 = arith.constant 0 : index
    %c0_489 = arith.constant 0 : index
    %896 = vector.load %arg13[%c0_488, %c0_489] : memref<2x128xbf16, #tpu.memory_space<vmem>>, vector<2x128xbf16>
    %c1_490 = arith.constant 1 : index
    %c0_491 = arith.constant 0 : index
    %c0_492 = arith.constant 0 : index
    %897 = vector.load %arg3[%c1_490, %c0_491, %c0_492] : memref<2x128x512xbf16, #tpu.memory_space<vmem>>, vector<1x128x512xbf16>
    %898 = vector.shape_cast %897 : vector<1x128x512xbf16> to vector<128x512xbf16>
    %cst_493 = arith.constant dense<0.000000e+00> : vector<2x512xf32>
    %899 = tpu.matmul %896, %898, %cst_493 {dimension_numbers = #tpu.dot_dimension_numbers<[1], [0], [0], [1], [0, 0, 1, 1], [], []>} : vector<2x128xbf16>, vector<128x512xbf16>, vector<2x512xf32> -> vector<2x512xf32>
    %900 = arith.addf %895, %899 : vector<2x512xf32>
    %901 = vector.extract_strided_slice %900 {offsets = [0, 0], sizes = [2, 128], strides = [1, 1]} : vector<2x512xf32> to vector<2x128xf32>
    %902 = arith.negf %901 : vector<2x128xf32>
    %903 = math.exp %902 : vector<2x128xf32>
    %cst_494 = arith.constant 1.000000e+00 : f32
    %904 = vector.broadcast %cst_494 : f32 to vector<2x128xf32>
    %905 = arith.addf %904, %903 : vector<2x128xf32>
    %906 = arith.divf %904, %905 : vector<2x128xf32>
    %907 = vector.extract_strided_slice %900 {offsets = [0, 128], sizes = [2, 128], strides = [1, 1]} : vector<2x512xf32> to vector<2x128xf32>
    %908 = arith.negf %907 : vector<2x128xf32>
    %909 = math.exp %908 : vector<2x128xf32>
    %cst_495 = arith.constant 1.000000e+00 : f32
    %910 = vector.broadcast %cst_495 : f32 to vector<2x128xf32>
    %911 = arith.addf %910, %909 : vector<2x128xf32>
    %912 = arith.divf %910, %911 : vector<2x128xf32>
    %913 = vector.extract_strided_slice %900 {offsets = [0, 256], sizes = [2, 128], strides = [1, 1]} : vector<2x512xf32> to vector<2x128xf32>
    %914 = math.tanh %913 : vector<2x128xf32>
    %915 = vector.extract_strided_slice %900 {offsets = [0, 384], sizes = [2, 128], strides = [1, 1]} : vector<2x512xf32> to vector<2x128xf32>
    %916 = arith.negf %915 : vector<2x128xf32>
    %917 = math.exp %916 : vector<2x128xf32>
    %cst_496 = arith.constant 1.000000e+00 : f32
    %918 = vector.broadcast %cst_496 : f32 to vector<2x128xf32>
    %919 = arith.addf %918, %917 : vector<2x128xf32>
    %920 = arith.divf %918, %919 : vector<2x128xf32>
    %c0_497 = arith.constant 0 : index
    %c0_498 = arith.constant 0 : index
    %921 = vector.load %arg14[%c0_497, %c0_498] : memref<2x128xf32, #tpu.memory_space<vmem>>, vector<2x128xf32>
    %922 = arith.mulf %912, %921 : vector<2x128xf32>
    %923 = arith.mulf %906, %914 : vector<2x128xf32>
    %924 = arith.addf %922, %923 : vector<2x128xf32>
    %925 = math.tanh %924 : vector<2x128xf32>
    %926 = arith.mulf %920, %925 : vector<2x128xf32>
    %927 = vector.broadcast %c4_i32_485 : i32 to vector<2x1xi32>
    %928 = arith.cmpi sgt, %0, %927 : vector<2x1xi32>
    %c0_499 = arith.constant 0 : index
    %c0_500 = arith.constant 0 : index
    %929 = vector.load %arg14[%c0_499, %c0_500] : memref<2x128xf32, #tpu.memory_space<vmem>>, vector<2x128xf32>
    %930 = vector.shape_cast %928 : vector<2x1xi1> to vector<2x1xi1>
    %931 = vector.broadcast %930 : vector<2x1xi1> to vector<2x128xi1>
    %932 = arith.select %931, %924, %929 : vector<2x128xi1>, vector<2x128xf32>
    %c0_501 = arith.constant 0 : index
    %c0_502 = arith.constant 0 : index
    %933 = vector.load %arg14[%c0_501, %c0_502] : memref<2x128xf32, #tpu.memory_space<vmem>>, vector<2x128xf32>
    tpu.vector_store %arg14[%c0_501, %c0_502], %932 {strides = array<i32>} : memref<2x128xf32, #tpu.memory_space<vmem>>, vector<2x128xf32>,
    %c0_503 = arith.constant 0 : index
    %c0_504 = arith.constant 0 : index
    %934 = vector.load %arg12[%c0_503, %c0_504] : memref<2x128xf32, #tpu.memory_space<vmem>>, vector<2x128xf32>
    %935 = vector.shape_cast %928 : vector<2x1xi1> to vector<2x1xi1>
    %936 = vector.broadcast %935 : vector<2x1xi1> to vector<2x128xi1>
    %937 = arith.select %936, %926, %934 : vector<2x128xi1>, vector<2x128xf32>
    %c0_505 = arith.constant 0 : index
    %c0_506 = arith.constant 0 : index
    %938 = vector.load %arg12[%c0_505, %c0_506] : memref<2x128xf32, #tpu.memory_space<vmem>>, vector<2x128xf32>
    tpu.vector_store %arg12[%c0_505, %c0_506], %937 {strides = array<i32>} : memref<2x128xf32, #tpu.memory_space<vmem>>, vector<2x128xf32>,
    %939 = arith.truncf %937 : vector<2x128xf32> to vector<2x128xbf16>
    %c0_507 = arith.constant 0 : index
    %c0_508 = arith.constant 0 : index
    %940 = vector.load %arg13[%c0_507, %c0_508] : memref<2x128xbf16, #tpu.memory_space<vmem>>, vector<2x128xbf16>
    tpu.vector_store %arg13[%c0_507, %c0_508], %939 {strides = array<i32>} : memref<2x128xbf16, #tpu.memory_space<vmem>>, vector<2x128xbf16>,
    %cst_509 = arith.constant 0.000000e+00 : f32
    %941 = vector.shape_cast %928 : vector<2x1xi1> to vector<2x1xi1>
    %942 = vector.broadcast %941 : vector<2x1xi1> to vector<2x128xi1>
    %943 = vector.broadcast %cst_509 : f32 to vector<2x128xf32>
    %944 = arith.select %942, %926, %943 : vector<2x128xi1>, vector<2x128xf32>
    %945 = arith.truncf %944 : vector<2x128xf32> to vector<2x128xbf16>
    %946 = arith.index_cast %c4_i32_485 : i32 to index
    %c0_510 = arith.constant 0 : index
    %c0_511 = arith.constant 0 : index
    %947 = vector.load %arg10[%946, %c0_510, %c0_511] : memref<8x2x128xbf16, #tpu.memory_space<vmem>>, vector<1x2x128xbf16>
    %948 = vector.shape_cast %947 : vector<1x2x128xbf16> to vector<2x128xbf16>
    %949 = vector.shape_cast %945 : vector<2x128xbf16> to vector<1x2x128xbf16>
    tpu.vector_store %arg10[%946, %c0_510, %c0_511], %949 {strides = array<i32>} : memref<8x2x128xbf16, #tpu.memory_space<vmem>>, vector<1x2x128xbf16>,
    %c5_i32_512 = arith.constant 5 : i32
    %950 = arith.index_cast %c5_i32_512 : i32 to index
    %c0_513 = arith.constant 0 : index
    %c0_514 = arith.constant 0 : index
    %951 = vector.load %arg11[%950, %c0_513, %c0_514] : memref<8x2x512xf32, #tpu.memory_space<vmem>>, vector<1x2x512xf32>
    %952 = vector.shape_cast %951 : vector<1x2x512xf32> to vector<2x512xf32>
    %c0_515 = arith.constant 0 : index
    %c0_516 = arith.constant 0 : index
    %953 = vector.load %arg13[%c0_515, %c0_516] : memref<2x128xbf16, #tpu.memory_space<vmem>>, vector<2x128xbf16>
    %c1_517 = arith.constant 1 : index
    %c0_518 = arith.constant 0 : index
    %c0_519 = arith.constant 0 : index
    %954 = vector.load %arg3[%c1_517, %c0_518, %c0_519] : memref<2x128x512xbf16, #tpu.memory_space<vmem>>, vector<1x128x512xbf16>
    %955 = vector.shape_cast %954 : vector<1x128x512xbf16> to vector<128x512xbf16>
    %cst_520 = arith.constant dense<0.000000e+00> : vector<2x512xf32>
    %956 = tpu.matmul %953, %955, %cst_520 {dimension_numbers = #tpu.dot_dimension_numbers<[1], [0], [0], [1], [0, 0, 1, 1], [], []>} : vector<2x128xbf16>, vector<128x512xbf16>, vector<2x512xf32> -> vector<2x512xf32>
    %957 = arith.addf %952, %956 : vector<2x512xf32>
    %958 = vector.extract_strided_slice %957 {offsets = [0, 0], sizes = [2, 128], strides = [1, 1]} : vector<2x512xf32> to vector<2x128xf32>
    %959 = arith.negf %958 : vector<2x128xf32>
    %960 = math.exp %959 : vector<2x128xf32>
    %cst_521 = arith.constant 1.000000e+00 : f32
    %961 = vector.broadcast %cst_521 : f32 to vector<2x128xf32>
    %962 = arith.addf %961, %960 : vector<2x128xf32>
    %963 = arith.divf %961, %962 : vector<2x128xf32>
    %964 = vector.extract_strided_slice %957 {offsets = [0, 128], sizes = [2, 128], strides = [1, 1]} : vector<2x512xf32> to vector<2x128xf32>
    %965 = arith.negf %964 : vector<2x128xf32>
    %966 = math.exp %965 : vector<2x128xf32>
    %cst_522 = arith.constant 1.000000e+00 : f32
    %967 = vector.broadcast %cst_522 : f32 to vector<2x128xf32>
    %968 = arith.addf %967, %966 : vector<2x128xf32>
    %969 = arith.divf %967, %968 : vector<2x128xf32>
    %970 = vector.extract_strided_slice %957 {offsets = [0, 256], sizes = [2, 128], strides = [1, 1]} : vector<2x512xf32> to vector<2x128xf32>
    %971 = math.tanh %970 : vector<2x128xf32>
    %972 = vector.extract_strided_slice %957 {offsets = [0, 384], sizes = [2, 128], strides = [1, 1]} : vector<2x512xf32> to vector<2x128xf32>
    %973 = arith.negf %972 : vector<2x128xf32>
    %974 = math.exp %973 : vector<2x128xf32>
    %cst_523 = arith.constant 1.000000e+00 : f32
    %975 = vector.broadcast %cst_523 : f32 to vector<2x128xf32>
    %976 = arith.addf %975, %974 : vector<2x128xf32>
    %977 = arith.divf %975, %976 : vector<2x128xf32>
    %c0_524 = arith.constant 0 : index
    %c0_525 = arith.constant 0 : index
    %978 = vector.load %arg14[%c0_524, %c0_525] : memref<2x128xf32, #tpu.memory_space<vmem>>, vector<2x128xf32>
    %979 = arith.mulf %969, %978 : vector<2x128xf32>
    %980 = arith.mulf %963, %971 : vector<2x128xf32>
    %981 = arith.addf %979, %980 : vector<2x128xf32>
    %982 = math.tanh %981 : vector<2x128xf32>
    %983 = arith.mulf %977, %982 : vector<2x128xf32>
    %984 = vector.broadcast %c5_i32_512 : i32 to vector<2x1xi32>
    %985 = arith.cmpi sgt, %0, %984 : vector<2x1xi32>
    %c0_526 = arith.constant 0 : index
    %c0_527 = arith.constant 0 : index
    %986 = vector.load %arg14[%c0_526, %c0_527] : memref<2x128xf32, #tpu.memory_space<vmem>>, vector<2x128xf32>
    %987 = vector.shape_cast %985 : vector<2x1xi1> to vector<2x1xi1>
    %988 = vector.broadcast %987 : vector<2x1xi1> to vector<2x128xi1>
    %989 = arith.select %988, %981, %986 : vector<2x128xi1>, vector<2x128xf32>
    %c0_528 = arith.constant 0 : index
    %c0_529 = arith.constant 0 : index
    %990 = vector.load %arg14[%c0_528, %c0_529] : memref<2x128xf32, #tpu.memory_space<vmem>>, vector<2x128xf32>
    tpu.vector_store %arg14[%c0_528, %c0_529], %989 {strides = array<i32>} : memref<2x128xf32, #tpu.memory_space<vmem>>, vector<2x128xf32>,
    %c0_530 = arith.constant 0 : index
    %c0_531 = arith.constant 0 : index
    %991 = vector.load %arg12[%c0_530, %c0_531] : memref<2x128xf32, #tpu.memory_space<vmem>>, vector<2x128xf32>
    %992 = vector.shape_cast %985 : vector<2x1xi1> to vector<2x1xi1>
    %993 = vector.broadcast %992 : vector<2x1xi1> to vector<2x128xi1>
    %994 = arith.select %993, %983, %991 : vector<2x128xi1>, vector<2x128xf32>
    %c0_532 = arith.constant 0 : index
    %c0_533 = arith.constant 0 : index
    %995 = vector.load %arg12[%c0_532, %c0_533] : memref<2x128xf32, #tpu.memory_space<vmem>>, vector<2x128xf32>
    tpu.vector_store %arg12[%c0_532, %c0_533], %994 {strides = array<i32>} : memref<2x128xf32, #tpu.memory_space<vmem>>, vector<2x128xf32>,
    %996 = arith.truncf %994 : vector<2x128xf32> to vector<2x128xbf16>
    %c0_534 = arith.constant 0 : index
    %c0_535 = arith.constant 0 : index
    %997 = vector.load %arg13[%c0_534, %c0_535] : memref<2x128xbf16, #tpu.memory_space<vmem>>, vector<2x128xbf16>
    tpu.vector_store %arg13[%c0_534, %c0_535], %996 {strides = array<i32>} : memref<2x128xbf16, #tpu.memory_space<vmem>>, vector<2x128xbf16>,
    %cst_536 = arith.constant 0.000000e+00 : f32
    %998 = vector.shape_cast %985 : vector<2x1xi1> to vector<2x1xi1>
    %999 = vector.broadcast %998 : vector<2x1xi1> to vector<2x128xi1>
    %1000 = vector.broadcast %cst_536 : f32 to vector<2x128xf32>
    %1001 = arith.select %999, %983, %1000 : vector<2x128xi1>, vector<2x128xf32>
    %1002 = arith.truncf %1001 : vector<2x128xf32> to vector<2x128xbf16>
    %1003 = arith.index_cast %c5_i32_512 : i32 to index
    %c0_537 = arith.constant 0 : index
    %c0_538 = arith.constant 0 : index
    %1004 = vector.load %arg10[%1003, %c0_537, %c0_538] : memref<8x2x128xbf16, #tpu.memory_space<vmem>>, vector<1x2x128xbf16>
    %1005 = vector.shape_cast %1004 : vector<1x2x128xbf16> to vector<2x128xbf16>
    %1006 = vector.shape_cast %1002 : vector<2x128xbf16> to vector<1x2x128xbf16>
    tpu.vector_store %arg10[%1003, %c0_537, %c0_538], %1006 {strides = array<i32>} : memref<8x2x128xbf16, #tpu.memory_space<vmem>>, vector<1x2x128xbf16>,
    %c6_i32_539 = arith.constant 6 : i32
    %1007 = arith.index_cast %c6_i32_539 : i32 to index
    %c0_540 = arith.constant 0 : index
    %c0_541 = arith.constant 0 : index
    %1008 = vector.load %arg11[%1007, %c0_540, %c0_541] : memref<8x2x512xf32, #tpu.memory_space<vmem>>, vector<1x2x512xf32>
    %1009 = vector.shape_cast %1008 : vector<1x2x512xf32> to vector<2x512xf32>
    %c0_542 = arith.constant 0 : index
    %c0_543 = arith.constant 0 : index
    %1010 = vector.load %arg13[%c0_542, %c0_543] : memref<2x128xbf16, #tpu.memory_space<vmem>>, vector<2x128xbf16>
    %c1_544 = arith.constant 1 : index
    %c0_545 = arith.constant 0 : index
    %c0_546 = arith.constant 0 : index
    %1011 = vector.load %arg3[%c1_544, %c0_545, %c0_546] : memref<2x128x512xbf16, #tpu.memory_space<vmem>>, vector<1x128x512xbf16>
    %1012 = vector.shape_cast %1011 : vector<1x128x512xbf16> to vector<128x512xbf16>
    %cst_547 = arith.constant dense<0.000000e+00> : vector<2x512xf32>
    %1013 = tpu.matmul %1010, %1012, %cst_547 {dimension_numbers = #tpu.dot_dimension_numbers<[1], [0], [0], [1], [0, 0, 1, 1], [], []>} : vector<2x128xbf16>, vector<128x512xbf16>, vector<2x512xf32> -> vector<2x512xf32>
    %1014 = arith.addf %1009, %1013 : vector<2x512xf32>
    %1015 = vector.extract_strided_slice %1014 {offsets = [0, 0], sizes = [2, 128], strides = [1, 1]} : vector<2x512xf32> to vector<2x128xf32>
    %1016 = arith.negf %1015 : vector<2x128xf32>
    %1017 = math.exp %1016 : vector<2x128xf32>
    %cst_548 = arith.constant 1.000000e+00 : f32
    %1018 = vector.broadcast %cst_548 : f32 to vector<2x128xf32>
    %1019 = arith.addf %1018, %1017 : vector<2x128xf32>
    %1020 = arith.divf %1018, %1019 : vector<2x128xf32>
    %1021 = vector.extract_strided_slice %1014 {offsets = [0, 128], sizes = [2, 128], strides = [1, 1]} : vector<2x512xf32> to vector<2x128xf32>
    %1022 = arith.negf %1021 : vector<2x128xf32>
    %1023 = math.exp %1022 : vector<2x128xf32>
    %cst_549 = arith.constant 1.000000e+00 : f32
    %1024 = vector.broadcast %cst_549 : f32 to vector<2x128xf32>
    %1025 = arith.addf %1024, %1023 : vector<2x128xf32>
    %1026 = arith.divf %1024, %1025 : vector<2x128xf32>
    %1027 = vector.extract_strided_slice %1014 {offsets = [0, 256], sizes = [2, 128], strides = [1, 1]} : vector<2x512xf32> to vector<2x128xf32>
    %1028 = math.tanh %1027 : vector<2x128xf32>
    %1029 = vector.extract_strided_slice %1014 {offsets = [0, 384], sizes = [2, 128], strides = [1, 1]} : vector<2x512xf32> to vector<2x128xf32>
    %1030 = arith.negf %1029 : vector<2x128xf32>
    %1031 = math.exp %1030 : vector<2x128xf32>
    %cst_550 = arith.constant 1.000000e+00 : f32
    %1032 = vector.broadcast %cst_550 : f32 to vector<2x128xf32>
    %1033 = arith.addf %1032, %1031 : vector<2x128xf32>
    %1034 = arith.divf %1032, %1033 : vector<2x128xf32>
    %c0_551 = arith.constant 0 : index
    %c0_552 = arith.constant 0 : index
    %1035 = vector.load %arg14[%c0_551, %c0_552] : memref<2x128xf32, #tpu.memory_space<vmem>>, vector<2x128xf32>
    %1036 = arith.mulf %1026, %1035 : vector<2x128xf32>
    %1037 = arith.mulf %1020, %1028 : vector<2x128xf32>
    %1038 = arith.addf %1036, %1037 : vector<2x128xf32>
    %1039 = math.tanh %1038 : vector<2x128xf32>
    %1040 = arith.mulf %1034, %1039 : vector<2x128xf32>
    %1041 = vector.broadcast %c6_i32_539 : i32 to vector<2x1xi32>
    %1042 = arith.cmpi sgt, %0, %1041 : vector<2x1xi32>
    %c0_553 = arith.constant 0 : index
    %c0_554 = arith.constant 0 : index
    %1043 = vector.load %arg14[%c0_553, %c0_554] : memref<2x128xf32, #tpu.memory_space<vmem>>, vector<2x128xf32>
    %1044 = vector.shape_cast %1042 : vector<2x1xi1> to vector<2x1xi1>
    %1045 = vector.broadcast %1044 : vector<2x1xi1> to vector<2x128xi1>
    %1046 = arith.select %1045, %1038, %1043 : vector<2x128xi1>, vector<2x128xf32>
    %c0_555 = arith.constant 0 : index
    %c0_556 = arith.constant 0 : index
    %1047 = vector.load %arg14[%c0_555, %c0_556] : memref<2x128xf32, #tpu.memory_space<vmem>>, vector<2x128xf32>
    tpu.vector_store %arg14[%c0_555, %c0_556], %1046 {strides = array<i32>} : memref<2x128xf32, #tpu.memory_space<vmem>>, vector<2x128xf32>,
    %c0_557 = arith.constant 0 : index
    %c0_558 = arith.constant 0 : index
    %1048 = vector.load %arg12[%c0_557, %c0_558] : memref<2x128xf32, #tpu.memory_space<vmem>>, vector<2x128xf32>
    %1049 = vector.shape_cast %1042 : vector<2x1xi1> to vector<2x1xi1>
    %1050 = vector.broadcast %1049 : vector<2x1xi1> to vector<2x128xi1>
    %1051 = arith.select %1050, %1040, %1048 : vector<2x128xi1>, vector<2x128xf32>
    %c0_559 = arith.constant 0 : index
    %c0_560 = arith.constant 0 : index
    %1052 = vector.load %arg12[%c0_559, %c0_560] : memref<2x128xf32, #tpu.memory_space<vmem>>, vector<2x128xf32>
    tpu.vector_store %arg12[%c0_559, %c0_560], %1051 {strides = array<i32>} : memref<2x128xf32, #tpu.memory_space<vmem>>, vector<2x128xf32>,
    %1053 = arith.truncf %1051 : vector<2x128xf32> to vector<2x128xbf16>
    %c0_561 = arith.constant 0 : index
    %c0_562 = arith.constant 0 : index
    %1054 = vector.load %arg13[%c0_561, %c0_562] : memref<2x128xbf16, #tpu.memory_space<vmem>>, vector<2x128xbf16>
    tpu.vector_store %arg13[%c0_561, %c0_562], %1053 {strides = array<i32>} : memref<2x128xbf16, #tpu.memory_space<vmem>>, vector<2x128xbf16>,
    %cst_563 = arith.constant 0.000000e+00 : f32
    %1055 = vector.shape_cast %1042 : vector<2x1xi1> to vector<2x1xi1>
    %1056 = vector.broadcast %1055 : vector<2x1xi1> to vector<2x128xi1>
    %1057 = vector.broadcast %cst_563 : f32 to vector<2x128xf32>
    %1058 = arith.select %1056, %1040, %1057 : vector<2x128xi1>, vector<2x128xf32>
    %1059 = arith.truncf %1058 : vector<2x128xf32> to vector<2x128xbf16>
    %1060 = arith.index_cast %c6_i32_539 : i32 to index
    %c0_564 = arith.constant 0 : index
    %c0_565 = arith.constant 0 : index
    %1061 = vector.load %arg10[%1060, %c0_564, %c0_565] : memref<8x2x128xbf16, #tpu.memory_space<vmem>>, vector<1x2x128xbf16>
    %1062 = vector.shape_cast %1061 : vector<1x2x128xbf16> to vector<2x128xbf16>
    %1063 = vector.shape_cast %1059 : vector<2x128xbf16> to vector<1x2x128xbf16>
    tpu.vector_store %arg10[%1060, %c0_564, %c0_565], %1063 {strides = array<i32>} : memref<8x2x128xbf16, #tpu.memory_space<vmem>>, vector<1x2x128xbf16>,
    %c7_i32_566 = arith.constant 7 : i32
    %1064 = arith.index_cast %c7_i32_566 : i32 to index
    %c0_567 = arith.constant 0 : index
    %c0_568 = arith.constant 0 : index
    %1065 = vector.load %arg11[%1064, %c0_567, %c0_568] : memref<8x2x512xf32, #tpu.memory_space<vmem>>, vector<1x2x512xf32>
    %1066 = vector.shape_cast %1065 : vector<1x2x512xf32> to vector<2x512xf32>
    %c0_569 = arith.constant 0 : index
    %c0_570 = arith.constant 0 : index
    %1067 = vector.load %arg13[%c0_569, %c0_570] : memref<2x128xbf16, #tpu.memory_space<vmem>>, vector<2x128xbf16>
    %c1_571 = arith.constant 1 : index
    %c0_572 = arith.constant 0 : index
    %c0_573 = arith.constant 0 : index
    %1068 = vector.load %arg3[%c1_571, %c0_572, %c0_573] : memref<2x128x512xbf16, #tpu.memory_space<vmem>>, vector<1x128x512xbf16>
    %1069 = vector.shape_cast %1068 : vector<1x128x512xbf16> to vector<128x512xbf16>
    %cst_574 = arith.constant dense<0.000000e+00> : vector<2x512xf32>
    %1070 = tpu.matmul %1067, %1069, %cst_574 {dimension_numbers = #tpu.dot_dimension_numbers<[1], [0], [0], [1], [0, 0, 1, 1], [], []>} : vector<2x128xbf16>, vector<128x512xbf16>, vector<2x512xf32> -> vector<2x512xf32>
    %1071 = arith.addf %1066, %1070 : vector<2x512xf32>
    %1072 = vector.extract_strided_slice %1071 {offsets = [0, 0], sizes = [2, 128], strides = [1, 1]} : vector<2x512xf32> to vector<2x128xf32>
    %1073 = arith.negf %1072 : vector<2x128xf32>
    %1074 = math.exp %1073 : vector<2x128xf32>
    %cst_575 = arith.constant 1.000000e+00 : f32
    %1075 = vector.broadcast %cst_575 : f32 to vector<2x128xf32>
    %1076 = arith.addf %1075, %1074 : vector<2x128xf32>
    %1077 = arith.divf %1075, %1076 : vector<2x128xf32>
    %1078 = vector.extract_strided_slice %1071 {offsets = [0, 128], sizes = [2, 128], strides = [1, 1]} : vector<2x512xf32> to vector<2x128xf32>
    %1079 = arith.negf %1078 : vector<2x128xf32>
    %1080 = math.exp %1079 : vector<2x128xf32>
    %cst_576 = arith.constant 1.000000e+00 : f32
    %1081 = vector.broadcast %cst_576 : f32 to vector<2x128xf32>
    %1082 = arith.addf %1081, %1080 : vector<2x128xf32>
    %1083 = arith.divf %1081, %1082 : vector<2x128xf32>
    %1084 = vector.extract_strided_slice %1071 {offsets = [0, 256], sizes = [2, 128], strides = [1, 1]} : vector<2x512xf32> to vector<2x128xf32>
    %1085 = math.tanh %1084 : vector<2x128xf32>
    %1086 = vector.extract_strided_slice %1071 {offsets = [0, 384], sizes = [2, 128], strides = [1, 1]} : vector<2x512xf32> to vector<2x128xf32>
    %1087 = arith.negf %1086 : vector<2x128xf32>
    %1088 = math.exp %1087 : vector<2x128xf32>
    %cst_577 = arith.constant 1.000000e+00 : f32
    %1089 = vector.broadcast %cst_577 : f32 to vector<2x128xf32>
    %1090 = arith.addf %1089, %1088 : vector<2x128xf32>
    %1091 = arith.divf %1089, %1090 : vector<2x128xf32>
    %c0_578 = arith.constant 0 : index
    %c0_579 = arith.constant 0 : index
    %1092 = vector.load %arg14[%c0_578, %c0_579] : memref<2x128xf32, #tpu.memory_space<vmem>>, vector<2x128xf32>
    %1093 = arith.mulf %1083, %1092 : vector<2x128xf32>
    %1094 = arith.mulf %1077, %1085 : vector<2x128xf32>
    %1095 = arith.addf %1093, %1094 : vector<2x128xf32>
    %1096 = math.tanh %1095 : vector<2x128xf32>
    %1097 = arith.mulf %1091, %1096 : vector<2x128xf32>
    %1098 = vector.broadcast %c7_i32_566 : i32 to vector<2x1xi32>
    %1099 = arith.cmpi sgt, %0, %1098 : vector<2x1xi32>
    %c0_580 = arith.constant 0 : index
    %c0_581 = arith.constant 0 : index
    %1100 = vector.load %arg14[%c0_580, %c0_581] : memref<2x128xf32, #tpu.memory_space<vmem>>, vector<2x128xf32>
    %1101 = vector.shape_cast %1099 : vector<2x1xi1> to vector<2x1xi1>
    %1102 = vector.broadcast %1101 : vector<2x1xi1> to vector<2x128xi1>
    %1103 = arith.select %1102, %1095, %1100 : vector<2x128xi1>, vector<2x128xf32>
    %c0_582 = arith.constant 0 : index
    %c0_583 = arith.constant 0 : index
    %1104 = vector.load %arg14[%c0_582, %c0_583] : memref<2x128xf32, #tpu.memory_space<vmem>>, vector<2x128xf32>
    tpu.vector_store %arg14[%c0_582, %c0_583], %1103 {strides = array<i32>} : memref<2x128xf32, #tpu.memory_space<vmem>>, vector<2x128xf32>,
    %c0_584 = arith.constant 0 : index
    %c0_585 = arith.constant 0 : index
    %1105 = vector.load %arg12[%c0_584, %c0_585] : memref<2x128xf32, #tpu.memory_space<vmem>>, vector<2x128xf32>
    %1106 = vector.shape_cast %1099 : vector<2x1xi1> to vector<2x1xi1>
    %1107 = vector.broadcast %1106 : vector<2x1xi1> to vector<2x128xi1>
    %1108 = arith.select %1107, %1097, %1105 : vector<2x128xi1>, vector<2x128xf32>
    %c0_586 = arith.constant 0 : index
    %c0_587 = arith.constant 0 : index
    %1109 = vector.load %arg12[%c0_586, %c0_587] : memref<2x128xf32, #tpu.memory_space<vmem>>, vector<2x128xf32>
    tpu.vector_store %arg12[%c0_586, %c0_587], %1108 {strides = array<i32>} : memref<2x128xf32, #tpu.memory_space<vmem>>, vector<2x128xf32>,
    %1110 = arith.truncf %1108 : vector<2x128xf32> to vector<2x128xbf16>
    %c0_588 = arith.constant 0 : index
    %c0_589 = arith.constant 0 : index
    %1111 = vector.load %arg13[%c0_588, %c0_589] : memref<2x128xbf16, #tpu.memory_space<vmem>>, vector<2x128xbf16>
    tpu.vector_store %arg13[%c0_588, %c0_589], %1110 {strides = array<i32>} : memref<2x128xbf16, #tpu.memory_space<vmem>>, vector<2x128xbf16>,
    %cst_590 = arith.constant 0.000000e+00 : f32
    %1112 = vector.shape_cast %1099 : vector<2x1xi1> to vector<2x1xi1>
    %1113 = vector.broadcast %1112 : vector<2x1xi1> to vector<2x128xi1>
    %1114 = vector.broadcast %cst_590 : f32 to vector<2x128xf32>
    %1115 = arith.select %1113, %1097, %1114 : vector<2x128xi1>, vector<2x128xf32>
    %1116 = arith.truncf %1115 : vector<2x128xf32> to vector<2x128xbf16>
    %1117 = arith.index_cast %c7_i32_566 : i32 to index
    %c0_591 = arith.constant 0 : index
    %c0_592 = arith.constant 0 : index
    %1118 = vector.load %arg10[%1117, %c0_591, %c0_592] : memref<8x2x128xbf16, #tpu.memory_space<vmem>>, vector<1x2x128xbf16>
    %1119 = vector.shape_cast %1118 : vector<1x2x128xbf16> to vector<2x128xbf16>
    %1120 = vector.shape_cast %1116 : vector<2x128xbf16> to vector<1x2x128xbf16>
    tpu.vector_store %arg10[%1117, %c0_591, %c0_592], %1120 {strides = array<i32>} : memref<8x2x128xbf16, #tpu.memory_space<vmem>>, vector<1x2x128xbf16>,
    %c8_i32_593 = arith.constant 8 : i32
    %c0_i32_594 = arith.constant 0 : i32
    %1121 = arith.index_cast %c0_i32_594 : i32 to index
    %c0_595 = arith.constant 0 : index
    %c0_596 = arith.constant 0 : index
    %1122 = vector.load %arg10[%1121, %c0_595, %c0_596] : memref<8x2x128xbf16, #tpu.memory_space<vmem>>, vector<1x2x128xbf16>
    %1123 = vector.shape_cast %1122 : vector<1x2x128xbf16> to vector<2x128xbf16>
    %c0_597 = arith.constant 0 : index
    %c0_598 = arith.constant 0 : index
    %1124 = vector.load %arg5[%c0_597, %c0_598] : memref<128x128xbf16, #tpu.memory_space<vmem>>, vector<128x128xbf16>
    %cst_599 = arith.constant dense<0.000000e+00> : vector<2x128xf32>
    %1125 = tpu.matmul %1123, %1124, %cst_599 {dimension_numbers = #tpu.dot_dimension_numbers<[1], [0], [0], [1], [0, 0, 1, 1], [], []>} : vector<2x128xbf16>, vector<128x128xbf16>, vector<2x128xf32> -> vector<2x128xf32>
    %c0_600 = arith.constant 0 : index
    %c0_601 = arith.constant 0 : index
    %1126 = vector.load %arg6[%c0_600, %c0_601] : memref<1x128xf32, #tpu.memory_space<vmem>>, vector<1x128xf32>
    %1127 = vector.broadcast %1126 : vector<1x128xf32> to vector<2x128xf32>
    %1128 = arith.addf %1125, %1127 : vector<2x128xf32>
    %1129 = math.tanh %1128 : vector<2x128xf32>
    %1130 = arith.truncf %1129 : vector<2x128xf32> to vector<2x128xbf16>
    %c0_602 = arith.constant 0 : index
    %c0_603 = arith.constant 0 : index
    %1131 = vector.load %arg7[%c0_602, %c0_603] : memref<128x128xbf16, #tpu.memory_space<vmem>>, vector<128x128xbf16>
    %cst_604 = arith.constant dense<0.000000e+00> : vector<2x128xf32>
    %1132 = tpu.matmul %1130, %1131, %cst_604 {dimension_numbers = #tpu.dot_dimension_numbers<[1], [0], [0], [1], [0, 0, 1, 1], [], []>} : vector<2x128xbf16>, vector<128x128xbf16>, vector<2x128xf32> -> vector<2x128xf32>
    %c0_605 = arith.constant 0 : index
    %c0_606 = arith.constant 0 : index
    %1133 = vector.load %arg8[%c0_605, %c0_606] : memref<1x128xf32, #tpu.memory_space<vmem>>, vector<1x128xf32>
    %1134 = vector.broadcast %1133 : vector<1x128xf32> to vector<2x128xf32>
    %1135 = arith.addf %1132, %1134 : vector<2x128xf32>
    %1136 = arith.index_cast %c0_i32_594 : i32 to index
    %c0_607 = arith.constant 0 : index
    %c0_608 = arith.constant 0 : index
    %1137 = vector.load %arg9[%1136, %c0_607, %c0_608] : memref<8x2x128xf32, #tpu.memory_space<vmem>>, vector<1x2x128xf32>
    %1138 = vector.shape_cast %1137 : vector<1x2x128xf32> to vector<2x128xf32>
    %1139 = vector.shape_cast %1135 : vector<2x128xf32> to vector<1x2x128xf32>
    tpu.vector_store %arg9[%1136, %c0_607, %c0_608], %1139 {strides = array<i32>} : memref<8x2x128xf32, #tpu.memory_space<vmem>>, vector<1x2x128xf32>,
    %c1_i32_609 = arith.constant 1 : i32
    %1140 = arith.index_cast %c1_i32_609 : i32 to index
    %c0_610 = arith.constant 0 : index
    %c0_611 = arith.constant 0 : index
    %1141 = vector.load %arg10[%1140, %c0_610, %c0_611] : memref<8x2x128xbf16, #tpu.memory_space<vmem>>, vector<1x2x128xbf16>
    %1142 = vector.shape_cast %1141 : vector<1x2x128xbf16> to vector<2x128xbf16>
    %c0_612 = arith.constant 0 : index
    %c0_613 = arith.constant 0 : index
    %1143 = vector.load %arg5[%c0_612, %c0_613] : memref<128x128xbf16, #tpu.memory_space<vmem>>, vector<128x128xbf16>
    %cst_614 = arith.constant dense<0.000000e+00> : vector<2x128xf32>
    %1144 = tpu.matmul %1142, %1143, %cst_614 {dimension_numbers = #tpu.dot_dimension_numbers<[1], [0], [0], [1], [0, 0, 1, 1], [], []>} : vector<2x128xbf16>, vector<128x128xbf16>, vector<2x128xf32> -> vector<2x128xf32>
    %c0_615 = arith.constant 0 : index
    %c0_616 = arith.constant 0 : index
    %1145 = vector.load %arg6[%c0_615, %c0_616] : memref<1x128xf32, #tpu.memory_space<vmem>>, vector<1x128xf32>
    %1146 = vector.broadcast %1145 : vector<1x128xf32> to vector<2x128xf32>
    %1147 = arith.addf %1144, %1146 : vector<2x128xf32>
    %1148 = math.tanh %1147 : vector<2x128xf32>
    %1149 = arith.truncf %1148 : vector<2x128xf32> to vector<2x128xbf16>
    %c0_617 = arith.constant 0 : index
    %c0_618 = arith.constant 0 : index
    %1150 = vector.load %arg7[%c0_617, %c0_618] : memref<128x128xbf16, #tpu.memory_space<vmem>>, vector<128x128xbf16>
    %cst_619 = arith.constant dense<0.000000e+00> : vector<2x128xf32>
    %1151 = tpu.matmul %1149, %1150, %cst_619 {dimension_numbers = #tpu.dot_dimension_numbers<[1], [0], [0], [1], [0, 0, 1, 1], [], []>} : vector<2x128xbf16>, vector<128x128xbf16>, vector<2x128xf32> -> vector<2x128xf32>
    %c0_620 = arith.constant 0 : index
    %c0_621 = arith.constant 0 : index
    %1152 = vector.load %arg8[%c0_620, %c0_621] : memref<1x128xf32, #tpu.memory_space<vmem>>, vector<1x128xf32>
    %1153 = vector.broadcast %1152 : vector<1x128xf32> to vector<2x128xf32>
    %1154 = arith.addf %1151, %1153 : vector<2x128xf32>
    %1155 = arith.index_cast %c1_i32_609 : i32 to index
    %c0_622 = arith.constant 0 : index
    %c0_623 = arith.constant 0 : index
    %1156 = vector.load %arg9[%1155, %c0_622, %c0_623] : memref<8x2x128xf32, #tpu.memory_space<vmem>>, vector<1x2x128xf32>
    %1157 = vector.shape_cast %1156 : vector<1x2x128xf32> to vector<2x128xf32>
    %1158 = vector.shape_cast %1154 : vector<2x128xf32> to vector<1x2x128xf32>
    tpu.vector_store %arg9[%1155, %c0_622, %c0_623], %1158 {strides = array<i32>} : memref<8x2x128xf32, #tpu.memory_space<vmem>>, vector<1x2x128xf32>,
    %c2_i32_624 = arith.constant 2 : i32
    %1159 = arith.index_cast %c2_i32_624 : i32 to index
    %c0_625 = arith.constant 0 : index
    %c0_626 = arith.constant 0 : index
    %1160 = vector.load %arg10[%1159, %c0_625, %c0_626] : memref<8x2x128xbf16, #tpu.memory_space<vmem>>, vector<1x2x128xbf16>
    %1161 = vector.shape_cast %1160 : vector<1x2x128xbf16> to vector<2x128xbf16>
    %c0_627 = arith.constant 0 : index
    %c0_628 = arith.constant 0 : index
    %1162 = vector.load %arg5[%c0_627, %c0_628] : memref<128x128xbf16, #tpu.memory_space<vmem>>, vector<128x128xbf16>
    %cst_629 = arith.constant dense<0.000000e+00> : vector<2x128xf32>
    %1163 = tpu.matmul %1161, %1162, %cst_629 {dimension_numbers = #tpu.dot_dimension_numbers<[1], [0], [0], [1], [0, 0, 1, 1], [], []>} : vector<2x128xbf16>, vector<128x128xbf16>, vector<2x128xf32> -> vector<2x128xf32>
    %c0_630 = arith.constant 0 : index
    %c0_631 = arith.constant 0 : index
    %1164 = vector.load %arg6[%c0_630, %c0_631] : memref<1x128xf32, #tpu.memory_space<vmem>>, vector<1x128xf32>
    %1165 = vector.broadcast %1164 : vector<1x128xf32> to vector<2x128xf32>
    %1166 = arith.addf %1163, %1165 : vector<2x128xf32>
    %1167 = math.tanh %1166 : vector<2x128xf32>
    %1168 = arith.truncf %1167 : vector<2x128xf32> to vector<2x128xbf16>
    %c0_632 = arith.constant 0 : index
    %c0_633 = arith.constant 0 : index
    %1169 = vector.load %arg7[%c0_632, %c0_633] : memref<128x128xbf16, #tpu.memory_space<vmem>>, vector<128x128xbf16>
    %cst_634 = arith.constant dense<0.000000e+00> : vector<2x128xf32>
    %1170 = tpu.matmul %1168, %1169, %cst_634 {dimension_numbers = #tpu.dot_dimension_numbers<[1], [0], [0], [1], [0, 0, 1, 1], [], []>} : vector<2x128xbf16>, vector<128x128xbf16>, vector<2x128xf32> -> vector<2x128xf32>
    %c0_635 = arith.constant 0 : index
    %c0_636 = arith.constant 0 : index
    %1171 = vector.load %arg8[%c0_635, %c0_636] : memref<1x128xf32, #tpu.memory_space<vmem>>, vector<1x128xf32>
    %1172 = vector.broadcast %1171 : vector<1x128xf32> to vector<2x128xf32>
    %1173 = arith.addf %1170, %1172 : vector<2x128xf32>
    %1174 = arith.index_cast %c2_i32_624 : i32 to index
    %c0_637 = arith.constant 0 : index
    %c0_638 = arith.constant 0 : index
    %1175 = vector.load %arg9[%1174, %c0_637, %c0_638] : memref<8x2x128xf32, #tpu.memory_space<vmem>>, vector<1x2x128xf32>
    %1176 = vector.shape_cast %1175 : vector<1x2x128xf32> to vector<2x128xf32>
    %1177 = vector.shape_cast %1173 : vector<2x128xf32> to vector<1x2x128xf32>
    tpu.vector_store %arg9[%1174, %c0_637, %c0_638], %1177 {strides = array<i32>} : memref<8x2x128xf32, #tpu.memory_space<vmem>>, vector<1x2x128xf32>,
    %c3_i32_639 = arith.constant 3 : i32
    %1178 = arith.index_cast %c3_i32_639 : i32 to index
    %c0_640 = arith.constant 0 : index
    %c0_641 = arith.constant 0 : index
    %1179 = vector.load %arg10[%1178, %c0_640, %c0_641] : memref<8x2x128xbf16, #tpu.memory_space<vmem>>, vector<1x2x128xbf16>
    %1180 = vector.shape_cast %1179 : vector<1x2x128xbf16> to vector<2x128xbf16>
    %c0_642 = arith.constant 0 : index
    %c0_643 = arith.constant 0 : index
    %1181 = vector.load %arg5[%c0_642, %c0_643] : memref<128x128xbf16, #tpu.memory_space<vmem>>, vector<128x128xbf16>
    %cst_644 = arith.constant dense<0.000000e+00> : vector<2x128xf32>
    %1182 = tpu.matmul %1180, %1181, %cst_644 {dimension_numbers = #tpu.dot_dimension_numbers<[1], [0], [0], [1], [0, 0, 1, 1], [], []>} : vector<2x128xbf16>, vector<128x128xbf16>, vector<2x128xf32> -> vector<2x128xf32>
    %c0_645 = arith.constant 0 : index
    %c0_646 = arith.constant 0 : index
    %1183 = vector.load %arg6[%c0_645, %c0_646] : memref<1x128xf32, #tpu.memory_space<vmem>>, vector<1x128xf32>
    %1184 = vector.broadcast %1183 : vector<1x128xf32> to vector<2x128xf32>
    %1185 = arith.addf %1182, %1184 : vector<2x128xf32>
    %1186 = math.tanh %1185 : vector<2x128xf32>
    %1187 = arith.truncf %1186 : vector<2x128xf32> to vector<2x128xbf16>
    %c0_647 = arith.constant 0 : index
    %c0_648 = arith.constant 0 : index
    %1188 = vector.load %arg7[%c0_647, %c0_648] : memref<128x128xbf16, #tpu.memory_space<vmem>>, vector<128x128xbf16>
    %cst_649 = arith.constant dense<0.000000e+00> : vector<2x128xf32>
    %1189 = tpu.matmul %1187, %1188, %cst_649 {dimension_numbers = #tpu.dot_dimension_numbers<[1], [0], [0], [1], [0, 0, 1, 1], [], []>} : vector<2x128xbf16>, vector<128x128xbf16>, vector<2x128xf32> -> vector<2x128xf32>
    %c0_650 = arith.constant 0 : index
    %c0_651 = arith.constant 0 : index
    %1190 = vector.load %arg8[%c0_650, %c0_651] : memref<1x128xf32, #tpu.memory_space<vmem>>, vector<1x128xf32>
    %1191 = vector.broadcast %1190 : vector<1x128xf32> to vector<2x128xf32>
    %1192 = arith.addf %1189, %1191 : vector<2x128xf32>
    %1193 = arith.index_cast %c3_i32_639 : i32 to index
    %c0_652 = arith.constant 0 : index
    %c0_653 = arith.constant 0 : index
    %1194 = vector.load %arg9[%1193, %c0_652, %c0_653] : memref<8x2x128xf32, #tpu.memory_space<vmem>>, vector<1x2x128xf32>
    %1195 = vector.shape_cast %1194 : vector<1x2x128xf32> to vector<2x128xf32>
    %1196 = vector.shape_cast %1192 : vector<2x128xf32> to vector<1x2x128xf32>
    tpu.vector_store %arg9[%1193, %c0_652, %c0_653], %1196 {strides = array<i32>} : memref<8x2x128xf32, #tpu.memory_space<vmem>>, vector<1x2x128xf32>,
    %c4_i32_654 = arith.constant 4 : i32
    %1197 = arith.index_cast %c4_i32_654 : i32 to index
    %c0_655 = arith.constant 0 : index
    %c0_656 = arith.constant 0 : index
    %1198 = vector.load %arg10[%1197, %c0_655, %c0_656] : memref<8x2x128xbf16, #tpu.memory_space<vmem>>, vector<1x2x128xbf16>
    %1199 = vector.shape_cast %1198 : vector<1x2x128xbf16> to vector<2x128xbf16>
    %c0_657 = arith.constant 0 : index
    %c0_658 = arith.constant 0 : index
    %1200 = vector.load %arg5[%c0_657, %c0_658] : memref<128x128xbf16, #tpu.memory_space<vmem>>, vector<128x128xbf16>
    %cst_659 = arith.constant dense<0.000000e+00> : vector<2x128xf32>
    %1201 = tpu.matmul %1199, %1200, %cst_659 {dimension_numbers = #tpu.dot_dimension_numbers<[1], [0], [0], [1], [0, 0, 1, 1], [], []>} : vector<2x128xbf16>, vector<128x128xbf16>, vector<2x128xf32> -> vector<2x128xf32>
    %c0_660 = arith.constant 0 : index
    %c0_661 = arith.constant 0 : index
    %1202 = vector.load %arg6[%c0_660, %c0_661] : memref<1x128xf32, #tpu.memory_space<vmem>>, vector<1x128xf32>
    %1203 = vector.broadcast %1202 : vector<1x128xf32> to vector<2x128xf32>
    %1204 = arith.addf %1201, %1203 : vector<2x128xf32>
    %1205 = math.tanh %1204 : vector<2x128xf32>
    %1206 = arith.truncf %1205 : vector<2x128xf32> to vector<2x128xbf16>
    %c0_662 = arith.constant 0 : index
    %c0_663 = arith.constant 0 : index
    %1207 = vector.load %arg7[%c0_662, %c0_663] : memref<128x128xbf16, #tpu.memory_space<vmem>>, vector<128x128xbf16>
    %cst_664 = arith.constant dense<0.000000e+00> : vector<2x128xf32>
    %1208 = tpu.matmul %1206, %1207, %cst_664 {dimension_numbers = #tpu.dot_dimension_numbers<[1], [0], [0], [1], [0, 0, 1, 1], [], []>} : vector<2x128xbf16>, vector<128x128xbf16>, vector<2x128xf32> -> vector<2x128xf32>
    %c0_665 = arith.constant 0 : index
    %c0_666 = arith.constant 0 : index
    %1209 = vector.load %arg8[%c0_665, %c0_666] : memref<1x128xf32, #tpu.memory_space<vmem>>, vector<1x128xf32>
    %1210 = vector.broadcast %1209 : vector<1x128xf32> to vector<2x128xf32>
    %1211 = arith.addf %1208, %1210 : vector<2x128xf32>
    %1212 = arith.index_cast %c4_i32_654 : i32 to index
    %c0_667 = arith.constant 0 : index
    %c0_668 = arith.constant 0 : index
    %1213 = vector.load %arg9[%1212, %c0_667, %c0_668] : memref<8x2x128xf32, #tpu.memory_space<vmem>>, vector<1x2x128xf32>
    %1214 = vector.shape_cast %1213 : vector<1x2x128xf32> to vector<2x128xf32>
    %1215 = vector.shape_cast %1211 : vector<2x128xf32> to vector<1x2x128xf32>
    tpu.vector_store %arg9[%1212, %c0_667, %c0_668], %1215 {strides = array<i32>} : memref<8x2x128xf32, #tpu.memory_space<vmem>>, vector<1x2x128xf32>,
    %c5_i32_669 = arith.constant 5 : i32
    %1216 = arith.index_cast %c5_i32_669 : i32 to index
    %c0_670 = arith.constant 0 : index
    %c0_671 = arith.constant 0 : index
    %1217 = vector.load %arg10[%1216, %c0_670, %c0_671] : memref<8x2x128xbf16, #tpu.memory_space<vmem>>, vector<1x2x128xbf16>
    %1218 = vector.shape_cast %1217 : vector<1x2x128xbf16> to vector<2x128xbf16>
    %c0_672 = arith.constant 0 : index
    %c0_673 = arith.constant 0 : index
    %1219 = vector.load %arg5[%c0_672, %c0_673] : memref<128x128xbf16, #tpu.memory_space<vmem>>, vector<128x128xbf16>
    %cst_674 = arith.constant dense<0.000000e+00> : vector<2x128xf32>
    %1220 = tpu.matmul %1218, %1219, %cst_674 {dimension_numbers = #tpu.dot_dimension_numbers<[1], [0], [0], [1], [0, 0, 1, 1], [], []>} : vector<2x128xbf16>, vector<128x128xbf16>, vector<2x128xf32> -> vector<2x128xf32>
    %c0_675 = arith.constant 0 : index
    %c0_676 = arith.constant 0 : index
    %1221 = vector.load %arg6[%c0_675, %c0_676] : memref<1x128xf32, #tpu.memory_space<vmem>>, vector<1x128xf32>
    %1222 = vector.broadcast %1221 : vector<1x128xf32> to vector<2x128xf32>
    %1223 = arith.addf %1220, %1222 : vector<2x128xf32>
    %1224 = math.tanh %1223 : vector<2x128xf32>
    %1225 = arith.truncf %1224 : vector<2x128xf32> to vector<2x128xbf16>
    %c0_677 = arith.constant 0 : index
    %c0_678 = arith.constant 0 : index
    %1226 = vector.load %arg7[%c0_677, %c0_678] : memref<128x128xbf16, #tpu.memory_space<vmem>>, vector<128x128xbf16>
    %cst_679 = arith.constant dense<0.000000e+00> : vector<2x128xf32>
    %1227 = tpu.matmul %1225, %1226, %cst_679 {dimension_numbers = #tpu.dot_dimension_numbers<[1], [0], [0], [1], [0, 0, 1, 1], [], []>} : vector<2x128xbf16>, vector<128x128xbf16>, vector<2x128xf32> -> vector<2x128xf32>
    %c0_680 = arith.constant 0 : index
    %c0_681 = arith.constant 0 : index
    %1228 = vector.load %arg8[%c0_680, %c0_681] : memref<1x128xf32, #tpu.memory_space<vmem>>, vector<1x128xf32>
    %1229 = vector.broadcast %1228 : vector<1x128xf32> to vector<2x128xf32>
    %1230 = arith.addf %1227, %1229 : vector<2x128xf32>
    %1231 = arith.index_cast %c5_i32_669 : i32 to index
    %c0_682 = arith.constant 0 : index
    %c0_683 = arith.constant 0 : index
    %1232 = vector.load %arg9[%1231, %c0_682, %c0_683] : memref<8x2x128xf32, #tpu.memory_space<vmem>>, vector<1x2x128xf32>
    %1233 = vector.shape_cast %1232 : vector<1x2x128xf32> to vector<2x128xf32>
    %1234 = vector.shape_cast %1230 : vector<2x128xf32> to vector<1x2x128xf32>
    tpu.vector_store %arg9[%1231, %c0_682, %c0_683], %1234 {strides = array<i32>} : memref<8x2x128xf32, #tpu.memory_space<vmem>>, vector<1x2x128xf32>,
    %c6_i32_684 = arith.constant 6 : i32
    %1235 = arith.index_cast %c6_i32_684 : i32 to index
    %c0_685 = arith.constant 0 : index
    %c0_686 = arith.constant 0 : index
    %1236 = vector.load %arg10[%1235, %c0_685, %c0_686] : memref<8x2x128xbf16, #tpu.memory_space<vmem>>, vector<1x2x128xbf16>
    %1237 = vector.shape_cast %1236 : vector<1x2x128xbf16> to vector<2x128xbf16>
    %c0_687 = arith.constant 0 : index
    %c0_688 = arith.constant 0 : index
    %1238 = vector.load %arg5[%c0_687, %c0_688] : memref<128x128xbf16, #tpu.memory_space<vmem>>, vector<128x128xbf16>
    %cst_689 = arith.constant dense<0.000000e+00> : vector<2x128xf32>
    %1239 = tpu.matmul %1237, %1238, %cst_689 {dimension_numbers = #tpu.dot_dimension_numbers<[1], [0], [0], [1], [0, 0, 1, 1], [], []>} : vector<2x128xbf16>, vector<128x128xbf16>, vector<2x128xf32> -> vector<2x128xf32>
    %c0_690 = arith.constant 0 : index
    %c0_691 = arith.constant 0 : index
    %1240 = vector.load %arg6[%c0_690, %c0_691] : memref<1x128xf32, #tpu.memory_space<vmem>>, vector<1x128xf32>
    %1241 = vector.broadcast %1240 : vector<1x128xf32> to vector<2x128xf32>
    %1242 = arith.addf %1239, %1241 : vector<2x128xf32>
    %1243 = math.tanh %1242 : vector<2x128xf32>
    %1244 = arith.truncf %1243 : vector<2x128xf32> to vector<2x128xbf16>
    %c0_692 = arith.constant 0 : index
    %c0_693 = arith.constant 0 : index
    %1245 = vector.load %arg7[%c0_692, %c0_693] : memref<128x128xbf16, #tpu.memory_space<vmem>>, vector<128x128xbf16>
    %cst_694 = arith.constant dense<0.000000e+00> : vector<2x128xf32>
    %1246 = tpu.matmul %1244, %1245, %cst_694 {dimension_numbers = #tpu.dot_dimension_numbers<[1], [0], [0], [1], [0, 0, 1, 1], [], []>} : vector<2x128xbf16>, vector<128x128xbf16>, vector<2x128xf32> -> vector<2x128xf32>
    %c0_695 = arith.constant 0 : index
    %c0_696 = arith.constant 0 : index
    %1247 = vector.load %arg8[%c0_695, %c0_696] : memref<1x128xf32, #tpu.memory_space<vmem>>, vector<1x128xf32>
    %1248 = vector.broadcast %1247 : vector<1x128xf32> to vector<2x128xf32>
    %1249 = arith.addf %1246, %1248 : vector<2x128xf32>
    %1250 = arith.index_cast %c6_i32_684 : i32 to index
    %c0_697 = arith.constant 0 : index
    %c0_698 = arith.constant 0 : index
    %1251 = vector.load %arg9[%1250, %c0_697, %c0_698] : memref<8x2x128xf32, #tpu.memory_space<vmem>>, vector<1x2x128xf32>
    %1252 = vector.shape_cast %1251 : vector<1x2x128xf32> to vector<2x128xf32>
    %1253 = vector.shape_cast %1249 : vector<2x128xf32> to vector<1x2x128xf32>
    tpu.vector_store %arg9[%1250, %c0_697, %c0_698], %1253 {strides = array<i32>} : memref<8x2x128xf32, #tpu.memory_space<vmem>>, vector<1x2x128xf32>,
    %c7_i32_699 = arith.constant 7 : i32
    %1254 = arith.index_cast %c7_i32_699 : i32 to index
    %c0_700 = arith.constant 0 : index
    %c0_701 = arith.constant 0 : index
    %1255 = vector.load %arg10[%1254, %c0_700, %c0_701] : memref<8x2x128xbf16, #tpu.memory_space<vmem>>, vector<1x2x128xbf16>
    %1256 = vector.shape_cast %1255 : vector<1x2x128xbf16> to vector<2x128xbf16>
    %c0_702 = arith.constant 0 : index
    %c0_703 = arith.constant 0 : index
    %1257 = vector.load %arg5[%c0_702, %c0_703] : memref<128x128xbf16, #tpu.memory_space<vmem>>, vector<128x128xbf16>
    %cst_704 = arith.constant dense<0.000000e+00> : vector<2x128xf32>
    %1258 = tpu.matmul %1256, %1257, %cst_704 {dimension_numbers = #tpu.dot_dimension_numbers<[1], [0], [0], [1], [0, 0, 1, 1], [], []>} : vector<2x128xbf16>, vector<128x128xbf16>, vector<2x128xf32> -> vector<2x128xf32>
    %c0_705 = arith.constant 0 : index
    %c0_706 = arith.constant 0 : index
    %1259 = vector.load %arg6[%c0_705, %c0_706] : memref<1x128xf32, #tpu.memory_space<vmem>>, vector<1x128xf32>
    %1260 = vector.broadcast %1259 : vector<1x128xf32> to vector<2x128xf32>
    %1261 = arith.addf %1258, %1260 : vector<2x128xf32>
    %1262 = math.tanh %1261 : vector<2x128xf32>
    %1263 = arith.truncf %1262 : vector<2x128xf32> to vector<2x128xbf16>
    %c0_707 = arith.constant 0 : index
    %c0_708 = arith.constant 0 : index
    %1264 = vector.load %arg7[%c0_707, %c0_708] : memref<128x128xbf16, #tpu.memory_space<vmem>>, vector<128x128xbf16>
    %cst_709 = arith.constant dense<0.000000e+00> : vector<2x128xf32>
    %1265 = tpu.matmul %1263, %1264, %cst_709 {dimension_numbers = #tpu.dot_dimension_numbers<[1], [0], [0], [1], [0, 0, 1, 1], [], []>} : vector<2x128xbf16>, vector<128x128xbf16>, vector<2x128xf32> -> vector<2x128xf32>
    %c0_710 = arith.constant 0 : index
    %c0_711 = arith.constant 0 : index
    %1266 = vector.load %arg8[%c0_710, %c0_711] : memref<1x128xf32, #tpu.memory_space<vmem>>, vector<1x128xf32>
    %1267 = vector.broadcast %1266 : vector<1x128xf32> to vector<2x128xf32>
    %1268 = arith.addf %1265, %1267 : vector<2x128xf32>
    %1269 = arith.index_cast %c7_i32_699 : i32 to index
    %c0_712 = arith.constant 0 : index
    %c0_713 = arith.constant 0 : index
    %1270 = vector.load %arg9[%1269, %c0_712, %c0_713] : memref<8x2x128xf32, #tpu.memory_space<vmem>>, vector<1x2x128xf32>
    %1271 = vector.shape_cast %1270 : vector<1x2x128xf32> to vector<2x128xf32>
    %1272 = vector.shape_cast %1268 : vector<2x128xf32> to vector<1x2x128xf32>
    tpu.vector_store %arg9[%1269, %c0_712, %c0_713], %1272 {strides = array<i32>} : memref<8x2x128xf32, #tpu.memory_space<vmem>>, vector<1x2x128xf32>,
    %c8_i32_714 = arith.constant 8 : i32
    return
  }
}

</mosaic_0001>

<bundles_post_ra>
// kernel: tpu_custom_call.1
= control target key start
LH: loop header
LB: loop body
LE: loop exit
PB: predicated region body
PF: predicated region fallthrough
CT: control target
= control target key end

     0   :  { %14 = vsyncpa [#allocation8], 0  ;;  %s17338_s0 = inlined_call_operand.vmem [shape: s32[2,1], index: 0, kind: input, shape index: {}]   ;;  %s17339_s1 = inlined_call_operand.hbm [shape: bf16[8,2,128], index: 1, kind: input, shape index: {}]   ;;  %s17340_s2 = inlined_call_operand.hbm [shape: bf16[2,128,512], index: 2, kind: input, shape index: {}]   ;;  %s17341_s3 = inlined_call_operand.hbm [shape: bf16[2,128,512], index: 3, kind: input, shape index: {}]   ;;  %s17342_s4 = inlined_call_operand.vmem [shape: f32[2,1,512], index: 4, kind: input, shape index: {}]   ;;  %s17343_s5 = inlined_call_operand.hbm [shape: bf16[128,128], index: 5, kind: input, shape index: {}]   ;;  %s17344_s6 = inlined_call_operand.vmem [shape: f32[1,128], index: 6, kind: input, shape index: {}]   ;;  %s17345_s7 = inlined_call_operand.hbm [shape: bf16[128,128], index: 7, kind: input, shape index: {}]   ;;  %s17346_s8 = inlined_call_operand.vmem [shape: f32[1,128], index: 8, kind: input, shape index: {}]   ;;  %s17347_s9 = inlined_call_operand.hbm [shape: f32[8,2,128], index: 9, kind: output, shape index: {}]  }
   0x1   :  { %15 = vsyncpa [#allocation11], 0 }
   0x2   :  { %16 = vsyncpa [#allocation14], 0 }
   0x3   :  { %17 = vsyncpa [#allocation9], 0  ;;  %s15035_s30 = smov [#allocation10]   ;;  %s14895_s13 = scalar_lea.hbm %s17340_s2, 8192 }
   0x4   :  { %s37_s10 = sshll.u32 %s15035_s30, 4  ;;  %p14896_p0 = scmp.ne.s32.totalorder %s17340_s2, %s14895_s13  ;;  %s38_s10 = int_to_ptr.vmem [resolvable:$true] %s37_s10 }
   0x5   :  { %p14899_p1 = scmp.lt.u32.totalorder %s14895_s13, %s17340_s2 }
   0x7   :  { %p14901_p2 = pnand %p14899_p1, %p14896_p0 }
   0x9   :  { %14904 = shalt.err (!%p14901_p2)
}
   0xa   :  { %s14905_s18 = scalar_lea.vmem %s38_s10, 8192  ;;  %p14910_p4 = scmp.lt.s32.totalorder %s38_s10, %s38_s10 }
   0xb   :  { %p14906_p3 = scmp.ne.s32.totalorder %s38_s10, %s14905_s18  ;;  %p14911_p5 = scmp.lt.s32.totalorder %s14905_s18, %s14905_s18 }
   0xd   :  { %p14912_p6 = por %p14911_p5, %p14910_p4 }
   0xf   :  { %p14913_p7 = pnand %p14912_p6, %p14906_p3 }
  0x11   :  { %14916 = shalt.err (!%p14913_p7)
}
  0x12   :  { %s15036_s19 = smov 256   ;;  %s15037_s20 = smov 16  }
  0x13   :  { %43 = dma.hbm_to_vmem [thread:$0]  %s17340_s2, 8192, %s38_s10, [#allocation11], %s15036_s19, %s15036_s19, %s15037_s20  }
  0x14   :  { %s15038_s23 = smov [#allocation13]   ;;  %s14917_s27 = scalar_lea.hbm %s17343_s5, 1024 }
  0x15   :  { %s63_s24 = sshll.u32 %s15038_s23, 4  ;;  %p14918_p8 = scmp.ne.s32.totalorder %s17343_s5, %s14917_s27  ;;  %s64_s24 = int_to_ptr.vmem [resolvable:$true] %s63_s24 }
  0x16   :  { %p14921_p9 = scmp.lt.u32.totalorder %s14917_s27, %s17343_s5 }
  0x18   :  { %p14923_p10 = pnand %p14921_p9, %p14918_p8 }
  0x1a   :  { %14926 = shalt.err (!%p14923_p10)
}
  0x1b   :  { %s14927_s12 = scalar_lea.vmem %s64_s24, 1024  ;;  %p14932_p12 = scmp.lt.s32.totalorder %s64_s24, %s64_s24 }
  0x1c   :  { %p14928_p11 = scmp.ne.s32.totalorder %s64_s24, %s14927_s12  ;;  %p14933_p13 = scmp.lt.s32.totalorder %s14927_s12, %s14927_s12 }
  0x1e   :  { %p14934_p0 = por %p14933_p13, %p14932_p12 }
  0x20   :  { %p14935_p1 = pnand %p14934_p0, %p14928_p11 }
  0x22   :  { %14938 = shalt.err (!%p14935_p1)
}
  0x23   :  { %s15039_s2 = smov 64   ;;  %s15040_s10 = smov 4  }
  0x24   :  { %69 = dma.hbm_to_vmem [thread:$0]  %s17343_s5, 1024, %s64_s24, [#allocation14], %s15039_s2, %s15039_s2, %s15040_s10  }
  0x25   :  { %s15041_s15 = smov [#allocation7]   ;;  %s15042_s17 = smov [#allocation12]  }
  0x26   :  { %s25_s16 = sshll.u32 %s15041_s15, 4  ;;  %s49_s18 = sshll.u32 %s15042_s17, 4  ;;  %s26_s16 = int_to_ptr.vmem [resolvable:$true] %s25_s16  ;;  %s50_s18 = int_to_ptr.vmem [resolvable:$true] %s49_s18 }
  0x27   :  { %s14939_s23 = scalar_lea.hbm %s17339_s1, 128 }
  0x28   :  { %p14940_p2 = scmp.ne.s32.totalorder %s17339_s1, %s14939_s23  ;;  %p14943_p3 = scmp.lt.u32.totalorder %s14939_s23, %s17339_s1 }
  0x2a   :  { %p14945_p4 = pnand %p14943_p3, %p14940_p2 }
  0x2c   :  { %14948 = shalt.err (!%p14945_p4)
}
  0x2d   :  { %s14949_s5 = scalar_lea.vmem %s26_s16, 128  ;;  %p14954_p6 = scmp.lt.s32.totalorder %s26_s16, %s26_s16 }
  0x2e   :  { %p14950_p5 = scmp.ne.s32.totalorder %s26_s16, %s14949_s5  ;;  %p14955_p7 = scmp.lt.s32.totalorder %s14949_s5, %s14949_s5 }
  0x30   :  { %p14956_p8 = por %p14955_p7, %p14954_p6 }
  0x32   :  { %p14957_p9 = pnand %p14956_p8, %p14950_p5 }
  0x34   :  { %14960 = shalt.err (!%p14957_p9)
}
  0x35   :  { %s15043_s24 = smov 1   ;;  %s14961_s13 = scalar_lea.hbm %s17341_s3, 8192 }
  0x36   :  { %31 = dma.hbm_to_vmem [thread:$0]  %s17339_s1, 128, %s26_s16, [#allocation8], %s15037_s20, %s15037_s20, %s15043_s24  }
  0x37   :  { %p14962_p10 = scmp.ne.s32.totalorder %s17341_s3, %s14961_s13  ;;  %p14965_p11 = scmp.lt.u32.totalorder %s14961_s13, %s17341_s3 }
  0x39   :  { %p14967_p12 = pnand %p14965_p11, %p14962_p10 }
  0x3b   :  { %14970 = shalt.err (!%p14967_p12)
}
  0x3c   :  { %s14971_s22 = scalar_lea.vmem %s50_s18, 8192  ;;  %p14976_p0 = scmp.lt.s32.totalorder %s50_s18, %s50_s18 }
  0x3d   :  { %p14972_p13 = scmp.ne.s32.totalorder %s50_s18, %s14971_s22  ;;  %p14977_p1 = scmp.lt.s32.totalorder %s14971_s22, %s14971_s22 }
  0x3f   :  { %p14978_p2 = por %p14977_p1, %p14976_p0 }
  0x41   :  { %p14979_p3 = pnand %p14978_p2, %p14972_p13 }
  0x43   :  { %14982 = shalt.err (!%p14979_p3)
}
  0x44   :  { %55 = dma.hbm_to_vmem [thread:$0]  %s17341_s3, 8192, %s50_s18, [#allocation11], %s15036_s19, %s15036_s19, %s15037_s20  }
  0x45   :  { %s15044_s23 = smov [#allocation15]   ;;  %s14983_s28 = scalar_lea.hbm %s17345_s7, 1024 }
  0x46   :  { %s77_s25 = sshll.u32 %s15044_s23, 4  ;;  %p14984_p4 = scmp.ne.s32.totalorder %s17345_s7, %s14983_s28  ;;  %s78_s25 = int_to_ptr.vmem [resolvable:$true] %s77_s25 }
  0x47   :  { %p14987_p5 = scmp.lt.u32.totalorder %s14983_s28, %s17345_s7 }
  0x49   :  { %p14989_p6 = pnand %p14987_p5, %p14984_p4 }
  0x4b   :  { %14992 = shalt.err (!%p14989_p6)
}
  0x4c   :  { %s14993_s11 = scalar_lea.vmem %s78_s25, 1024  ;;  %p14998_p8 = scmp.lt.s32.totalorder %s78_s25, %s78_s25 }
  0x4d   :  { %p14994_p7 = scmp.ne.s32.totalorder %s78_s25, %s14993_s11  ;;  %p14999_p9 = scmp.lt.s32.totalorder %s14993_s11, %s14993_s11 }
  0x4f   :  { %p15000_p10 = por %p14999_p9, %p14998_p8 }
  0x51   :  { %p15001_p11 = pnand %p15000_p10, %p14994_p7 }
  0x53   :  { %15004 = shalt.err (!%p15001_p11)
}
  0x54   :  { %83 = dma.hbm_to_vmem [thread:$0]  %s17345_s7, 1024, %s78_s25, [#allocation14], %s15039_s2, %s15039_s2, %s15040_s10  }
  0x55   :  { %15027 = dma.done.wait [#allocation8], 128  }
  0x56   :  { %15028 = vsyncadd [#allocation8], 4294967168 }
  0x57   :  { %15029 = dma.done.wait [#allocation11], 16384  }
  0x58   :  { %15030 = vsyncadd [#allocation11], 4294950912 }
  0x59   :  { %15031 = dma.done.wait [#allocation14], 2048  }
  0x5a   :  { %15032 = vsyncadd [#allocation14], 4294965248  ;;  %v17354_v0 = vmov 0   ;;  %v15181_v1 = vld [vmem:[#allocation10 + $0x4] ss:$16 sps:$4 sm:$0xff]  }
  0x5b   :  { %350 = vmatprep.mubr.bf16.mxu0 %v17354_v0  ;;  %2524 = vst [vmem:[#allocation5] sm:$0x1] %v17354_v0  ;;  %391 = vmatprep.mubr.bf16.mxu1 %v17354_v0  ;;  %v15183_v2 = vld [vmem:[#allocation10 + $0xc] ss:$16 sps:$4 sm:$0xff]   ;;  %v15186_v3 = vld [vmem:[#allocation10] ss:$16 sps:$4 sm:$0xff]  }
  0x5c   :  { %13981 = vset.pattern.permute.xlu0 %v17354_v0  ;;  %13982 = vset.pattern.permute.xlu1 %v17354_v0  ;;  %v15188_v4 = vld [vmem:[#allocation10 + $0x8] ss:$16 sps:$4 sm:$0xff]   ;;  %v15191_v5 = vld [vmem:[#allocation10 + $0x24] ss:$16 sps:$4 sm:$0xff]   ;;  %v15195_v6 = vld [vmem:[#allocation10 + $0x2c] ss:$16 sps:$4 sm:$0xff]  }
  0x5d   :  { %318 = vmatprep.subr.bf16.mxu0 %v15181_v1  ;;  %359 = vmatprep.subr.bf16.mxu1 %v15183_v2  ;;  %v15197_v7 = vld [vmem:[#allocation10 + $0x20] ss:$16 sps:$4 sm:$0xff]   ;;  %v15200_v8 = vld [vmem:[#allocation10 + $0x28] ss:$16 sps:$4 sm:$0xff]   ;;  %v15203_v9 = vld [vmem:[#allocation10 + $0x44] ss:$16 sps:$4 sm:$0xff]  }
  0x5e   :  { %319 = vmatpush1.bf16.msra.mxu0 %v15186_v3  ;;  %360 = vmatpush1.bf16.msra.mxu1 %v15188_v4  ;;  %v15205_v10 = vld [vmem:[#allocation10 + $0x4c] ss:$16 sps:$4 sm:$0xff]   ;;  %v15207_v11 = vld [vmem:[#allocation10 + $0x40] ss:$16 sps:$4 sm:$0xff]   ;;  %v15209_v12 = vld [vmem:[#allocation10 + $0x48] ss:$16 sps:$4 sm:$0xff]  }
  0x5f   :  { %320 = vmatprep.subr.bf16.mxu0 %v15191_v5  ;;  %361 = vmatprep.subr.bf16.mxu1 %v15195_v6  ;;  %v15213_v13 = vld [vmem:[#allocation10 + $0x64] ss:$16 sps:$4 sm:$0xff]   ;;  %v15217_v14 = vld [vmem:[#allocation10 + $0x6c] ss:$16 sps:$4 sm:$0xff]   ;;  %v15219_v15 = vld [vmem:[#allocation10 + $0x60] ss:$16 sps:$4 sm:$0xff]  }
  0x60   :  { %v15223_v16 = vld [vmem:[#allocation10 + $0x68] ss:$16 sps:$4 sm:$0xff]   ;;  %v15225_v17 = vld [vmem:[#allocation10 + $0x84] ss:$16 sps:$4 sm:$0xff]   ;;  %v15229_v18 = vld [vmem:[#allocation10 + $0x8c] ss:$16 sps:$4 sm:$0xff]  }
  0x61   :  { %v15231_v19 = vld [vmem:[#allocation10 + $0x80] ss:$16 sps:$4 sm:$0xff]   ;;  %v15233_v20 = vld [vmem:[#allocation10 + $0x88] ss:$16 sps:$4 sm:$0xff]   ;;  %v15237_v21 = vld [vmem:[#allocation10 + $0xa4] ss:$16 sps:$4 sm:$0xff]  }
  0x62   :  { %321 = vmatpush1.bf16.msra.mxu0 %v15197_v7  ;;  %362 = vmatpush1.bf16.msra.mxu1 %v15200_v8  ;;  %v15241_v22 = vld [vmem:[#allocation10 + $0xac] ss:$16 sps:$4 sm:$0xff]   ;;  %v15245_v23 = vld [vmem:[#allocation10 + $0xa0] ss:$16 sps:$4 sm:$0xff]   ;;  %v15247_v24 = vld [vmem:[#allocation10 + $0xa8] ss:$16 sps:$4 sm:$0xff]  }
  0x63   :  { %322 = vmatprep.subr.bf16.mxu0 %v15203_v9  ;;  %363 = vmatprep.subr.bf16.mxu1 %v15205_v10  ;;  %v15251_v25 = vld [vmem:[#allocation10 + $0xc4] ss:$16 sps:$4 sm:$0xff]   ;;  %v15253_v26 = vld [vmem:[#allocation10 + $0xcc] ss:$16 sps:$4 sm:$0xff]   ;;  %v15255_v27 = vld [vmem:[#allocation10 + $0xc0] ss:$16 sps:$4 sm:$0xff]  }
  0x64   :  { %v15257_v28 = vld [vmem:[#allocation10 + $0xc8] ss:$16 sps:$4 sm:$0xff]   ;;  %v15259_v29 = vld [vmem:[#allocation10 + $0xe4] ss:$16 sps:$4 sm:$0xff]   ;;  %v15261_v30 = vld [vmem:[#allocation10 + $0xec] ss:$16 sps:$4 sm:$0xff]  }
  0x65   :  { %v15267_v31 = vld [vmem:[#allocation10 + $0xe0] ss:$16 sps:$4 sm:$0xff]   ;;  %v15269_v32 = vld [vmem:[#allocation10 + $0xe8] ss:$16 sps:$4 sm:$0xff]   ;;  %v1324_v37 = vld [vmem:[#allocation7 + $0x4] sm:$0x1] }
  0x66   :  { %323 = vmatpush1.bf16.msra.mxu0 %v15207_v11  ;;  %364 = vmatpush1.bf16.msra.mxu1 %v15209_v12  ;;  %v104_v33 = vld [vmem:[#allocation7] sm:$0x1]  ;;  %v424_v34 = vld [vmem:[#allocation7 + $0x1] sm:$0x1]  ;;  %v724_v35 = vld [vmem:[#allocation7 + $0x2] sm:$0x1] }
  0x67   :  { %324 = vmatprep.subr.bf16.mxu0 %v15213_v13  ;;  %365 = vmatprep.subr.bf16.mxu1 %v15217_v14  ;;  %v1024_v36 = vld [vmem:[#allocation7 + $0x3] sm:$0x1]  ;;  %v14863_v38 = vld [vmem:[#allocation10 + $0x4] ss:$16 sps:$4 sm:$0xff]   ;;  %v14864_v39 = vld [vmem:[#allocation10 + $0xc] ss:$16 sps:$4 sm:$0xff]  }
  0x68   :  { %v14865_v40 = vld [vmem:[#allocation10] ss:$16 sps:$4 sm:$0xff]   ;;  %v14866_v41 = vld [vmem:[#allocation10 + $0x8] ss:$16 sps:$4 sm:$0xff]   ;;  %v14867_v42 = vld [vmem:[#allocation10 + $0x24] ss:$16 sps:$4 sm:$0xff]  }
  0x69   :  { %v14868_v43 = vld [vmem:[#allocation10 + $0x2c] ss:$16 sps:$4 sm:$0xff]   ;;  %v14869_v44 = vld [vmem:[#allocation10 + $0x20] ss:$16 sps:$4 sm:$0xff]   ;;  %v14870_v45 = vld [vmem:[#allocation10 + $0x28] ss:$16 sps:$4 sm:$0xff]  }
  0x6a   :  { %325 = vmatpush1.bf16.msra.mxu0 %v15219_v15  ;;  %366 = vmatpush1.bf16.msra.mxu1 %v15223_v16  ;;  %v14871_v46 = vld [vmem:[#allocation10 + $0x44] ss:$16 sps:$4 sm:$0xff]   ;;  %v14872_v47 = vld [vmem:[#allocation10 + $0x4c] ss:$16 sps:$4 sm:$0xff]   ;;  %v14873_v48 = vld [vmem:[#allocation10 + $0x40] ss:$16 sps:$4 sm:$0xff]  }
  0x6b   :  { %326 = vmatprep.subr.bf16.mxu0 %v15225_v17  ;;  %367 = vmatprep.subr.bf16.mxu1 %v15229_v18  ;;  %v14874_v49 = vld [vmem:[#allocation10 + $0x48] ss:$16 sps:$4 sm:$0xff]   ;;  %v14875_v50 = vld [vmem:[#allocation10 + $0x64] ss:$16 sps:$4 sm:$0xff]   ;;  %v14876_v51 = vld [vmem:[#allocation10 + $0x6c] ss:$16 sps:$4 sm:$0xff]  }
  0x6c   :  { %v14877_v52 = vld [vmem:[#allocation10 + $0x60] ss:$16 sps:$4 sm:$0xff]   ;;  %v14878_v53 = vld [vmem:[#allocation10 + $0x68] ss:$16 sps:$4 sm:$0xff]   ;;  %v14879_v54 = vld [vmem:[#allocation10 + $0x84] ss:$16 sps:$4 sm:$0xff]  }
  0x6d   :  { %v14880_v55 = vld [vmem:[#allocation10 + $0x8c] ss:$16 sps:$4 sm:$0xff]   ;;  %v14881_v56 = vld [vmem:[#allocation10 + $0x80] ss:$16 sps:$4 sm:$0xff]   ;;  %v14882_v57 = vld [vmem:[#allocation10 + $0x88] ss:$16 sps:$4 sm:$0xff]  }
  0x6e   :  { %327 = vmatpush1.bf16.msra.mxu0 %v15231_v19  ;;  %368 = vmatpush1.bf16.msra.mxu1 %v15233_v20  ;;  %v14883_v58 = vld [vmem:[#allocation10 + $0xa4] ss:$16 sps:$4 sm:$0xff]   ;;  %v14884_v59 = vld [vmem:[#allocation10 + $0xac] ss:$16 sps:$4 sm:$0xff]   ;;  %v14885_v60 = vld [vmem:[#allocation10 + $0xa0] ss:$16 sps:$4 sm:$0xff]  }
  0x6f   :  { %328 = vmatprep.subr.bf16.mxu0 %v15237_v21  ;;  %369 = vmatprep.subr.bf16.mxu1 %v15241_v22  ;;  %v14886_v61 = vld [vmem:[#allocation10 + $0xa8] ss:$16 sps:$4 sm:$0xff]   ;;  %v14887_v62 = vld [vmem:[#allocation10 + $0xc4] ss:$16 sps:$4 sm:$0xff]   ;;  %v14888_v63 = vld [vmem:[#allocation10 + $0xcc] ss:$16 sps:$4 sm:$0xff]  }
  0x72   :  { %329 = vmatpush1.bf16.msra.mxu0 %v15245_v23  ;;  %370 = vmatpush1.bf16.msra.mxu1 %v15247_v24 }
  0x73   :  { %330 = vmatprep.subr.bf16.mxu0 %v15251_v25  ;;  %371 = vmatprep.subr.bf16.mxu1 %v15253_v26 }
  0x76   :  { %331 = vmatpush1.bf16.msra.mxu0 %v15255_v27  ;;  %372 = vmatpush1.bf16.msra.mxu1 %v15257_v28 }
  0x77   :  { %332 = vmatprep.subr.bf16.mxu0 %v15259_v29  ;;  %373 = vmatprep.subr.bf16.mxu1 %v15261_v30 }
  0x7a   :  { %333 = vmatpush1.bf16.msra.mxu0 %v15267_v31  ;;  %374 = vmatpush1.bf16.msra.mxu1 %v15269_v32 }
  0x7b   :  { %617 = vmatprep.subr.bf16.mxu0 %v15181_v1  ;;  %658 = vmatprep.subr.bf16.mxu1 %v15183_v2 }
  0x7d   :  { %351 = vmatmul.mubr.bf16.vlgmr.msra.gmra.mrb[0].mxu0 %v104_v33  ;;  %392 = vmatmul.mubr.bf16.vlgmr.msra.gmra.mrb[0].mxu1 %v104_v33  ;;  %v15479_v33 = vld [vmem:[#allocation10 + $0xcc] ss:$16 sps:$4 sm:$0xff]  }
  0x7e   :  { %618 = vmatpush1.bf16.msra.mxu0 %v15186_v3  ;;  %659 = vmatpush1.bf16.msra.mxu1 %v15188_v4 }
  0x7f   :  { %619 = vmatprep.subr.bf16.mxu0 %v15191_v5  ;;  %660 = vmatprep.subr.bf16.mxu1 %v15195_v6 }
  0x80   :  { %649 = vmatprep.mubr.bf16.mxu0 %v17354_v0  ;;  %690 = vmatprep.mubr.bf16.mxu1 %v17354_v0 }
  0x82   :  { %620 = vmatpush1.bf16.msra.mxu0 %v15197_v7  ;;  %661 = vmatpush1.bf16.msra.mxu1 %v15200_v8 }
  0x83   :  { %621 = vmatprep.subr.bf16.mxu0 %v15203_v9  ;;  %662 = vmatprep.subr.bf16.mxu1 %v15205_v10 }
  0x86   :  { %622 = vmatpush1.bf16.msra.mxu0 %v15207_v11  ;;  %663 = vmatpush1.bf16.msra.mxu1 %v15209_v12 }
  0x87   :  { %623 = vmatprep.subr.bf16.mxu0 %v15213_v13  ;;  %664 = vmatprep.subr.bf16.mxu1 %v15217_v14 }
  0x8a   :  { %624 = vmatpush1.bf16.msra.mxu0 %v15219_v15  ;;  %665 = vmatpush1.bf16.msra.mxu1 %v15223_v16 }
  0x8b   :  { %625 = vmatprep.subr.bf16.mxu0 %v15225_v17  ;;  %666 = vmatprep.subr.bf16.mxu1 %v15229_v18 }
  0x8e   :  { %626 = vmatpush1.bf16.msra.mxu0 %v15231_v19  ;;  %667 = vmatpush1.bf16.msra.mxu1 %v15233_v20 }
  0x8f   :  { %627 = vmatprep.subr.bf16.mxu0 %v15237_v21  ;;  %668 = vmatprep.subr.bf16.mxu1 %v15241_v22 }
  0x92   :  { %628 = vmatpush1.bf16.msra.mxu0 %v15245_v23  ;;  %669 = vmatpush1.bf16.msra.mxu1 %v15247_v24 }
  0x93   :  { %629 = vmatprep.subr.bf16.mxu0 %v15251_v25  ;;  %670 = vmatprep.subr.bf16.mxu1 %v15253_v26 }
  0x96   :  { %630 = vmatpush1.bf16.msra.mxu0 %v15255_v27  ;;  %671 = vmatpush1.bf16.msra.mxu1 %v15257_v28 }
  0x97   :  { %631 = vmatprep.subr.bf16.mxu0 %v15259_v29  ;;  %672 = vmatprep.subr.bf16.mxu1 %v15261_v30 }
  0x9a   :  { %632 = vmatpush1.bf16.msra.mxu0 %v15267_v31  ;;  %673 = vmatpush1.bf16.msra.mxu1 %v15269_v32 }
  0x9b   :  { %917 = vmatprep.subr.bf16.mxu0 %v15181_v1  ;;  %958 = vmatprep.subr.bf16.mxu1 %v15183_v2 }
  0x9d   :  { %650 = vmatmul.mubr.bf16.vlgmr.msra.gmra.mrb[4].mxu0 %v424_v34  ;;  %691 = vmatmul.mubr.bf16.vlgmr.msra.gmra.mrb[4].mxu1 %v424_v34  ;;  %v15485_v34 = vld [vmem:[#allocation10 + $0xc0] ss:$16 sps:$4 sm:$0xff]  }
  0x9e   :  { %918 = vmatpush1.bf16.msra.mxu0 %v15186_v3  ;;  %959 = vmatpush1.bf16.msra.mxu1 %v15188_v4 }
  0x9f   :  { %919 = vmatprep.subr.bf16.mxu0 %v15191_v5  ;;  %960 = vmatprep.subr.bf16.mxu1 %v15195_v6 }
  0xa0   :  { %949 = vmatprep.mubr.bf16.mxu0 %v17354_v0  ;;  %990 = vmatprep.mubr.bf16.mxu1 %v17354_v0 }
  0xa2   :  { %920 = vmatpush1.bf16.msra.mxu0 %v15197_v7  ;;  %961 = vmatpush1.bf16.msra.mxu1 %v15200_v8 }
  0xa3   :  { %921 = vmatprep.subr.bf16.mxu0 %v15203_v9  ;;  %962 = vmatprep.subr.bf16.mxu1 %v15205_v10 }
  0xa6   :  { %922 = vmatpush1.bf16.msra.mxu0 %v15207_v11  ;;  %963 = vmatpush1.bf16.msra.mxu1 %v15209_v12 }
  0xa7   :  { %923 = vmatprep.subr.bf16.mxu0 %v15213_v13  ;;  %964 = vmatprep.subr.bf16.mxu1 %v15217_v14 }
  0xaa   :  { %924 = vmatpush1.bf16.msra.mxu0 %v15219_v15  ;;  %965 = vmatpush1.bf16.msra.mxu1 %v15223_v16 }
  0xab   :  { %925 = vmatprep.subr.bf16.mxu0 %v15225_v17  ;;  %966 = vmatprep.subr.bf16.mxu1 %v15229_v18 }
  0xae   :  { %926 = vmatpush1.bf16.msra.mxu0 %v15231_v19  ;;  %967 = vmatpush1.bf16.msra.mxu1 %v15233_v20 }
  0xaf   :  { %927 = vmatprep.subr.bf16.mxu0 %v15237_v21  ;;  %968 = vmatprep.subr.bf16.mxu1 %v15241_v22 }
  0xb2   :  { %928 = vmatpush1.bf16.msra.mxu0 %v15245_v23  ;;  %969 = vmatpush1.bf16.msra.mxu1 %v15247_v24 }
  0xb3   :  { %929 = vmatprep.subr.bf16.mxu0 %v15251_v25  ;;  %970 = vmatprep.subr.bf16.mxu1 %v15253_v26 }
  0xb6   :  { %930 = vmatpush1.bf16.msra.mxu0 %v15255_v27  ;;  %971 = vmatpush1.bf16.msra.mxu1 %v15257_v28 }
  0xb7   :  { %931 = vmatprep.subr.bf16.mxu0 %v15259_v29  ;;  %972 = vmatprep.subr.bf16.mxu1 %v15261_v30 }
  0xba   :  { %932 = vmatpush1.bf16.msra.mxu0 %v15267_v31  ;;  %973 = vmatpush1.bf16.msra.mxu1 %v15269_v32 }
  0xbb   :  { %1217 = vmatprep.subr.bf16.mxu0 %v15181_v1  ;;  %1258 = vmatprep.subr.bf16.mxu1 %v15183_v2 }
  0xbd   :  { %950 = vmatmul.mubr.bf16.vlgmr.msra.gmra.mrb[8].mxu0 %v724_v35  ;;  %991 = vmatmul.mubr.bf16.vlgmr.msra.gmra.mrb[8].mxu1 %v724_v35  ;;  %v15487_v35 = vld [vmem:[#allocation10 + $0xc8] ss:$16 sps:$4 sm:$0xff]  }
  0xbe   :  { %1218 = vmatpush1.bf16.msra.mxu0 %v15186_v3  ;;  %1259 = vmatpush1.bf16.msra.mxu1 %v15188_v4 }
  0xbf   :  { %1219 = vmatprep.subr.bf16.mxu0 %v15191_v5  ;;  %1260 = vmatprep.subr.bf16.mxu1 %v15195_v6 }
  0xc0   :  { %1249 = vmatprep.mubr.bf16.mxu0 %v17354_v0  ;;  %1290 = vmatprep.mubr.bf16.mxu1 %v17354_v0 }
  0xc2   :  { %1220 = vmatpush1.bf16.msra.mxu0 %v15197_v7  ;;  %1261 = vmatpush1.bf16.msra.mxu1 %v15200_v8 }
  0xc3   :  { %1221 = vmatprep.subr.bf16.mxu0 %v15203_v9  ;;  %1262 = vmatprep.subr.bf16.mxu1 %v15205_v10 }
  0xc6   :  { %1222 = vmatpush1.bf16.msra.mxu0 %v15207_v11  ;;  %1263 = vmatpush1.bf16.msra.mxu1 %v15209_v12 }
  0xc7   :  { %1223 = vmatprep.subr.bf16.mxu0 %v15213_v13  ;;  %1264 = vmatprep.subr.bf16.mxu1 %v15217_v14 }
  0xca   :  { %1224 = vmatpush1.bf16.msra.mxu0 %v15219_v15  ;;  %1265 = vmatpush1.bf16.msra.mxu1 %v15223_v16 }
  0xcb   :  { %1225 = vmatprep.subr.bf16.mxu0 %v15225_v17  ;;  %1266 = vmatprep.subr.bf16.mxu1 %v15229_v18 }
  0xce   :  { %1226 = vmatpush1.bf16.msra.mxu0 %v15231_v19  ;;  %1267 = vmatpush1.bf16.msra.mxu1 %v15233_v20 }
  0xcf   :  { %1227 = vmatprep.subr.bf16.mxu0 %v15237_v21  ;;  %1268 = vmatprep.subr.bf16.mxu1 %v15241_v22 }
  0xd2   :  { %1228 = vmatpush1.bf16.msra.mxu0 %v15245_v23  ;;  %1269 = vmatpush1.bf16.msra.mxu1 %v15247_v24 }
  0xd3   :  { %1229 = vmatprep.subr.bf16.mxu0 %v15251_v25  ;;  %1270 = vmatprep.subr.bf16.mxu1 %v15253_v26 }
  0xd6   :  { %1230 = vmatpush1.bf16.msra.mxu0 %v15255_v27  ;;  %1271 = vmatpush1.bf16.msra.mxu1 %v15257_v28 }
  0xd7   :  { %1231 = vmatprep.subr.bf16.mxu0 %v15259_v29  ;;  %1272 = vmatprep.subr.bf16.mxu1 %v15261_v30 }
  0xda   :  { %1232 = vmatpush1.bf16.msra.mxu0 %v15267_v31  ;;  %1273 = vmatpush1.bf16.msra.mxu1 %v15269_v32 }
  0xdb   :  { %1517 = vmatprep.subr.bf16.mxu0 %v15181_v1  ;;  %1558 = vmatprep.subr.bf16.mxu1 %v15183_v2  ;;  %v15415_v1 = vld [vmem:[#allocation10 + $0x4] ss:$16 sps:$4 sm:$0xff]   ;;  %v15417_v2 = vld [vmem:[#allocation10 + $0xc] ss:$16 sps:$4 sm:$0xff]  }
  0xdd   :  { %1250 = vmatmul.mubr.bf16.vlgmr.msra.gmra.mrb[12].mxu0 %v1024_v36  ;;  %1291 = vmatmul.mubr.bf16.vlgmr.msra.gmra.mrb[12].mxu1 %v1024_v36  ;;  %v15489_v36 = vld [vmem:[#allocation10 + $0xe4] ss:$16 sps:$4 sm:$0xff]  }
  0xde   :  { %1518 = vmatpush1.bf16.msra.mxu0 %v15186_v3  ;;  %1559 = vmatpush1.bf16.msra.mxu1 %v15188_v4  ;;  %v14889_v3 = vld [vmem:[#allocation10 + $0xc0] ss:$16 sps:$4 sm:$0xff]   ;;  %v14890_v4 = vld [vmem:[#allocation10 + $0xc8] ss:$16 sps:$4 sm:$0xff]  }
  0xdf   :  { %1519 = vmatprep.subr.bf16.mxu0 %v15191_v5  ;;  %1560 = vmatprep.subr.bf16.mxu1 %v15195_v6  ;;  %v14891_v5 = vld [vmem:[#allocation10 + $0xe4] ss:$16 sps:$4 sm:$0xff]   ;;  %v14892_v6 = vld [vmem:[#allocation10 + $0xec] ss:$16 sps:$4 sm:$0xff]  }
  0xe0   :  { %1549 = vmatprep.mubr.bf16.mxu0 %v17354_v0  ;;  %1590 = vmatprep.mubr.bf16.mxu1 %v17354_v0 }
  0xe2   :  { %1520 = vmatpush1.bf16.msra.mxu0 %v15197_v7  ;;  %1561 = vmatpush1.bf16.msra.mxu1 %v15200_v8  ;;  %v1624_v7 = vld [vmem:[#allocation7 + $0x5] sm:$0x1]  ;;  %v15419_v8 = vld [vmem:[#allocation10] ss:$16 sps:$4 sm:$0xff]  }
  0xe3   :  { %1521 = vmatprep.subr.bf16.mxu0 %v15203_v9  ;;  %1562 = vmatprep.subr.bf16.mxu1 %v15205_v10  ;;  %v15421_v9 = vld [vmem:[#allocation10 + $0x8] ss:$16 sps:$4 sm:$0xff]   ;;  %v15423_v10 = vld [vmem:[#allocation10 + $0x24] ss:$16 sps:$4 sm:$0xff]  }
  0xe6   :  { %1522 = vmatpush1.bf16.msra.mxu0 %v15207_v11  ;;  %1563 = vmatpush1.bf16.msra.mxu1 %v15209_v12  ;;  %v15425_v11 = vld [vmem:[#allocation10 + $0x2c] ss:$16 sps:$4 sm:$0xff]   ;;  %v14893_v12 = vld [vmem:[#allocation10 + $0xe0] ss:$16 sps:$4 sm:$0xff]  }
  0xe7   :  { %1523 = vmatprep.subr.bf16.mxu0 %v15213_v13  ;;  %1564 = vmatprep.subr.bf16.mxu1 %v15217_v14  ;;  %v14894_v13 = vld [vmem:[#allocation10 + $0xe8] ss:$16 sps:$4 sm:$0xff]   ;;  %v15429_v14 = vld [vmem:[#allocation10 + $0x20] ss:$16 sps:$4 sm:$0xff]  }
  0xea   :  { %1524 = vmatpush1.bf16.msra.mxu0 %v15219_v15  ;;  %1565 = vmatpush1.bf16.msra.mxu1 %v15223_v16  ;;  %v15431_v15 = vld [vmem:[#allocation10 + $0x28] ss:$16 sps:$4 sm:$0xff]   ;;  %v15433_v16 = vld [vmem:[#allocation10 + $0x44] ss:$16 sps:$4 sm:$0xff]  }
  0xeb   :  { %1525 = vmatprep.subr.bf16.mxu0 %v15225_v17  ;;  %1566 = vmatprep.subr.bf16.mxu1 %v15229_v18  ;;  %v15435_v17 = vld [vmem:[#allocation10 + $0x4c] ss:$16 sps:$4 sm:$0xff]   ;;  %v15441_v18 = vld [vmem:[#allocation10 + $0x40] ss:$16 sps:$4 sm:$0xff]  }
  0xee   :  { %1526 = vmatpush1.bf16.msra.mxu0 %v15231_v19  ;;  %1567 = vmatpush1.bf16.msra.mxu1 %v15233_v20  ;;  %v15443_v19 = vld [vmem:[#allocation10 + $0x48] ss:$16 sps:$4 sm:$0xff]   ;;  %v15447_v20 = vld [vmem:[#allocation10 + $0x64] ss:$16 sps:$4 sm:$0xff]  }
  0xef   :  { %1527 = vmatprep.subr.bf16.mxu0 %v15237_v21  ;;  %1568 = vmatprep.subr.bf16.mxu1 %v15241_v22  ;;  %v15449_v21 = vld [vmem:[#allocation10 + $0x6c] ss:$16 sps:$4 sm:$0xff]   ;;  %v14049_v22 = vld [vmem:[#allocation10 + $0x60] ss:$16 sps:$4 sm:$0xff]  }
  0xf2   :  { %1528 = vmatpush1.bf16.msra.mxu0 %v15245_v23  ;;  %1569 = vmatpush1.bf16.msra.mxu1 %v15247_v24  ;;  %v14052_v23 = vld [vmem:[#allocation10 + $0x68] ss:$16 sps:$4 sm:$0xff]   ;;  %v15455_v24 = vld [vmem:[#allocation10 + $0x84] ss:$16 sps:$4 sm:$0xff]  }
  0xf3   :  { %1529 = vmatprep.subr.bf16.mxu0 %v15251_v25  ;;  %1570 = vmatprep.subr.bf16.mxu1 %v15253_v26  ;;  %v15457_v25 = vld [vmem:[#allocation10 + $0x8c] ss:$16 sps:$4 sm:$0xff]   ;;  %v15463_v26 = vld [vmem:[#allocation10 + $0x80] ss:$16 sps:$4 sm:$0xff]  }
  0xf6   :  { %1530 = vmatpush1.bf16.msra.mxu0 %v15255_v27  ;;  %1571 = vmatpush1.bf16.msra.mxu1 %v15257_v28  ;;  %v15465_v27 = vld [vmem:[#allocation10 + $0x88] ss:$16 sps:$4 sm:$0xff]   ;;  %v15467_v28 = vld [vmem:[#allocation10 + $0xa4] ss:$16 sps:$4 sm:$0xff]  }
  0xf7   :  { %1531 = vmatprep.subr.bf16.mxu0 %v15259_v29  ;;  %1572 = vmatprep.subr.bf16.mxu1 %v15261_v30  ;;  %v15469_v29 = vld [vmem:[#allocation10 + $0xac] ss:$16 sps:$4 sm:$0xff]   ;;  %v15473_v30 = vld [vmem:[#allocation10 + $0xa0] ss:$16 sps:$4 sm:$0xff]  }
  0xfa   :  { %1532 = vmatpush1.bf16.msra.mxu0 %v15267_v31  ;;  %1573 = vmatpush1.bf16.msra.mxu1 %v15269_v32  ;;  %v15475_v31 = vld [vmem:[#allocation10 + $0xa8] ss:$16 sps:$4 sm:$0xff]   ;;  %v15477_v32 = vld [vmem:[#allocation10 + $0xc4] ss:$16 sps:$4 sm:$0xff]  }
  0xfb   :  { %1817 = vmatprep.subr.bf16.mxu0 %v14863_v38  ;;  %1858 = vmatprep.subr.bf16.mxu1 %v14864_v39  ;;  %v15497_v38 = vld [vmem:[#allocation10 + $0xe0] ss:$16 sps:$4 sm:$0xff]   ;;  %v15499_v39 = vld [vmem:[#allocation10 + $0xe8] ss:$16 sps:$4 sm:$0xff]  }
  0xfd   :  { %1550 = vmatmul.mubr.bf16.vlgmr.msra.gmra.mrb[16].mxu0 %v1324_v37  ;;  %1591 = vmatmul.mubr.bf16.vlgmr.msra.gmra.mrb[16].mxu1 %v1324_v37  ;;  %v15491_v37 = vld [vmem:[#allocation10 + $0xec] ss:$16 sps:$4 sm:$0xff]  }
  0xfe   :  { %1818 = vmatpush1.bf16.msra.mxu0 %v14865_v40  ;;  %1859 = vmatpush1.bf16.msra.mxu1 %v14866_v41  ;;  %v1924_v40 = vld [vmem:[#allocation7 + $0x6] sm:$0x1]  ;;  %v138_v41 = vlaneseq }
  0xff   :  { %1819 = vmatprep.subr.bf16.mxu0 %v14867_v42  ;;  %1860 = vmatprep.subr.bf16.mxu1 %v14868_v43 }
 0x100   :  { %1849 = vmatprep.mubr.bf16.mxu0 %v17354_v0  ;;  %1890 = vmatprep.mubr.bf16.mxu1 %v17354_v0  ;;  %v15519_v42 = vshrl.u32 %v138_v41, 7 }
 0x102   :  { %1820 = vmatpush1.bf16.msra.mxu0 %v14869_v44  ;;  %1861 = vmatpush1.bf16.msra.mxu1 %v14870_v45  ;;  %17376 = vst [vmem:[#allocation21_spill] sm:$0xff] %v15519_v42  ;;  %v17351_v43 = vsub.s32 0, %v15519_v42  ;;  %v17350_v44 = vsub.s32 2, %v15519_v42  ;;  %v103_v45 = vld [vmem:[%s17342_s4] sm:$0xf] }
 0x103   :  { %1821 = vmatprep.subr.bf16.mxu0 %v14871_v46  ;;  %1862 = vmatprep.subr.bf16.mxu1 %v14872_v47  ;;  %v17349_v46 = vsub.s32 1, %v15519_v42  ;;  %v15046_v47 = vmov 1983009808  }
 0x106   :  { %1822 = vmatpush1.bf16.msra.mxu0 %v14873_v48  ;;  %1863 = vmatpush1.bf16.msra.mxu1 %v14874_v49  ;;  %v407_v48 = vunpack.c.l.s4 %v15046_v47  ;;  %v17348_v49 = vsub.s32 3, %v15519_v42 }
 0x107   :  { %1823 = vmatprep.subr.bf16.mxu0 %v14875_v50  ;;  %1864 = vmatprep.subr.bf16.mxu1 %v14876_v51  ;;  %v15536_v50 = vrot.slane %v103_v45, %v17351_v43  ;;  %v15540_v51 = vrot.slane %v103_v45, %v17350_v44 }
 0x10a   :  { %1824 = vmatpush1.bf16.msra.mxu0 %v14877_v52  ;;  %1865 = vmatpush1.bf16.msra.mxu1 %v14878_v53  ;;  %v15546_v52 = vrot.slane %v103_v45, %v17349_v46  ;;  %v408_v53 = vunpack.c.0.s8 %v407_v48 }
 0x10b   :  { %1825 = vmatprep.subr.bf16.mxu0 %v14879_v54  ;;  %1866 = vmatprep.subr.bf16.mxu1 %v14880_v55  ;;  %v15550_v54 = vrot.slane %v103_v45, %v17348_v49 }
 0x10e   :  { %1826 = vmatpush1.bf16.msra.mxu0 %v14881_v56  ;;  %1867 = vmatpush1.bf16.msra.mxu1 %v14882_v57 }
 0x10f   :  { %1827 = vmatprep.subr.bf16.mxu0 %v14883_v58  ;;  %1868 = vmatprep.subr.bf16.mxu1 %v14884_v59 }
 0x112   :  { %1828 = vmatpush1.bf16.msra.mxu0 %v14885_v60  ;;  %1869 = vmatpush1.bf16.msra.mxu1 %v14886_v61 }
 0x113   :  { %1829 = vmatprep.subr.bf16.mxu0 %v14887_v62  ;;  %1870 = vmatprep.subr.bf16.mxu1 %v14888_v63  ;;  %v15558_v62 = vsub.s32 %v408_v53, %v15519_v42 }
 0x116   :  { %1830 = vmatpush1.bf16.msra.mxu0 %v14889_v3  ;;  %1871 = vmatpush1.bf16.msra.mxu1 %v14890_v4 }
 0x117   :  { %1831 = vmatprep.subr.bf16.mxu0 %v14891_v5  ;;  %1872 = vmatprep.subr.bf16.mxu1 %v14892_v6 }
 0x11a   :  { %1832 = vmatpush1.bf16.msra.mxu0 %v14893_v12  ;;  %1873 = vmatpush1.bf16.msra.mxu1 %v14894_v13  ;;  %v2224_v12 = vld [vmem:[#allocation7 + $0x7] sm:$0x1]  ;;  %v15583_v13 = vld [vmem:[#allocation12] ss:$16 sps:$4 sm:$0xff]  }
 0x11b   :  { %2117 = vmatprep.subr.bf16.mxu0 %v15415_v1  ;;  %2158 = vmatprep.subr.bf16.mxu1 %v15417_v2 }
 0x11d   :  { %1850 = vmatmul.mubr.bf16.vlgmr.msra.gmra.mrb[20].mxu0 %v1624_v7  ;;  %1891 = vmatmul.mubr.bf16.vlgmr.msra.gmra.mrb[20].mxu1 %v1624_v7 }
 0x11e   :  { %2118 = vmatpush1.bf16.msra.mxu0 %v15419_v8  ;;  %2159 = vmatpush1.bf16.msra.mxu1 %v15421_v9 }
 0x11f   :  { %2119 = vmatprep.subr.bf16.mxu0 %v15423_v10  ;;  %2160 = vmatprep.subr.bf16.mxu1 %v15425_v11 }
 0x120   :  { %2149 = vmatprep.mubr.bf16.mxu0 %v17354_v0  ;;  %2190 = vmatprep.mubr.bf16.mxu1 %v17354_v0 }
 0x122   :  { %2120 = vmatpush1.bf16.msra.mxu0 %v15429_v14  ;;  %2161 = vmatpush1.bf16.msra.mxu1 %v15431_v15 }
 0x123   :  { %2121 = vmatprep.subr.bf16.mxu0 %v15433_v16  ;;  %2162 = vmatprep.subr.bf16.mxu1 %v15435_v17 }
 0x126   :  { %2122 = vmatpush1.bf16.msra.mxu0 %v15441_v18  ;;  %2163 = vmatpush1.bf16.msra.mxu1 %v15443_v19 }
 0x127   :  { %2123 = vmatprep.subr.bf16.mxu0 %v15447_v20  ;;  %2164 = vmatprep.subr.bf16.mxu1 %v15449_v21 }
 0x12a   :  { %2124 = vmatpush1.bf16.msra.mxu0 %v14049_v22  ;;  %2165 = vmatpush1.bf16.msra.mxu1 %v14052_v23 }
 0x12b   :  { %2125 = vmatprep.subr.bf16.mxu0 %v15455_v24  ;;  %2166 = vmatprep.subr.bf16.mxu1 %v15457_v25 }
 0x12e   :  { %2126 = vmatpush1.bf16.msra.mxu0 %v15463_v26  ;;  %2167 = vmatpush1.bf16.msra.mxu1 %v15465_v27 }
 0x12f   :  { %2127 = vmatprep.subr.bf16.mxu0 %v15467_v28  ;;  %2168 = vmatprep.subr.bf16.mxu1 %v15469_v29 }
 0x132   :  { %2128 = vmatpush1.bf16.msra.mxu0 %v15473_v30  ;;  %2169 = vmatpush1.bf16.msra.mxu1 %v15475_v31 }
 0x133   :  { %2129 = vmatprep.subr.bf16.mxu0 %v15477_v32  ;;  %2170 = vmatprep.subr.bf16.mxu1 %v15479_v33 }
 0x136   :  { %2130 = vmatpush1.bf16.msra.mxu0 %v15485_v34  ;;  %2171 = vmatpush1.bf16.msra.mxu1 %v15487_v35 }
 0x137   :  { %2131 = vmatprep.subr.bf16.mxu0 %v15489_v36  ;;  %2172 = vmatprep.subr.bf16.mxu1 %v15491_v37 }
 0x13a   :  { %2132 = vmatpush1.bf16.msra.mxu0 %v15497_v38  ;;  %2173 = vmatpush1.bf16.msra.mxu1 %v15499_v39 }
 0x13b   :  { %2417 = vmatprep.subr.bf16.mxu0 %v15415_v1  ;;  %2458 = vmatprep.subr.bf16.mxu1 %v15417_v2 }
 0x13d   :  { %2150 = vmatmul.mubr.bf16.vlgmr.msra.gmra.mrb[24].mxu0 %v1924_v40  ;;  %2191 = vmatmul.mubr.bf16.vlgmr.msra.gmra.mrb[24].mxu1 %v1924_v40 }
 0x13e   :  { %2418 = vmatpush1.bf16.msra.mxu0 %v15419_v8  ;;  %2459 = vmatpush1.bf16.msra.mxu1 %v15421_v9  ;;  %v15575_v9 = vld [vmem:[#allocation12 + $0x4] ss:$16 sps:$4 sm:$0xff]  }
 0x13f   :  { %2419 = vmatprep.subr.bf16.mxu0 %v15423_v10  ;;  %2460 = vmatprep.subr.bf16.mxu1 %v15425_v11  ;;  %v15577_v10 = vld [vmem:[#allocation12 + $0xc] ss:$16 sps:$4 sm:$0xff]  }
 0x140   :  { %2449 = vmatprep.mubr.bf16.mxu0 %v17354_v0  ;;  %2490 = vmatprep.mubr.bf16.mxu1 %v17354_v0 }
 0x142   :  { %2420 = vmatpush1.bf16.msra.mxu0 %v15429_v14  ;;  %2461 = vmatpush1.bf16.msra.mxu1 %v15431_v15  ;;  %v15585_v14 = vld [vmem:[#allocation12 + $0x8] ss:$16 sps:$4 sm:$0xff]   ;;  %v15589_v15 = vld [vmem:[#allocation12 + $0x24] ss:$16 sps:$4 sm:$0xff]  }
 0x143   :  { %2421 = vmatprep.subr.bf16.mxu0 %v15433_v16  ;;  %2462 = vmatprep.subr.bf16.mxu1 %v15435_v17  ;;  %v15591_v16 = vld [vmem:[#allocation12 + $0x2c] ss:$16 sps:$4 sm:$0xff]   ;;  %v15595_v17 = vld [vmem:[#allocation12 + $0x20] ss:$16 sps:$4 sm:$0xff]  }
 0x146   :  { %2422 = vmatpush1.bf16.msra.mxu0 %v15441_v18  ;;  %2463 = vmatpush1.bf16.msra.mxu1 %v15443_v19  ;;  %v15597_v18 = vld [vmem:[#allocation12 + $0x28] ss:$16 sps:$4 sm:$0xff]   ;;  %v15601_v19 = vld [vmem:[#allocation12 + $0x44] ss:$16 sps:$4 sm:$0xff]  }
 0x147   :  { %2423 = vmatprep.subr.bf16.mxu0 %v15447_v20  ;;  %2464 = vmatprep.subr.bf16.mxu1 %v15449_v21  ;;  %v15603_v20 = vld [vmem:[#allocation12 + $0x4c] ss:$16 sps:$4 sm:$0xff]   ;;  %v15609_v21 = vld [vmem:[#allocation12 + $0x40] ss:$16 sps:$4 sm:$0xff]  }
 0x14a   :  { %2424 = vmatpush1.bf16.msra.mxu0 %v14049_v22  ;;  %2465 = vmatpush1.bf16.msra.mxu1 %v14052_v23  ;;  %v15611_v22 = vld [vmem:[#allocation12 + $0x48] ss:$16 sps:$4 sm:$0xff]   ;;  %v15615_v23 = vld [vmem:[#allocation12 + $0x64] ss:$16 sps:$4 sm:$0xff]  }
 0x14b   :  { %2425 = vmatprep.subr.bf16.mxu0 %v15455_v24  ;;  %2466 = vmatprep.subr.bf16.mxu1 %v15457_v25  ;;  %v15617_v24 = vld [vmem:[#allocation12 + $0x6c] ss:$16 sps:$4 sm:$0xff]   ;;  %v15621_v25 = vld [vmem:[#allocation12 + $0x60] ss:$16 sps:$4 sm:$0xff]  }
 0x14e   :  { %2426 = vmatpush1.bf16.msra.mxu0 %v15463_v26  ;;  %2467 = vmatpush1.bf16.msra.mxu1 %v15465_v27  ;;  %v15623_v26 = vld [vmem:[#allocation12 + $0x68] ss:$16 sps:$4 sm:$0xff]   ;;  %v15627_v27 = vld [vmem:[#allocation12 + $0x84] ss:$16 sps:$4 sm:$0xff]  }
 0x14f   :  { %2427 = vmatprep.subr.bf16.mxu0 %v15467_v28  ;;  %2468 = vmatprep.subr.bf16.mxu1 %v15469_v29  ;;  %v15629_v28 = vld [vmem:[#allocation12 + $0x8c] ss:$16 sps:$4 sm:$0xff]   ;;  %v15633_v29 = vld [vmem:[#allocation12 + $0x80] ss:$16 sps:$4 sm:$0xff]  }
 0x150   :  { %v352_v55 = vpop.f32.mrb[0].mxu0  ;;  %v393_v56 = vpop.f32.mrb[0].mxu1 }
 0x151   :  { %v353_v57 = vadd.f32 %v352_v55, %v15536_v50  ;;  %v394_v58 = vadd.f32 %v393_v56, %v15540_v51  ;;  %v354_v59 = vpop.f32.mrb[1].mxu0  ;;  %v395_v60 = vpop.f32.mrb[1].mxu1  ;;  %v15661_v56 = vld [vmem:[#allocation12 + $0xc0] ss:$16 sps:$4 sm:$0xff]  }
 0x152   :  { %v355_v61 = vadd.f32 %v354_v59, %v15546_v52  ;;  %v396_v63 = vadd.f32 %v395_v60, %v15550_v54  ;;  %v356_v1 = vpop.f32.mrb[2].mxu0  ;;  %v397_v2 = vpop.f32.mrb[2].mxu1  ;;  %2428 = vmatpush1.bf16.msra.mxu0 %v15473_v30  ;;  %2469 = vmatpush1.bf16.msra.mxu1 %v15475_v31  ;;  %v15635_v30 = vld [vmem:[#allocation12 + $0x88] ss:$16 sps:$4 sm:$0xff]   ;;  %v15639_v31 = vld [vmem:[#allocation12 + $0xa4] ss:$16 sps:$4 sm:$0xff]  }
 0x153   :  { %v357_v3 = vpop.f32.mrb[3].mxu0  ;;  %v398_v4 = vpop.f32.mrb[3].mxu1  ;;  %2429 = vmatprep.subr.bf16.mxu0 %v15477_v32  ;;  %2470 = vmatprep.subr.bf16.mxu1 %v15479_v33  ;;  %v15641_v32 = vld [vmem:[#allocation12 + $0xac] ss:$16 sps:$4 sm:$0xff]   ;;  %v15645_v33 = vld [vmem:[#allocation12 + $0xa0] ss:$16 sps:$4 sm:$0xff]  }
 0x154   :  { %v404_v5 = vcombine.low %v353_v57, %v355_v61  ;;  %v405_v6 = vcombine.low %v394_v58, %v396_v63  ;;  %v15663_v57 = vld [vmem:[#allocation12 + $0xc8] ss:$16 sps:$4 sm:$0xff]   ;;  %v15667_v60 = vld [vmem:[#allocation12 + $0xe4] ss:$16 sps:$4 sm:$0xff]   ;;  %v15669_v61 = vld [vmem:[#allocation12 + $0xec] ss:$16 sps:$4 sm:$0xff]  }
 0x155   :  { %v15679_v4 = vld [vmem:[#allocation12 + $0xe0] ss:$16 sps:$4 sm:$0xff]  }
 0x156   :  { %v15566_v7 = vrot.slane %v404_v5, %v15558_v62  ;;  %v15569_v8 = vrot.slane %v405_v6, %v15558_v62  ;;  %2430 = vmatpush1.bf16.msra.mxu0 %v15485_v34  ;;  %2471 = vmatpush1.bf16.msra.mxu1 %v15487_v35  ;;  %v15647_v34 = vld [vmem:[#allocation12 + $0xa8] ss:$16 sps:$4 sm:$0xff]   ;;  %v15651_v35 = vld [vmem:[#allocation12 + $0xc4] ss:$16 sps:$4 sm:$0xff]  }
 0x157   :  { %2431 = vmatprep.subr.bf16.mxu0 %v15489_v36  ;;  %2472 = vmatprep.subr.bf16.mxu1 %v15491_v37  ;;  %v15653_v36 = vld [vmem:[#allocation12 + $0xcc] ss:$16 sps:$4 sm:$0xff]   ;;  %v15681_v5 = vld [vmem:[#allocation12 + $0xe8] ss:$16 sps:$4 sm:$0xff]  }
 0x158   :  { %v15686_v6 = vld [vmem:[%s17338_s0] sm:$0x3] }
 0x159   :  { %vm2857_vm0 = vcmp.gt.s32.totalorder %v15686_v6, 0  ;;  %vm3204_vm1 = vcmp.gt.s32.totalorder %v15686_v6, 1  ;;  %vm4248_vm2 = vcmp.gt.s32.totalorder %v15686_v6, 4  ;;  %vm4944_vm3 = vcmp.gt.s32.totalorder %v15686_v6, 6 }
 0x15a   :  { %2432 = vmatpush1.bf16.msra.mxu0 %v15497_v38  ;;  %2473 = vmatpush1.bf16.msra.mxu1 %v15499_v39  ;;  %vm3552_vm5 = vcmp.gt.s32.totalorder %v15686_v6, 2  ;;  %vm3900_vm6 = vcmp.gt.s32.totalorder %v15686_v6, 3  ;;  %vm4596_vm7 = vcmp.gt.s32.totalorder %v15686_v6, 5  ;;  %vm5292_vm8 = vcmp.gt.s32.totalorder %v15686_v6, 7 }
 0x15b   :  { %2720 = vmatprep.subr.bf16.mxu0 %v15575_v9  ;;  %2761 = vmatprep.subr.bf16.mxu1 %v15577_v10 }
 0x15d   :  { %2450 = vmatmul.mubr.bf16.vlgmr.msra.gmra.mrb[28].mxu0 %v2224_v12  ;;  %2491 = vmatmul.mubr.bf16.vlgmr.msra.gmra.mrb[28].mxu1 %v2224_v12 }
 0x15e   :  { %2721 = vmatpush1.bf16.msra.mxu0 %v15583_v13  ;;  %2762 = vmatpush1.bf16.msra.mxu1 %v15585_v14 }
 0x15f   :  { %2722 = vmatprep.subr.bf16.mxu0 %v15589_v15  ;;  %2763 = vmatprep.subr.bf16.mxu1 %v15591_v16 }
 0x160   :  { %2752 = vmatprep.mubr.bf16.mxu0 %v17354_v0  ;;  %2793 = vmatprep.mubr.bf16.mxu1 %v17354_v0 }
 0x162   :  { %2723 = vmatpush1.bf16.msra.mxu0 %v15595_v17  ;;  %2764 = vmatpush1.bf16.msra.mxu1 %v15597_v18 }
 0x163   :  { %2724 = vmatprep.subr.bf16.mxu0 %v15601_v19  ;;  %2765 = vmatprep.subr.bf16.mxu1 %v15603_v20 }
 0x166   :  { %2725 = vmatpush1.bf16.msra.mxu0 %v15609_v21  ;;  %2766 = vmatpush1.bf16.msra.mxu1 %v15611_v22 }
 0x167   :  { %2726 = vmatprep.subr.bf16.mxu0 %v15615_v23  ;;  %2767 = vmatprep.subr.bf16.mxu1 %v15617_v24 }
 0x16a   :  { %2727 = vmatpush1.bf16.msra.mxu0 %v15621_v25  ;;  %2768 = vmatpush1.bf16.msra.mxu1 %v15623_v26 }
 0x16b   :  { %2728 = vmatprep.subr.bf16.mxu0 %v15627_v27  ;;  %2769 = vmatprep.subr.bf16.mxu1 %v15629_v28 }
 0x16e   :  { %2729 = vmatpush1.bf16.msra.mxu0 %v15633_v29  ;;  %2770 = vmatpush1.bf16.msra.mxu1 %v15635_v30 }
 0x16f   :  { %2730 = vmatprep.subr.bf16.mxu0 %v15639_v31  ;;  %2771 = vmatprep.subr.bf16.mxu1 %v15641_v32 }
 0x170   :  { %v651_v37 = vpop.f32.mrb[4].mxu0  ;;  %v692_v38 = vpop.f32.mrb[4].mxu1 }
 0x171   :  { %v652_v39 = vadd.f32 %v651_v37, %v15536_v50  ;;  %v693_v40 = vadd.f32 %v692_v38, %v15540_v51  ;;  %v653_v41 = vpop.f32.mrb[5].mxu0  ;;  %v694_v45 = vpop.f32.mrb[5].mxu1  ;;  %v2858_v37 = vsel %vm2857_vm0, 1, %v17354_v0  ;;  %v2527_v38 = vld [vmem:[#allocation5] sm:$0x1]  ;;  %vm15048_vm0 = vmmov 0  }
 0x172   :  { %v654_v47 = vadd.f32 %v653_v41, %v15546_v52  ;;  %v695_v48 = vadd.f32 %v694_v45, %v15550_v54  ;;  %v655_v53 = vpop.f32.mrb[6].mxu0  ;;  %v696_v55 = vpop.f32.mrb[6].mxu1  ;;  %2731 = vmatpush1.bf16.msra.mxu0 %v15645_v33  ;;  %2772 = vmatpush1.bf16.msra.mxu1 %v15647_v34  ;;  %v4945_v41 = vsel %vm4944_vm3, 1, %v17354_v0 }
 0x173   :  { %v656_v58 = vpop.f32.mrb[7].mxu0  ;;  %v697_v59 = vpop.f32.mrb[7].mxu1  ;;  %2732 = vmatprep.subr.bf16.mxu0 %v15651_v35  ;;  %2773 = vmatprep.subr.bf16.mxu1 %v15653_v36 }
 0x174   :  { %v703_v63 = vcombine.low %v652_v39, %v654_v47  ;;  %v704_v1 = vcombine.low %v693_v40, %v695_v48  ;;  %2860 = vperm.xlu0 %13981, %v2858_v37   ;;  %v3205_v39 = vsel %vm3204_vm1, 1, %v17354_v0  ;;  %v4249_v40 = vsel %vm4248_vm2, 1, %v17354_v0 }
 0x176   :  { %v15672_v2 = vrot.slane %v703_v63, %v15558_v62  ;;  %v15675_v3 = vrot.slane %v704_v1, %v15558_v62  ;;  %2733 = vmatpush1.bf16.msra.mxu0 %v15661_v56  ;;  %2774 = vmatpush1.bf16.msra.mxu1 %v15663_v57 }
 0x177   :  { %2734 = vmatprep.subr.bf16.mxu0 %v15667_v60  ;;  %2775 = vmatprep.subr.bf16.mxu1 %v15669_v61 }
 0x178   :  { %3207 = vperm.xlu0 %13981, %v3205_v39  }
 0x17a   :  { %2735 = vmatpush1.bf16.msra.mxu0 %v15679_v4  ;;  %2776 = vmatpush1.bf16.msra.mxu1 %v15681_v5 }
 0x17b   :  { %3067 = vmatprep.subr.bf16.mxu0 %v15575_v9  ;;  %3108 = vmatprep.subr.bf16.mxu1 %v15577_v10 }
 0x17c   :  { %4251 = vperm.xlu0 %13981, %v4249_v40  }
 0x17d   :  { %2753 = vmatmul.mubr.bf16.vlgmr.msra.gmra.mrb[32].mxu0 %v2527_v38  ;;  %2794 = vmatmul.mubr.bf16.vlgmr.msra.gmra.mrb[32].mxu1 %v2527_v38 }
 0x17e   :  { %3068 = vmatpush1.bf16.msra.mxu0 %v15583_v13  ;;  %3109 = vmatpush1.bf16.msra.mxu1 %v15585_v14 }
 0x17f   :  { %3069 = vmatprep.subr.bf16.mxu0 %v15589_v15  ;;  %3110 = vmatprep.subr.bf16.mxu1 %v15591_v16 }
 0x180   :  { %3099 = vmatprep.mubr.bf16.mxu0 %v17354_v0  ;;  %3140 = vmatprep.mubr.bf16.mxu1 %v17354_v0 }
 0x181   :  { %4947 = vperm.xlu0 %13981, %v4945_v41  }
 0x182   :  { %3070 = vmatpush1.bf16.msra.mxu0 %v15595_v17  ;;  %3111 = vmatpush1.bf16.msra.mxu1 %v15597_v18 }
 0x183   :  { %3071 = vmatprep.subr.bf16.mxu0 %v15601_v19  ;;  %3112 = vmatprep.subr.bf16.mxu1 %v15603_v20 }
 0x186   :  { %3072 = vmatpush1.bf16.msra.mxu0 %v15609_v21  ;;  %3113 = vmatpush1.bf16.msra.mxu1 %v15611_v22 }
 0x187   :  { %3073 = vmatprep.subr.bf16.mxu0 %v15615_v23  ;;  %3114 = vmatprep.subr.bf16.mxu1 %v15617_v24 }
 0x18a   :  { %3074 = vmatpush1.bf16.msra.mxu0 %v15621_v25  ;;  %3115 = vmatpush1.bf16.msra.mxu1 %v15623_v26 }
 0x18b   :  { %3075 = vmatprep.subr.bf16.mxu0 %v15627_v27  ;;  %3116 = vmatprep.subr.bf16.mxu1 %v15629_v28 }
 0x18e   :  { %3076 = vmatpush1.bf16.msra.mxu0 %v15633_v29  ;;  %3117 = vmatpush1.bf16.msra.mxu1 %v15635_v30 }
 0x18f   :  { %3077 = vmatprep.subr.bf16.mxu0 %v15639_v31  ;;  %3118 = vmatprep.subr.bf16.mxu1 %v15641_v32 }
 0x190   :  { %v951_v45 = vpop.f32.mrb[8].mxu0  ;;  %v992_v47 = vpop.f32.mrb[8].mxu1 }
 0x191   :  { %v952_v48 = vadd.f32 %v951_v45, %v15536_v50  ;;  %v993_v53 = vadd.f32 %v992_v47, %v15540_v51  ;;  %v953_v55 = vpop.f32.mrb[9].mxu0  ;;  %v994_v58 = vpop.f32.mrb[9].mxu1 }
 0x192   :  { %v954_v59 = vadd.f32 %v953_v55, %v15546_v52  ;;  %v995_v63 = vadd.f32 %v994_v58, %v15550_v54  ;;  %v955_v1 = vpop.f32.mrb[10].mxu0  ;;  %v996_v37 = vpop.f32.mrb[10].mxu1  ;;  %3078 = vmatpush1.bf16.msra.mxu0 %v15645_v33  ;;  %3119 = vmatpush1.bf16.msra.mxu1 %v15647_v34 }
 0x193   :  { %v956_v38 = vpop.f32.mrb[11].mxu0  ;;  %v997_v39 = vpop.f32.mrb[11].mxu1  ;;  %3079 = vmatprep.subr.bf16.mxu0 %v15651_v35  ;;  %3120 = vmatprep.subr.bf16.mxu1 %v15653_v36 }
 0x194   :  { %v1003_v40 = vcombine.low %v952_v48, %v954_v59  ;;  %v1004_v41 = vcombine.low %v993_v53, %v995_v63 }
 0x196   :  { %v15735_v45 = vrot.slane %v1003_v40, %v15558_v62  ;;  %v15738_v47 = vrot.slane %v1004_v41, %v15558_v62  ;;  %3080 = vmatpush1.bf16.msra.mxu0 %v15661_v56  ;;  %3121 = vmatpush1.bf16.msra.mxu1 %v15663_v57 }
 0x197   :  { %3081 = vmatprep.subr.bf16.mxu0 %v15667_v60  ;;  %3122 = vmatprep.subr.bf16.mxu1 %v15669_v61 }
 0x19a   :  { %3082 = vmatpush1.bf16.msra.mxu0 %v15679_v4  ;;  %3123 = vmatpush1.bf16.msra.mxu1 %v15681_v5 }
 0x19b   :  { %3415 = vmatprep.subr.bf16.mxu0 %v15575_v9  ;;  %3456 = vmatprep.subr.bf16.mxu1 %v15577_v10 }
 0x1b0   :  { %v1251_v48 = vpop.f32.mrb[12].mxu0  ;;  %v1292_v53 = vpop.f32.mrb[12].mxu1 }
 0x1b1   :  { %v1252_v58 = vadd.f32 %v1251_v48, %v15536_v50  ;;  %v1293_v59 = vadd.f32 %v1292_v53, %v15540_v51  ;;  %v1253_v63 = vpop.f32.mrb[13].mxu0  ;;  %v1294_v1 = vpop.f32.mrb[13].mxu1 }
 0x1b2   :  { %v1254_v37 = vadd.f32 %v1253_v63, %v15546_v52  ;;  %v1295_v38 = vadd.f32 %v1294_v1, %v15550_v54  ;;  %v1255_v39 = vpop.f32.mrb[14].mxu0  ;;  %v1296_v40 = vpop.f32.mrb[14].mxu1 }
 0x1b3   :  { %v1256_v41 = vpop.f32.mrb[15].mxu0  ;;  %v1297_v49 = vpop.f32.mrb[15].mxu1 }
 0x1b4   :  { %v1303_v46 = vcombine.low %v1252_v58, %v1254_v37  ;;  %v1304_v9 = vcombine.low %v1293_v59, %v1295_v38 }
 0x1b6   :  { %v15755_v10 = vrot.slane %v1303_v46, %v15558_v62  ;;  %v15758_v44 = vrot.slane %v1304_v9, %v15558_v62 }
 0x1d0   :  { %v1551_v53 = vpop.f32.mrb[16].mxu0  ;;  %v1592_v43 = vpop.f32.mrb[16].mxu1 }
 0x1d1   :  { %v1552_v63 = vadd.f32 %v1551_v53, %v15536_v50  ;;  %v1593_v1 = vadd.f32 %v1592_v43, %v15540_v51  ;;  %v1553_v39 = vpop.f32.mrb[17].mxu0  ;;  %v1594_v40 = vpop.f32.mrb[17].mxu1  ;;  %v17352_v53 = vmov 0.0  }
 0x1d2   :  { %v1554_v49 = vadd.f32 %v1553_v39, %v15546_v52  ;;  %v1595_v58 = vadd.f32 %v1594_v40, %v15550_v54  ;;  %v1555_v46 = vpop.f32.mrb[18].mxu0  ;;  %v1596_v59 = vpop.f32.mrb[18].mxu1  ;;  %2523 = vst [vmem:[#allocation4] sm:$0x3] %v17352_v53  ;;  %2525 = vst [vmem:[#allocation6] sm:$0x3] %v17352_v53 }
 0x1d3   :  { %v1556_v37 = vpop.f32.mrb[19].mxu0  ;;  %v1597_v38 = vpop.f32.mrb[19].mxu1 }
 0x1d4   :  { %v1603_v41 = vcombine.low %v1552_v63, %v1554_v49  ;;  %v1604_v9 = vcombine.low %v1593_v1, %v1595_v58 }
 0x1d6   :  { %v15767_v48 = vrot.slane %v1603_v41, %v15558_v62  ;;  %v15770_v55 = vrot.slane %v1604_v9, %v15558_v62 }
 0x1f0   :  { %v1851_v39 = vpop.f32.mrb[20].mxu0  ;;  %v1892_v40 = vpop.f32.mrb[20].mxu1 }
 0x1f1   :  { %v1852_v46 = vadd.f32 %v1851_v39, %v15536_v50  ;;  %v1893_v63 = vadd.f32 %v1892_v40, %v15540_v51  ;;  %v1853_v1 = vpop.f32.mrb[21].mxu0  ;;  %v1894_v49 = vpop.f32.mrb[21].mxu1 }
 0x1f2   :  { %v1854_v58 = vadd.f32 %v1853_v1, %v15546_v52  ;;  %v1895_v59 = vadd.f32 %v1894_v49, %v15550_v54  ;;  %v1855_v37 = vpop.f32.mrb[22].mxu0  ;;  %v1896_v38 = vpop.f32.mrb[22].mxu1 }
 0x1f3   :  { %v1856_v41 = vpop.f32.mrb[23].mxu0  ;;  %v1897_v9 = vpop.f32.mrb[23].mxu1 }
 0x1f4   :  { %v1903_v43 = vcombine.low %v1852_v46, %v1854_v58  ;;  %v1904_v12 = vcombine.low %v1893_v63, %v1895_v59 }
 0x1f6   :  { %v15781_v53 = vrot.slane %v1903_v43, %v15558_v62  ;;  %v15784_v0 = vrot.slane %v1904_v12, %v15558_v62 }
 0x1f8   :  { %17377 = vst [vmem:[#allocation22_spill] sm:$0xff] %v15784_v0 }
 0x210   :  { %v2151_v40 = vpop.f32.mrb[24].mxu0  ;;  %v2192_v11 = vpop.f32.mrb[24].mxu1 }
 0x211   :  { %v2152_v1 = vadd.f32 %v2151_v40, %v15536_v50  ;;  %v2193_v49 = vadd.f32 %v2192_v11, %v15540_v51  ;;  %v2153_v37 = vpop.f32.mrb[25].mxu0  ;;  %v2194_v38 = vpop.f32.mrb[25].mxu1 }
 0x212   :  { %v2154_v46 = vadd.f32 %v2153_v37, %v15546_v52  ;;  %v2195_v63 = vadd.f32 %v2194_v38, %v15550_v54  ;;  %v2155_v43 = vpop.f32.mrb[26].mxu0  ;;  %v2196_v58 = vpop.f32.mrb[26].mxu1 }
 0x213   :  { %v2156_v59 = vpop.f32.mrb[27].mxu0  ;;  %v2197_v12 = vpop.f32.mrb[27].mxu1 }
 0x214   :  { %v2203_v41 = vcombine.low %v2152_v1, %v2154_v46  ;;  %v2204_v9 = vcombine.low %v2193_v49, %v2195_v63 }
 0x216   :  { %v15793_v39 = vrot.slane %v2203_v41, %v15558_v62  ;;  %v15796_v42 = vrot.slane %v2204_v9, %v15558_v62 }
 0x218   :  { %17378 = vst [vmem:[#allocation23_spill] sm:$0xff] %v15796_v42 }
 0x230   :  { %v2451_v40 = vpop.f32.mrb[28].mxu0  ;;  %v2492_v0 = vpop.f32.mrb[28].mxu1 }
 0x231   :  { %v2452_v37 = vadd.f32 %v2451_v40, %v15536_v50  ;;  %v2493_v38 = vadd.f32 %v2492_v0, %v15540_v51  ;;  %v2453_v43 = vpop.f32.mrb[29].mxu0  ;;  %v2494_v58 = vpop.f32.mrb[29].mxu1 }
 0x232   :  { %v2454_v1 = vadd.f32 %v2453_v43, %v15546_v52  ;;  %v2495_v49 = vadd.f32 %v2494_v58, %v15550_v54  ;;  %v2455_v46 = vpop.f32.mrb[30].mxu0  ;;  %v2496_v63 = vpop.f32.mrb[30].mxu1 }
 0x233   :  { %v2456_v59 = vpop.f32.mrb[31].mxu0  ;;  %v2497_v12 = vpop.f32.mrb[31].mxu1 }
 0x234   :  { %v2503_v41 = vcombine.low %v2452_v37, %v2454_v1  ;;  %v2504_v9 = vcombine.low %v2493_v38, %v2495_v49  ;;  %v17379_v59 = vcombine.low %v15566_v7, %v15569_v8  ;;  %v2851_v7 = vld [vmem:[#allocation6] sm:$0x3] }
 0x236   :  { %v15805_v11 = vrot.slane %v2503_v41, %v15558_v62  ;;  %v15808_v42 = vrot.slane %v2504_v9, %v15558_v62 }
 0x250   :  { %v2754_v50 = vpop.f32.mrb[32].mxu0  ;;  %v2795_v51 = vpop.f32.mrb[32].mxu1 }
 0x251   :  { %v2756_v52 = vpop.f32.mrb[33].mxu0  ;;  %v2797_v40 = vpop.f32.mrb[33].mxu1 }
 0x252   :  { %v2806_v54 = vcombine.low %v2754_v50, %v2756_v52  ;;  %v2807_v43 = vcombine.low %v2795_v51, %v2797_v40  ;;  %v2758_v58 = vpop.f32.mrb[34].mxu0  ;;  %v2799_v46 = vpop.f32.mrb[34].mxu1 }
 0x253   :  { %v2759_v63 = vpop.f32.mrb[35].mxu0  ;;  %v2800_v37 = vpop.f32.mrb[35].mxu1 }
 0x254   :  { %v2814_v38 = vrot.slane %v2806_v54, %v15558_v62  ;;  %v2821_v1 = vrot.slane %v2807_v43, %v15558_v62  ;;  %v15817_v37 = vpop.permute.xlu0 %2860 }
 0x255   :  { %vm2862_vm4 = vcmp.eq.s32.totalorder %v15817_v37, 1 }
 0x256   :  { %v2822_v49 = vcombine.low %v2814_v38, %v2821_v1 }
 0x258   :  { %v2824_v12 = vadd.f32 %v2822_v49, %v17379_v59 }
 0x25a   :  { %v12571_v41 = vmul.f32 -1.442695, %v2824_v12  ;;  %v2832_v9 = vrot.slane %v2824_v12, 2  ;;  %v2843_v50 = vrot.slane %v2824_v12, 6  ;;  %v2840_v40 = vrot.slane %v2824_v12, 4 }
 0x25c   :  { %14591 = vpow2.f32 %v12571_v41  ;;  %v12572_v0 = vmul.f32 -1.442695, %v2832_v9  ;;  %v12573_v51 = vmul.f32 -1.442695, %v2843_v50  ;;  %v2865_v50 = vld [vmem:[#allocation4] sm:$0x3] }
 0x25e   :  { %14593 = vpow2.f32 %v12572_v0 }
 0x25f   :  { %14595 = vpow2.f32 %v12573_v51 }
 0x266   :  { %v14592_v52 = vpop.eup %14591 }
 0x267   :  { %v2828_v58 = vadd.f32 1.0, %v14592_v52 }
 0x268   :  { %v14594_v46 = vpop.eup %14593 }
 0x269   :  { %14597 = vrcp.f32 %v2828_v58  ;;  %v2837_v54 = vadd.f32 1.0, %v14594_v46  ;;  %v14596_v43 = vpop.eup %14595 }
 0x26a   :  { %14599 = vtanh.f32 %v2840_v40  ;;  %v2848_v1 = vadd.f32 1.0, %v14596_v43  ;;  %v17380_v43 = vmov 0  }
 0x26b   :  { %14601 = vrcp.f32 %v2837_v54 }
 0x26c   :  { %14603 = vrcp.f32 %v2848_v1  ;;  %v15871_v1 = vpop.permute.xlu0 %3207 }
 0x26d   :  { %vm3209_vm9 = vcmp.eq.s32.totalorder %v15871_v1, 1  ;;  %v16880_v1 = vld [vmem:[#allocation12 + $0x108] ss:$16 sps:$4 sm:$0xff]  }
 0x273   :  { %v14598_v63 = vpop.eup %14597 }
 0x274   :  { %v14600_v8 = vpop.eup %14599 }
 0x275   :  { %v14602_v38 = vpop.eup %14601  ;;  %v2853_v49 = vmul.f32 %v14600_v8, %v14598_v63 }
 0x276   :  { %v2852_v0 = vmul.f32 %v14602_v38, %v2851_v7  ;;  %v14604_v41 = vpop.eup %14603 }
 0x278   :  { %v2854_v59 = vadd.f32 %v2853_v49, %v2852_v0 }
 0x27a   :  { %14605 = vtanh.f32 %v2854_v59  ;;  %v2863_v12 = vsel %vm2862_vm4, %v2854_v59, %v2851_v7 }
 0x27b   :  { %2864 = vst [vmem:[#allocation6] sm:$0x3] %v2863_v12 }
 0x282   :  { %v3198_v63 = vld [vmem:[#allocation6] sm:$0x3] }
 0x284   :  { %v14606_v9 = vpop.eup %14605 }
 0x285   :  { %v2856_v51 = vmul.f32 %v14606_v9, %v14604_v41 }
 0x287   :  { %v2866_v52 = vsel %vm2862_vm4, %v2856_v51, %v2865_v50  ;;  %v2870_v40 = vsel %vm2862_vm4, %v2856_v51, 0.0 }
 0x288   :  { %2867 = vst [vmem:[#allocation4] sm:$0x3] %v2866_v52  ;;  %v2868_v58 = vpack.c.bf16 %v2866_v52, %v2866_v52  ;;  %v2871_v46 = vpack.c.bf16 %v2870_v40, %v2870_v40 }
 0x28a   :  { %2869 = vst [vmem:[#allocation5] sm:$0x1] %v2868_v58  ;;  %2872 = vst [vmem:[#allocation2] sm:$0x1] %v2871_v46  ;;  %v15882_v46 = vld [vmem:[#allocation12] ss:$16 sps:$4 sm:$0xff]  }
 0x28f   :  { %v3212_v9 = vld [vmem:[#allocation4] sm:$0x3] }
 0x291   :  { %v2874_v54 = vld [vmem:[#allocation5] sm:$0x1] }
 0x292   :  { %3100 = vmatmul.mubr.bf16.vlgmr.msra.gmra.mrb[36].mxu0 %v2874_v54  ;;  %3141 = vmatmul.mubr.bf16.vlgmr.msra.gmra.mrb[36].mxu1 %v2874_v54  ;;  %v15884_v54 = vld [vmem:[#allocation12 + $0x4] ss:$16 sps:$4 sm:$0xff]  }
 0x293   :  { %3416 = vmatpush1.bf16.msra.mxu0 %v15583_v13  ;;  %3457 = vmatpush1.bf16.msra.mxu1 %v15585_v14  ;;  %v3553_v13 = vsel %vm3552_vm5, 1, %v17380_v43  ;;  %v3901_v14 = vsel %vm3900_vm6, 1, %v17380_v43 }
 0x294   :  { %3417 = vmatprep.subr.bf16.mxu0 %v15589_v15  ;;  %3458 = vmatprep.subr.bf16.mxu1 %v15591_v16  ;;  %v4597_v15 = vsel %vm4596_vm7, 1, %v17380_v43  ;;  %v5293_v16 = vsel %vm5292_vm8, 1, %v17380_v43 }
 0x295   :  { %3447 = vmatprep.mubr.bf16.mxu0 %v17380_v43  ;;  %3488 = vmatprep.mubr.bf16.mxu1 %v17380_v43 }
 0x296   :  { %3555 = vperm.xlu1 %13982, %v3553_v13   ;;  %v15886_v13 = vld [vmem:[#allocation12 + $0x8] ss:$16 sps:$4 sm:$0xff]  }
 0x297   :  { %3418 = vmatpush1.bf16.msra.mxu0 %v15595_v17  ;;  %3459 = vmatpush1.bf16.msra.mxu1 %v15597_v18 }
 0x298   :  { %3419 = vmatprep.subr.bf16.mxu0 %v15601_v19  ;;  %3460 = vmatprep.subr.bf16.mxu1 %v15603_v20 }
 0x29a   :  { %3903 = vperm.xlu1 %13982, %v3901_v14   ;;  %v15888_v14 = vld [vmem:[#allocation12 + $0xc] ss:$16 sps:$4 sm:$0xff]  }
 0x29b   :  { %3420 = vmatpush1.bf16.msra.mxu0 %v15609_v21  ;;  %3461 = vmatpush1.bf16.msra.mxu1 %v15611_v22 }
 0x29c   :  { %3421 = vmatprep.subr.bf16.mxu0 %v15615_v23  ;;  %3462 = vmatprep.subr.bf16.mxu1 %v15617_v24 }
 0x29e   :  { %4599 = vperm.xlu1 %13982, %v4597_v15   ;;  %v15890_v15 = vld [vmem:[#allocation12 + $0x24] ss:$16 sps:$4 sm:$0xff]  }
 0x29f   :  { %3422 = vmatpush1.bf16.msra.mxu0 %v15621_v25  ;;  %3463 = vmatpush1.bf16.msra.mxu1 %v15623_v26 }
 0x2a0   :  { %3423 = vmatprep.subr.bf16.mxu0 %v15627_v27  ;;  %3464 = vmatprep.subr.bf16.mxu1 %v15629_v28 }
 0x2a2   :  { %5295 = vperm.xlu1 %13982, %v5293_v16   ;;  %v15893_v16 = vld [vmem:[#allocation12 + $0x2c] ss:$16 sps:$4 sm:$0xff]  }
 0x2a3   :  { %3424 = vmatpush1.bf16.msra.mxu0 %v15633_v29  ;;  %3465 = vmatpush1.bf16.msra.mxu1 %v15635_v30  ;;  %v17381_v30 = vcombine.low %v15672_v2, %v15675_v3 }
 0x2a4   :  { %3425 = vmatprep.subr.bf16.mxu0 %v15639_v31  ;;  %3466 = vmatprep.subr.bf16.mxu1 %v15641_v32 }
 0x2a7   :  { %3426 = vmatpush1.bf16.msra.mxu0 %v15645_v33  ;;  %3467 = vmatpush1.bf16.msra.mxu1 %v15647_v34 }
 0x2a8   :  { %3427 = vmatprep.subr.bf16.mxu0 %v15651_v35  ;;  %3468 = vmatprep.subr.bf16.mxu1 %v15653_v36 }
 0x2ab   :  { %3428 = vmatpush1.bf16.msra.mxu0 %v15661_v56  ;;  %3469 = vmatpush1.bf16.msra.mxu1 %v15663_v57 }
 0x2ac   :  { %3429 = vmatprep.subr.bf16.mxu0 %v15667_v60  ;;  %3470 = vmatprep.subr.bf16.mxu1 %v15669_v61 }
 0x2af   :  { %3430 = vmatpush1.bf16.msra.mxu0 %v15679_v4  ;;  %3471 = vmatpush1.bf16.msra.mxu1 %v15681_v5 }
 0x2b0   :  { %3763 = vmatprep.subr.bf16.mxu0 %v15884_v54  ;;  %3804 = vmatprep.subr.bf16.mxu1 %v15888_v14 }
 0x365   :  { %v3101_v17 = vpop.f32.mrb[36].mxu0  ;;  %v3142_v18 = vpop.f32.mrb[36].mxu1 }
 0x366   :  { %v3103_v19 = vpop.f32.mrb[37].mxu0  ;;  %v3144_v20 = vpop.f32.mrb[37].mxu1 }
 0x367   :  { %v3153_v21 = vcombine.low %v3101_v17, %v3103_v19  ;;  %v3154_v22 = vcombine.low %v3142_v18, %v3144_v20  ;;  %v3105_v23 = vpop.f32.mrb[38].mxu0  ;;  %v3146_v24 = vpop.f32.mrb[38].mxu1  ;;  %v15897_v17 = vld [vmem:[#allocation12 + $0x20] ss:$16 sps:$4 sm:$0xff]   ;;  %v15901_v18 = vld [vmem:[#allocation12 + $0x28] ss:$16 sps:$4 sm:$0xff]  }
 0x368   :  { %v3106_v25 = vpop.f32.mrb[39].mxu0  ;;  %v3147_v26 = vpop.f32.mrb[39].mxu1  ;;  %v15906_v19 = vld [vmem:[#allocation12 + $0x44] ss:$16 sps:$4 sm:$0xff]   ;;  %v15908_v20 = vld [vmem:[#allocation12 + $0x4c] ss:$16 sps:$4 sm:$0xff]  }
 0x369   :  { %v3161_v27 = vrot.slane %v3153_v21, %v15558_v62  ;;  %v3168_v28 = vrot.slane %v3154_v22, %v15558_v62  ;;  %v15910_v21 = vld [vmem:[#allocation12 + $0x40] ss:$16 sps:$4 sm:$0xff]   ;;  %v15912_v22 = vld [vmem:[#allocation12 + $0x48] ss:$16 sps:$4 sm:$0xff]   ;;  %v15918_v23 = vld [vmem:[#allocation12 + $0x64] ss:$16 sps:$4 sm:$0xff]  }
 0x36a   :  { %v15920_v24 = vld [vmem:[#allocation12 + $0x6c] ss:$16 sps:$4 sm:$0xff]   ;;  %v15922_v25 = vld [vmem:[#allocation12 + $0x60] ss:$16 sps:$4 sm:$0xff]   ;;  %v15924_v26 = vld [vmem:[#allocation12 + $0x68] ss:$16 sps:$4 sm:$0xff]  }
 0x36b   :  { %v3169_v29 = vcombine.low %v3161_v27, %v3168_v28  ;;  %v15930_v27 = vld [vmem:[#allocation12 + $0x84] ss:$16 sps:$4 sm:$0xff]   ;;  %v15932_v28 = vld [vmem:[#allocation12 + $0x8c] ss:$16 sps:$4 sm:$0xff]  }
 0x36d   :  { %v3171_v31 = vadd.f32 %v3169_v29, %v17381_v30  ;;  %v15934_v29 = vld [vmem:[#allocation12 + $0x80] ss:$16 sps:$4 sm:$0xff]   ;;  %v15936_v30 = vld [vmem:[#allocation12 + $0x88] ss:$16 sps:$4 sm:$0xff]  }
 0x36f   :  { %v12606_v32 = vmul.f32 -1.442695, %v3171_v31  ;;  %v3179_v33 = vrot.slane %v3171_v31, 2  ;;  %v3190_v35 = vrot.slane %v3171_v31, 6  ;;  %v3187_v57 = vrot.slane %v3171_v31, 4 }
 0x370   :  { %v15942_v31 = vld [vmem:[#allocation12 + $0xa4] ss:$16 sps:$4 sm:$0xff]  }
 0x371   :  { %14607 = vpow2.f32 %v12606_v32  ;;  %v12607_v34 = vmul.f32 -1.442695, %v3179_v33  ;;  %v12608_v36 = vmul.f32 -1.442695, %v3190_v35  ;;  %v15944_v32 = vld [vmem:[#allocation12 + $0xac] ss:$16 sps:$4 sm:$0xff]  }
 0x372   :  { %v15946_v33 = vld [vmem:[#allocation12 + $0xa0] ss:$16 sps:$4 sm:$0xff]   ;;  %v15954_v35 = vld [vmem:[#allocation12 + $0xc4] ss:$16 sps:$4 sm:$0xff]  }
 0x373   :  { %14609 = vpow2.f32 %v12607_v34  ;;  %v15948_v34 = vld [vmem:[#allocation12 + $0xa8] ss:$16 sps:$4 sm:$0xff]  }
 0x374   :  { %14611 = vpow2.f32 %v12608_v36  ;;  %v15956_v36 = vld [vmem:[#allocation12 + $0xcc] ss:$16 sps:$4 sm:$0xff]  }
 0x37b   :  { %v14608_v56 = vpop.eup %14607 }
 0x37c   :  { %v3175_v60 = vadd.f32 1.0, %v14608_v56  ;;  %v15958_v56 = vld [vmem:[#allocation12 + $0xc0] ss:$16 sps:$4 sm:$0xff]  }
 0x37d   :  { %v14610_v61 = vpop.eup %14609 }
 0x37e   :  { %14613 = vrcp.f32 %v3175_v60  ;;  %v3184_v4 = vadd.f32 1.0, %v14610_v61  ;;  %v14612_v5 = vpop.eup %14611  ;;  %v15966_v60 = vld [vmem:[#allocation12 + $0xe4] ss:$16 sps:$4 sm:$0xff]   ;;  %v15968_v61 = vld [vmem:[#allocation12 + $0xec] ss:$16 sps:$4 sm:$0xff]  }
 0x37f   :  { %14615 = vtanh.f32 %v3187_v57  ;;  %v3195_v7 = vadd.f32 1.0, %v14612_v5  ;;  %v15960_v57 = vld [vmem:[#allocation12 + $0xc8] ss:$16 sps:$4 sm:$0xff]  }
 0x380   :  { %14617 = vrcp.f32 %v3184_v4  ;;  %v15970_v4 = vld [vmem:[#allocation12 + $0xe0] ss:$16 sps:$4 sm:$0xff]   ;;  %v15972_v5 = vld [vmem:[#allocation12 + $0xe8] ss:$16 sps:$4 sm:$0xff]  }
 0x381   :  { %14619 = vrcp.f32 %v3195_v7 }
 0x388   :  { %v14614_v6 = vpop.eup %14613 }
 0x389   :  { %v14616_v2 = vpop.eup %14615 }
 0x38a   :  { %v14618_v3 = vpop.eup %14617  ;;  %v3200_v38 = vmul.f32 %v14616_v2, %v14614_v6 }
 0x38b   :  { %v3199_v8 = vmul.f32 %v14618_v3, %v3198_v63  ;;  %v14620_v59 = vpop.eup %14619 }
 0x38d   :  { %v3201_v0 = vadd.f32 %v3200_v38, %v3199_v8 }
 0x38f   :  { %14621 = vtanh.f32 %v3201_v0  ;;  %v3210_v49 = vsel %vm3209_vm9, %v3201_v0, %v3198_v63 }
 0x390   :  { %3211 = vst [vmem:[#allocation6] sm:$0x3] %v3210_v49 }
 0x399   :  { %v14622_v12 = vpop.eup %14621 }
 0x39a   :  { %v3203_v41 = vmul.f32 %v14622_v12, %v14620_v59 }
 0x39c   :  { %v3213_v50 = vsel %vm3209_vm9, %v3203_v41, %v3212_v9  ;;  %v3217_v51 = vsel %vm3209_vm9, %v3203_v41, 0.0 }
 0x39d   :  { %v3215_v52 = vpack.c.bf16 %v3213_v50, %v3213_v50  ;;  %v3218_v40 = vpack.c.bf16 %v3217_v51, %v3217_v51  ;;  %3214 = vst [vmem:[#allocation4] sm:$0x3] %v3213_v50  ;;  %v17382_v50 = vcombine.low %v15735_v45, %v15738_v47  ;;  %v15985_v47 = vpop.permute.xlu1 %3555 }
 0x39e   :  { %vm3557_vm10 = vcmp.eq.s32.totalorder %v15985_v47, 1 }
 0x39f   :  { %3216 = vst [vmem:[#allocation5] sm:$0x1] %v3215_v52  ;;  %3220 = vst [vmem:[#allocation2 + $0x1] sm:$0x1] %v3218_v40 }
 0x3a6   :  { %v3222_v58 = vld [vmem:[#allocation5] sm:$0x1] }
 0x3a7   :  { %3448 = vmatmul.mubr.bf16.vlgmr.msra.gmra.mrb[40].mxu0 %v3222_v58  ;;  %3489 = vmatmul.mubr.bf16.vlgmr.msra.gmra.mrb[40].mxu1 %v3222_v58 }
 0x3a8   :  { %3795 = vmatprep.mubr.bf16.mxu0 %v17380_v43  ;;  %3836 = vmatprep.mubr.bf16.mxu1 %v17380_v43 }
 0x3a9   :  { %3764 = vmatpush1.bf16.msra.mxu0 %v15882_v46  ;;  %3805 = vmatpush1.bf16.msra.mxu1 %v15886_v13 }
 0x3aa   :  { %3765 = vmatprep.subr.bf16.mxu0 %v15890_v15  ;;  %3806 = vmatprep.subr.bf16.mxu1 %v15893_v16 }
 0x3ad   :  { %3766 = vmatpush1.bf16.msra.mxu0 %v15897_v17  ;;  %3807 = vmatpush1.bf16.msra.mxu1 %v15901_v18 }
 0x3ae   :  { %3767 = vmatprep.subr.bf16.mxu0 %v15906_v19  ;;  %3808 = vmatprep.subr.bf16.mxu1 %v15908_v20 }
 0x3b1   :  { %3768 = vmatpush1.bf16.msra.mxu0 %v15910_v21  ;;  %3809 = vmatpush1.bf16.msra.mxu1 %v15912_v22 }
 0x3b2   :  { %3769 = vmatprep.subr.bf16.mxu0 %v15918_v23  ;;  %3810 = vmatprep.subr.bf16.mxu1 %v15920_v24 }
 0x3b5   :  { %3770 = vmatpush1.bf16.msra.mxu0 %v15922_v25  ;;  %3811 = vmatpush1.bf16.msra.mxu1 %v15924_v26 }
 0x3b6   :  { %3771 = vmatprep.subr.bf16.mxu0 %v15930_v27  ;;  %3812 = vmatprep.subr.bf16.mxu1 %v15932_v28 }
 0x3b9   :  { %3772 = vmatpush1.bf16.msra.mxu0 %v15934_v29  ;;  %3813 = vmatpush1.bf16.msra.mxu1 %v15936_v30 }
 0x3ba   :  { %3773 = vmatprep.subr.bf16.mxu0 %v15942_v31  ;;  %3814 = vmatprep.subr.bf16.mxu1 %v15944_v32 }
 0x3bd   :  { %3774 = vmatpush1.bf16.msra.mxu0 %v15946_v33  ;;  %3815 = vmatpush1.bf16.msra.mxu1 %v15948_v34 }
 0x3be   :  { %3775 = vmatprep.subr.bf16.mxu0 %v15954_v35  ;;  %3816 = vmatprep.subr.bf16.mxu1 %v15956_v36 }
 0x3c1   :  { %3776 = vmatpush1.bf16.msra.mxu0 %v15958_v56  ;;  %3817 = vmatpush1.bf16.msra.mxu1 %v15960_v57 }
 0x3c2   :  { %3777 = vmatprep.subr.bf16.mxu0 %v15966_v60  ;;  %3818 = vmatprep.subr.bf16.mxu1 %v15968_v61 }
 0x3c5   :  { %3778 = vmatpush1.bf16.msra.mxu0 %v15970_v4  ;;  %3819 = vmatpush1.bf16.msra.mxu1 %v15972_v5 }
 0x3c6   :  { %4111 = vmatprep.subr.bf16.mxu0 %v15884_v54  ;;  %4152 = vmatprep.subr.bf16.mxu1 %v15888_v14 }
 0x47a   :  { %v3449_v6 = vpop.f32.mrb[40].mxu0  ;;  %v3490_v2 = vpop.f32.mrb[40].mxu1 }
 0x47b   :  { %v3451_v3 = vpop.f32.mrb[41].mxu0  ;;  %v3492_v63 = vpop.f32.mrb[41].mxu1 }
 0x47c   :  { %v3501_v7 = vcombine.low %v3449_v6, %v3451_v3  ;;  %v3502_v8 = vcombine.low %v3490_v2, %v3492_v63  ;;  %v3453_v38 = vpop.f32.mrb[42].mxu0  ;;  %v3494_v0 = vpop.f32.mrb[42].mxu1 }
 0x47d   :  { %v3454_v49 = vpop.f32.mrb[43].mxu0  ;;  %v3495_v59 = vpop.f32.mrb[43].mxu1 }
 0x47e   :  { %v3509_v12 = vrot.slane %v3501_v7, %v15558_v62  ;;  %v3516_v41 = vrot.slane %v3502_v8, %v15558_v62 }
 0x480   :  { %v3517_v9 = vcombine.low %v3509_v12, %v3516_v41  ;;  %v3546_v41 = vld [vmem:[#allocation6] sm:$0x3] }
 0x482   :  { %v3519_v51 = vadd.f32 %v3517_v9, %v17382_v50 }
 0x484   :  { %v12641_v52 = vmul.f32 -1.442695, %v3519_v51  ;;  %v3527_v40 = vrot.slane %v3519_v51, 2  ;;  %v3538_v6 = vrot.slane %v3519_v51, 6  ;;  %v3535_v63 = vrot.slane %v3519_v51, 4 }
 0x486   :  { %14623 = vpow2.f32 %v12641_v52  ;;  %v12642_v58 = vmul.f32 -1.442695, %v3527_v40  ;;  %v12643_v2 = vmul.f32 -1.442695, %v3538_v6 }
 0x488   :  { %14625 = vpow2.f32 %v12642_v58 }
 0x489   :  { %14627 = vpow2.f32 %v12643_v2  ;;  %v3560_v2 = vld [vmem:[#allocation4] sm:$0x3] }
 0x490   :  { %v14624_v3 = vpop.eup %14623 }
 0x491   :  { %v3523_v38 = vadd.f32 1.0, %v14624_v3 }
 0x492   :  { %v14626_v0 = vpop.eup %14625 }
 0x493   :  { %14629 = vrcp.f32 %v3523_v38  ;;  %v3532_v7 = vadd.f32 1.0, %v14626_v0  ;;  %v14628_v8 = vpop.eup %14627 }
 0x494   :  { %14631 = vtanh.f32 %v3535_v63  ;;  %v3543_v12 = vadd.f32 1.0, %v14628_v8 }
 0x495   :  { %14633 = vrcp.f32 %v3532_v7 }
 0x496   :  { %14635 = vrcp.f32 %v3543_v12 }
 0x49d   :  { %v14630_v49 = vpop.eup %14629 }
 0x49e   :  { %v14632_v45 = vpop.eup %14631 }
 0x49f   :  { %v14634_v59 = vpop.eup %14633  ;;  %v3548_v50 = vmul.f32 %v14632_v45, %v14630_v49 }
 0x4a0   :  { %v3547_v9 = vmul.f32 %v14634_v59, %v3546_v41  ;;  %v14636_v40 = vpop.eup %14635 }
 0x4a2   :  { %v3549_v51 = vadd.f32 %v3548_v50, %v3547_v9 }
 0x4a4   :  { %14637 = vtanh.f32 %v3549_v51  ;;  %v3558_v52 = vsel %vm3557_vm10, %v3549_v51, %v3546_v41 }
 0x4a5   :  { %3559 = vst [vmem:[#allocation6] sm:$0x3] %v3558_v52 }
 0x4ae   :  { %v14638_v58 = vpop.eup %14637 }
 0x4af   :  { %v3551_v6 = vmul.f32 %v14638_v58, %v14636_v40 }
 0x4b1   :  { %v3561_v3 = vsel %vm3557_vm10, %v3551_v6, %v3560_v2  ;;  %v3565_v63 = vsel %vm3557_vm10, %v3551_v6, 0.0  ;;  %v17383_v2 = vcombine.low %v15755_v10, %v15758_v44 }
 0x4b2   :  { %3562 = vst [vmem:[#allocation4] sm:$0x3] %v3561_v3  ;;  %v3563_v38 = vpack.c.bf16 %v3561_v3, %v3561_v3  ;;  %v3566_v0 = vpack.c.bf16 %v3565_v63, %v3565_v63 }
 0x4b4   :  { %3564 = vst [vmem:[#allocation5] sm:$0x1] %v3563_v38  ;;  %3568 = vst [vmem:[#allocation2 + $0x2] sm:$0x1] %v3566_v0 }
 0x4bb   :  { %v3570_v7 = vld [vmem:[#allocation5] sm:$0x1] }
 0x4bc   :  { %3796 = vmatmul.mubr.bf16.vlgmr.msra.gmra.mrb[44].mxu0 %v3570_v7  ;;  %3837 = vmatmul.mubr.bf16.vlgmr.msra.gmra.mrb[44].mxu1 %v3570_v7 }
 0x4bd   :  { %4112 = vmatpush1.bf16.msra.mxu0 %v15882_v46  ;;  %4153 = vmatpush1.bf16.msra.mxu1 %v15886_v13 }
 0x4be   :  { %4113 = vmatprep.subr.bf16.mxu0 %v15890_v15  ;;  %4154 = vmatprep.subr.bf16.mxu1 %v15893_v16 }
 0x4bf   :  { %4143 = vmatprep.mubr.bf16.mxu0 %v17380_v43  ;;  %4184 = vmatprep.mubr.bf16.mxu1 %v17380_v43 }
 0x4c1   :  { %4114 = vmatpush1.bf16.msra.mxu0 %v15897_v17  ;;  %4155 = vmatpush1.bf16.msra.mxu1 %v15901_v18 }
 0x4c2   :  { %4115 = vmatprep.subr.bf16.mxu0 %v15906_v19  ;;  %4156 = vmatprep.subr.bf16.mxu1 %v15908_v20 }
 0x4c5   :  { %4116 = vmatpush1.bf16.msra.mxu0 %v15910_v21  ;;  %4157 = vmatpush1.bf16.msra.mxu1 %v15912_v22 }
 0x4c6   :  { %4117 = vmatprep.subr.bf16.mxu0 %v15918_v23  ;;  %4158 = vmatprep.subr.bf16.mxu1 %v15920_v24 }
 0x4c9   :  { %4118 = vmatpush1.bf16.msra.mxu0 %v15922_v25  ;;  %4159 = vmatpush1.bf16.msra.mxu1 %v15924_v26 }
 0x4ca   :  { %4119 = vmatprep.subr.bf16.mxu0 %v15930_v27  ;;  %4160 = vmatprep.subr.bf16.mxu1 %v15932_v28 }
 0x4cd   :  { %4120 = vmatpush1.bf16.msra.mxu0 %v15934_v29  ;;  %4161 = vmatpush1.bf16.msra.mxu1 %v15936_v30 }
 0x4ce   :  { %4121 = vmatprep.subr.bf16.mxu0 %v15942_v31  ;;  %4162 = vmatprep.subr.bf16.mxu1 %v15944_v32 }
 0x4d1   :  { %4122 = vmatpush1.bf16.msra.mxu0 %v15946_v33  ;;  %4163 = vmatpush1.bf16.msra.mxu1 %v15948_v34 }
 0x4d2   :  { %4123 = vmatprep.subr.bf16.mxu0 %v15954_v35  ;;  %4164 = vmatprep.subr.bf16.mxu1 %v15956_v36 }
 0x4d5   :  { %4124 = vmatpush1.bf16.msra.mxu0 %v15958_v56  ;;  %4165 = vmatpush1.bf16.msra.mxu1 %v15960_v57 }
 0x4d6   :  { %4125 = vmatprep.subr.bf16.mxu0 %v15966_v60  ;;  %4166 = vmatprep.subr.bf16.mxu1 %v15968_v61 }
 0x4d9   :  { %4126 = vmatpush1.bf16.msra.mxu0 %v15970_v4  ;;  %4167 = vmatpush1.bf16.msra.mxu1 %v15972_v5 }
 0x4da   :  { %4459 = vmatprep.subr.bf16.mxu0 %v15884_v54  ;;  %4500 = vmatprep.subr.bf16.mxu1 %v15888_v14 }
 0x58f   :  { %v3797_v8 = vpop.f32.mrb[44].mxu0  ;;  %v3838_v49 = vpop.f32.mrb[44].mxu1 }
 0x590   :  { %v3799_v45 = vpop.f32.mrb[45].mxu0  ;;  %v3840_v59 = vpop.f32.mrb[45].mxu1 }
 0x591   :  { %v3849_v12 = vcombine.low %v3797_v8, %v3799_v45  ;;  %v3850_v41 = vcombine.low %v3838_v49, %v3840_v59  ;;  %v3801_v9 = vpop.f32.mrb[46].mxu0  ;;  %v3842_v50 = vpop.f32.mrb[46].mxu1 }
 0x592   :  { %v3802_v51 = vpop.f32.mrb[47].mxu0  ;;  %v3843_v52 = vpop.f32.mrb[47].mxu1 }
 0x593   :  { %v3857_v40 = vrot.slane %v3849_v12, %v15558_v62  ;;  %v3864_v58 = vrot.slane %v3850_v41, %v15558_v62  ;;  %v3894_v51 = vld [vmem:[#allocation6] sm:$0x3] }
 0x595   :  { %v3865_v6 = vcombine.low %v3857_v40, %v3864_v58 }
 0x597   :  { %v3867_v3 = vadd.f32 %v3865_v6, %v17383_v2  ;;  %v16033_v6 = vpop.permute.xlu1 %3903 }
 0x598   :  { %17384 = vst [vmem:[#allocation24_spill] sm:$0xff] %v16033_v6  ;;  %vm3905_vm11 = vcmp.eq.s32.totalorder %v16033_v6, 1 }
 0x599   :  { %v12676_v63 = vmul.f32 -1.442695, %v3867_v3  ;;  %v3875_v38 = vrot.slane %v3867_v3, 2  ;;  %v3886_v7 = vrot.slane %v3867_v3, 6  ;;  %v3883_v45 = vrot.slane %v3867_v3, 4 }
 0x59b   :  { %14639 = vpow2.f32 %v12676_v63  ;;  %v12677_v0 = vmul.f32 -1.442695, %v3875_v38  ;;  %v12678_v8 = vmul.f32 -1.442695, %v3886_v7  ;;  %v3908_v7 = vld [vmem:[#allocation4] sm:$0x3] }
 0x59d   :  { %14641 = vpow2.f32 %v12677_v0 }
 0x59e   :  { %14643 = vpow2.f32 %v12678_v8 }
 0x5a5   :  { %v14640_v49 = vpop.eup %14639 }
 0x5a6   :  { %v3871_v59 = vadd.f32 1.0, %v14640_v49 }
 0x5a7   :  { %v14642_v9 = vpop.eup %14641 }
 0x5a8   :  { %14645 = vrcp.f32 %v3871_v59  ;;  %v3880_v12 = vadd.f32 1.0, %v14642_v9  ;;  %v14644_v41 = vpop.eup %14643 }
 0x5a9   :  { %14647 = vtanh.f32 %v3883_v45  ;;  %v3891_v52 = vadd.f32 1.0, %v14644_v41 }
 0x5aa   :  { %14649 = vrcp.f32 %v3880_v12 }
 0x5ab   :  { %14651 = vrcp.f32 %v3891_v52 }
 0x5b2   :  { %v14646_v50 = vpop.eup %14645 }
 0x5b3   :  { %v14648_v44 = vpop.eup %14647 }
 0x5b4   :  { %v14650_v10 = vpop.eup %14649  ;;  %v3896_v58 = vmul.f32 %v14648_v44, %v14646_v50 }
 0x5b5   :  { %v3895_v40 = vmul.f32 %v14650_v10, %v3894_v51  ;;  %v14652_v63 = vpop.eup %14651 }
 0x5b7   :  { %v3897_v2 = vadd.f32 %v3896_v58, %v3895_v40 }
 0x5b9   :  { %14653 = vtanh.f32 %v3897_v2  ;;  %v3906_v3 = vsel %vm3905_vm11, %v3897_v2, %v3894_v51 }
 0x5ba   :  { %3907 = vst [vmem:[#allocation6] sm:$0x3] %v3906_v3 }
 0x5c3   :  { %v14654_v38 = vpop.eup %14653 }
 0x5c4   :  { %v3899_v0 = vmul.f32 %v14654_v38, %v14652_v63 }
 0x5c6   :  { %v3909_v8 = vsel %vm3905_vm11, %v3899_v0, %v3908_v7  ;;  %v3913_v49 = vsel %vm3905_vm11, %v3899_v0, 0.0 }
 0x5c7   :  { %3910 = vst [vmem:[#allocation4] sm:$0x3] %v3909_v8  ;;  %v3911_v45 = vpack.c.bf16 %v3909_v8, %v3909_v8  ;;  %v3914_v59 = vpack.c.bf16 %v3913_v49, %v3913_v49 }
 0x5c9   :  { %3912 = vst [vmem:[#allocation5] sm:$0x1] %v3911_v45  ;;  %3916 = vst [vmem:[#allocation2 + $0x3] sm:$0x1] %v3914_v59 }
 0x5d0   :  { %v3918_v9 = vld [vmem:[#allocation5] sm:$0x1] }
 0x5d1   :  { %4144 = vmatmul.mubr.bf16.vlgmr.msra.gmra.mrb[48].mxu0 %v3918_v9  ;;  %4185 = vmatmul.mubr.bf16.vlgmr.msra.gmra.mrb[48].mxu1 %v3918_v9 }
 0x5d2   :  { %4460 = vmatpush1.bf16.msra.mxu0 %v15882_v46  ;;  %4501 = vmatpush1.bf16.msra.mxu1 %v15886_v13 }
 0x5d3   :  { %4461 = vmatprep.subr.bf16.mxu0 %v15890_v15  ;;  %4502 = vmatprep.subr.bf16.mxu1 %v15893_v16 }
 0x5d4   :  { %4491 = vmatprep.mubr.bf16.mxu0 %v17380_v43  ;;  %4532 = vmatprep.mubr.bf16.mxu1 %v17380_v43 }
 0x5d6   :  { %4462 = vmatpush1.bf16.msra.mxu0 %v15897_v17  ;;  %4503 = vmatpush1.bf16.msra.mxu1 %v15901_v18 }
 0x5d7   :  { %4463 = vmatprep.subr.bf16.mxu0 %v15906_v19  ;;  %4504 = vmatprep.subr.bf16.mxu1 %v15908_v20 }
 0x5da   :  { %4464 = vmatpush1.bf16.msra.mxu0 %v15910_v21  ;;  %4505 = vmatpush1.bf16.msra.mxu1 %v15912_v22 }
 0x5db   :  { %4465 = vmatprep.subr.bf16.mxu0 %v15918_v23  ;;  %4506 = vmatprep.subr.bf16.mxu1 %v15920_v24 }
 0x5de   :  { %4466 = vmatpush1.bf16.msra.mxu0 %v15922_v25  ;;  %4507 = vmatpush1.bf16.msra.mxu1 %v15924_v26 }
 0x5df   :  { %4467 = vmatprep.subr.bf16.mxu0 %v15930_v27  ;;  %4508 = vmatprep.subr.bf16.mxu1 %v15932_v28 }
 0x5e2   :  { %4468 = vmatpush1.bf16.msra.mxu0 %v15934_v29  ;;  %4509 = vmatpush1.bf16.msra.mxu1 %v15936_v30 }
 0x5e3   :  { %4469 = vmatprep.subr.bf16.mxu0 %v15942_v31  ;;  %4510 = vmatprep.subr.bf16.mxu1 %v15944_v32 }
 0x5e6   :  { %4470 = vmatpush1.bf16.msra.mxu0 %v15946_v33  ;;  %4511 = vmatpush1.bf16.msra.mxu1 %v15948_v34 }
 0x5e7   :  { %4471 = vmatprep.subr.bf16.mxu0 %v15954_v35  ;;  %4512 = vmatprep.subr.bf16.mxu1 %v15956_v36 }
 0x5ea   :  { %4472 = vmatpush1.bf16.msra.mxu0 %v15958_v56  ;;  %4513 = vmatpush1.bf16.msra.mxu1 %v15960_v57 }
 0x5eb   :  { %4473 = vmatprep.subr.bf16.mxu0 %v15966_v60  ;;  %4514 = vmatprep.subr.bf16.mxu1 %v15968_v61 }
 0x5ee   :  { %4474 = vmatpush1.bf16.msra.mxu0 %v15970_v4  ;;  %4515 = vmatpush1.bf16.msra.mxu1 %v15972_v5 }
 0x5ef   :  { %4807 = vmatprep.subr.bf16.mxu0 %v15884_v54  ;;  %4848 = vmatprep.subr.bf16.mxu1 %v15888_v14  ;;  %v17385_v54 = vcombine.low %v15767_v48, %v15770_v55 }
 0x6a4   :  { %v4145_v12 = vpop.f32.mrb[48].mxu0  ;;  %v4186_v41 = vpop.f32.mrb[48].mxu1 }
 0x6a5   :  { %v4147_v50 = vpop.f32.mrb[49].mxu0  ;;  %v4188_v44 = vpop.f32.mrb[49].mxu1 }
 0x6a6   :  { %v4197_v10 = vcombine.low %v4145_v12, %v4147_v50  ;;  %v4198_v51 = vcombine.low %v4186_v41, %v4188_v44  ;;  %v4149_v52 = vpop.f32.mrb[50].mxu0  ;;  %v4190_v40 = vpop.f32.mrb[50].mxu1 }
 0x6a7   :  { %v4150_v58 = vpop.f32.mrb[51].mxu0  ;;  %v4191_v2 = vpop.f32.mrb[51].mxu1 }
 0x6a8   :  { %v4205_v3 = vrot.slane %v4197_v10, %v15558_v62  ;;  %v4212_v63 = vrot.slane %v4198_v51, %v15558_v62  ;;  %v4242_v51 = vld [vmem:[#allocation6] sm:$0x3]  ;;  %v16081_v2 = vpop.permute.xlu0 %4251 }
 0x6a9   :  { %17386 = vst [vmem:[#allocation25_spill] sm:$0xff] %v16081_v2  ;;  %vm4253_vm12 = vcmp.eq.s32.totalorder %v16081_v2, 1 }
 0x6aa   :  { %v4213_v38 = vcombine.low %v4205_v3, %v4212_v63 }
 0x6ac   :  { %v4215_v0 = vadd.f32 %v4213_v38, %v17385_v54 }
 0x6ae   :  { %v12711_v14 = vmul.f32 -1.442695, %v4215_v0  ;;  %v4223_v7 = vrot.slane %v4215_v0, 2  ;;  %v4234_v49 = vrot.slane %v4215_v0, 6  ;;  %v4231_v9 = vrot.slane %v4215_v0, 4 }
 0x6b0   :  { %14655 = vpow2.f32 %v12711_v14  ;;  %v12712_v8 = vmul.f32 -1.442695, %v4223_v7  ;;  %v12713_v45 = vmul.f32 -1.442695, %v4234_v49  ;;  %v4256_v14 = vld [vmem:[#allocation4] sm:$0x3] }
 0x6b2   :  { %14657 = vpow2.f32 %v12712_v8 }
 0x6b3   :  { %14659 = vpow2.f32 %v12713_v45 }
 0x6ba   :  { %v14656_v59 = vpop.eup %14655 }
 0x6bb   :  { %v4219_v12 = vadd.f32 1.0, %v14656_v59 }
 0x6bc   :  { %v14658_v41 = vpop.eup %14657 }
 0x6bd   :  { %14661 = vrcp.f32 %v4219_v12  ;;  %v4228_v50 = vadd.f32 1.0, %v14658_v41  ;;  %v14660_v44 = vpop.eup %14659 }
 0x6be   :  { %14663 = vtanh.f32 %v4231_v9  ;;  %v4239_v52 = vadd.f32 1.0, %v14660_v44 }
 0x6bf   :  { %14665 = vrcp.f32 %v4228_v50  ;;  %v16127_v50 = vpop.permute.xlu1 %4599 }
 0x6c0   :  { %14667 = vrcp.f32 %v4239_v52  ;;  %vm4601_vm13 = vcmp.eq.s32.totalorder %v16127_v50, 1 }
 0x6c7   :  { %v14662_v10 = vpop.eup %14661 }
 0x6c8   :  { %v14664_v55 = vpop.eup %14663 }
 0x6c9   :  { %v14666_v48 = vpop.eup %14665  ;;  %v4244_v58 = vmul.f32 %v14664_v55, %v14662_v10 }
 0x6ca   :  { %v4243_v40 = vmul.f32 %v14666_v48, %v4242_v51  ;;  %v14668_v38 = vpop.eup %14667 }
 0x6cc   :  { %v4245_v3 = vadd.f32 %v4244_v58, %v4243_v40 }
 0x6ce   :  { %14669 = vtanh.f32 %v4245_v3  ;;  %v4254_v63 = vsel %vm4253_vm12, %v4245_v3, %v4242_v51 }
 0x6cf   :  { %4255 = vst [vmem:[#allocation6] sm:$0x3] %v4254_v63 }
 0x6d6   :  { %v4590_v9 = vld [vmem:[#allocation6] sm:$0x3] }
 0x6d8   :  { %v14670_v54 = vpop.eup %14669 }
 0x6d9   :  { %v4247_v0 = vmul.f32 %v14670_v54, %v14668_v38  ;;  %v14177_v54 = vld [vmem:[#allocation12 + $0x4] ss:$16 sps:$4 sm:$0xff]  }
 0x6db   :  { %v4257_v7 = vsel %vm4253_vm12, %v4247_v0, %v4256_v14  ;;  %v4261_v8 = vsel %vm4253_vm12, %v4247_v0, 0.0  ;;  %v14180_v0 = vld [vmem:[#allocation12 + $0xc] ss:$16 sps:$4 sm:$0xff]   ;;  %v14175_v14 = vld [vmem:[#allocation12] ss:$16 sps:$4 sm:$0xff]  }
 0x6dc   :  { %4258 = vst [vmem:[#allocation4] sm:$0x3] %v4257_v7  ;;  %v4259_v49 = vpack.c.bf16 %v4257_v7, %v4257_v7  ;;  %v4262_v45 = vpack.c.bf16 %v4261_v8, %v4261_v8  ;;  %v14178_v7 = vld [vmem:[#allocation12 + $0x8] ss:$16 sps:$4 sm:$0xff]   ;;  %v14183_v8 = vld [vmem:[#allocation12 + $0x24] ss:$16 sps:$4 sm:$0xff]  }
 0x6de   :  { %4260 = vst [vmem:[#allocation5] sm:$0x1] %v4259_v49  ;;  %4264 = vst [vmem:[#allocation2 + $0x4] sm:$0x1] %v4262_v45  ;;  %v14186_v49 = vld [vmem:[#allocation12 + $0x2c] ss:$16 sps:$4 sm:$0xff]  }
 0x6df   :  { %v14181_v45 = vld [vmem:[#allocation12 + $0x20] ss:$16 sps:$4 sm:$0xff]  }
 0x6e3   :  { %v4604_v52 = vld [vmem:[#allocation4] sm:$0x3] }
 0x6e5   :  { %v4266_v59 = vld [vmem:[#allocation5] sm:$0x1] }
 0x6e6   :  { %4492 = vmatmul.mubr.bf16.vlgmr.msra.gmra.mrb[52].mxu0 %v4266_v59  ;;  %4533 = vmatmul.mubr.bf16.vlgmr.msra.gmra.mrb[52].mxu1 %v4266_v59  ;;  %v14184_v59 = vld [vmem:[#allocation12 + $0x28] ss:$16 sps:$4 sm:$0xff]  }
 0x6e7   :  { %4808 = vmatpush1.bf16.msra.mxu0 %v15882_v46  ;;  %4849 = vmatpush1.bf16.msra.mxu1 %v15886_v13 }
 0x6e8   :  { %4809 = vmatprep.subr.bf16.mxu0 %v15890_v15  ;;  %4850 = vmatprep.subr.bf16.mxu1 %v15893_v16 }
 0x6e9   :  { %4839 = vmatprep.mubr.bf16.mxu0 %v17380_v43  ;;  %4880 = vmatprep.mubr.bf16.mxu1 %v17380_v43 }
 0x6eb   :  { %4810 = vmatpush1.bf16.msra.mxu0 %v15897_v17  ;;  %4851 = vmatpush1.bf16.msra.mxu1 %v15901_v18 }
 0x6ec   :  { %4811 = vmatprep.subr.bf16.mxu0 %v15906_v19  ;;  %4852 = vmatprep.subr.bf16.mxu1 %v15908_v20 }
 0x6ef   :  { %4812 = vmatpush1.bf16.msra.mxu0 %v15910_v21  ;;  %4853 = vmatpush1.bf16.msra.mxu1 %v15912_v22 }
 0x6f0   :  { %4813 = vmatprep.subr.bf16.mxu0 %v15918_v23  ;;  %4854 = vmatprep.subr.bf16.mxu1 %v15920_v24 }
 0x6f3   :  { %4814 = vmatpush1.bf16.msra.mxu0 %v15922_v25  ;;  %4855 = vmatpush1.bf16.msra.mxu1 %v15924_v26  ;;  %v17387_v26 = vld [vmem:[#allocation22_spill] sm:$0xff] }
 0x6f4   :  { %4815 = vmatprep.subr.bf16.mxu0 %v15930_v27  ;;  %4856 = vmatprep.subr.bf16.mxu1 %v15932_v28  ;;  %v17388_v27 = vcombine.low %v15781_v53, %v17387_v26  ;;  %17389 = vst [vmem:[#allocation22_spill] sm:$0xff] %v16127_v50  ;;  %v14210_v26 = vld [vmem:[#allocation12 + $0xac] ss:$16 sps:$4 sm:$0xff]  }
 0x6f7   :  { %4816 = vmatpush1.bf16.msra.mxu0 %v15934_v29  ;;  %4857 = vmatpush1.bf16.msra.mxu1 %v15936_v30 }
 0x6f8   :  { %4817 = vmatprep.subr.bf16.mxu0 %v15942_v31  ;;  %4858 = vmatprep.subr.bf16.mxu1 %v15944_v32 }
 0x6fb   :  { %4818 = vmatpush1.bf16.msra.mxu0 %v15946_v33  ;;  %4859 = vmatpush1.bf16.msra.mxu1 %v15948_v34 }
 0x6fc   :  { %4819 = vmatprep.subr.bf16.mxu0 %v15954_v35  ;;  %4860 = vmatprep.subr.bf16.mxu1 %v15956_v36 }
 0x6ff   :  { %4820 = vmatpush1.bf16.msra.mxu0 %v15958_v56  ;;  %4861 = vmatpush1.bf16.msra.mxu1 %v15960_v57 }
 0x700   :  { %4821 = vmatprep.subr.bf16.mxu0 %v15966_v60  ;;  %4862 = vmatprep.subr.bf16.mxu1 %v15968_v61 }
 0x703   :  { %4822 = vmatpush1.bf16.msra.mxu0 %v15970_v4  ;;  %4863 = vmatpush1.bf16.msra.mxu1 %v15972_v5 }
 0x704   :  { %5155 = vmatprep.subr.bf16.mxu0 %v14177_v54  ;;  %5196 = vmatprep.subr.bf16.mxu1 %v14180_v0 }
 0x7b9   :  { %v4493_v46 = vpop.f32.mrb[52].mxu0  ;;  %v4534_v13 = vpop.f32.mrb[52].mxu1 }
 0x7ba   :  { %v4495_v15 = vpop.f32.mrb[53].mxu0  ;;  %v4536_v16 = vpop.f32.mrb[53].mxu1 }
 0x7bb   :  { %v4545_v17 = vcombine.low %v4493_v46, %v4495_v15  ;;  %v4546_v18 = vcombine.low %v4534_v13, %v4536_v16  ;;  %v4497_v19 = vpop.f32.mrb[54].mxu0  ;;  %v4538_v20 = vpop.f32.mrb[54].mxu1  ;;  %v14189_v46 = vld [vmem:[#allocation12 + $0x44] ss:$16 sps:$4 sm:$0xff]   ;;  %v14192_v13 = vld [vmem:[#allocation12 + $0x4c] ss:$16 sps:$4 sm:$0xff]  }
 0x7bc   :  { %v4498_v21 = vpop.f32.mrb[55].mxu0  ;;  %v4539_v22 = vpop.f32.mrb[55].mxu1  ;;  %v14187_v15 = vld [vmem:[#allocation12 + $0x40] ss:$16 sps:$4 sm:$0xff]   ;;  %v14190_v16 = vld [vmem:[#allocation12 + $0x48] ss:$16 sps:$4 sm:$0xff]  }
 0x7bd   :  { %v4553_v23 = vrot.slane %v4545_v17, %v15558_v62  ;;  %v4560_v24 = vrot.slane %v4546_v18, %v15558_v62  ;;  %v14195_v17 = vld [vmem:[#allocation12 + $0x64] ss:$16 sps:$4 sm:$0xff]   ;;  %v14198_v18 = vld [vmem:[#allocation12 + $0x6c] ss:$16 sps:$4 sm:$0xff]   ;;  %v14193_v19 = vld [vmem:[#allocation12 + $0x60] ss:$16 sps:$4 sm:$0xff]  }
 0x7be   :  { %v14196_v20 = vld [vmem:[#allocation12 + $0x68] ss:$16 sps:$4 sm:$0xff]   ;;  %v14201_v21 = vld [vmem:[#allocation12 + $0x84] ss:$16 sps:$4 sm:$0xff]   ;;  %v14204_v22 = vld [vmem:[#allocation12 + $0x8c] ss:$16 sps:$4 sm:$0xff]  }
 0x7bf   :  { %v4561_v25 = vcombine.low %v4553_v23, %v4560_v24  ;;  %v14199_v23 = vld [vmem:[#allocation12 + $0x80] ss:$16 sps:$4 sm:$0xff]   ;;  %v14202_v24 = vld [vmem:[#allocation12 + $0x88] ss:$16 sps:$4 sm:$0xff]  }
 0x7c1   :  { %v4563_v28 = vadd.f32 %v4561_v25, %v17388_v27  ;;  %v14207_v25 = vld [vmem:[#allocation12 + $0xa4] ss:$16 sps:$4 sm:$0xff]   ;;  %v14205_v27 = vld [vmem:[#allocation12 + $0xa0] ss:$16 sps:$4 sm:$0xff]  }
 0x7c3   :  { %v12746_v29 = vmul.f32 -1.442695, %v4563_v28  ;;  %v4571_v30 = vrot.slane %v4563_v28, 2  ;;  %v4582_v32 = vrot.slane %v4563_v28, 6  ;;  %v4579_v35 = vrot.slane %v4563_v28, 4 }
 0x7c4   :  { %v14208_v28 = vld [vmem:[#allocation12 + $0xa8] ss:$16 sps:$4 sm:$0xff]  }
 0x7c5   :  { %14671 = vpow2.f32 %v12746_v29  ;;  %v12747_v31 = vmul.f32 -1.442695, %v4571_v30  ;;  %v12748_v33 = vmul.f32 -1.442695, %v4582_v32  ;;  %v14213_v29 = vld [vmem:[#allocation12 + $0xc4] ss:$16 sps:$4 sm:$0xff]  }
 0x7c6   :  { %v14216_v30 = vld [vmem:[#allocation12 + $0xcc] ss:$16 sps:$4 sm:$0xff]   ;;  %v14214_v32 = vld [vmem:[#allocation12 + $0xc8] ss:$16 sps:$4 sm:$0xff]  }
 0x7c7   :  { %14673 = vpow2.f32 %v12747_v31  ;;  %v14211_v31 = vld [vmem:[#allocation12 + $0xc0] ss:$16 sps:$4 sm:$0xff]  }
 0x7c8   :  { %14675 = vpow2.f32 %v12748_v33  ;;  %v14219_v33 = vld [vmem:[#allocation12 + $0xe4] ss:$16 sps:$4 sm:$0xff]  }
 0x7cf   :  { %v14672_v34 = vpop.eup %14671 }
 0x7d0   :  { %v4567_v36 = vadd.f32 1.0, %v14672_v34  ;;  %v14217_v34 = vld [vmem:[#allocation12 + $0xe0] ss:$16 sps:$4 sm:$0xff]  }
 0x7d1   :  { %v14674_v56 = vpop.eup %14673 }
 0x7d2   :  { %14677 = vrcp.f32 %v4567_v36  ;;  %v4576_v57 = vadd.f32 1.0, %v14674_v56  ;;  %v14676_v60 = vpop.eup %14675  ;;  %v14222_v36 = vld [vmem:[#allocation12 + $0xec] ss:$16 sps:$4 sm:$0xff]   ;;  %v16138_v56 = vld [vmem:[#allocation10 + $0x104] ss:$16 sps:$4 sm:$0xff]  }
 0x7d3   :  { %14679 = vtanh.f32 %v4579_v35  ;;  %v4587_v5 = vadd.f32 1.0, %v14676_v60  ;;  %v14220_v35 = vld [vmem:[#allocation12 + $0xe8] ss:$16 sps:$4 sm:$0xff]  }
 0x7d4   :  { %14681 = vrcp.f32 %v4576_v57  ;;  %v16140_v57 = vld [vmem:[#allocation10 + $0x10c] ss:$16 sps:$4 sm:$0xff]  }
 0x7d5   :  { %14683 = vrcp.f32 %v4587_v5 }
 0x7dc   :  { %v14678_v61 = vpop.eup %14677 }
 0x7dd   :  { %v14680_v53 = vpop.eup %14679 }
 0x7de   :  { %v14682_v4 = vpop.eup %14681  ;;  %v4592_v41 = vmul.f32 %v14680_v53, %v14678_v61 }
 0x7df   :  { %v4591_v12 = vmul.f32 %v14682_v4, %v4590_v9  ;;  %v14684_v55 = vpop.eup %14683 }
 0x7e1   :  { %v4593_v44 = vadd.f32 %v4592_v41, %v4591_v12 }
 0x7e3   :  { %14685 = vtanh.f32 %v4593_v44  ;;  %v4602_v10 = vsel %vm4601_vm13, %v4593_v44, %v4590_v9 }
 0x7e4   :  { %4603 = vst [vmem:[#allocation6] sm:$0x3] %v4602_v10 }
 0x7ed   :  { %v14686_v48 = vpop.eup %14685 }
 0x7ee   :  { %v4595_v51 = vmul.f32 %v14686_v48, %v14684_v55 }
 0x7f0   :  { %v4605_v40 = vsel %vm4601_vm13, %v4595_v51, %v4604_v52  ;;  %v4609_v58 = vsel %vm4601_vm13, %v4595_v51, 0.0  ;;  %v17390_v52 = vld [vmem:[#allocation23_spill] sm:$0xff] }
 0x7f1   :  { %4606 = vst [vmem:[#allocation4] sm:$0x3] %v4605_v40  ;;  %v4607_v3 = vpack.c.bf16 %v4605_v40, %v4605_v40  ;;  %v4610_v63 = vpack.c.bf16 %v4609_v58, %v4609_v58  ;;  %v17391_v40 = vcombine.low %v15793_v39, %v17390_v52  ;;  %v16214_v52 = vld [vmem:[#allocation10 + $0x1ac] ss:$16 sps:$4 sm:$0xff]  }
 0x7f3   :  { %4612 = vst [vmem:[#allocation2 + $0x5] sm:$0x1] %v4610_v63  ;;  %4608 = vst [vmem:[#allocation5] sm:$0x1] %v4607_v3 }
 0x7fa   :  { %v4614_v38 = vld [vmem:[#allocation5] sm:$0x1] }
 0x7fb   :  { %4840 = vmatmul.mubr.bf16.vlgmr.msra.gmra.mrb[56].mxu0 %v4614_v38  ;;  %4881 = vmatmul.mubr.bf16.vlgmr.msra.gmra.mrb[56].mxu1 %v4614_v38 }
 0x7fc   :  { %5187 = vmatprep.mubr.bf16.mxu0 %v17380_v43  ;;  %5228 = vmatprep.mubr.bf16.mxu1 %v17380_v43 }
 0x7fd   :  { %5156 = vmatpush1.bf16.msra.mxu0 %v14175_v14  ;;  %5197 = vmatpush1.bf16.msra.mxu1 %v14178_v7 }
 0x7fe   :  { %5157 = vmatprep.subr.bf16.mxu0 %v14183_v8  ;;  %5198 = vmatprep.subr.bf16.mxu1 %v14186_v49 }
 0x801   :  { %5158 = vmatpush1.bf16.msra.mxu0 %v14181_v45  ;;  %5199 = vmatpush1.bf16.msra.mxu1 %v14184_v59 }
 0x802   :  { %5159 = vmatprep.subr.bf16.mxu0 %v14189_v46  ;;  %5200 = vmatprep.subr.bf16.mxu1 %v14192_v13 }
 0x805   :  { %5160 = vmatpush1.bf16.msra.mxu0 %v14187_v15  ;;  %5201 = vmatpush1.bf16.msra.mxu1 %v14190_v16  ;;  %v4938_v16 = vld [vmem:[#allocation6] sm:$0x3] }
 0x806   :  { %5161 = vmatprep.subr.bf16.mxu0 %v14195_v17  ;;  %5202 = vmatprep.subr.bf16.mxu1 %v14198_v18  ;;  %v16149_v17 = vpop.permute.xlu0 %4947 }
 0x807   :  { %17392 = vst [vmem:[#allocation23_spill] sm:$0xff] %v16149_v17  ;;  %vm4949_vm14 = vcmp.eq.s32.totalorder %v16149_v17, 1 }
 0x809   :  { %5162 = vmatpush1.bf16.msra.mxu0 %v14193_v19  ;;  %5203 = vmatpush1.bf16.msra.mxu1 %v14196_v20 }
 0x80a   :  { %5163 = vmatprep.subr.bf16.mxu0 %v14201_v21  ;;  %5204 = vmatprep.subr.bf16.mxu1 %v14204_v22 }
 0x80d   :  { %5164 = vmatpush1.bf16.msra.mxu0 %v14199_v23  ;;  %5205 = vmatpush1.bf16.msra.mxu1 %v14202_v24 }
 0x80e   :  { %5165 = vmatprep.subr.bf16.mxu0 %v14207_v25  ;;  %5206 = vmatprep.subr.bf16.mxu1 %v14210_v26  ;;  %v4952_v25 = vld [vmem:[#allocation4] sm:$0x3] }
 0x811   :  { %5166 = vmatpush1.bf16.msra.mxu0 %v14205_v27  ;;  %5207 = vmatpush1.bf16.msra.mxu1 %v14208_v28 }
 0x812   :  { %5167 = vmatprep.subr.bf16.mxu0 %v14213_v29  ;;  %5208 = vmatprep.subr.bf16.mxu1 %v14216_v30  ;;  %v16158_v30 = vld [vmem:[#allocation10 + $0x100] ss:$16 sps:$4 sm:$0xff]  }
 0x815   :  { %5168 = vmatpush1.bf16.msra.mxu0 %v14211_v31  ;;  %5209 = vmatpush1.bf16.msra.mxu1 %v14214_v32  ;;  %v16160_v31 = vld [vmem:[#allocation10 + $0x108] ss:$16 sps:$4 sm:$0xff]   ;;  %v16162_v32 = vld [vmem:[#allocation10 + $0x124] ss:$16 sps:$4 sm:$0xff]  }
 0x816   :  { %5169 = vmatprep.subr.bf16.mxu0 %v14219_v33  ;;  %5210 = vmatprep.subr.bf16.mxu1 %v14222_v36  ;;  %v16164_v33 = vld [vmem:[#allocation10 + $0x12c] ss:$16 sps:$4 sm:$0xff]   ;;  %v16170_v36 = vld [vmem:[#allocation10 + $0x128] ss:$16 sps:$4 sm:$0xff]  }
 0x819   :  { %5170 = vmatpush1.bf16.msra.mxu0 %v14217_v34  ;;  %5211 = vmatpush1.bf16.msra.mxu1 %v14220_v35  ;;  %v16168_v35 = vld [vmem:[#allocation10 + $0x120] ss:$16 sps:$4 sm:$0xff]  }
 0x81a   :  { %5526 = vmatprep.subr.bf16.mxu0 %v16138_v56  ;;  %5567 = vmatprep.subr.bf16.mxu1 %v16140_v57 }
 0x8ce   :  { %v4841_v60 = vpop.f32.mrb[56].mxu0  ;;  %v4882_v61 = vpop.f32.mrb[56].mxu1 }
 0x8cf   :  { %v4843_v53 = vpop.f32.mrb[57].mxu0  ;;  %v4884_v4 = vpop.f32.mrb[57].mxu1 }
 0x8d0   :  { %v4893_v5 = vcombine.low %v4841_v60, %v4843_v53  ;;  %v4894_v9 = vcombine.low %v4882_v61, %v4884_v4  ;;  %v4845_v12 = vpop.f32.mrb[58].mxu0  ;;  %v4886_v41 = vpop.f32.mrb[58].mxu1  ;;  %v16174_v60 = vld [vmem:[#allocation10 + $0x144] ss:$16 sps:$4 sm:$0xff]   ;;  %v16176_v61 = vld [vmem:[#allocation10 + $0x14c] ss:$16 sps:$4 sm:$0xff]  }
 0x8d1   :  { %v4846_v44 = vpop.f32.mrb[59].mxu0  ;;  %v4887_v10 = vpop.f32.mrb[59].mxu1  ;;  %v16182_v53 = vld [vmem:[#allocation10 + $0x140] ss:$16 sps:$4 sm:$0xff]   ;;  %v16184_v4 = vld [vmem:[#allocation10 + $0x148] ss:$16 sps:$4 sm:$0xff]  }
 0x8d2   :  { %v4901_v55 = vrot.slane %v4893_v5, %v15558_v62  ;;  %v4908_v48 = vrot.slane %v4894_v9, %v15558_v62  ;;  %v16188_v5 = vld [vmem:[#allocation10 + $0x164] ss:$16 sps:$4 sm:$0xff]   ;;  %v16190_v9 = vld [vmem:[#allocation10 + $0x16c] ss:$16 sps:$4 sm:$0xff]   ;;  %v16194_v12 = vld [vmem:[#allocation10 + $0x160] ss:$16 sps:$4 sm:$0xff]  }
 0x8d3   :  { %v16196_v41 = vld [vmem:[#allocation10 + $0x168] ss:$16 sps:$4 sm:$0xff]   ;;  %v16200_v44 = vld [vmem:[#allocation10 + $0x184] ss:$16 sps:$4 sm:$0xff]   ;;  %v16202_v10 = vld [vmem:[#allocation10 + $0x18c] ss:$16 sps:$4 sm:$0xff]  }
 0x8d4   :  { %v4909_v51 = vcombine.low %v4901_v55, %v4908_v48  ;;  %v16206_v55 = vld [vmem:[#allocation10 + $0x180] ss:$16 sps:$4 sm:$0xff]   ;;  %v16208_v48 = vld [vmem:[#allocation10 + $0x188] ss:$16 sps:$4 sm:$0xff]  }
 0x8d6   :  { %v4911_v58 = vadd.f32 %v4909_v51, %v17391_v40  ;;  %v16212_v51 = vld [vmem:[#allocation10 + $0x1a4] ss:$16 sps:$4 sm:$0xff]   ;;  %v16218_v40 = vld [vmem:[#allocation10 + $0x1a0] ss:$16 sps:$4 sm:$0xff]  }
 0x8d8   :  { %v12781_v3 = vmul.f32 -1.442695, %v4911_v58  ;;  %v4919_v63 = vrot.slane %v4911_v58, 2  ;;  %v4930_v54 = vrot.slane %v4911_v58, 6  ;;  %v4927_v7 = vrot.slane %v4911_v58, 4 }
 0x8d9   :  { %v16220_v58 = vld [vmem:[#allocation10 + $0x1a8] ss:$16 sps:$4 sm:$0xff]  }
 0x8da   :  { %14687 = vpow2.f32 %v12781_v3  ;;  %v12782_v38 = vmul.f32 -1.442695, %v4919_v63  ;;  %v12783_v0 = vmul.f32 -1.442695, %v4930_v54  ;;  %v16224_v3 = vld [vmem:[#allocation10 + $0x1c4] ss:$16 sps:$4 sm:$0xff]  }
 0x8db   :  { %v16226_v63 = vld [vmem:[#allocation10 + $0x1cc] ss:$16 sps:$4 sm:$0xff]   ;;  %v16232_v54 = vld [vmem:[#allocation10 + $0x1c8] ss:$16 sps:$4 sm:$0xff]  }
 0x8dc   :  { %14689 = vpow2.f32 %v12782_v38  ;;  %v16230_v38 = vld [vmem:[#allocation10 + $0x1c0] ss:$16 sps:$4 sm:$0xff]  }
 0x8dd   :  { %14691 = vpow2.f32 %v12783_v0  ;;  %v16236_v0 = vld [vmem:[#allocation10 + $0x1e4] ss:$16 sps:$4 sm:$0xff]  }
 0x8e4   :  { %v14688_v14 = vpop.eup %14687 }
 0x8e5   :  { %v4915_v8 = vadd.f32 1.0, %v14688_v14  ;;  %v16238_v14 = vld [vmem:[#allocation10 + $0x1ec] ss:$16 sps:$4 sm:$0xff]  }
 0x8e6   :  { %v14690_v49 = vpop.eup %14689 }
 0x8e7   :  { %14693 = vrcp.f32 %v4915_v8  ;;  %v4924_v45 = vadd.f32 1.0, %v14690_v49  ;;  %v14692_v59 = vpop.eup %14691  ;;  %v16244_v8 = vld [vmem:[#allocation10 + $0x1e8] ss:$16 sps:$4 sm:$0xff]  }
 0x8e8   :  { %14695 = vtanh.f32 %v4927_v7  ;;  %v4935_v15 = vadd.f32 1.0, %v14692_v59  ;;  %v16242_v7 = vld [vmem:[#allocation10 + $0x1e0] ss:$16 sps:$4 sm:$0xff]   ;;  %v5311_v49 = vld [vmem:[#allocation2] sm:$0x1] }
 0x8e9   :  { %14697 = vrcp.f32 %v4924_v45  ;;  %v5631_v45 = vld [vmem:[#allocation2 + $0x1] sm:$0x1]  ;;  %v5929_v59 = vld [vmem:[#allocation2 + $0x2] sm:$0x1] }
 0x8ea   :  { %14699 = vrcp.f32 %v4935_v15  ;;  %v16426_v15 = vld [vmem:[#allocation10 + $0x108] ss:$16 sps:$4 sm:$0xff]  }
 0x8f1   :  { %v14694_v46 = vpop.eup %14693 }
 0x8f2   :  { %v14696_v39 = vpop.eup %14695 }
 0x8f3   :  { %v14698_v13 = vpop.eup %14697  ;;  %v4940_v19 = vmul.f32 %v14696_v39, %v14694_v46  ;;  %v6227_v46 = vld [vmem:[#allocation2 + $0x3] sm:$0x1]  ;;  %v6525_v39 = vld [vmem:[#allocation2 + $0x4] sm:$0x1] }
 0x8f4   :  { %v4939_v18 = vmul.f32 %v14698_v13, %v4938_v16  ;;  %v14700_v22 = vpop.eup %14699  ;;  %v16424_v13 = vld [vmem:[#allocation10 + $0x100] ss:$16 sps:$4 sm:$0xff]  }
 0x8f6   :  { %v4941_v20 = vadd.f32 %v4940_v19, %v4939_v18  ;;  %v16432_v18 = vld [vmem:[#allocation10 + $0x12c] ss:$16 sps:$4 sm:$0xff]   ;;  %v6823_v19 = vld [vmem:[#allocation2 + $0x5] sm:$0x1] }
 0x8f8   :  { %14701 = vtanh.f32 %v4941_v20  ;;  %v4950_v21 = vsel %vm4949_vm14, %v4941_v20, %v4938_v16  ;;  %v16430_v16 = vld [vmem:[#allocation10 + $0x124] ss:$16 sps:$4 sm:$0xff]   ;;  %v16436_v20 = vld [vmem:[#allocation10 + $0x120] ss:$16 sps:$4 sm:$0xff]  }
 0x8f9   :  { %4951 = vst [vmem:[#allocation6] sm:$0x3] %v4950_v21  ;;  %v16438_v21 = vld [vmem:[#allocation10 + $0x128] ss:$16 sps:$4 sm:$0xff]  }
 0x902   :  { %v14702_v23 = vpop.eup %14701 }
 0x903   :  { %v4943_v24 = vmul.f32 %v14702_v23, %v14700_v22  ;;  %v16442_v22 = vld [vmem:[#allocation10 + $0x144] ss:$16 sps:$4 sm:$0xff]   ;;  %v16444_v23 = vld [vmem:[#allocation10 + $0x14c] ss:$16 sps:$4 sm:$0xff]  }
 0x905   :  { %v4953_v26 = vsel %vm4949_vm14, %v4943_v24, %v4952_v25  ;;  %v4957_v27 = vsel %vm4949_vm14, %v4943_v24, 0.0  ;;  %v16450_v24 = vld [vmem:[#allocation10 + $0x140] ss:$16 sps:$4 sm:$0xff]   ;;  %v16452_v25 = vld [vmem:[#allocation10 + $0x148] ss:$16 sps:$4 sm:$0xff]  }
 0x906   :  { %4954 = vst [vmem:[#allocation4] sm:$0x3] %v4953_v26  ;;  %v4955_v28 = vpack.c.bf16 %v4953_v26, %v4953_v26  ;;  %v4958_v29 = vpack.c.bf16 %v4957_v27, %v4957_v27  ;;  %v16456_v26 = vld [vmem:[#allocation10 + $0x164] ss:$16 sps:$4 sm:$0xff]   ;;  %v16458_v27 = vld [vmem:[#allocation10 + $0x16c] ss:$16 sps:$4 sm:$0xff]  }
 0x908   :  { %4960 = vst [vmem:[#allocation2 + $0x6] sm:$0x1] %v4958_v29  ;;  %4956 = vst [vmem:[#allocation5] sm:$0x1] %v4955_v28  ;;  %v16462_v28 = vld [vmem:[#allocation10 + $0x160] ss:$16 sps:$4 sm:$0xff]  }
 0x909   :  { %v16464_v29 = vld [vmem:[#allocation10 + $0x168] ss:$16 sps:$4 sm:$0xff]  }
 0x90f   :  { %v4962_v34 = vld [vmem:[#allocation5] sm:$0x1] }
 0x910   :  { %5188 = vmatmul.mubr.bf16.vlgmr.msra.gmra.mrb[60].mxu0 %v4962_v34  ;;  %5229 = vmatmul.mubr.bf16.vlgmr.msra.gmra.mrb[60].mxu1 %v4962_v34  ;;  %v16480_v34 = vld [vmem:[#allocation10 + $0x1a4] ss:$16 sps:$4 sm:$0xff]  }
 0x911   :  { %5527 = vmatpush1.bf16.msra.mxu0 %v16158_v30  ;;  %5568 = vmatpush1.bf16.msra.mxu1 %v16160_v31 }
 0x912   :  { %5528 = vmatprep.subr.bf16.mxu0 %v16162_v32  ;;  %5569 = vmatprep.subr.bf16.mxu1 %v16164_v33 }
 0x913   :  { %5558 = vmatprep.mubr.bf16.mxu0 %v17380_v43  ;;  %5599 = vmatprep.mubr.bf16.mxu1 %v17380_v43 }
 0x915   :  { %5529 = vmatpush1.bf16.msra.mxu0 %v16168_v35  ;;  %5570 = vmatpush1.bf16.msra.mxu1 %v16170_v36 }
 0x916   :  { %5530 = vmatprep.subr.bf16.mxu0 %v16174_v60  ;;  %5571 = vmatprep.subr.bf16.mxu1 %v16176_v61 }
 0x919   :  { %5531 = vmatpush1.bf16.msra.mxu0 %v16182_v53  ;;  %5572 = vmatpush1.bf16.msra.mxu1 %v16184_v4 }
 0x91a   :  { %5532 = vmatprep.subr.bf16.mxu0 %v16188_v5  ;;  %5573 = vmatprep.subr.bf16.mxu1 %v16190_v9 }
 0x91d   :  { %5533 = vmatpush1.bf16.msra.mxu0 %v16194_v12  ;;  %5574 = vmatpush1.bf16.msra.mxu1 %v16196_v41 }
 0x91e   :  { %5534 = vmatprep.subr.bf16.mxu0 %v16200_v44  ;;  %5575 = vmatprep.subr.bf16.mxu1 %v16202_v10 }
 0x921   :  { %5535 = vmatpush1.bf16.msra.mxu0 %v16206_v55  ;;  %5576 = vmatpush1.bf16.msra.mxu1 %v16208_v48 }
 0x922   :  { %5536 = vmatprep.subr.bf16.mxu0 %v16212_v51  ;;  %5577 = vmatprep.subr.bf16.mxu1 %v16214_v52 }
 0x925   :  { %5537 = vmatpush1.bf16.msra.mxu0 %v16218_v40  ;;  %5578 = vmatpush1.bf16.msra.mxu1 %v16220_v58 }
 0x926   :  { %5538 = vmatprep.subr.bf16.mxu0 %v16224_v3  ;;  %5579 = vmatprep.subr.bf16.mxu1 %v16226_v63 }
 0x929   :  { %5539 = vmatpush1.bf16.msra.mxu0 %v16230_v38  ;;  %5580 = vmatpush1.bf16.msra.mxu1 %v16232_v54 }
 0x92a   :  { %5540 = vmatprep.subr.bf16.mxu0 %v16236_v0  ;;  %5581 = vmatprep.subr.bf16.mxu1 %v16238_v14 }
 0x92d   :  { %5541 = vmatpush1.bf16.msra.mxu0 %v16242_v7  ;;  %5582 = vmatpush1.bf16.msra.mxu1 %v16244_v8 }
 0x92e   :  { %5824 = vmatprep.subr.bf16.mxu0 %v16138_v56  ;;  %5865 = vmatprep.subr.bf16.mxu1 %v16140_v57 }
 0x930   :  { %5559 = vmatmul.mubr.bf16.vlgmr.msra.gmra.mrb[64].mxu0 %v5311_v49  ;;  %5600 = vmatmul.mubr.bf16.vlgmr.msra.gmra.mrb[64].mxu1 %v5311_v49 }
 0x931   :  { %5825 = vmatpush1.bf16.msra.mxu0 %v16158_v30  ;;  %5866 = vmatpush1.bf16.msra.mxu1 %v16160_v31 }
 0x932   :  { %5826 = vmatprep.subr.bf16.mxu0 %v16162_v32  ;;  %5867 = vmatprep.subr.bf16.mxu1 %v16164_v33 }
 0x933   :  { %5856 = vmatprep.mubr.bf16.mxu0 %v17380_v43  ;;  %5897 = vmatprep.mubr.bf16.mxu1 %v17380_v43 }
 0x935   :  { %5827 = vmatpush1.bf16.msra.mxu0 %v16168_v35  ;;  %5868 = vmatpush1.bf16.msra.mxu1 %v16170_v36 }
 0x936   :  { %5828 = vmatprep.subr.bf16.mxu0 %v16174_v60  ;;  %5869 = vmatprep.subr.bf16.mxu1 %v16176_v61 }
 0x939   :  { %5829 = vmatpush1.bf16.msra.mxu0 %v16182_v53  ;;  %5870 = vmatpush1.bf16.msra.mxu1 %v16184_v4 }
 0x93a   :  { %5830 = vmatprep.subr.bf16.mxu0 %v16188_v5  ;;  %5871 = vmatprep.subr.bf16.mxu1 %v16190_v9 }
 0x93d   :  { %5831 = vmatpush1.bf16.msra.mxu0 %v16194_v12  ;;  %5872 = vmatpush1.bf16.msra.mxu1 %v16196_v41 }
 0x93e   :  { %5832 = vmatprep.subr.bf16.mxu0 %v16200_v44  ;;  %5873 = vmatprep.subr.bf16.mxu1 %v16202_v10 }
 0x941   :  { %5833 = vmatpush1.bf16.msra.mxu0 %v16206_v55  ;;  %5874 = vmatpush1.bf16.msra.mxu1 %v16208_v48 }
 0x942   :  { %5834 = vmatprep.subr.bf16.mxu0 %v16212_v51  ;;  %5875 = vmatprep.subr.bf16.mxu1 %v16214_v52 }
 0x945   :  { %5835 = vmatpush1.bf16.msra.mxu0 %v16218_v40  ;;  %5876 = vmatpush1.bf16.msra.mxu1 %v16220_v58 }
 0x946   :  { %5836 = vmatprep.subr.bf16.mxu0 %v16224_v3  ;;  %5877 = vmatprep.subr.bf16.mxu1 %v16226_v63 }
 0x949   :  { %5837 = vmatpush1.bf16.msra.mxu0 %v16230_v38  ;;  %5878 = vmatpush1.bf16.msra.mxu1 %v16232_v54 }
 0x94a   :  { %5838 = vmatprep.subr.bf16.mxu0 %v16236_v0  ;;  %5879 = vmatprep.subr.bf16.mxu1 %v16238_v14 }
 0x94d   :  { %5839 = vmatpush1.bf16.msra.mxu0 %v16242_v7  ;;  %5880 = vmatpush1.bf16.msra.mxu1 %v16244_v8 }
 0x94e   :  { %6122 = vmatprep.subr.bf16.mxu0 %v16138_v56  ;;  %6163 = vmatprep.subr.bf16.mxu1 %v16140_v57 }
 0x950   :  { %5857 = vmatmul.mubr.bf16.vlgmr.msra.gmra.mrb[68].mxu0 %v5631_v45  ;;  %5898 = vmatmul.mubr.bf16.vlgmr.msra.gmra.mrb[68].mxu1 %v5631_v45 }
 0x951   :  { %6123 = vmatpush1.bf16.msra.mxu0 %v16158_v30  ;;  %6164 = vmatpush1.bf16.msra.mxu1 %v16160_v31 }
 0x952   :  { %6124 = vmatprep.subr.bf16.mxu0 %v16162_v32  ;;  %6165 = vmatprep.subr.bf16.mxu1 %v16164_v33 }
 0x953   :  { %6154 = vmatprep.mubr.bf16.mxu0 %v17380_v43  ;;  %6195 = vmatprep.mubr.bf16.mxu1 %v17380_v43 }
 0x955   :  { %6125 = vmatpush1.bf16.msra.mxu0 %v16168_v35  ;;  %6166 = vmatpush1.bf16.msra.mxu1 %v16170_v36 }
 0x956   :  { %6126 = vmatprep.subr.bf16.mxu0 %v16174_v60  ;;  %6167 = vmatprep.subr.bf16.mxu1 %v16176_v61 }
 0x959   :  { %6127 = vmatpush1.bf16.msra.mxu0 %v16182_v53  ;;  %6168 = vmatpush1.bf16.msra.mxu1 %v16184_v4 }
 0x95a   :  { %6128 = vmatprep.subr.bf16.mxu0 %v16188_v5  ;;  %6169 = vmatprep.subr.bf16.mxu1 %v16190_v9 }
 0x95d   :  { %6129 = vmatpush1.bf16.msra.mxu0 %v16194_v12  ;;  %6170 = vmatpush1.bf16.msra.mxu1 %v16196_v41 }
 0x95e   :  { %6130 = vmatprep.subr.bf16.mxu0 %v16200_v44  ;;  %6171 = vmatprep.subr.bf16.mxu1 %v16202_v10 }
 0x961   :  { %6131 = vmatpush1.bf16.msra.mxu0 %v16206_v55  ;;  %6172 = vmatpush1.bf16.msra.mxu1 %v16208_v48 }
 0x962   :  { %6132 = vmatprep.subr.bf16.mxu0 %v16212_v51  ;;  %6173 = vmatprep.subr.bf16.mxu1 %v16214_v52 }
 0x965   :  { %6133 = vmatpush1.bf16.msra.mxu0 %v16218_v40  ;;  %6174 = vmatpush1.bf16.msra.mxu1 %v16220_v58 }
 0x966   :  { %6134 = vmatprep.subr.bf16.mxu0 %v16224_v3  ;;  %6175 = vmatprep.subr.bf16.mxu1 %v16226_v63 }
 0x969   :  { %6135 = vmatpush1.bf16.msra.mxu0 %v16230_v38  ;;  %6176 = vmatpush1.bf16.msra.mxu1 %v16232_v54 }
 0x96a   :  { %6136 = vmatprep.subr.bf16.mxu0 %v16236_v0  ;;  %6177 = vmatprep.subr.bf16.mxu1 %v16238_v14 }
 0x96d   :  { %6137 = vmatpush1.bf16.msra.mxu0 %v16242_v7  ;;  %6178 = vmatpush1.bf16.msra.mxu1 %v16244_v8 }
 0x96e   :  { %6420 = vmatprep.subr.bf16.mxu0 %v16138_v56  ;;  %6461 = vmatprep.subr.bf16.mxu1 %v16140_v57 }
 0x970   :  { %6155 = vmatmul.mubr.bf16.vlgmr.msra.gmra.mrb[72].mxu0 %v5929_v59  ;;  %6196 = vmatmul.mubr.bf16.vlgmr.msra.gmra.mrb[72].mxu1 %v5929_v59 }
 0x971   :  { %6421 = vmatpush1.bf16.msra.mxu0 %v16158_v30  ;;  %6462 = vmatpush1.bf16.msra.mxu1 %v16160_v31 }
 0x972   :  { %6422 = vmatprep.subr.bf16.mxu0 %v16162_v32  ;;  %6463 = vmatprep.subr.bf16.mxu1 %v16164_v33 }
 0x973   :  { %6452 = vmatprep.mubr.bf16.mxu0 %v17380_v43  ;;  %6493 = vmatprep.mubr.bf16.mxu1 %v17380_v43 }
 0x975   :  { %6423 = vmatpush1.bf16.msra.mxu0 %v16168_v35  ;;  %6464 = vmatpush1.bf16.msra.mxu1 %v16170_v36 }
 0x976   :  { %6424 = vmatprep.subr.bf16.mxu0 %v16174_v60  ;;  %6465 = vmatprep.subr.bf16.mxu1 %v16176_v61 }
 0x979   :  { %6425 = vmatpush1.bf16.msra.mxu0 %v16182_v53  ;;  %6466 = vmatpush1.bf16.msra.mxu1 %v16184_v4 }
 0x97a   :  { %6426 = vmatprep.subr.bf16.mxu0 %v16188_v5  ;;  %6467 = vmatprep.subr.bf16.mxu1 %v16190_v9 }
 0x97d   :  { %6427 = vmatpush1.bf16.msra.mxu0 %v16194_v12  ;;  %6468 = vmatpush1.bf16.msra.mxu1 %v16196_v41 }
 0x97e   :  { %6428 = vmatprep.subr.bf16.mxu0 %v16200_v44  ;;  %6469 = vmatprep.subr.bf16.mxu1 %v16202_v10 }
 0x981   :  { %6429 = vmatpush1.bf16.msra.mxu0 %v16206_v55  ;;  %6470 = vmatpush1.bf16.msra.mxu1 %v16208_v48 }
 0x982   :  { %6430 = vmatprep.subr.bf16.mxu0 %v16212_v51  ;;  %6471 = vmatprep.subr.bf16.mxu1 %v16214_v52 }
 0x985   :  { %6431 = vmatpush1.bf16.msra.mxu0 %v16218_v40  ;;  %6472 = vmatpush1.bf16.msra.mxu1 %v16220_v58 }
 0x986   :  { %6432 = vmatprep.subr.bf16.mxu0 %v16224_v3  ;;  %6473 = vmatprep.subr.bf16.mxu1 %v16226_v63 }
 0x989   :  { %6433 = vmatpush1.bf16.msra.mxu0 %v16230_v38  ;;  %6474 = vmatpush1.bf16.msra.mxu1 %v16232_v54 }
 0x98a   :  { %6434 = vmatprep.subr.bf16.mxu0 %v16236_v0  ;;  %6475 = vmatprep.subr.bf16.mxu1 %v16238_v14 }
 0x98d   :  { %6435 = vmatpush1.bf16.msra.mxu0 %v16242_v7  ;;  %6476 = vmatpush1.bf16.msra.mxu1 %v16244_v8 }
 0x98e   :  { %6718 = vmatprep.subr.bf16.mxu0 %v16138_v56  ;;  %6759 = vmatprep.subr.bf16.mxu1 %v16140_v57 }
 0x990   :  { %6453 = vmatmul.mubr.bf16.vlgmr.msra.gmra.mrb[76].mxu0 %v6227_v46  ;;  %6494 = vmatmul.mubr.bf16.vlgmr.msra.gmra.mrb[76].mxu1 %v6227_v46  ;;  %v7121_v46 = vld [vmem:[#allocation2 + $0x6] sm:$0x1] }
 0x991   :  { %6719 = vmatpush1.bf16.msra.mxu0 %v16158_v30  ;;  %6760 = vmatpush1.bf16.msra.mxu1 %v16160_v31 }
 0x992   :  { %6720 = vmatprep.subr.bf16.mxu0 %v16162_v32  ;;  %6761 = vmatprep.subr.bf16.mxu1 %v16164_v33 }
 0x993   :  { %6750 = vmatprep.mubr.bf16.mxu0 %v17380_v43  ;;  %6791 = vmatprep.mubr.bf16.mxu1 %v17380_v43 }
 0x995   :  { %6721 = vmatpush1.bf16.msra.mxu0 %v16168_v35  ;;  %6762 = vmatpush1.bf16.msra.mxu1 %v16170_v36 }
 0x996   :  { %6722 = vmatprep.subr.bf16.mxu0 %v16174_v60  ;;  %6763 = vmatprep.subr.bf16.mxu1 %v16176_v61 }
 0x999   :  { %6723 = vmatpush1.bf16.msra.mxu0 %v16182_v53  ;;  %6764 = vmatpush1.bf16.msra.mxu1 %v16184_v4 }
 0x99a   :  { %6724 = vmatprep.subr.bf16.mxu0 %v16188_v5  ;;  %6765 = vmatprep.subr.bf16.mxu1 %v16190_v9 }
 0x99d   :  { %6725 = vmatpush1.bf16.msra.mxu0 %v16194_v12  ;;  %6766 = vmatpush1.bf16.msra.mxu1 %v16196_v41 }
 0x99e   :  { %6726 = vmatprep.subr.bf16.mxu0 %v16200_v44  ;;  %6767 = vmatprep.subr.bf16.mxu1 %v16202_v10 }
 0x9a1   :  { %6727 = vmatpush1.bf16.msra.mxu0 %v16206_v55  ;;  %6768 = vmatpush1.bf16.msra.mxu1 %v16208_v48 }
 0x9a2   :  { %6728 = vmatprep.subr.bf16.mxu0 %v16212_v51  ;;  %6769 = vmatprep.subr.bf16.mxu1 %v16214_v52 }
 0x9a5   :  { %6729 = vmatpush1.bf16.msra.mxu0 %v16218_v40  ;;  %6770 = vmatpush1.bf16.msra.mxu1 %v16220_v58 }
 0x9a6   :  { %6730 = vmatprep.subr.bf16.mxu0 %v16224_v3  ;;  %6771 = vmatprep.subr.bf16.mxu1 %v16226_v63 }
 0x9a9   :  { %6731 = vmatpush1.bf16.msra.mxu0 %v16230_v38  ;;  %6772 = vmatpush1.bf16.msra.mxu1 %v16232_v54 }
 0x9aa   :  { %6732 = vmatprep.subr.bf16.mxu0 %v16236_v0  ;;  %6773 = vmatprep.subr.bf16.mxu1 %v16238_v14 }
 0x9ad   :  { %6733 = vmatpush1.bf16.msra.mxu0 %v16242_v7  ;;  %6774 = vmatpush1.bf16.msra.mxu1 %v16244_v8 }
 0x9ae   :  { %7016 = vmatprep.subr.bf16.mxu0 %v16138_v56  ;;  %7057 = vmatprep.subr.bf16.mxu1 %v16140_v57  ;;  %v16418_v56 = vld [vmem:[#allocation10 + $0x104] ss:$16 sps:$4 sm:$0xff]   ;;  %v16420_v57 = vld [vmem:[#allocation10 + $0x10c] ss:$16 sps:$4 sm:$0xff]  }
 0x9b0   :  { %6751 = vmatmul.mubr.bf16.vlgmr.msra.gmra.mrb[80].mxu0 %v6525_v39  ;;  %6792 = vmatmul.mubr.bf16.vlgmr.msra.gmra.mrb[80].mxu1 %v6525_v39 }
 0x9b1   :  { %7017 = vmatpush1.bf16.msra.mxu0 %v16158_v30  ;;  %7058 = vmatpush1.bf16.msra.mxu1 %v16160_v31  ;;  %v16468_v30 = vld [vmem:[#allocation10 + $0x184] ss:$16 sps:$4 sm:$0xff]   ;;  %v16470_v31 = vld [vmem:[#allocation10 + $0x18c] ss:$16 sps:$4 sm:$0xff]  }
 0x9b2   :  { %7018 = vmatprep.subr.bf16.mxu0 %v16162_v32  ;;  %7059 = vmatprep.subr.bf16.mxu1 %v16164_v33  ;;  %v16474_v32 = vld [vmem:[#allocation10 + $0x180] ss:$16 sps:$4 sm:$0xff]   ;;  %v16476_v33 = vld [vmem:[#allocation10 + $0x188] ss:$16 sps:$4 sm:$0xff]  }
 0x9b3   :  { %7048 = vmatprep.mubr.bf16.mxu0 %v17380_v43  ;;  %7089 = vmatprep.mubr.bf16.mxu1 %v17380_v43 }
 0x9b5   :  { %7019 = vmatpush1.bf16.msra.mxu0 %v16168_v35  ;;  %7060 = vmatpush1.bf16.msra.mxu1 %v16170_v36  ;;  %v16482_v35 = vld [vmem:[#allocation10 + $0x1ac] ss:$16 sps:$4 sm:$0xff]   ;;  %v16486_v36 = vld [vmem:[#allocation10 + $0x1a0] ss:$16 sps:$4 sm:$0xff]  }
 0x9b6   :  { %7020 = vmatprep.subr.bf16.mxu0 %v16174_v60  ;;  %7061 = vmatprep.subr.bf16.mxu1 %v16176_v61  ;;  %v16488_v60 = vld [vmem:[#allocation10 + $0x1a8] ss:$16 sps:$4 sm:$0xff]   ;;  %v16492_v61 = vld [vmem:[#allocation10 + $0x1c4] ss:$16 sps:$4 sm:$0xff]  }
 0x9b9   :  { %7021 = vmatpush1.bf16.msra.mxu0 %v16182_v53  ;;  %7062 = vmatpush1.bf16.msra.mxu1 %v16184_v4  ;;  %v16494_v53 = vld [vmem:[#allocation10 + $0x1cc] ss:$16 sps:$4 sm:$0xff]  }
 0x9ba   :  { %7022 = vmatprep.subr.bf16.mxu0 %v16188_v5  ;;  %7063 = vmatprep.subr.bf16.mxu1 %v16190_v9 }
 0x9bd   :  { %7023 = vmatpush1.bf16.msra.mxu0 %v16194_v12  ;;  %7064 = vmatpush1.bf16.msra.mxu1 %v16196_v41 }
 0x9be   :  { %7024 = vmatprep.subr.bf16.mxu0 %v16200_v44  ;;  %7065 = vmatprep.subr.bf16.mxu1 %v16202_v10 }
 0x9c1   :  { %7025 = vmatpush1.bf16.msra.mxu0 %v16206_v55  ;;  %7066 = vmatpush1.bf16.msra.mxu1 %v16208_v48  ;;  %v16498_v48 = vld [vmem:[#allocation10 + $0x1c0] ss:$16 sps:$4 sm:$0xff]  }
 0x9c2   :  { %7026 = vmatprep.subr.bf16.mxu0 %v16212_v51  ;;  %7067 = vmatprep.subr.bf16.mxu1 %v16214_v52  ;;  %v16500_v51 = vld [vmem:[#allocation10 + $0x1c8] ss:$16 sps:$4 sm:$0xff]  }
 0x9c5   :  { %7027 = vmatpush1.bf16.msra.mxu0 %v16218_v40  ;;  %7068 = vmatpush1.bf16.msra.mxu1 %v16220_v58  ;;  %v16504_v58 = vld [vmem:[#allocation10 + $0x1e4] ss:$16 sps:$4 sm:$0xff]  }
 0x9c6   :  { %7028 = vmatprep.subr.bf16.mxu0 %v16224_v3  ;;  %7069 = vmatprep.subr.bf16.mxu1 %v16226_v63  ;;  %v16506_v3 = vld [vmem:[#allocation10 + $0x1ec] ss:$16 sps:$4 sm:$0xff]  }
 0x9c9   :  { %7029 = vmatpush1.bf16.msra.mxu0 %v16230_v38  ;;  %7070 = vmatpush1.bf16.msra.mxu1 %v16232_v54 }
 0x9ca   :  { %7030 = vmatprep.subr.bf16.mxu0 %v16236_v0  ;;  %7071 = vmatprep.subr.bf16.mxu1 %v16238_v14  ;;  %v16512_v0 = vld [vmem:[#allocation10 + $0x1e0] ss:$16 sps:$4 sm:$0xff]   ;;  %v16514_v14 = vld [vmem:[#allocation10 + $0x1e8] ss:$16 sps:$4 sm:$0xff]  }
 0x9cd   :  { %7031 = vmatpush1.bf16.msra.mxu0 %v16242_v7  ;;  %7072 = vmatpush1.bf16.msra.mxu1 %v16244_v8  ;;  %v17393_v7 = vcombine.low %v15805_v11, %v15808_v42 }
 0x9ce   :  { %7314 = vmatprep.subr.bf16.mxu0 %v16418_v56  ;;  %7355 = vmatprep.subr.bf16.mxu1 %v16420_v57 }
 0x9d0   :  { %7049 = vmatmul.mubr.bf16.vlgmr.msra.gmra.mrb[84].mxu0 %v6823_v19  ;;  %7090 = vmatmul.mubr.bf16.vlgmr.msra.gmra.mrb[84].mxu1 %v6823_v19 }
 0x9d1   :  { %7315 = vmatpush1.bf16.msra.mxu0 %v16424_v13  ;;  %7356 = vmatpush1.bf16.msra.mxu1 %v16426_v15 }
 0x9d2   :  { %7316 = vmatprep.subr.bf16.mxu0 %v16430_v16  ;;  %7357 = vmatprep.subr.bf16.mxu1 %v16432_v18 }
 0x9d3   :  { %7346 = vmatprep.mubr.bf16.mxu0 %v17380_v43  ;;  %7387 = vmatprep.mubr.bf16.mxu1 %v17380_v43 }
 0x9d5   :  { %7317 = vmatpush1.bf16.msra.mxu0 %v16436_v20  ;;  %7358 = vmatpush1.bf16.msra.mxu1 %v16438_v21 }
 0x9d6   :  { %7318 = vmatprep.subr.bf16.mxu0 %v16442_v22  ;;  %7359 = vmatprep.subr.bf16.mxu1 %v16444_v23 }
 0x9d9   :  { %7319 = vmatpush1.bf16.msra.mxu0 %v16450_v24  ;;  %7360 = vmatpush1.bf16.msra.mxu1 %v16452_v25 }
 0x9da   :  { %7320 = vmatprep.subr.bf16.mxu0 %v16456_v26  ;;  %7361 = vmatprep.subr.bf16.mxu1 %v16458_v27 }
 0x9dd   :  { %7321 = vmatpush1.bf16.msra.mxu0 %v16462_v28  ;;  %7362 = vmatpush1.bf16.msra.mxu1 %v16464_v29 }
 0x9de   :  { %7322 = vmatprep.subr.bf16.mxu0 %v16468_v30  ;;  %7363 = vmatprep.subr.bf16.mxu1 %v16470_v31 }
 0x9e1   :  { %7323 = vmatpush1.bf16.msra.mxu0 %v16474_v32  ;;  %7364 = vmatpush1.bf16.msra.mxu1 %v16476_v33 }
 0x9e2   :  { %7324 = vmatprep.subr.bf16.mxu0 %v16480_v34  ;;  %7365 = vmatprep.subr.bf16.mxu1 %v16482_v35 }
 0x9e3   :  { %v5189_v4 = vpop.f32.mrb[60].mxu0  ;;  %v5230_v5 = vpop.f32.mrb[60].mxu1 }
 0x9e4   :  { %v5191_v9 = vpop.f32.mrb[61].mxu0  ;;  %v5232_v12 = vpop.f32.mrb[61].mxu1 }
 0x9e5   :  { %v5241_v41 = vcombine.low %v5189_v4, %v5191_v9  ;;  %v5242_v44 = vcombine.low %v5230_v5, %v5232_v12  ;;  %7325 = vmatpush1.bf16.msra.mxu0 %v16486_v36  ;;  %7366 = vmatpush1.bf16.msra.mxu1 %v16488_v60  ;;  %v5193_v10 = vpop.f32.mrb[62].mxu0  ;;  %v5234_v55 = vpop.f32.mrb[62].mxu1 }
 0x9e6   :  { %v5194_v52 = vpop.f32.mrb[63].mxu0  ;;  %v5235_v40 = vpop.f32.mrb[63].mxu1  ;;  %7326 = vmatprep.subr.bf16.mxu0 %v16492_v61  ;;  %7367 = vmatprep.subr.bf16.mxu1 %v16494_v53 }
 0x9e7   :  { %v5249_v63 = vrot.slane %v5241_v41, %v15558_v62  ;;  %v5256_v38 = vrot.slane %v5242_v44, %v15558_v62 }
 0x9e9   :  { %v5257_v54 = vcombine.low %v5249_v63, %v5256_v38  ;;  %7327 = vmatpush1.bf16.msra.mxu0 %v16498_v48  ;;  %7368 = vmatpush1.bf16.msra.mxu1 %v16500_v51  ;;  %v5286_v63 = vld [vmem:[#allocation6] sm:$0x3] }
 0x9ea   :  { %7328 = vmatprep.subr.bf16.mxu0 %v16504_v58  ;;  %7369 = vmatprep.subr.bf16.mxu1 %v16506_v3 }
 0x9eb   :  { %v5259_v8 = vadd.f32 %v5257_v54, %v17393_v7  ;;  %v16574_v54 = vpop.permute.xlu1 %5295 }
 0x9ec   :  { %vm5297_vm15 = vcmp.eq.s32.totalorder %v16574_v54, 1 }
 0x9ed   :  { %v12816_v49 = vmul.f32 -1.442695, %v5259_v8  ;;  %v5267_v45 = vrot.slane %v5259_v8, 2  ;;  %7329 = vmatpush1.bf16.msra.mxu0 %v16512_v0  ;;  %7370 = vmatpush1.bf16.msra.mxu1 %v16514_v14  ;;  %v5278_v42 = vrot.slane %v5259_v8, 6 }
 0x9ee   :  { %7612 = vmatprep.subr.bf16.mxu0 %v16418_v56  ;;  %7653 = vmatprep.subr.bf16.mxu1 %v16420_v57  ;;  %v5275_v56 = vrot.slane %v5259_v8, 4 }
 0x9ef   :  { %14703 = vpow2.f32 %v12816_v49  ;;  %v12817_v59 = vmul.f32 -1.442695, %v5267_v45  ;;  %v12818_v11 = vmul.f32 -1.442695, %v5278_v42 }
 0x9f0   :  { %7347 = vmatmul.mubr.bf16.vlgmr.msra.gmra.mrb[88].mxu0 %v7121_v46  ;;  %7388 = vmatmul.mubr.bf16.vlgmr.msra.gmra.mrb[88].mxu1 %v7121_v46 }
 0x9f1   :  { %14705 = vpow2.f32 %v12817_v59  ;;  %7613 = vmatpush1.bf16.msra.mxu0 %v16424_v13  ;;  %7654 = vmatpush1.bf16.msra.mxu1 %v16426_v15  ;;  %v5300_v59 = vld [vmem:[#allocation4] sm:$0x3] }
 0x9f2   :  { %7614 = vmatprep.subr.bf16.mxu0 %v16430_v16  ;;  %7655 = vmatprep.subr.bf16.mxu1 %v16432_v18  ;;  %14707 = vpow2.f32 %v12818_v11  ;;  %v12819_v16 = vld [vmem:[%s17342_s4 + $0x4] sm:$0xf] }
 0x9f3   :  { %7644 = vmatprep.mubr.bf16.mxu0 %v17380_v43  ;;  %7685 = vmatprep.mubr.bf16.mxu1 %v17380_v43  ;;  %v17394_v18 = vld [vmem:[#allocation21_spill] sm:$0xff] }
 0x9f4   :  { %v17395_v19 = vsub.s32 0, %v17394_v18  ;;  %17399 = vst [vmem:[#allocation21_spill] sm:$0xff] %v16574_v54  ;;  %v16606_v11 = vld [vmem:[#allocation12 + $0x100] ss:$16 sps:$4 sm:$0xff]  }
 0x9f5   :  { %7615 = vmatpush1.bf16.msra.mxu0 %v16436_v20  ;;  %7656 = vmatpush1.bf16.msra.mxu1 %v16438_v21  ;;  %v17396_v21 = vsub.s32 2, %v17394_v18 }
 0x9f6   :  { %7616 = vmatprep.subr.bf16.mxu0 %v16442_v22  ;;  %7657 = vmatprep.subr.bf16.mxu1 %v16444_v23  ;;  %v16548_v20 = vrot.slane %v12819_v16, %v17395_v19  ;;  %v17397_v23 = vsub.s32 1, %v17394_v18 }
 0x9f7   :  { %v16552_v22 = vrot.slane %v12819_v16, %v17396_v21 }
 0x9f9   :  { %v14704_v39 = vpop.eup %14703  ;;  %7617 = vmatpush1.bf16.msra.mxu0 %v16450_v24  ;;  %7658 = vmatpush1.bf16.msra.mxu1 %v16452_v25  ;;  %v16556_v24 = vrot.slane %v12819_v16, %v17397_v23  ;;  %v17398_v25 = vsub.s32 3, %v17394_v18 }
 0x9fa   :  { %v5263_v57 = vadd.f32 1.0, %v14704_v39  ;;  %7618 = vmatprep.subr.bf16.mxu0 %v16456_v26  ;;  %7659 = vmatprep.subr.bf16.mxu1 %v16458_v27  ;;  %v16608_v39 = vld [vmem:[#allocation12 + $0x108] ss:$16 sps:$4 sm:$0xff]  }
 0x9fb   :  { %v14706_v13 = vpop.eup %14705  ;;  %v16560_v26 = vrot.slane %v12819_v16, %v17398_v25 }
 0x9fc   :  { %14709 = vrcp.f32 %v5263_v57  ;;  %v5272_v15 = vadd.f32 1.0, %v14706_v13  ;;  %v14708_v5 = vpop.eup %14707  ;;  %v16610_v13 = vld [vmem:[#allocation12 + $0x124] ss:$16 sps:$4 sm:$0xff]  }
 0x9fd   :  { %14711 = vtanh.f32 %v5275_v56  ;;  %7619 = vmatpush1.bf16.msra.mxu0 %v16462_v28  ;;  %7660 = vmatpush1.bf16.msra.mxu1 %v16464_v29  ;;  %v5283_v40 = vadd.f32 1.0, %v14708_v5  ;;  %v16622_v5 = vld [vmem:[#allocation12 + $0x128] ss:$16 sps:$4 sm:$0xff]  }
 0x9fe   :  { %14713 = vrcp.f32 %v5272_v15  ;;  %7620 = vmatprep.subr.bf16.mxu0 %v16468_v30  ;;  %7661 = vmatprep.subr.bf16.mxu1 %v16470_v31  ;;  %v16612_v15 = vld [vmem:[#allocation12 + $0x12c] ss:$16 sps:$4 sm:$0xff]  }
 0x9ff   :  { %14715 = vrcp.f32 %v5283_v40  ;;  %v16654_v40 = vld [vmem:[#allocation12 + $0x160] ss:$16 sps:$4 sm:$0xff]  }
 0xa01   :  { %7621 = vmatpush1.bf16.msra.mxu0 %v16474_v32  ;;  %7662 = vmatpush1.bf16.msra.mxu1 %v16476_v33 }
 0xa02   :  { %7622 = vmatprep.subr.bf16.mxu0 %v16480_v34  ;;  %7663 = vmatprep.subr.bf16.mxu1 %v16482_v35 }
 0xa03   :  { %v5560_v27 = vpop.f32.mrb[64].mxu0  ;;  %v5601_v28 = vpop.f32.mrb[64].mxu1 }
 0xa04   :  { %v5561_v29 = vadd.f32 %v5560_v27, %v16548_v20  ;;  %v5602_v30 = vadd.f32 %v5601_v28, %v16552_v22  ;;  %v5562_v31 = vpop.f32.mrb[65].mxu0  ;;  %v5603_v4 = vpop.f32.mrb[65].mxu1 }
 0xa05   :  { %v5563_v9 = vadd.f32 %v5562_v31, %v16556_v24  ;;  %v5604_v12 = vadd.f32 %v5603_v4, %v16560_v26  ;;  %v5564_v32 = vpop.f32.mrb[66].mxu0  ;;  %v5605_v41 = vpop.f32.mrb[66].mxu1  ;;  %7623 = vmatpush1.bf16.msra.mxu0 %v16486_v36  ;;  %7664 = vmatpush1.bf16.msra.mxu1 %v16488_v60  ;;  %v16620_v4 = vld [vmem:[#allocation12 + $0x120] ss:$16 sps:$4 sm:$0xff]  }
 0xa06   :  { %v14710_v33 = vpop.eup %14709  ;;  %v5565_v34 = vpop.f32.mrb[67].mxu0  ;;  %7624 = vmatprep.subr.bf16.mxu0 %v16492_v61  ;;  %7665 = vmatprep.subr.bf16.mxu1 %v16494_v53  ;;  %v16586_v61 = vld [vmem:[#allocation12 + $0x104] ss:$16 sps:$4 sm:$0xff]   ;;  %v16588_v53 = vld [vmem:[#allocation12 + $0x10c] ss:$16 sps:$4 sm:$0xff]  }
 0xa07   :  { %v5606_v35 = vpop.f32.mrb[67].mxu1  ;;  %v14712_v44 = vpop.eup %14711  ;;  %v5612_v10 = vcombine.low %v5561_v29, %v5563_v9  ;;  %v5613_v55 = vcombine.low %v5602_v30, %v5604_v12  ;;  %v16626_v32 = vld [vmem:[#allocation12 + $0x144] ss:$16 sps:$4 sm:$0xff]   ;;  %v16628_v41 = vld [vmem:[#allocation12 + $0x14c] ss:$16 sps:$4 sm:$0xff]  }
 0xa08   :  { %v14714_v52 = vpop.eup %14713  ;;  %v5288_v38 = vmul.f32 %v14712_v44, %v14710_v33  ;;  %v16640_v35 = vld [vmem:[#allocation12 + $0x140] ss:$16 sps:$4 sm:$0xff]   ;;  %v16642_v44 = vld [vmem:[#allocation12 + $0x148] ss:$16 sps:$4 sm:$0xff]  }
 0xa09   :  { %v5287_v7 = vmul.f32 %v14714_v52, %v5286_v63  ;;  %v16577_v36 = vrot.slane %v5612_v10, %v15558_v62  ;;  %v16580_v60 = vrot.slane %v5613_v55, %v15558_v62  ;;  %7625 = vmatpush1.bf16.msra.mxu0 %v16498_v48  ;;  %7666 = vmatpush1.bf16.msra.mxu1 %v16500_v51  ;;  %v17400_v51 = vmov 0.0   ;;  %v16648_v55 = vld [vmem:[#allocation12 + $0x164] ss:$16 sps:$4 sm:$0xff]   ;;  %v16650_v52 = vld [vmem:[#allocation12 + $0x16c] ss:$16 sps:$4 sm:$0xff]  }
 0xa0a   :  { %7626 = vmatprep.subr.bf16.mxu0 %v16504_v58  ;;  %7667 = vmatprep.subr.bf16.mxu1 %v16506_v3  ;;  %v14716_v58 = vpop.eup %14715 }
 0xa0b   :  { %v5289_v8 = vadd.f32 %v5288_v38, %v5287_v7  ;;  %v16660_v38 = vld [vmem:[#allocation12 + $0x184] ss:$16 sps:$4 sm:$0xff]   ;;  %v16662_v7 = vld [vmem:[#allocation12 + $0x18c] ss:$16 sps:$4 sm:$0xff]  }
 0xa0d   :  { %14717 = vtanh.f32 %v5289_v8  ;;  %v5298_v48 = vsel %vm5297_vm15, %v5289_v8, %v5286_v63  ;;  %7627 = vmatpush1.bf16.msra.mxu0 %v16512_v0  ;;  %7668 = vmatpush1.bf16.msra.mxu1 %v16514_v14  ;;  %v16656_v63 = vld [vmem:[#allocation12 + $0x168] ss:$16 sps:$4 sm:$0xff]   ;;  %v16666_v8 = vld [vmem:[#allocation12 + $0x180] ss:$16 sps:$4 sm:$0xff]  }
 0xa0e   :  { %5299 = vst [vmem:[#allocation6] sm:$0x3] %v5298_v48  ;;  %7915 = vmatprep.subr.bf16.mxu0 %v16586_v61  ;;  %7956 = vmatprep.subr.bf16.mxu1 %v16588_v53  ;;  %v16668_v48 = vld [vmem:[#allocation12 + $0x188] ss:$16 sps:$4 sm:$0xff]  }
 0xa0f   :  { %7719 = vst [vmem:[#allocation6] sm:$0x3] %v17400_v51 }
 0xa17   :  { %v14718_v3 = vpop.eup %14717 }
 0xa18   :  { %v5291_v45 = vmul.f32 %v14718_v3, %v14716_v58  ;;  %v16672_v58 = vld [vmem:[#allocation12 + $0x1a4] ss:$16 sps:$4 sm:$0xff]   ;;  %v16674_v3 = vld [vmem:[#allocation12 + $0x1ac] ss:$16 sps:$4 sm:$0xff]  }
 0xa1a   :  { %v5301_v46 = vsel %vm5297_vm15, %v5291_v45, %v5300_v59  ;;  %v5305_v42 = vsel %vm5297_vm15, %v5291_v45, 0.0  ;;  %v16678_v45 = vld [vmem:[#allocation12 + $0x1a0] ss:$16 sps:$4 sm:$0xff]   ;;  %v16680_v59 = vld [vmem:[#allocation12 + $0x1a8] ss:$16 sps:$4 sm:$0xff]  }
 0xa1b   :  { %5302 = vst [vmem:[#allocation4] sm:$0x3] %v5301_v46  ;;  %v5303_v0 = vpack.c.bf16 %v5301_v46, %v5301_v46  ;;  %v5306_v14 = vpack.c.bf16 %v5305_v42, %v5305_v42  ;;  %v16684_v46 = vld [vmem:[#allocation12 + $0x1c4] ss:$16 sps:$4 sm:$0xff]   ;;  %v16686_v42 = vld [vmem:[#allocation12 + $0x1cc] ss:$16 sps:$4 sm:$0xff]  }
 0xa1c   :  { %7717 = vst [vmem:[#allocation4] sm:$0x3] %v17400_v51 }
 0xa1d   :  { %5308 = vst [vmem:[#allocation2 + $0x7] sm:$0x1] %v5306_v14  ;;  %5304 = vst [vmem:[#allocation5] sm:$0x1] %v5303_v0  ;;  %v16690_v0 = vld [vmem:[#allocation12 + $0x1c0] ss:$16 sps:$4 sm:$0xff]  }
 0xa1e   :  { %7718 = vst [vmem:[#allocation5] sm:$0x1] %v17380_v43  ;;  %v16692_v14 = vld [vmem:[#allocation12 + $0x1c8] ss:$16 sps:$4 sm:$0xff]  }
 0xa23   :  { %v5858_v56 = vpop.f32.mrb[68].mxu0  ;;  %v5899_v57 = vpop.f32.mrb[68].mxu1 }
 0xa24   :  { %v5859_v16 = vadd.f32 %v5858_v56, %v16548_v20  ;;  %v5900_v18 = vadd.f32 %v5899_v57, %v16552_v22  ;;  %v5860_v19 = vpop.f32.mrb[69].mxu0  ;;  %v5901_v21 = vpop.f32.mrb[69].mxu1  ;;  %v7419_v23 = vld [vmem:[#allocation2 + $0x7] sm:$0x1]  ;;  %v16696_v56 = vld [vmem:[#allocation12 + $0x1e4] ss:$16 sps:$4 sm:$0xff]  }
 0xa25   :  { %v5861_v25 = vadd.f32 %v5860_v19, %v16556_v24  ;;  %v5902_v27 = vadd.f32 %v5901_v21, %v16560_v26  ;;  %v5862_v28 = vpop.f32.mrb[70].mxu0  ;;  %v5903_v29 = vpop.f32.mrb[70].mxu1  ;;  %7645 = vmatmul.mubr.bf16.vlgmr.msra.gmra.mrb[92].mxu0 %v7419_v23  ;;  %7686 = vmatmul.mubr.bf16.vlgmr.msra.gmra.mrb[92].mxu1 %v7419_v23  ;;  %v16698_v57 = vld [vmem:[#allocation12 + $0x1ec] ss:$16 sps:$4 sm:$0xff]   ;;  %v7721_v19 = vld [vmem:[#allocation5] sm:$0x1] }
 0xa26   :  { %v5863_v30 = vpop.f32.mrb[71].mxu0  ;;  %v5904_v31 = vpop.f32.mrb[71].mxu1  ;;  %7916 = vmatpush1.bf16.msra.mxu0 %v16606_v11  ;;  %7957 = vmatpush1.bf16.msra.mxu1 %v16608_v39 }
 0xa27   :  { %v5910_v9 = vcombine.low %v5859_v16, %v5861_v25  ;;  %v5911_v12 = vcombine.low %v5900_v18, %v5902_v27  ;;  %7917 = vmatprep.subr.bf16.mxu0 %v16610_v13  ;;  %7958 = vmatprep.subr.bf16.mxu1 %v16612_v15  ;;  %v16702_v16 = vld [vmem:[#allocation12 + $0x1e0] ss:$16 sps:$4 sm:$0xff]   ;;  %v16704_v18 = vld [vmem:[#allocation12 + $0x1e8] ss:$16 sps:$4 sm:$0xff]  }
 0xa28   :  { %7947 = vmatprep.mubr.bf16.mxu0 %v17380_v43  ;;  %7988 = vmatprep.mubr.bf16.mxu1 %v17380_v43 }
 0xa29   :  { %v16633_v33 = vrot.slane %v5910_v9, %v15558_v62  ;;  %v16636_v34 = vrot.slane %v5911_v12, %v15558_v62 }
 0xa2a   :  { %7918 = vmatpush1.bf16.msra.mxu0 %v16620_v4  ;;  %7959 = vmatpush1.bf16.msra.mxu1 %v16622_v5 }
 0xa2b   :  { %7919 = vmatprep.subr.bf16.mxu0 %v16626_v32  ;;  %7960 = vmatprep.subr.bf16.mxu1 %v16628_v41 }
 0xa2e   :  { %7920 = vmatpush1.bf16.msra.mxu0 %v16640_v35  ;;  %7961 = vmatpush1.bf16.msra.mxu1 %v16642_v44 }
 0xa2f   :  { %7921 = vmatprep.subr.bf16.mxu0 %v16648_v55  ;;  %7962 = vmatprep.subr.bf16.mxu1 %v16650_v52 }
 0xa32   :  { %7922 = vmatpush1.bf16.msra.mxu0 %v16654_v40  ;;  %7963 = vmatpush1.bf16.msra.mxu1 %v16656_v63 }
 0xa33   :  { %7923 = vmatprep.subr.bf16.mxu0 %v16660_v38  ;;  %7964 = vmatprep.subr.bf16.mxu1 %v16662_v7 }
 0xa36   :  { %7924 = vmatpush1.bf16.msra.mxu0 %v16666_v8  ;;  %7965 = vmatpush1.bf16.msra.mxu1 %v16668_v48 }
 0xa37   :  { %7925 = vmatprep.subr.bf16.mxu0 %v16672_v58  ;;  %7966 = vmatprep.subr.bf16.mxu1 %v16674_v3 }
 0xa3a   :  { %7926 = vmatpush1.bf16.msra.mxu0 %v16678_v45  ;;  %7967 = vmatpush1.bf16.msra.mxu1 %v16680_v59 }
 0xa3b   :  { %7927 = vmatprep.subr.bf16.mxu0 %v16684_v46  ;;  %7968 = vmatprep.subr.bf16.mxu1 %v16686_v42 }
 0xa3e   :  { %7928 = vmatpush1.bf16.msra.mxu0 %v16690_v0  ;;  %7969 = vmatpush1.bf16.msra.mxu1 %v16692_v14 }
 0xa3f   :  { %7929 = vmatprep.subr.bf16.mxu0 %v16696_v56  ;;  %7970 = vmatprep.subr.bf16.mxu1 %v16698_v57 }
 0xa42   :  { %7930 = vmatpush1.bf16.msra.mxu0 %v16702_v16  ;;  %7971 = vmatpush1.bf16.msra.mxu1 %v16704_v18 }
 0xa43   :  { %v6156_v21 = vpop.f32.mrb[72].mxu0  ;;  %v6197_v23 = vpop.f32.mrb[72].mxu1  ;;  %8256 = vmatprep.subr.bf16.mxu0 %v16586_v61  ;;  %8297 = vmatprep.subr.bf16.mxu1 %v16588_v53 }
 0xa44   :  { %v6157_v25 = vadd.f32 %v6156_v21, %v16548_v20  ;;  %v6198_v27 = vadd.f32 %v6197_v23, %v16552_v22  ;;  %v6158_v28 = vpop.f32.mrb[73].mxu0  ;;  %v6199_v29 = vpop.f32.mrb[73].mxu1 }
 0xa45   :  { %v6159_v30 = vadd.f32 %v6158_v28, %v16556_v24  ;;  %v6200_v31 = vadd.f32 %v6199_v29, %v16560_v26  ;;  %v6160_v9 = vpop.f32.mrb[74].mxu0  ;;  %v6201_v12 = vpop.f32.mrb[74].mxu1  ;;  %7948 = vmatmul.mubr.bf16.vlgmr.msra.gmra.mrb[96].mxu0 %v7721_v19  ;;  %7989 = vmatmul.mubr.bf16.vlgmr.msra.gmra.mrb[96].mxu1 %v7721_v19 }
 0xa46   :  { %v6161_v10 = vpop.f32.mrb[75].mxu0  ;;  %v6202_v49 = vpop.f32.mrb[75].mxu1  ;;  %8257 = vmatpush1.bf16.msra.mxu0 %v16606_v11  ;;  %8298 = vmatpush1.bf16.msra.mxu1 %v16608_v39 }
 0xa47   :  { %v6208_v54 = vcombine.low %v6157_v25, %v6159_v30  ;;  %v6209_v21 = vcombine.low %v6198_v27, %v6200_v31  ;;  %8258 = vmatprep.subr.bf16.mxu0 %v16610_v13  ;;  %8299 = vmatprep.subr.bf16.mxu1 %v16612_v15 }
 0xa48   :  { %8288 = vmatprep.mubr.bf16.mxu0 %v17380_v43  ;;  %8329 = vmatprep.mubr.bf16.mxu1 %v17380_v43 }
 0xa49   :  { %v16723_v23 = vrot.slane %v6208_v54, %v15558_v62  ;;  %v16726_v10 = vrot.slane %v6209_v21, %v15558_v62 }
 0xa4a   :  { %8259 = vmatpush1.bf16.msra.mxu0 %v16620_v4  ;;  %8300 = vmatpush1.bf16.msra.mxu1 %v16622_v5 }
 0xa4b   :  { %8260 = vmatprep.subr.bf16.mxu0 %v16626_v32  ;;  %8301 = vmatprep.subr.bf16.mxu1 %v16628_v41 }
 0xa4e   :  { %8261 = vmatpush1.bf16.msra.mxu0 %v16640_v35  ;;  %8302 = vmatpush1.bf16.msra.mxu1 %v16642_v44 }
 0xa4f   :  { %8262 = vmatprep.subr.bf16.mxu0 %v16648_v55  ;;  %8303 = vmatprep.subr.bf16.mxu1 %v16650_v52 }
 0xa52   :  { %8263 = vmatpush1.bf16.msra.mxu0 %v16654_v40  ;;  %8304 = vmatpush1.bf16.msra.mxu1 %v16656_v63 }
 0xa53   :  { %8264 = vmatprep.subr.bf16.mxu0 %v16660_v38  ;;  %8305 = vmatprep.subr.bf16.mxu1 %v16662_v7 }
 0xa56   :  { %8265 = vmatpush1.bf16.msra.mxu0 %v16666_v8  ;;  %8306 = vmatpush1.bf16.msra.mxu1 %v16668_v48 }
 0xa57   :  { %8266 = vmatprep.subr.bf16.mxu0 %v16672_v58  ;;  %8307 = vmatprep.subr.bf16.mxu1 %v16674_v3 }
 0xa5a   :  { %8267 = vmatpush1.bf16.msra.mxu0 %v16678_v45  ;;  %8308 = vmatpush1.bf16.msra.mxu1 %v16680_v59 }
 0xa5b   :  { %8268 = vmatprep.subr.bf16.mxu0 %v16684_v46  ;;  %8309 = vmatprep.subr.bf16.mxu1 %v16686_v42 }
 0xa5e   :  { %8269 = vmatpush1.bf16.msra.mxu0 %v16690_v0  ;;  %8310 = vmatpush1.bf16.msra.mxu1 %v16692_v14 }
 0xa5f   :  { %8270 = vmatprep.subr.bf16.mxu0 %v16696_v56  ;;  %8311 = vmatprep.subr.bf16.mxu1 %v16698_v57 }
 0xa62   :  { %8271 = vmatpush1.bf16.msra.mxu0 %v16702_v16  ;;  %8312 = vmatpush1.bf16.msra.mxu1 %v16704_v18 }
 0xa63   :  { %v6454_v54 = vpop.f32.mrb[76].mxu0  ;;  %v6495_v19 = vpop.f32.mrb[76].mxu1  ;;  %8597 = vmatprep.subr.bf16.mxu0 %v16586_v61  ;;  %8638 = vmatprep.subr.bf16.mxu1 %v16588_v53 }
 0xa64   :  { %v6455_v25 = vadd.f32 %v6454_v54, %v16548_v20  ;;  %v6496_v27 = vadd.f32 %v6495_v19, %v16552_v22  ;;  %v6456_v28 = vpop.f32.mrb[77].mxu0  ;;  %v6497_v29 = vpop.f32.mrb[77].mxu1 }
 0xa65   :  { %v6457_v30 = vadd.f32 %v6456_v28, %v16556_v24  ;;  %v6498_v31 = vadd.f32 %v6497_v29, %v16560_v26  ;;  %v6458_v9 = vpop.f32.mrb[78].mxu0  ;;  %v6499_v12 = vpop.f32.mrb[78].mxu1 }
 0xa66   :  { %v6459_v21 = vpop.f32.mrb[79].mxu0  ;;  %v6500_v49 = vpop.f32.mrb[79].mxu1 }
 0xa67   :  { %v6506_v17 = vcombine.low %v6455_v25, %v6457_v30  ;;  %v6507_v51 = vcombine.low %v6496_v27, %v6498_v31 }
 0xa69   :  { %v16763_v61 = vrot.slane %v6506_v17, %v15558_v62  ;;  %v16766_v53 = vrot.slane %v6507_v51, %v15558_v62 }
 0xa83   :  { %v6752_v19 = vpop.f32.mrb[80].mxu0  ;;  %v6793_v50 = vpop.f32.mrb[80].mxu1 }
 0xa84   :  { %v6753_v28 = vadd.f32 %v6752_v19, %v16548_v20  ;;  %v6794_v29 = vadd.f32 %v6793_v50, %v16552_v22  ;;  %v6754_v9 = vpop.f32.mrb[81].mxu0  ;;  %v6795_v12 = vpop.f32.mrb[81].mxu1 }
 0xa85   :  { %v6755_v49 = vadd.f32 %v6754_v9, %v16556_v24  ;;  %v6796_v25 = vadd.f32 %v6795_v12, %v16560_v26  ;;  %v6756_v17 = vpop.f32.mrb[82].mxu0  ;;  %v6797_v27 = vpop.f32.mrb[82].mxu1 }
 0xa86   :  { %v6757_v30 = vpop.f32.mrb[83].mxu0  ;;  %v6798_v51 = vpop.f32.mrb[83].mxu1 }
 0xa87   :  { %v6804_v31 = vcombine.low %v6753_v28, %v6755_v49  ;;  %v6805_v21 = vcombine.low %v6794_v29, %v6796_v25 }
 0xa89   :  { %v16775_v54 = vrot.slane %v6804_v31, %v15558_v62  ;;  %v16778_v2 = vrot.slane %v6805_v21, %v15558_v62 }
 0xa8b   :  { %17401 = vst [vmem:[#allocation26_spill] sm:$0xff] %v16775_v54  ;;  %17402 = vst [vmem:[#allocation27_spill] sm:$0xff] %v16778_v2 }
 0xaa3   :  { %v7050_v19 = vpop.f32.mrb[84].mxu0  ;;  %v7091_v6 = vpop.f32.mrb[84].mxu1 }
 0xaa4   :  { %v7051_v9 = vadd.f32 %v7050_v19, %v16548_v20  ;;  %v7092_v12 = vadd.f32 %v7091_v6, %v16552_v22  ;;  %v7052_v17 = vpop.f32.mrb[85].mxu0  ;;  %v7093_v27 = vpop.f32.mrb[85].mxu1 }
 0xaa5   :  { %v7053_v28 = vadd.f32 %v7052_v17, %v16556_v24  ;;  %v7094_v29 = vadd.f32 %v7093_v27, %v16560_v26  ;;  %v7054_v49 = vpop.f32.mrb[86].mxu0  ;;  %v7095_v25 = vpop.f32.mrb[86].mxu1 }
 0xaa6   :  { %v7055_v30 = vpop.f32.mrb[87].mxu0  ;;  %v7096_v51 = vpop.f32.mrb[87].mxu1 }
 0xaa7   :  { %v7102_v31 = vcombine.low %v7051_v9, %v7053_v28  ;;  %v7103_v21 = vcombine.low %v7092_v12, %v7094_v29 }
 0xaa9   :  { %v16787_v50 = vrot.slane %v7102_v31, %v15558_v62  ;;  %v16790_v2 = vrot.slane %v7103_v21, %v15558_v62 }
 0xaab   :  { %17403 = vst [vmem:[#allocation28_spill] sm:$0xff] %v16787_v50  ;;  %17404 = vst [vmem:[#allocation29_spill] sm:$0xff] %v16790_v2 }
 0xac3   :  { %v7348_v19 = vpop.f32.mrb[88].mxu0  ;;  %v7389_v54 = vpop.f32.mrb[88].mxu1 }
 0xac4   :  { %v7349_v17 = vadd.f32 %v7348_v19, %v16548_v20  ;;  %v7390_v27 = vadd.f32 %v7389_v54, %v16552_v22  ;;  %v7350_v49 = vpop.f32.mrb[89].mxu0  ;;  %v7391_v25 = vpop.f32.mrb[89].mxu1 }
 0xac5   :  { %v7351_v9 = vadd.f32 %v7350_v49, %v16556_v24  ;;  %v7392_v12 = vadd.f32 %v7391_v25, %v16560_v26  ;;  %v7352_v28 = vpop.f32.mrb[90].mxu0  ;;  %v7393_v29 = vpop.f32.mrb[90].mxu1 }
 0xac6   :  { %v7353_v30 = vpop.f32.mrb[91].mxu0  ;;  %v7394_v51 = vpop.f32.mrb[91].mxu1 }
 0xac7   :  { %v7400_v31 = vcombine.low %v7349_v17, %v7351_v9  ;;  %v7401_v21 = vcombine.low %v7390_v27, %v7392_v12 }
 0xac9   :  { %v16799_v6 = vrot.slane %v7400_v31, %v15558_v62  ;;  %v16802_v2 = vrot.slane %v7401_v21, %v15558_v62 }
 0xacb   :  { %17405 = vst [vmem:[#allocation30_spill] sm:$0xff] %v16802_v2 }
 0xaf8   :  { %v7646_v19 = vpop.f32.mrb[92].mxu0  ;;  %v7687_v50 = vpop.f32.mrb[92].mxu1 }
 0xaf9   :  { %v7647_v49 = vadd.f32 %v7646_v19, %v16548_v20  ;;  %v7688_v25 = vadd.f32 %v7687_v50, %v16552_v22  ;;  %v7648_v28 = vpop.f32.mrb[93].mxu0  ;;  %v7689_v29 = vpop.f32.mrb[93].mxu1 }
 0xafa   :  { %v7649_v17 = vadd.f32 %v7648_v28, %v16556_v24  ;;  %v7690_v27 = vadd.f32 %v7689_v29, %v16560_v26  ;;  %v7650_v9 = vpop.f32.mrb[94].mxu0  ;;  %v7691_v12 = vpop.f32.mrb[94].mxu1 }
 0xafb   :  { %v7651_v30 = vpop.f32.mrb[95].mxu0  ;;  %v7692_v51 = vpop.f32.mrb[95].mxu1 }
 0xafc   :  { %v7698_v31 = vcombine.low %v7647_v49, %v7649_v17  ;;  %v7699_v21 = vcombine.low %v7688_v25, %v7690_v27  ;;  %v17406_v30 = vcombine.low %v16577_v36, %v16580_v60  ;;  %v8046_v36 = vld [vmem:[#allocation6] sm:$0x3] }
 0xafe   :  { %v16811_v54 = vrot.slane %v7698_v31, %v15558_v62  ;;  %v16814_v2 = vrot.slane %v7699_v21, %v15558_v62 }
 0xb18   :  { %v7949_v22 = vpop.f32.mrb[96].mxu0  ;;  %v7990_v50 = vpop.f32.mrb[96].mxu1 }
 0xb19   :  { %v7951_v24 = vpop.f32.mrb[97].mxu0  ;;  %v7992_v19 = vpop.f32.mrb[97].mxu1 }
 0xb1a   :  { %v8001_v26 = vcombine.low %v7949_v22, %v7951_v24  ;;  %v8002_v28 = vcombine.low %v7990_v50, %v7992_v19  ;;  %v7953_v29 = vpop.f32.mrb[98].mxu0  ;;  %v7994_v9 = vpop.f32.mrb[98].mxu1 }
 0xb1b   :  { %v7954_v12 = vpop.f32.mrb[99].mxu0  ;;  %v7995_v49 = vpop.f32.mrb[99].mxu1 }
 0xb1c   :  { %v8009_v25 = vrot.slane %v8001_v26, %v15558_v62  ;;  %v8016_v17 = vrot.slane %v8002_v28, %v15558_v62 }
 0xb1e   :  { %v8017_v27 = vcombine.low %v8009_v25, %v8016_v17 }
 0xb20   :  { %v8019_v51 = vadd.f32 %v8017_v27, %v17406_v30 }
 0xb22   :  { %v13108_v31 = vmul.f32 -1.442695, %v8019_v51  ;;  %v8027_v21 = vrot.slane %v8019_v51, 2  ;;  %v8038_v22 = vrot.slane %v8019_v51, 6  ;;  %v8035_v19 = vrot.slane %v8019_v51, 4 }
 0xb24   :  { %14719 = vpow2.f32 %v13108_v31  ;;  %v13109_v20 = vmul.f32 -1.442695, %v8027_v21  ;;  %v13110_v50 = vmul.f32 -1.442695, %v8038_v22  ;;  %v8054_v21 = vld [vmem:[#allocation4] sm:$0x3] }
 0xb26   :  { %14721 = vpow2.f32 %v13109_v20 }
 0xb27   :  { %14723 = vpow2.f32 %v13110_v50 }
 0xb2e   :  { %v14720_v24 = vpop.eup %14719 }
 0xb2f   :  { %v8023_v29 = vadd.f32 1.0, %v14720_v24 }
 0xb30   :  { %v14722_v9 = vpop.eup %14721 }
 0xb31   :  { %14725 = vrcp.f32 %v8023_v29  ;;  %v8032_v26 = vadd.f32 1.0, %v14722_v9  ;;  %v14724_v28 = vpop.eup %14723 }
 0xb32   :  { %14727 = vtanh.f32 %v8035_v19  ;;  %v8043_v25 = vadd.f32 1.0, %v14724_v28 }
 0xb33   :  { %14729 = vrcp.f32 %v8032_v26 }
 0xb34   :  { %14731 = vrcp.f32 %v8043_v25 }
 0xb3b   :  { %v14726_v12 = vpop.eup %14725 }
 0xb3c   :  { %v14728_v60 = vpop.eup %14727 }
 0xb3d   :  { %v14730_v49 = vpop.eup %14729  ;;  %v8048_v27 = vmul.f32 %v14728_v60, %v14726_v12 }
 0xb3e   :  { %v8047_v17 = vmul.f32 %v14730_v49, %v8046_v36  ;;  %v14732_v51 = vpop.eup %14731 }
 0xb40   :  { %v8049_v20 = vadd.f32 %v8048_v27, %v8047_v17 }
 0xb42   :  { %14733 = vtanh.f32 %v8049_v20  ;;  %v8052_v30 = vsel %vm2862_vm4, %v8049_v20, %v8046_v36 }
 0xb43   :  { %8053 = vst [vmem:[#allocation6] sm:$0x3] %v8052_v30 }
 0xb4c   :  { %v14734_v31 = vpop.eup %14733 }
 0xb4d   :  { %v8051_v22 = vmul.f32 %v14734_v31, %v14732_v51  ;;  %v16874_v51 = vld [vmem:[#allocation12 + $0x104] ss:$16 sps:$4 sm:$0xff]   ;;  %v16876_v31 = vld [vmem:[#allocation12 + $0x10c] ss:$16 sps:$4 sm:$0xff]  }
 0xb4f   :  { %v8055_v50 = vsel %vm2862_vm4, %v8051_v22, %v8054_v21  ;;  %v8059_v24 = vsel %vm2862_vm4, %v8051_v22, 0.0  ;;  %v16878_v21 = vld [vmem:[#allocation12 + $0x100] ss:$16 sps:$4 sm:$0xff]   ;;  %v16886_v22 = vld [vmem:[#allocation12 + $0x124] ss:$16 sps:$4 sm:$0xff]  }
 0xb50   :  { %8056 = vst [vmem:[#allocation4] sm:$0x3] %v8055_v50  ;;  %v8057_v19 = vpack.c.bf16 %v8055_v50, %v8055_v50  ;;  %v8060_v29 = vpack.c.bf16 %v8059_v24, %v8059_v24  ;;  %v16888_v50 = vld [vmem:[#allocation12 + $0x12c] ss:$16 sps:$4 sm:$0xff]   ;;  %v16890_v24 = vld [vmem:[#allocation12 + $0x120] ss:$16 sps:$4 sm:$0xff]  }
 0xb52   :  { %8058 = vst [vmem:[#allocation5] sm:$0x1] %v8057_v19  ;;  %8061 = vst [vmem:[#allocation2] sm:$0x1] %v8060_v29  ;;  %v16892_v19 = vld [vmem:[#allocation12 + $0x128] ss:$16 sps:$4 sm:$0xff]  }
 0xb53   :  { %v16898_v29 = vld [vmem:[#allocation12 + $0x144] ss:$16 sps:$4 sm:$0xff]  }
 0xb57   :  { %v8395_v49 = vld [vmem:[#allocation4] sm:$0x3] }
 0xb59   :  { %v8063_v9 = vld [vmem:[#allocation5] sm:$0x1] }
 0xb5a   :  { %8289 = vmatmul.mubr.bf16.vlgmr.msra.gmra.mrb[100].mxu0 %v8063_v9  ;;  %8330 = vmatmul.mubr.bf16.vlgmr.msra.gmra.mrb[100].mxu1 %v8063_v9  ;;  %v16900_v9 = vld [vmem:[#allocation12 + $0x14c] ss:$16 sps:$4 sm:$0xff]  }
 0xb5b   :  { %8598 = vmatpush1.bf16.msra.mxu0 %v16606_v11  ;;  %8639 = vmatpush1.bf16.msra.mxu1 %v16608_v39 }
 0xb5c   :  { %8599 = vmatprep.subr.bf16.mxu0 %v16610_v13  ;;  %8640 = vmatprep.subr.bf16.mxu1 %v16612_v15 }
 0xb5d   :  { %8629 = vmatprep.mubr.bf16.mxu0 %v17380_v43  ;;  %8670 = vmatprep.mubr.bf16.mxu1 %v17380_v43 }
 0xb5f   :  { %8600 = vmatpush1.bf16.msra.mxu0 %v16620_v4  ;;  %8641 = vmatpush1.bf16.msra.mxu1 %v16622_v5 }
 0xb60   :  { %8601 = vmatprep.subr.bf16.mxu0 %v16626_v32  ;;  %8642 = vmatprep.subr.bf16.mxu1 %v16628_v41 }
 0xb63   :  { %8602 = vmatpush1.bf16.msra.mxu0 %v16640_v35  ;;  %8643 = vmatpush1.bf16.msra.mxu1 %v16642_v44 }
 0xb64   :  { %8603 = vmatprep.subr.bf16.mxu0 %v16648_v55  ;;  %8644 = vmatprep.subr.bf16.mxu1 %v16650_v52 }
 0xb67   :  { %8604 = vmatpush1.bf16.msra.mxu0 %v16654_v40  ;;  %8645 = vmatpush1.bf16.msra.mxu1 %v16656_v63  ;;  %v17407_v40 = vcombine.low %v16633_v33, %v16636_v34 }
 0xb68   :  { %8605 = vmatprep.subr.bf16.mxu0 %v16660_v38  ;;  %8646 = vmatprep.subr.bf16.mxu1 %v16662_v7 }
 0xb6b   :  { %8606 = vmatpush1.bf16.msra.mxu0 %v16666_v8  ;;  %8647 = vmatpush1.bf16.msra.mxu1 %v16668_v48 }
 0xb6c   :  { %8607 = vmatprep.subr.bf16.mxu0 %v16672_v58  ;;  %8648 = vmatprep.subr.bf16.mxu1 %v16674_v3 }
 0xb6f   :  { %8608 = vmatpush1.bf16.msra.mxu0 %v16678_v45  ;;  %8649 = vmatpush1.bf16.msra.mxu1 %v16680_v59 }
 0xb70   :  { %8609 = vmatprep.subr.bf16.mxu0 %v16684_v46  ;;  %8650 = vmatprep.subr.bf16.mxu1 %v16686_v42 }
 0xb73   :  { %8610 = vmatpush1.bf16.msra.mxu0 %v16690_v0  ;;  %8651 = vmatpush1.bf16.msra.mxu1 %v16692_v14 }
 0xb74   :  { %8611 = vmatprep.subr.bf16.mxu0 %v16696_v56  ;;  %8652 = vmatprep.subr.bf16.mxu1 %v16698_v57  ;;  %v8387_v57 = vld [vmem:[#allocation6] sm:$0x3] }
 0xb77   :  { %8612 = vmatpush1.bf16.msra.mxu0 %v16702_v16  ;;  %8653 = vmatpush1.bf16.msra.mxu1 %v16704_v18 }
 0xb78   :  { %8938 = vmatprep.subr.bf16.mxu0 %v16874_v51  ;;  %8979 = vmatprep.subr.bf16.mxu1 %v16876_v31 }
 0xc2d   :  { %v8290_v37 = vpop.f32.mrb[100].mxu0  ;;  %v8331_v11 = vpop.f32.mrb[100].mxu1 }
 0xc2e   :  { %v8292_v39 = vpop.f32.mrb[101].mxu0  ;;  %v8333_v13 = vpop.f32.mrb[101].mxu1 }
 0xc2f   :  { %v8342_v15 = vcombine.low %v8290_v37, %v8292_v39  ;;  %v8343_v4 = vcombine.low %v8331_v11, %v8333_v13  ;;  %v8294_v5 = vpop.f32.mrb[102].mxu0  ;;  %v8335_v32 = vpop.f32.mrb[102].mxu1  ;;  %v16902_v37 = vld [vmem:[#allocation12 + $0x140] ss:$16 sps:$4 sm:$0xff]   ;;  %v16904_v11 = vld [vmem:[#allocation12 + $0x148] ss:$16 sps:$4 sm:$0xff]  }
 0xc30   :  { %v8295_v41 = vpop.f32.mrb[103].mxu0  ;;  %v8336_v35 = vpop.f32.mrb[103].mxu1  ;;  %v16910_v39 = vld [vmem:[#allocation12 + $0x164] ss:$16 sps:$4 sm:$0xff]   ;;  %v16912_v13 = vld [vmem:[#allocation12 + $0x16c] ss:$16 sps:$4 sm:$0xff]  }
 0xc31   :  { %v8350_v44 = vrot.slane %v8342_v15, %v15558_v62  ;;  %v8357_v55 = vrot.slane %v8343_v4, %v15558_v62  ;;  %v16914_v15 = vld [vmem:[#allocation12 + $0x160] ss:$16 sps:$4 sm:$0xff]   ;;  %v16916_v4 = vld [vmem:[#allocation12 + $0x168] ss:$16 sps:$4 sm:$0xff]   ;;  %v16922_v5 = vld [vmem:[#allocation12 + $0x184] ss:$16 sps:$4 sm:$0xff]  }
 0xc32   :  { %v16924_v32 = vld [vmem:[#allocation12 + $0x18c] ss:$16 sps:$4 sm:$0xff]   ;;  %v16926_v41 = vld [vmem:[#allocation12 + $0x180] ss:$16 sps:$4 sm:$0xff]   ;;  %v16928_v35 = vld [vmem:[#allocation12 + $0x188] ss:$16 sps:$4 sm:$0xff]  }
 0xc33   :  { %v8358_v52 = vcombine.low %v8350_v44, %v8357_v55  ;;  %v16934_v44 = vld [vmem:[#allocation12 + $0x1a4] ss:$16 sps:$4 sm:$0xff]   ;;  %v16936_v55 = vld [vmem:[#allocation12 + $0x1ac] ss:$16 sps:$4 sm:$0xff]  }
 0xc35   :  { %v8360_v63 = vadd.f32 %v8358_v52, %v17407_v40  ;;  %v16938_v52 = vld [vmem:[#allocation12 + $0x1a0] ss:$16 sps:$4 sm:$0xff]   ;;  %v16940_v40 = vld [vmem:[#allocation12 + $0x1a8] ss:$16 sps:$4 sm:$0xff]  }
 0xc37   :  { %v13143_v38 = vmul.f32 -1.442695, %v8360_v63  ;;  %v8368_v7 = vrot.slane %v8360_v63, 2  ;;  %v8379_v48 = vrot.slane %v8360_v63, 6  ;;  %v8376_v45 = vrot.slane %v8360_v63, 4 }
 0xc38   :  { %v16946_v63 = vld [vmem:[#allocation12 + $0x1c4] ss:$16 sps:$4 sm:$0xff]  }
 0xc39   :  { %14735 = vpow2.f32 %v13143_v38  ;;  %v13144_v8 = vmul.f32 -1.442695, %v8368_v7  ;;  %v13145_v58 = vmul.f32 -1.442695, %v8379_v48  ;;  %v16948_v38 = vld [vmem:[#allocation12 + $0x1cc] ss:$16 sps:$4 sm:$0xff]  }
 0xc3a   :  { %v16950_v7 = vld [vmem:[#allocation12 + $0x1c0] ss:$16 sps:$4 sm:$0xff]   ;;  %v16956_v48 = vld [vmem:[#allocation12 + $0x1e4] ss:$16 sps:$4 sm:$0xff]  }
 0xc3b   :  { %14737 = vpow2.f32 %v13144_v8  ;;  %v16952_v8 = vld [vmem:[#allocation12 + $0x1c8] ss:$16 sps:$4 sm:$0xff]  }
 0xc3c   :  { %14739 = vpow2.f32 %v13145_v58  ;;  %v16958_v58 = vld [vmem:[#allocation12 + $0x1ec] ss:$16 sps:$4 sm:$0xff]  }
 0xc43   :  { %v14736_v3 = vpop.eup %14735 }
 0xc44   :  { %v8364_v59 = vadd.f32 1.0, %v14736_v3  ;;  %v16962_v3 = vld [vmem:[#allocation12 + $0x1e0] ss:$16 sps:$4 sm:$0xff]  }
 0xc45   :  { %v14738_v46 = vpop.eup %14737 }
 0xc46   :  { %14741 = vrcp.f32 %v8364_v59  ;;  %v8373_v42 = vadd.f32 1.0, %v14738_v46  ;;  %v14740_v0 = vpop.eup %14739 }
 0xc47   :  { %14743 = vtanh.f32 %v8376_v45  ;;  %v8384_v56 = vadd.f32 1.0, %v14740_v0  ;;  %v16964_v45 = vld [vmem:[#allocation12 + $0x1e8] ss:$16 sps:$4 sm:$0xff]  }
 0xc48   :  { %14745 = vrcp.f32 %v8373_v42 }
 0xc49   :  { %14747 = vrcp.f32 %v8384_v56 }
 0xc50   :  { %v14742_v14 = vpop.eup %14741 }
 0xc51   :  { %v14744_v33 = vpop.eup %14743 }
 0xc52   :  { %v14746_v34 = vpop.eup %14745  ;;  %v8389_v18 = vmul.f32 %v14744_v33, %v14742_v14 }
 0xc53   :  { %v8388_v16 = vmul.f32 %v14746_v34, %v8387_v57  ;;  %v14748_v12 = vpop.eup %14747 }
 0xc55   :  { %v8390_v26 = vadd.f32 %v8389_v18, %v8388_v16 }
 0xc57   :  { %14749 = vtanh.f32 %v8390_v26  ;;  %v8393_v28 = vsel %vm3209_vm9, %v8390_v26, %v8387_v57 }
 0xc58   :  { %8394 = vst [vmem:[#allocation6] sm:$0x3] %v8393_v28 }
 0xc61   :  { %v14750_v36 = vpop.eup %14749 }
 0xc62   :  { %v8392_v60 = vmul.f32 %v14750_v36, %v14748_v12  ;;  %v17408_v12 = vcombine.low %v16723_v23, %v16726_v10 }
 0xc64   :  { %v8396_v25 = vsel %vm3209_vm9, %v8392_v60, %v8395_v49  ;;  %v8400_v17 = vsel %vm3209_vm9, %v8392_v60, 0.0 }
 0xc65   :  { %8397 = vst [vmem:[#allocation4] sm:$0x3] %v8396_v25  ;;  %v8398_v27 = vpack.c.bf16 %v8396_v25, %v8396_v25  ;;  %v8401_v20 = vpack.c.bf16 %v8400_v17, %v8400_v17 }
 0xc67   :  { %8399 = vst [vmem:[#allocation5] sm:$0x1] %v8398_v27  ;;  %8402 = vst [vmem:[#allocation2 + $0x1] sm:$0x1] %v8401_v20 }
 0xc6e   :  { %v8404_v30 = vld [vmem:[#allocation5] sm:$0x1] }
 0xc6f   :  { %8630 = vmatmul.mubr.bf16.vlgmr.msra.gmra.mrb[104].mxu0 %v8404_v30  ;;  %8671 = vmatmul.mubr.bf16.vlgmr.msra.gmra.mrb[104].mxu1 %v8404_v30 }
 0xc70   :  { %8970 = vmatprep.mubr.bf16.mxu0 %v17380_v43  ;;  %9011 = vmatprep.mubr.bf16.mxu1 %v17380_v43 }
 0xc71   :  { %8939 = vmatpush1.bf16.msra.mxu0 %v16878_v21  ;;  %8980 = vmatpush1.bf16.msra.mxu1 %v16880_v1 }
 0xc72   :  { %8940 = vmatprep.subr.bf16.mxu0 %v16886_v22  ;;  %8981 = vmatprep.subr.bf16.mxu1 %v16888_v50 }
 0xc75   :  { %8941 = vmatpush1.bf16.msra.mxu0 %v16890_v24  ;;  %8982 = vmatpush1.bf16.msra.mxu1 %v16892_v19 }
 0xc76   :  { %8942 = vmatprep.subr.bf16.mxu0 %v16898_v29  ;;  %8983 = vmatprep.subr.bf16.mxu1 %v16900_v9 }
 0xc79   :  { %8943 = vmatpush1.bf16.msra.mxu0 %v16902_v37  ;;  %8984 = vmatpush1.bf16.msra.mxu1 %v16904_v11 }
 0xc7a   :  { %8944 = vmatprep.subr.bf16.mxu0 %v16910_v39  ;;  %8985 = vmatprep.subr.bf16.mxu1 %v16912_v13 }
 0xc7d   :  { %8945 = vmatpush1.bf16.msra.mxu0 %v16914_v15  ;;  %8986 = vmatpush1.bf16.msra.mxu1 %v16916_v4 }
 0xc7e   :  { %8946 = vmatprep.subr.bf16.mxu0 %v16922_v5  ;;  %8987 = vmatprep.subr.bf16.mxu1 %v16924_v32 }
 0xc81   :  { %8947 = vmatpush1.bf16.msra.mxu0 %v16926_v41  ;;  %8988 = vmatpush1.bf16.msra.mxu1 %v16928_v35 }
 0xc82   :  { %8948 = vmatprep.subr.bf16.mxu0 %v16934_v44  ;;  %8989 = vmatprep.subr.bf16.mxu1 %v16936_v55 }
 0xc85   :  { %8949 = vmatpush1.bf16.msra.mxu0 %v16938_v52  ;;  %8990 = vmatpush1.bf16.msra.mxu1 %v16940_v40 }
 0xc86   :  { %8950 = vmatprep.subr.bf16.mxu0 %v16946_v63  ;;  %8991 = vmatprep.subr.bf16.mxu1 %v16948_v38 }
 0xc89   :  { %8951 = vmatpush1.bf16.msra.mxu0 %v16950_v7  ;;  %8992 = vmatpush1.bf16.msra.mxu1 %v16952_v8 }
 0xc8a   :  { %8952 = vmatprep.subr.bf16.mxu0 %v16956_v48  ;;  %8993 = vmatprep.subr.bf16.mxu1 %v16958_v58 }
 0xc8d   :  { %8953 = vmatpush1.bf16.msra.mxu0 %v16962_v3  ;;  %8994 = vmatpush1.bf16.msra.mxu1 %v16964_v45 }
 0xc8e   :  { %9279 = vmatprep.subr.bf16.mxu0 %v16874_v51  ;;  %9320 = vmatprep.subr.bf16.mxu1 %v16876_v31 }
 0xd42   :  { %v8631_v59 = vpop.f32.mrb[104].mxu0  ;;  %v8672_v46 = vpop.f32.mrb[104].mxu1 }
 0xd43   :  { %v8633_v42 = vpop.f32.mrb[105].mxu0  ;;  %v8674_v0 = vpop.f32.mrb[105].mxu1 }
 0xd44   :  { %v8683_v14 = vcombine.low %v8631_v59, %v8633_v42  ;;  %v8684_v33 = vcombine.low %v8672_v46, %v8674_v0  ;;  %v8635_v34 = vpop.f32.mrb[106].mxu0  ;;  %v8676_v56 = vpop.f32.mrb[106].mxu1 }
 0xd45   :  { %v8636_v57 = vpop.f32.mrb[107].mxu0  ;;  %v8677_v16 = vpop.f32.mrb[107].mxu1  ;;  %v8728_v34 = vld [vmem:[#allocation6] sm:$0x3] }
 0xd46   :  { %v8691_v18 = vrot.slane %v8683_v14, %v15558_v62  ;;  %v8698_v26 = vrot.slane %v8684_v33, %v15558_v62 }
 0xd48   :  { %v8699_v28 = vcombine.low %v8691_v18, %v8698_v26 }
 0xd4a   :  { %v8701_v36 = vadd.f32 %v8699_v28, %v17408_v12 }
 0xd4c   :  { %v13178_v60 = vmul.f32 -1.442695, %v8701_v36  ;;  %v8709_v49 = vrot.slane %v8701_v36, 2  ;;  %v8720_v17 = vrot.slane %v8701_v36, 6  ;;  %v8717_v30 = vrot.slane %v8701_v36, 4 }
 0xd4d   :  { %v8736_v36 = vld [vmem:[#allocation4] sm:$0x3] }
 0xd4e   :  { %14751 = vpow2.f32 %v13178_v60  ;;  %v13179_v25 = vmul.f32 -1.442695, %v8709_v49  ;;  %v13180_v27 = vmul.f32 -1.442695, %v8720_v17 }
 0xd50   :  { %14753 = vpow2.f32 %v13179_v25 }
 0xd51   :  { %14755 = vpow2.f32 %v13180_v27 }
 0xd58   :  { %v14752_v20 = vpop.eup %14751 }
 0xd59   :  { %v8705_v59 = vadd.f32 1.0, %v14752_v20 }
 0xd5a   :  { %v14754_v46 = vpop.eup %14753 }
 0xd5b   :  { %14757 = vrcp.f32 %v8705_v59  ;;  %v8714_v42 = vadd.f32 1.0, %v14754_v46  ;;  %v14756_v0 = vpop.eup %14755 }
 0xd5c   :  { %14759 = vtanh.f32 %v8717_v30  ;;  %v8725_v33 = vadd.f32 1.0, %v14756_v0 }
 0xd5d   :  { %14761 = vrcp.f32 %v8714_v42 }
 0xd5e   :  { %14763 = vrcp.f32 %v8725_v33 }
 0xd65   :  { %v14758_v14 = vpop.eup %14757 }
 0xd66   :  { %v14760_v23 = vpop.eup %14759 }
 0xd67   :  { %v14762_v10 = vpop.eup %14761  ;;  %v8730_v57 = vmul.f32 %v14760_v23, %v14758_v14 }
 0xd68   :  { %v8729_v56 = vmul.f32 %v14762_v10, %v8728_v34  ;;  %v14764_v26 = vpop.eup %14763 }
 0xd6a   :  { %v8731_v16 = vadd.f32 %v8730_v57, %v8729_v56  ;;  %v17409_v57 = vcombine.low %v16763_v61, %v16766_v53 }
 0xd6c   :  { %14765 = vtanh.f32 %v8731_v16  ;;  %v8734_v18 = vsel %vm3557_vm10, %v8731_v16, %v8728_v34 }
 0xd6d   :  { %8735 = vst [vmem:[#allocation6] sm:$0x3] %v8734_v18 }
 0xd76   :  { %v14766_v28 = vpop.eup %14765 }
 0xd77   :  { %v8733_v12 = vmul.f32 %v14766_v28, %v14764_v26 }
 0xd79   :  { %v8737_v60 = vsel %vm3557_vm10, %v8733_v12, %v8736_v36  ;;  %v8741_v49 = vsel %vm3557_vm10, %v8733_v12, 0.0 }
 0xd7a   :  { %v8739_v25 = vpack.c.bf16 %v8737_v60, %v8737_v60  ;;  %v8742_v17 = vpack.c.bf16 %v8741_v49, %v8741_v49  ;;  %8738 = vst [vmem:[#allocation4] sm:$0x3] %v8737_v60 }
 0xd7c   :  { %8740 = vst [vmem:[#allocation5] sm:$0x1] %v8739_v25  ;;  %8743 = vst [vmem:[#allocation2 + $0x2] sm:$0x1] %v8742_v17 }
 0xd83   :  { %v8745_v27 = vld [vmem:[#allocation5] sm:$0x1] }
 0xd84   :  { %8971 = vmatmul.mubr.bf16.vlgmr.msra.gmra.mrb[108].mxu0 %v8745_v27  ;;  %9012 = vmatmul.mubr.bf16.vlgmr.msra.gmra.mrb[108].mxu1 %v8745_v27 }
 0xd85   :  { %9280 = vmatpush1.bf16.msra.mxu0 %v16878_v21  ;;  %9321 = vmatpush1.bf16.msra.mxu1 %v16880_v1 }
 0xd86   :  { %9281 = vmatprep.subr.bf16.mxu0 %v16886_v22  ;;  %9322 = vmatprep.subr.bf16.mxu1 %v16888_v50 }
 0xd87   :  { %9311 = vmatprep.mubr.bf16.mxu0 %v17380_v43  ;;  %9352 = vmatprep.mubr.bf16.mxu1 %v17380_v43 }
 0xd89   :  { %9282 = vmatpush1.bf16.msra.mxu0 %v16890_v24  ;;  %9323 = vmatpush1.bf16.msra.mxu1 %v16892_v19 }
 0xd8a   :  { %9283 = vmatprep.subr.bf16.mxu0 %v16898_v29  ;;  %9324 = vmatprep.subr.bf16.mxu1 %v16900_v9 }
 0xd8d   :  { %9284 = vmatpush1.bf16.msra.mxu0 %v16902_v37  ;;  %9325 = vmatpush1.bf16.msra.mxu1 %v16904_v11 }
 0xd8e   :  { %9285 = vmatprep.subr.bf16.mxu0 %v16910_v39  ;;  %9326 = vmatprep.subr.bf16.mxu1 %v16912_v13 }
 0xd91   :  { %9286 = vmatpush1.bf16.msra.mxu0 %v16914_v15  ;;  %9327 = vmatpush1.bf16.msra.mxu1 %v16916_v4 }
 0xd92   :  { %9287 = vmatprep.subr.bf16.mxu0 %v16922_v5  ;;  %9328 = vmatprep.subr.bf16.mxu1 %v16924_v32 }
 0xd95   :  { %9288 = vmatpush1.bf16.msra.mxu0 %v16926_v41  ;;  %9329 = vmatpush1.bf16.msra.mxu1 %v16928_v35 }
 0xd96   :  { %9289 = vmatprep.subr.bf16.mxu0 %v16934_v44  ;;  %9330 = vmatprep.subr.bf16.mxu1 %v16936_v55 }
 0xd99   :  { %9290 = vmatpush1.bf16.msra.mxu0 %v16938_v52  ;;  %9331 = vmatpush1.bf16.msra.mxu1 %v16940_v40 }
 0xd9a   :  { %9291 = vmatprep.subr.bf16.mxu0 %v16946_v63  ;;  %9332 = vmatprep.subr.bf16.mxu1 %v16948_v38 }
 0xd9d   :  { %9292 = vmatpush1.bf16.msra.mxu0 %v16950_v7  ;;  %9333 = vmatpush1.bf16.msra.mxu1 %v16952_v8 }
 0xd9e   :  { %9293 = vmatprep.subr.bf16.mxu0 %v16956_v48  ;;  %9334 = vmatprep.subr.bf16.mxu1 %v16958_v58 }
 0xda1   :  { %9294 = vmatpush1.bf16.msra.mxu0 %v16962_v3  ;;  %9335 = vmatpush1.bf16.msra.mxu1 %v16964_v45 }
 0xda2   :  { %9620 = vmatprep.subr.bf16.mxu0 %v16874_v51  ;;  %9661 = vmatprep.subr.bf16.mxu1 %v16876_v31 }
 0xe57   :  { %v8972_v47 = vpop.f32.mrb[108].mxu0  ;;  %v9013_v20 = vpop.f32.mrb[108].mxu1 }
 0xe58   :  { %v8974_v30 = vpop.f32.mrb[109].mxu0  ;;  %v9015_v59 = vpop.f32.mrb[109].mxu1 }
 0xe59   :  { %v9024_v46 = vcombine.low %v8972_v47, %v8974_v30  ;;  %v9025_v42 = vcombine.low %v9013_v20, %v9015_v59  ;;  %v8976_v0 = vpop.f32.mrb[110].mxu0  ;;  %v9017_v14 = vpop.f32.mrb[110].mxu1  ;;  %v9069_v59 = vld [vmem:[#allocation6] sm:$0x3] }
 0xe5a   :  { %v8977_v23 = vpop.f32.mrb[111].mxu0  ;;  %v9018_v10 = vpop.f32.mrb[111].mxu1 }
 0xe5b   :  { %v9032_v33 = vrot.slane %v9024_v46, %v15558_v62  ;;  %v9039_v34 = vrot.slane %v9025_v42, %v15558_v62 }
 0xe5d   :  { %v9040_v56 = vcombine.low %v9032_v33, %v9039_v34 }
 0xe5f   :  { %v9042_v16 = vadd.f32 %v9040_v56, %v17409_v57  ;;  %v9077_v56 = vld [vmem:[#allocation4] sm:$0x3] }
 0xe61   :  { %v13213_v18 = vmul.f32 -1.442695, %v9042_v16  ;;  %v9050_v26 = vrot.slane %v9042_v16, 2  ;;  %v9061_v12 = vrot.slane %v9042_v16, 6  ;;  %v9058_v49 = vrot.slane %v9042_v16, 4 }
 0xe63   :  { %14767 = vpow2.f32 %v13213_v18  ;;  %v13214_v28 = vmul.f32 -1.442695, %v9050_v26  ;;  %v13215_v36 = vmul.f32 -1.442695, %v9061_v12 }
 0xe65   :  { %14769 = vpow2.f32 %v13214_v28 }
 0xe66   :  { %14771 = vpow2.f32 %v13215_v36 }
 0xe6d   :  { %v14768_v60 = vpop.eup %14767 }
 0xe6e   :  { %v9046_v25 = vadd.f32 1.0, %v14768_v60 }
 0xe6f   :  { %v14770_v17 = vpop.eup %14769 }
 0xe70   :  { %14773 = vrcp.f32 %v9046_v25  ;;  %v9055_v27 = vadd.f32 1.0, %v14770_v17  ;;  %v14772_v47 = vpop.eup %14771 }
 0xe71   :  { %14775 = vtanh.f32 %v9058_v49  ;;  %v9066_v30 = vadd.f32 1.0, %v14772_v47 }
 0xe72   :  { %14777 = vrcp.f32 %v9055_v27 }
 0xe73   :  { %14779 = vrcp.f32 %v9066_v30 }
 0xe7a   :  { %v14774_v20 = vpop.eup %14773 }
 0xe7b   :  { %v14776_v61 = vpop.eup %14775 }
 0xe7c   :  { %v14778_v53 = vpop.eup %14777  ;;  %v9071_v42 = vmul.f32 %v14776_v61, %v14774_v20 }
 0xe7d   :  { %v9070_v46 = vmul.f32 %v14778_v53, %v9069_v59  ;;  %v14780_v10 = vpop.eup %14779 }
 0xe7f   :  { %v9072_v0 = vadd.f32 %v9071_v42, %v9070_v46  ;;  %v17411_v46 = vld [vmem:[#allocation26_spill] sm:$0xff]  ;;  %v17412_v42 = vld [vmem:[#allocation27_spill] sm:$0xff] }
 0xe81   :  { %14781 = vtanh.f32 %v9072_v0  ;;  %v9075_v23 = vsel %vm3905_vm11, %v9072_v0, %v9069_v59 }
 0xe82   :  { %9076 = vst [vmem:[#allocation6] sm:$0x3] %v9075_v23 }
 0xe8b   :  { %v14782_v33 = vpop.eup %14781 }
 0xe8c   :  { %v9074_v34 = vmul.f32 %v14782_v33, %v14780_v10 }
 0xe8e   :  { %v9078_v57 = vsel %vm3905_vm11, %v9074_v34, %v9077_v56  ;;  %v9082_v16 = vsel %vm3905_vm11, %v9074_v34, 0.0 }
 0xe8f   :  { %v9080_v18 = vpack.c.bf16 %v9078_v57, %v9078_v57  ;;  %v9083_v26 = vpack.c.bf16 %v9082_v16, %v9082_v16  ;;  %9079 = vst [vmem:[#allocation4] sm:$0x3] %v9078_v57 }
 0xe91   :  { %9081 = vst [vmem:[#allocation5] sm:$0x1] %v9080_v18  ;;  %9084 = vst [vmem:[#allocation2 + $0x3] sm:$0x1] %v9083_v26 }
 0xe98   :  { %v9086_v28 = vld [vmem:[#allocation5] sm:$0x1] }
 0xe99   :  { %9312 = vmatmul.mubr.bf16.vlgmr.msra.gmra.mrb[112].mxu0 %v9086_v28  ;;  %9353 = vmatmul.mubr.bf16.vlgmr.msra.gmra.mrb[112].mxu1 %v9086_v28 }
 0xe9a   :  { %9621 = vmatpush1.bf16.msra.mxu0 %v16878_v21  ;;  %9662 = vmatpush1.bf16.msra.mxu1 %v16880_v1 }
 0xe9b   :  { %9622 = vmatprep.subr.bf16.mxu0 %v16886_v22  ;;  %9663 = vmatprep.subr.bf16.mxu1 %v16888_v50 }
 0xe9c   :  { %9652 = vmatprep.mubr.bf16.mxu0 %v17380_v43  ;;  %9693 = vmatprep.mubr.bf16.mxu1 %v17380_v43 }
 0xe9e   :  { %9623 = vmatpush1.bf16.msra.mxu0 %v16890_v24  ;;  %9664 = vmatpush1.bf16.msra.mxu1 %v16892_v19 }
 0xe9f   :  { %9624 = vmatprep.subr.bf16.mxu0 %v16898_v29  ;;  %9665 = vmatprep.subr.bf16.mxu1 %v16900_v9 }
 0xea2   :  { %9625 = vmatpush1.bf16.msra.mxu0 %v16902_v37  ;;  %9666 = vmatpush1.bf16.msra.mxu1 %v16904_v11 }
 0xea3   :  { %9626 = vmatprep.subr.bf16.mxu0 %v16910_v39  ;;  %9667 = vmatprep.subr.bf16.mxu1 %v16912_v13 }
 0xea6   :  { %9627 = vmatpush1.bf16.msra.mxu0 %v16914_v15  ;;  %9668 = vmatpush1.bf16.msra.mxu1 %v16916_v4 }
 0xea7   :  { %9628 = vmatprep.subr.bf16.mxu0 %v16922_v5  ;;  %9669 = vmatprep.subr.bf16.mxu1 %v16924_v32 }
 0xeaa   :  { %9629 = vmatpush1.bf16.msra.mxu0 %v16926_v41  ;;  %9670 = vmatpush1.bf16.msra.mxu1 %v16928_v35 }
 0xeab   :  { %9630 = vmatprep.subr.bf16.mxu0 %v16934_v44  ;;  %9671 = vmatprep.subr.bf16.mxu1 %v16936_v55 }
 0xeae   :  { %9631 = vmatpush1.bf16.msra.mxu0 %v16938_v52  ;;  %9672 = vmatpush1.bf16.msra.mxu1 %v16940_v40 }
 0xeaf   :  { %9632 = vmatprep.subr.bf16.mxu0 %v16946_v63  ;;  %9673 = vmatprep.subr.bf16.mxu1 %v16948_v38 }
 0xeb2   :  { %9633 = vmatpush1.bf16.msra.mxu0 %v16950_v7  ;;  %9674 = vmatpush1.bf16.msra.mxu1 %v16952_v8 }
 0xeb3   :  { %9634 = vmatprep.subr.bf16.mxu0 %v16956_v48  ;;  %9675 = vmatprep.subr.bf16.mxu1 %v16958_v58 }
 0xeb6   :  { %9635 = vmatpush1.bf16.msra.mxu0 %v16962_v3  ;;  %9676 = vmatpush1.bf16.msra.mxu1 %v16964_v45 }
 0xeb7   :  { %9961 = vmatprep.subr.bf16.mxu0 %v16874_v51  ;;  %10002 = vmatprep.subr.bf16.mxu1 %v16876_v31  ;;  %v17413_v51 = vcombine.low %v17411_v46, %v17412_v42 }
 0xf6c   :  { %v9313_v12 = vpop.f32.mrb[112].mxu0  ;;  %v9354_v36 = vpop.f32.mrb[112].mxu1 }
 0xf6d   :  { %v9315_v60 = vpop.f32.mrb[113].mxu0  ;;  %v9356_v49 = vpop.f32.mrb[113].mxu1 }
 0xf6e   :  { %v9365_v25 = vcombine.low %v9313_v12, %v9315_v60  ;;  %v9366_v17 = vcombine.low %v9354_v36, %v9356_v49  ;;  %v9317_v27 = vpop.f32.mrb[114].mxu0  ;;  %v9358_v47 = vpop.f32.mrb[114].mxu1  ;;  %v9410_v49 = vld [vmem:[#allocation6] sm:$0x3] }
 0xf6f   :  { %v9318_v20 = vpop.f32.mrb[115].mxu0  ;;  %v9359_v61 = vpop.f32.mrb[115].mxu1  ;;  %v14415_v47 = vld [vmem:[#allocation12 + $0x100] ss:$16 sps:$4 sm:$0xff]  }
 0xf70   :  { %v9373_v53 = vrot.slane %v9365_v25, %v15558_v62  ;;  %v9380_v30 = vrot.slane %v9366_v17, %v15558_v62 }
 0xf72   :  { %v9381_v59 = vcombine.low %v9373_v53, %v9380_v30 }
 0xf74   :  { %v9383_v0 = vadd.f32 %v9381_v59, %v17413_v51  ;;  %v9418_v59 = vld [vmem:[#allocation4] sm:$0x3] }
 0xf76   :  { %v13248_v31 = vmul.f32 -1.442695, %v9383_v0  ;;  %v9391_v14 = vrot.slane %v9383_v0, 2  ;;  %v9402_v10 = vrot.slane %v9383_v0, 6  ;;  %v9399_v56 = vrot.slane %v9383_v0, 4 }
 0xf78   :  { %14783 = vpow2.f32 %v13248_v31  ;;  %v13249_v23 = vmul.f32 -1.442695, %v9391_v14  ;;  %v13250_v33 = vmul.f32 -1.442695, %v9402_v10 }
 0xf7a   :  { %14785 = vpow2.f32 %v13249_v23 }
 0xf7b   :  { %14787 = vpow2.f32 %v13250_v33 }
 0xf82   :  { %v14784_v34 = vpop.eup %14783 }
 0xf83   :  { %v9387_v57 = vadd.f32 1.0, %v14784_v34 }
 0xf84   :  { %v14786_v16 = vpop.eup %14785 }
 0xf85   :  { %14789 = vrcp.f32 %v9387_v57  ;;  %v9396_v18 = vadd.f32 1.0, %v14786_v16  ;;  %v14788_v26 = vpop.eup %14787 }
 0xf86   :  { %14791 = vtanh.f32 %v9399_v56  ;;  %v9407_v60 = vadd.f32 1.0, %v14788_v26 }
 0xf87   :  { %14793 = vrcp.f32 %v9396_v18 }
 0xf88   :  { %14795 = vrcp.f32 %v9407_v60 }
 0xf8f   :  { %v14790_v28 = vpop.eup %14789 }
 0xf90   :  { %v14792_v12 = vpop.eup %14791 }
 0xf91   :  { %v14794_v36 = vpop.eup %14793  ;;  %v9412_v17 = vmul.f32 %v14792_v12, %v14790_v28 }
 0xf92   :  { %v9411_v25 = vmul.f32 %v14794_v36, %v9410_v49  ;;  %v14796_v61 = vpop.eup %14795 }
 0xf94   :  { %v9413_v27 = vadd.f32 %v9412_v17, %v9411_v25 }
 0xf96   :  { %14797 = vtanh.f32 %v9413_v27  ;;  %v9416_v20 = vsel %vm4253_vm12, %v9413_v27, %v9410_v49  ;;  %v14417_v27 = vld [vmem:[#allocation12 + $0x104] ss:$16 sps:$4 sm:$0xff]  }
 0xf97   :  { %9417 = vst [vmem:[#allocation6] sm:$0x3] %v9416_v20  ;;  %v14420_v20 = vld [vmem:[#allocation12 + $0x10c] ss:$16 sps:$4 sm:$0xff]  }
 0xf9e   :  { %v9751_v10 = vld [vmem:[#allocation6] sm:$0x3] }
 0xfa0   :  { %v14798_v53 = vpop.eup %14797 }
 0xfa1   :  { %v9415_v30 = vmul.f32 %v14798_v53, %v14796_v61  ;;  %v14418_v61 = vld [vmem:[#allocation12 + $0x108] ss:$16 sps:$4 sm:$0xff]   ;;  %v14423_v53 = vld [vmem:[#allocation12 + $0x124] ss:$16 sps:$4 sm:$0xff]  }
 0xfa3   :  { %v9419_v46 = vsel %vm4253_vm12, %v9415_v30, %v9418_v59  ;;  %v9423_v42 = vsel %vm4253_vm12, %v9415_v30, 0.0  ;;  %v14421_v30 = vld [vmem:[#allocation12 + $0x120] ss:$16 sps:$4 sm:$0xff]   ;;  %v14426_v59 = vld [vmem:[#allocation12 + $0x12c] ss:$16 sps:$4 sm:$0xff]  }
 0xfa4   :  { %v9421_v51 = vpack.c.bf16 %v9419_v46, %v9419_v46  ;;  %v9424_v0 = vpack.c.bf16 %v9423_v42, %v9423_v42  ;;  %9420 = vst [vmem:[#allocation4] sm:$0x3] %v9419_v46  ;;  %v14424_v46 = vld [vmem:[#allocation12 + $0x128] ss:$16 sps:$4 sm:$0xff]   ;;  %v14429_v42 = vld [vmem:[#allocation12 + $0x144] ss:$16 sps:$4 sm:$0xff]  }
 0xfa6   :  { %9422 = vst [vmem:[#allocation5] sm:$0x1] %v9421_v51  ;;  %9425 = vst [vmem:[#allocation2 + $0x4] sm:$0x1] %v9424_v0  ;;  %v14427_v51 = vld [vmem:[#allocation12 + $0x140] ss:$16 sps:$4 sm:$0xff]  }
 0xfa7   :  { %v14432_v0 = vld [vmem:[#allocation12 + $0x14c] ss:$16 sps:$4 sm:$0xff]  }
 0xfab   :  { %v9759_v12 = vld [vmem:[#allocation4] sm:$0x3] }
 0xfad   :  { %v9427_v31 = vld [vmem:[#allocation5] sm:$0x1] }
 0xfae   :  { %9653 = vmatmul.mubr.bf16.vlgmr.msra.gmra.mrb[116].mxu0 %v9427_v31  ;;  %9694 = vmatmul.mubr.bf16.vlgmr.msra.gmra.mrb[116].mxu1 %v9427_v31  ;;  %v14435_v31 = vld [vmem:[#allocation12 + $0x164] ss:$16 sps:$4 sm:$0xff]  }
 0xfaf   :  { %9962 = vmatpush1.bf16.msra.mxu0 %v16878_v21  ;;  %10003 = vmatpush1.bf16.msra.mxu1 %v16880_v1 }
 0xfb0   :  { %9963 = vmatprep.subr.bf16.mxu0 %v16886_v22  ;;  %10004 = vmatprep.subr.bf16.mxu1 %v16888_v50 }
 0xfb1   :  { %9993 = vmatprep.mubr.bf16.mxu0 %v17380_v43  ;;  %10034 = vmatprep.mubr.bf16.mxu1 %v17380_v43 }
 0xfb3   :  { %9964 = vmatpush1.bf16.msra.mxu0 %v16890_v24  ;;  %10005 = vmatpush1.bf16.msra.mxu1 %v16892_v19 }
 0xfb4   :  { %9965 = vmatprep.subr.bf16.mxu0 %v16898_v29  ;;  %10006 = vmatprep.subr.bf16.mxu1 %v16900_v9 }
 0xfb7   :  { %9966 = vmatpush1.bf16.msra.mxu0 %v16902_v37  ;;  %10007 = vmatpush1.bf16.msra.mxu1 %v16904_v11 }
 0xfb8   :  { %9967 = vmatprep.subr.bf16.mxu0 %v16910_v39  ;;  %10008 = vmatprep.subr.bf16.mxu1 %v16912_v13 }
 0xfbb   :  { %9968 = vmatpush1.bf16.msra.mxu0 %v16914_v15  ;;  %10009 = vmatpush1.bf16.msra.mxu1 %v16916_v4  ;;  %v17415_v4 = vld [vmem:[#allocation28_spill] sm:$0xff] }
 0xfbc   :  { %9969 = vmatprep.subr.bf16.mxu0 %v16922_v5  ;;  %10010 = vmatprep.subr.bf16.mxu1 %v16924_v32  ;;  %v17416_v5 = vld [vmem:[#allocation29_spill] sm:$0xff] }
 0xfbd   :  { %v17417_v32 = vcombine.low %v17415_v4, %v17416_v5  ;;  %v14456_v4 = vld [vmem:[#allocation12 + $0x1cc] ss:$16 sps:$4 sm:$0xff]   ;;  %v14454_v5 = vld [vmem:[#allocation12 + $0x1c8] ss:$16 sps:$4 sm:$0xff]  }
 0xfbf   :  { %9970 = vmatpush1.bf16.msra.mxu0 %v16926_v41  ;;  %10011 = vmatpush1.bf16.msra.mxu1 %v16928_v35 }
 0xfc0   :  { %9971 = vmatprep.subr.bf16.mxu0 %v16934_v44  ;;  %10012 = vmatprep.subr.bf16.mxu1 %v16936_v55 }
 0xfc3   :  { %9972 = vmatpush1.bf16.msra.mxu0 %v16938_v52  ;;  %10013 = vmatpush1.bf16.msra.mxu1 %v16940_v40 }
 0xfc4   :  { %9973 = vmatprep.subr.bf16.mxu0 %v16946_v63  ;;  %10014 = vmatprep.subr.bf16.mxu1 %v16948_v38 }
 0xfc7   :  { %9974 = vmatpush1.bf16.msra.mxu0 %v16950_v7  ;;  %10015 = vmatpush1.bf16.msra.mxu1 %v16952_v8 }
 0xfc8   :  { %9975 = vmatprep.subr.bf16.mxu0 %v16956_v48  ;;  %10016 = vmatprep.subr.bf16.mxu1 %v16958_v58 }
 0xfcb   :  { %9976 = vmatpush1.bf16.msra.mxu0 %v16962_v3  ;;  %10017 = vmatpush1.bf16.msra.mxu1 %v16964_v45 }
 0xfcc   :  { %10302 = vmatprep.subr.bf16.mxu0 %v14417_v27  ;;  %10343 = vmatprep.subr.bf16.mxu1 %v14420_v20 }
0x1081   :  { %v9654_v21 = vpop.f32.mrb[116].mxu0  ;;  %v9695_v1 = vpop.f32.mrb[116].mxu1 }
0x1082   :  { %v9656_v22 = vpop.f32.mrb[117].mxu0  ;;  %v9697_v50 = vpop.f32.mrb[117].mxu1 }
0x1083   :  { %v9706_v24 = vcombine.low %v9654_v21, %v9656_v22  ;;  %v9707_v19 = vcombine.low %v9695_v1, %v9697_v50  ;;  %v9658_v29 = vpop.f32.mrb[118].mxu0  ;;  %v9699_v9 = vpop.f32.mrb[118].mxu1  ;;  %v14433_v21 = vld [vmem:[#allocation12 + $0x160] ss:$16 sps:$4 sm:$0xff]   ;;  %v14438_v1 = vld [vmem:[#allocation12 + $0x16c] ss:$16 sps:$4 sm:$0xff]  }
0x1084   :  { %v9659_v37 = vpop.f32.mrb[119].mxu0  ;;  %v9700_v11 = vpop.f32.mrb[119].mxu1  ;;  %v14436_v22 = vld [vmem:[#allocation12 + $0x168] ss:$16 sps:$4 sm:$0xff]   ;;  %v14441_v50 = vld [vmem:[#allocation12 + $0x184] ss:$16 sps:$4 sm:$0xff]  }
0x1085   :  { %v9714_v39 = vrot.slane %v9706_v24, %v15558_v62  ;;  %v9721_v13 = vrot.slane %v9707_v19, %v15558_v62  ;;  %v14439_v24 = vld [vmem:[#allocation12 + $0x180] ss:$16 sps:$4 sm:$0xff]   ;;  %v14444_v19 = vld [vmem:[#allocation12 + $0x18c] ss:$16 sps:$4 sm:$0xff]   ;;  %v14442_v29 = vld [vmem:[#allocation12 + $0x188] ss:$16 sps:$4 sm:$0xff]  }
0x1086   :  { %v14447_v9 = vld [vmem:[#allocation12 + $0x1a4] ss:$16 sps:$4 sm:$0xff]   ;;  %v14445_v37 = vld [vmem:[#allocation12 + $0x1a0] ss:$16 sps:$4 sm:$0xff]   ;;  %v14450_v11 = vld [vmem:[#allocation12 + $0x1ac] ss:$16 sps:$4 sm:$0xff]  }
0x1087   :  { %v9722_v15 = vcombine.low %v9714_v39, %v9721_v13  ;;  %v14448_v39 = vld [vmem:[#allocation12 + $0x1a8] ss:$16 sps:$4 sm:$0xff]   ;;  %v14453_v13 = vld [vmem:[#allocation12 + $0x1c4] ss:$16 sps:$4 sm:$0xff]  }
0x1089   :  { %v9724_v41 = vadd.f32 %v9722_v15, %v17417_v32  ;;  %v14451_v15 = vld [vmem:[#allocation12 + $0x1c0] ss:$16 sps:$4 sm:$0xff]   ;;  %v14459_v32 = vld [vmem:[#allocation12 + $0x1e4] ss:$16 sps:$4 sm:$0xff]  }
0x108b   :  { %v13283_v35 = vmul.f32 -1.442695, %v9724_v41  ;;  %v9732_v44 = vrot.slane %v9724_v41, 2  ;;  %v9743_v52 = vrot.slane %v9724_v41, 6  ;;  %v9740_v38 = vrot.slane %v9724_v41, 4 }
0x108c   :  { %v14457_v41 = vld [vmem:[#allocation12 + $0x1e0] ss:$16 sps:$4 sm:$0xff]  }
0x108d   :  { %14799 = vpow2.f32 %v13283_v35  ;;  %v13284_v55 = vmul.f32 -1.442695, %v9732_v44  ;;  %v13285_v40 = vmul.f32 -1.442695, %v9743_v52  ;;  %v14462_v35 = vld [vmem:[#allocation12 + $0x1ec] ss:$16 sps:$4 sm:$0xff]  }
0x108e   :  { %v14460_v44 = vld [vmem:[#allocation12 + $0x1e8] ss:$16 sps:$4 sm:$0xff]  }
0x108f   :  { %14801 = vpow2.f32 %v13284_v55  ;;  %v17419_v55 = vmov 0.0  }
0x1090   :  { %14803 = vpow2.f32 %v13285_v40 }
0x1097   :  { %v14800_v63 = vpop.eup %14799 }
0x1098   :  { %v9728_v7 = vadd.f32 1.0, %v14800_v63 }
0x1099   :  { %v14802_v8 = vpop.eup %14801 }
0x109a   :  { %14805 = vrcp.f32 %v9728_v7  ;;  %v9737_v48 = vadd.f32 1.0, %v14802_v8  ;;  %v14804_v58 = vpop.eup %14803 }
0x109b   :  { %14807 = vtanh.f32 %v9740_v38  ;;  %v9748_v23 = vadd.f32 1.0, %v14804_v58 }
0x109c   :  { %14809 = vrcp.f32 %v9737_v48 }
0x109d   :  { %14811 = vrcp.f32 %v9748_v23 }
0x10a4   :  { %v14806_v3 = vpop.eup %14805 }
0x10a5   :  { %v14808_v45 = vpop.eup %14807 }
0x10a6   :  { %v14810_v14 = vpop.eup %14809  ;;  %v9753_v34 = vmul.f32 %v14808_v45, %v14806_v3 }
0x10a7   :  { %v9752_v33 = vmul.f32 %v14810_v14, %v9751_v10  ;;  %v14812_v18 = vpop.eup %14811 }
0x10a9   :  { %v9754_v56 = vadd.f32 %v9753_v34, %v9752_v33  ;;  %v17420_v33 = vld [vmem:[#allocation30_spill] sm:$0xff] }
0x10aa   :  { %v17421_v34 = vcombine.low %v16799_v6, %v17420_v33  ;;  %v10902_v33 = vld [vmem:[#allocation2 + $0x2] sm:$0x1] }
0x10ab   :  { %14813 = vtanh.f32 %v9754_v56  ;;  %v9757_v16 = vsel %vm4601_vm13, %v9754_v56, %v9751_v10 }
0x10ac   :  { %9758 = vst [vmem:[#allocation6] sm:$0x3] %v9757_v16 }
0x10b5   :  { %v14814_v26 = vpop.eup %14813 }
0x10b6   :  { %v9756_v28 = vmul.f32 %v14814_v26, %v14812_v18 }
0x10b8   :  { %v9760_v36 = vsel %vm4601_vm13, %v9756_v28, %v9759_v12  ;;  %v9764_v60 = vsel %vm4601_vm13, %v9756_v28, 0.0 }
0x10b9   :  { %v9762_v49 = vpack.c.bf16 %v9760_v36, %v9760_v36  ;;  %v9765_v25 = vpack.c.bf16 %v9764_v60, %v9764_v60  ;;  %9761 = vst [vmem:[#allocation4] sm:$0x3] %v9760_v36 }
0x10bb   :  { %9763 = vst [vmem:[#allocation5] sm:$0x1] %v9762_v49  ;;  %9766 = vst [vmem:[#allocation2 + $0x5] sm:$0x1] %v9765_v25 }
0x10c2   :  { %v9768_v17 = vld [vmem:[#allocation5] sm:$0x1] }
0x10c3   :  { %9994 = vmatmul.mubr.bf16.vlgmr.msra.gmra.mrb[120].mxu0 %v9768_v17  ;;  %10035 = vmatmul.mubr.bf16.vlgmr.msra.gmra.mrb[120].mxu1 %v9768_v17 }
0x10c4   :  { %10334 = vmatprep.mubr.bf16.mxu0 %v17380_v43  ;;  %10375 = vmatprep.mubr.bf16.mxu1 %v17380_v43  ;;  %v14430_v43 = vld [vmem:[#allocation12 + $0x148] ss:$16 sps:$4 sm:$0xff]  }
0x10c5   :  { %10303 = vmatpush1.bf16.msra.mxu0 %v14415_v47  ;;  %10344 = vmatpush1.bf16.msra.mxu1 %v14418_v61  ;;  %v10092_v61 = vld [vmem:[#allocation6] sm:$0x3] }
0x10c6   :  { %10304 = vmatprep.subr.bf16.mxu0 %v14423_v53  ;;  %10345 = vmatprep.subr.bf16.mxu1 %v14426_v59 }
0x10c9   :  { %10305 = vmatpush1.bf16.msra.mxu0 %v14421_v30  ;;  %10346 = vmatpush1.bf16.msra.mxu1 %v14424_v46  ;;  %v14500_v46 = vld [vmem:[#allocation13 + $0x28] sm:$0xff]  }
0x10ca   :  { %10306 = vmatprep.subr.bf16.mxu0 %v14429_v42  ;;  %10347 = vmatprep.subr.bf16.mxu1 %v14432_v0 }
0x10cd   :  { %10307 = vmatpush1.bf16.msra.mxu0 %v14427_v51  ;;  %10348 = vmatpush1.bf16.msra.mxu1 %v14430_v43 }
0x10ce   :  { %10308 = vmatprep.subr.bf16.mxu0 %v14435_v31  ;;  %10349 = vmatprep.subr.bf16.mxu1 %v14438_v1  ;;  %v10100_v31 = vld [vmem:[#allocation4] sm:$0x3] }
0x10d1   :  { %10309 = vmatpush1.bf16.msra.mxu0 %v14433_v21  ;;  %10350 = vmatpush1.bf16.msra.mxu1 %v14436_v22 }
0x10d2   :  { %10310 = vmatprep.subr.bf16.mxu0 %v14441_v50  ;;  %10351 = vmatprep.subr.bf16.mxu1 %v14444_v19 }
0x10d5   :  { %10311 = vmatpush1.bf16.msra.mxu0 %v14439_v24  ;;  %10352 = vmatpush1.bf16.msra.mxu1 %v14442_v29  ;;  %v14463_v24 = vld [vmem:[#allocation13] sm:$0xff]   ;;  %v14464_v29 = vld [vmem:[#allocation13 + $0x8] sm:$0xff]  }
0x10d6   :  { %10312 = vmatprep.subr.bf16.mxu0 %v14447_v9  ;;  %10353 = vmatprep.subr.bf16.mxu1 %v14450_v11  ;;  %v14465_v9 = vld [vmem:[#allocation13 + $0x10] sm:$0xff]   ;;  %v14467_v11 = vld [vmem:[#allocation13 + $0x20] sm:$0xff]  }
0x10d9   :  { %10313 = vmatpush1.bf16.msra.mxu0 %v14445_v37  ;;  %10354 = vmatpush1.bf16.msra.mxu1 %v14448_v39  ;;  %v14466_v37 = vld [vmem:[#allocation13 + $0x18] sm:$0xff]   ;;  %v14468_v39 = vld [vmem:[#allocation13 + $0x28] sm:$0xff]  }
0x10da   :  { %10314 = vmatprep.subr.bf16.mxu0 %v14453_v13  ;;  %10355 = vmatprep.subr.bf16.mxu1 %v14456_v4  ;;  %v14469_v13 = vld [vmem:[#allocation13 + $0x30] sm:$0xff]   ;;  %v14471_v4 = vld [vmem:[#allocation13] sm:$0xff]  }
0x10dd   :  { %10315 = vmatpush1.bf16.msra.mxu0 %v14451_v15  ;;  %10356 = vmatpush1.bf16.msra.mxu1 %v14454_v5  ;;  %v14470_v15 = vld [vmem:[#allocation13 + $0x38] sm:$0xff]   ;;  %v10449_v5 = vld [vmem:[#allocation2] sm:$0x1] }
0x10de   :  { %10316 = vmatprep.subr.bf16.mxu0 %v14459_v32  ;;  %10357 = vmatprep.subr.bf16.mxu1 %v14462_v35  ;;  %v14472_v32 = vld [vmem:[#allocation13 + $0x8] sm:$0xff]   ;;  %v14474_v35 = vld [vmem:[#allocation13 + $0x18] sm:$0xff]  }
0x10e1   :  { %10317 = vmatpush1.bf16.msra.mxu0 %v14457_v41  ;;  %10358 = vmatpush1.bf16.msra.mxu1 %v14460_v44  ;;  %v14473_v41 = vld [vmem:[#allocation13 + $0x10] sm:$0xff]   ;;  %v14475_v44 = vld [vmem:[#allocation13 + $0x20] sm:$0xff]  }
0x10e2   :  { %13644 = vmatprep.subr.bf16.mxu0 %v17419_v55  ;;  %13664 = vmatprep.subr.bf16.mxu1 %v17419_v55 }
0x1196   :  { %v9995_v52 = vpop.f32.mrb[120].mxu0  ;;  %v10036_v40 = vpop.f32.mrb[120].mxu1 }
0x1197   :  { %v9997_v63 = vpop.f32.mrb[121].mxu0  ;;  %v10038_v38 = vpop.f32.mrb[121].mxu1 }
0x1198   :  { %v10047_v7 = vcombine.low %v9995_v52, %v9997_v63  ;;  %v10048_v8 = vcombine.low %v10036_v40, %v10038_v38  ;;  %v9999_v48 = vpop.f32.mrb[122].mxu0  ;;  %v10040_v58 = vpop.f32.mrb[122].mxu1  ;;  %v14476_v52 = vld [vmem:[#allocation13 + $0x28] sm:$0xff]   ;;  %v14477_v40 = vld [vmem:[#allocation13 + $0x30] sm:$0xff]   ;;  %v14478_v63 = vld [vmem:[#allocation13 + $0x38] sm:$0xff]  }
0x1199   :  { %v10000_v3 = vpop.f32.mrb[123].mxu0  ;;  %v10041_v45 = vpop.f32.mrb[123].mxu1  ;;  %v14479_v38 = vld [vmem:[#allocation13] sm:$0xff]   ;;  %v14481_v48 = vld [vmem:[#allocation13 + $0x10] sm:$0xff]   ;;  %v14482_v58 = vld [vmem:[#allocation13 + $0x18] sm:$0xff]  }
0x119a   :  { %v10055_v14 = vrot.slane %v10047_v7, %v15558_v62  ;;  %v10062_v23 = vrot.slane %v10048_v8, %v15558_v62  ;;  %v10675_v7 = vld [vmem:[#allocation2 + $0x1] sm:$0x1]  ;;  %v14483_v3 = vld [vmem:[#allocation13 + $0x20] sm:$0xff]  }
0x119b   :  { %v14480_v8 = vld [vmem:[#allocation13 + $0x8] sm:$0xff]  }
0x119c   :  { %v10063_v10 = vcombine.low %v10055_v14, %v10062_v23  ;;  %v14484_v45 = vld [vmem:[#allocation13 + $0x28] sm:$0xff]   ;;  %v14485_v14 = vld [vmem:[#allocation13 + $0x30] sm:$0xff]   ;;  %v14486_v23 = vld [vmem:[#allocation13 + $0x38] sm:$0xff]  }
0x119e   :  { %v10065_v56 = vadd.f32 %v10063_v10, %v17421_v34  ;;  %v14487_v10 = vld [vmem:[#allocation13] sm:$0xff]   ;;  %v14488_v34 = vld [vmem:[#allocation13 + $0x8] sm:$0xff]  }
0x11a0   :  { %v13318_v57 = vmul.f32 -1.442695, %v10065_v56  ;;  %v10073_v16 = vrot.slane %v10065_v56, 2  ;;  %v10084_v26 = vrot.slane %v10065_v56, 6  ;;  %v10081_v36 = vrot.slane %v10065_v56, 4  ;;  %v14519_v56 = vld [vmem:[#allocation15] sm:$0xff]  }
0x11a2   :  { %14815 = vpow2.f32 %v13318_v57  ;;  %v13319_v18 = vmul.f32 -1.442695, %v10073_v16  ;;  %v13320_v28 = vmul.f32 -1.442695, %v10084_v26  ;;  %v14489_v57 = vld [vmem:[#allocation13 + $0x10] sm:$0xff]   ;;  %v14520_v16 = vld [vmem:[#allocation15 + $0x8] sm:$0xff]  }
0x11a3   :  { %v14521_v26 = vld [vmem:[#allocation15 + $0x10] sm:$0xff]  }
0x11a4   :  { %14817 = vpow2.f32 %v13319_v18  ;;  %v14490_v18 = vld [vmem:[#allocation13 + $0x18] sm:$0xff]  }
0x11a5   :  { %14819 = vpow2.f32 %v13320_v28  ;;  %v14491_v28 = vld [vmem:[#allocation13 + $0x20] sm:$0xff]  }
0x11ac   :  { %v14816_v12 = vpop.eup %14815 }
0x11ad   :  { %v10069_v60 = vadd.f32 1.0, %v14816_v12  ;;  %v14522_v12 = vld [vmem:[#allocation15 + $0x18] sm:$0xff]  }
0x11ae   :  { %v14818_v49 = vpop.eup %14817 }
0x11af   :  { %14821 = vrcp.f32 %v10069_v60  ;;  %v10078_v25 = vadd.f32 1.0, %v14818_v49  ;;  %v14820_v17 = vpop.eup %14819  ;;  %v14523_v60 = vld [vmem:[#allocation15 + $0x20] sm:$0xff]   ;;  %v14493_v49 = vld [vmem:[#allocation13 + $0x30] sm:$0xff]  }
0x11b0   :  { %14823 = vtanh.f32 %v10081_v36  ;;  %v10089_v20 = vadd.f32 1.0, %v14820_v17  ;;  %v14492_v36 = vld [vmem:[#allocation13 + $0x28] sm:$0xff]   ;;  %v14494_v17 = vld [vmem:[#allocation13 + $0x38] sm:$0xff]  }
0x11b1   :  { %14825 = vrcp.f32 %v10078_v25  ;;  %v14525_v25 = vld [vmem:[#allocation15 + $0x28] sm:$0xff]  }
0x11b2   :  { %14827 = vrcp.f32 %v10089_v20  ;;  %v11129_v20 = vld [vmem:[#allocation2 + $0x3] sm:$0x1] }
0x11b9   :  { %v14822_v27 = vpop.eup %14821 }
0x11ba   :  { %v14824_v6 = vpop.eup %14823 }
0x11bb   :  { %v14826_v47 = vpop.eup %14825  ;;  %v10094_v30 = vmul.f32 %v14824_v6, %v14822_v27  ;;  %v14527_v27 = vld [vmem:[#allocation15 + $0x30] sm:$0xff]   ;;  %v14495_v6 = vld [vmem:[#allocation13] sm:$0xff]  }
0x11bc   :  { %v10093_v53 = vmul.f32 %v14826_v47, %v10092_v61  ;;  %v14828_v51 = vpop.eup %14827  ;;  %v14529_v47 = vld [vmem:[#allocation15 + $0x38] sm:$0xff]  }
0x11be   :  { %v10095_v59 = vadd.f32 %v10094_v30, %v10093_v53  ;;  %v14497_v53 = vld [vmem:[#allocation13 + $0x10] sm:$0xff]   ;;  %v14498_v30 = vld [vmem:[#allocation13 + $0x18] sm:$0xff]  }
0x11c0   :  { %14829 = vtanh.f32 %v10095_v59  ;;  %v10098_v42 = vsel %vm4949_vm14, %v10095_v59, %v10092_v61  ;;  %v14496_v61 = vld [vmem:[#allocation13 + $0x8] sm:$0xff]   ;;  %v14499_v59 = vld [vmem:[#allocation13 + $0x20] sm:$0xff]  }
0x11c1   :  { %10099 = vst [vmem:[#allocation6] sm:$0x3] %v10098_v42  ;;  %v14501_v42 = vld [vmem:[#allocation13 + $0x30] sm:$0xff]  }
0x11ca   :  { %v14830_v0 = vpop.eup %14829 }
0x11cb   :  { %v10097_v43 = vmul.f32 %v14830_v0, %v14828_v51  ;;  %v14502_v51 = vld [vmem:[#allocation13 + $0x38] sm:$0xff]   ;;  %v14503_v0 = vld [vmem:[#allocation13] sm:$0xff]  }
0x11cd   :  { %v10101_v21 = vsel %vm4949_vm14, %v10097_v43, %v10100_v31  ;;  %v10105_v1 = vsel %vm4949_vm14, %v10097_v43, 0.0  ;;  %v11356_v43 = vld [vmem:[#allocation2 + $0x4] sm:$0x1] }
0x11ce   :  { %v10103_v22 = vpack.c.bf16 %v10101_v21, %v10101_v21  ;;  %v10106_v50 = vpack.c.bf16 %v10105_v1, %v10105_v1  ;;  %10102 = vst [vmem:[#allocation4] sm:$0x3] %v10101_v21  ;;  %v14504_v31 = vld [vmem:[#allocation13 + $0x8] sm:$0xff]   ;;  %v14505_v21 = vld [vmem:[#allocation13 + $0x10] sm:$0xff]   ;;  %v14506_v1 = vld [vmem:[#allocation13 + $0x18] sm:$0xff]  }
0x11d0   :  { %10104 = vst [vmem:[#allocation5] sm:$0x1] %v10103_v22  ;;  %10107 = vst [vmem:[#allocation2 + $0x6] sm:$0x1] %v10106_v50  ;;  %v14507_v22 = vld [vmem:[#allocation13 + $0x20] sm:$0xff]   ;;  %v14508_v50 = vld [vmem:[#allocation13 + $0x28] sm:$0xff]  }
0x11d7   :  { %v10109_v19 = vld [vmem:[#allocation5] sm:$0x1] }
0x11d8   :  { %10335 = vmatmul.mubr.bf16.vlgmr.msra.gmra.mrb[124].mxu0 %v10109_v19  ;;  %10376 = vmatmul.mubr.bf16.vlgmr.msra.gmra.mrb[124].mxu1 %v10109_v19  ;;  %v14510_v19 = vld [vmem:[#allocation13 + $0x38] sm:$0xff]  }
0x11d9   :  { %13645 = vmatpush3.bf16.msra.mxu0 %v14463_v24  ;;  %13660 = vmatprep.mubr.msk.bf16.mxu0 %vm15048_vm0, %v17419_v55  ;;  %v14509_v24 = vld [vmem:[#allocation13 + $0x30] sm:$0xff]  }
0x11da   :  { %13646 = vmatprep.subr.bf16.mxu0 %v17419_v55  ;;  %13680 = vmatprep.mubr.msk.bf16.mxu1 %vm15048_vm0, %v17419_v55 }
0x11db   :  { %13665 = vmatpush3.bf16.msra.mxu1 %v14519_v56  ;;  %v11810_v56 = vld [vmem:[#allocation2 + $0x6] sm:$0x1] }
0x11dc   :  { %13666 = vmatprep.subr.bf16.mxu1 %v17419_v55 }
0x11dd   :  { %13647 = vmatpush3.bf16.msra.mxu0 %v14464_v29  ;;  %v14511_v29 = vld [vmem:[#allocation13] sm:$0xff]  }
0x11de   :  { %13648 = vmatprep.subr.bf16.mxu0 %v17419_v55 }
0x11df   :  { %13667 = vmatpush3.bf16.msra.mxu1 %v14520_v16 }
0x11e0   :  { %13668 = vmatprep.subr.bf16.mxu1 %v17419_v55 }
0x11e1   :  { %13649 = vmatpush3.bf16.msra.mxu0 %v14465_v9  ;;  %v11583_v9 = vld [vmem:[#allocation2 + $0x5] sm:$0x1] }
0x11e2   :  { %13650 = vmatprep.subr.bf16.mxu0 %v17419_v55 }
0x11e3   :  { %13669 = vmatpush3.bf16.msra.mxu1 %v14521_v26  ;;  %v14530_v26 = vld [vmem:[#allocation13 + $0x18] sm:$0xff]  }
0x11e4   :  { %13670 = vmatprep.subr.bf16.mxu1 %v17419_v55 }
0x11e5   :  { %13651 = vmatpush3.bf16.msra.mxu0 %v14466_v37  ;;  %v14512_v37 = vld [vmem:[#allocation13 + $0x8] sm:$0xff]  }
0x11e6   :  { %13652 = vmatprep.subr.bf16.mxu0 %v17419_v55 }
0x11e7   :  { %13671 = vmatpush3.bf16.msra.mxu1 %v14522_v12 }
0x11e8   :  { %13672 = vmatprep.subr.bf16.mxu1 %v17419_v55 }
0x11e9   :  { %13653 = vmatpush3.bf16.msra.mxu0 %v14467_v11  ;;  %v14513_v11 = vld [vmem:[#allocation13 + $0x10] sm:$0xff]  }
0x11ea   :  { %13654 = vmatprep.subr.bf16.mxu0 %v17419_v55 }
0x11eb   :  { %13673 = vmatpush3.bf16.msra.mxu1 %v14523_v60  ;;  %v14532_v60 = vld [vmem:[#allocation13 + $0x20] sm:$0xff]  }
0x11ec   :  { %13674 = vmatprep.subr.bf16.mxu1 %v17419_v55 }
0x11ed   :  { %13655 = vmatpush3.bf16.msra.mxu0 %v14468_v39  ;;  %v14514_v39 = vld [vmem:[#allocation13 + $0x18] sm:$0xff]  }
0x11ee   :  { %13656 = vmatprep.subr.bf16.mxu0 %v17419_v55 }
0x11ef   :  { %13675 = vmatpush3.bf16.msra.mxu1 %v14525_v25  ;;  %v14534_v25 = vld [vmem:[#allocation13 + $0x28] sm:$0xff]  }
0x11f0   :  { %13676 = vmatprep.subr.bf16.mxu1 %v17419_v55 }
0x11f1   :  { %13657 = vmatpush3.bf16.msra.mxu0 %v14469_v13  ;;  %v14515_v13 = vld [vmem:[#allocation13 + $0x20] sm:$0xff]  }
0x11f2   :  { %13658 = vmatprep.subr.bf16.mxu0 %v17419_v55 }
0x11f3   :  { %13677 = vmatpush3.bf16.msra.mxu1 %v14527_v27 }
0x11f4   :  { %13678 = vmatprep.subr.bf16.mxu1 %v17419_v55 }
0x11f5   :  { %13659 = vmatpush3.bf16.msra.mxu0 %v14470_v15  ;;  %v14516_v15 = vld [vmem:[#allocation13 + $0x28] sm:$0xff]  }
0x11f6   :  { %13684 = vmatprep.subr.bf16.mxu0 %v17419_v55 }
0x11f7   :  { %13679 = vmatpush3.bf16.msra.mxu1 %v14529_v47 }
0x11f8   :  { %13661 = vmatmul.mubr.bf16.vlgmr.msra.gmra.mrb[128].mxu0 %v10449_v5  ;;  %13704 = vmatprep.subr.bf16.mxu1 %v17419_v55 }
0x11f9   :  { %13685 = vmatpush3.bf16.msra.mxu0 %v14471_v4  ;;  %13700 = vmatprep.mubr.msk.bf16.mxu0 %vm15048_vm0, %v17419_v55 }
0x11fa   :  { %13686 = vmatprep.subr.bf16.mxu0 %v17419_v55 }
0x11fd   :  { %13687 = vmatpush3.bf16.msra.mxu0 %v14472_v32 }
0x11fe   :  { %13688 = vmatprep.subr.bf16.mxu0 %v17419_v55 }
0x1201   :  { %13689 = vmatpush3.bf16.msra.mxu0 %v14473_v41 }
0x1202   :  { %13690 = vmatprep.subr.bf16.mxu0 %v17419_v55 }
0x1205   :  { %13691 = vmatpush3.bf16.msra.mxu0 %v14474_v35 }
0x1206   :  { %13692 = vmatprep.subr.bf16.mxu0 %v17419_v55 }
0x1209   :  { %13693 = vmatpush3.bf16.msra.mxu0 %v14475_v44 }
0x120a   :  { %13694 = vmatprep.subr.bf16.mxu0 %v17419_v55 }
0x120d   :  { %13695 = vmatpush3.bf16.msra.mxu0 %v14476_v52 }
0x120e   :  { %13696 = vmatprep.subr.bf16.mxu0 %v17419_v55 }
0x1211   :  { %13697 = vmatpush3.bf16.msra.mxu0 %v14477_v40 }
0x1212   :  { %13698 = vmatprep.subr.bf16.mxu0 %v17419_v55 }
0x1215   :  { %13699 = vmatpush3.bf16.msra.mxu0 %v14478_v63  ;;  %v14517_v63 = vld [vmem:[#allocation13 + $0x30] sm:$0xff]  }
0x1216   :  { %13724 = vmatprep.subr.bf16.mxu0 %v17419_v55 }
0x1218   :  { %13701 = vmatmul.mubr.bf16.vlgmr.msra.gmra.mrb[132].mxu0 %v10675_v7 }
0x1219   :  { %13725 = vmatpush3.bf16.msra.mxu0 %v14479_v38  ;;  %13740 = vmatprep.mubr.msk.bf16.mxu0 %vm15048_vm0, %v17419_v55 }
0x121a   :  { %13726 = vmatprep.subr.bf16.mxu0 %v17419_v55 }
0x121d   :  { %13727 = vmatpush3.bf16.msra.mxu0 %v14480_v8 }
0x121e   :  { %13728 = vmatprep.subr.bf16.mxu0 %v17419_v55 }
0x1221   :  { %13729 = vmatpush3.bf16.msra.mxu0 %v14481_v48 }
0x1222   :  { %13730 = vmatprep.subr.bf16.mxu0 %v17419_v55 }
0x1225   :  { %13731 = vmatpush3.bf16.msra.mxu0 %v14482_v58 }
0x1226   :  { %13732 = vmatprep.subr.bf16.mxu0 %v17419_v55 }
0x1229   :  { %13733 = vmatpush3.bf16.msra.mxu0 %v14483_v3  ;;  %v14518_v3 = vld [vmem:[#allocation13 + $0x38] sm:$0xff]  }
0x122a   :  { %13734 = vmatprep.subr.bf16.mxu0 %v17419_v55 }
0x122d   :  { %13735 = vmatpush3.bf16.msra.mxu0 %v14484_v45  ;;  %v17423_v45 = vcombine.low %v16811_v54, %v16814_v2  ;;  %v14528_v54 = vld [vmem:[#allocation13 + $0x10] sm:$0xff]  }
0x122e   :  { %13736 = vmatprep.subr.bf16.mxu0 %v17419_v55 }
0x1231   :  { %13737 = vmatpush3.bf16.msra.mxu0 %v14485_v14 }
0x1232   :  { %13738 = vmatprep.subr.bf16.mxu0 %v17419_v55 }
0x1235   :  { %13739 = vmatpush3.bf16.msra.mxu0 %v14486_v23 }
0x1236   :  { %13764 = vmatprep.subr.bf16.mxu0 %v17419_v55 }
0x1238   :  { %13741 = vmatmul.mubr.bf16.vlgmr.msra.gmra.mrb[136].mxu0 %v10902_v33  ;;  %v14524_v33 = vld [vmem:[#allocation13] sm:$0xff]  }
0x1239   :  { %13765 = vmatpush3.bf16.msra.mxu0 %v14487_v10  ;;  %13780 = vmatprep.mubr.msk.bf16.mxu0 %vm15048_vm0, %v17419_v55 }
0x123a   :  { %13766 = vmatprep.subr.bf16.mxu0 %v17419_v55 }
0x123d   :  { %13767 = vmatpush3.bf16.msra.mxu0 %v14488_v34 }
0x123e   :  { %13768 = vmatprep.subr.bf16.mxu0 %v17419_v55 }
0x1241   :  { %13769 = vmatpush3.bf16.msra.mxu0 %v14489_v57 }
0x1242   :  { %13770 = vmatprep.subr.bf16.mxu0 %v17419_v55 }
0x1245   :  { %13771 = vmatpush3.bf16.msra.mxu0 %v14490_v18 }
0x1246   :  { %13772 = vmatprep.subr.bf16.mxu0 %v17419_v55 }
0x1249   :  { %13773 = vmatpush3.bf16.msra.mxu0 %v14491_v28 }
0x124a   :  { %13774 = vmatprep.subr.bf16.mxu0 %v17419_v55 }
0x124d   :  { %13775 = vmatpush3.bf16.msra.mxu0 %v14492_v36 }
0x124e   :  { %13776 = vmatprep.subr.bf16.mxu0 %v17419_v55 }
0x1251   :  { %13777 = vmatpush3.bf16.msra.mxu0 %v14493_v49  ;;  %v17225_v49 = vld [vmem:[%s17344_s6] ss:$0 sm:$0xff] }
0x1252   :  { %13778 = vmatprep.subr.bf16.mxu0 %v17419_v55 }
0x1255   :  { %13779 = vmatpush3.bf16.msra.mxu0 %v14494_v17 }
0x1256   :  { %13804 = vmatprep.subr.bf16.mxu0 %v17419_v55 }
0x1258   :  { %13781 = vmatmul.mubr.bf16.vlgmr.msra.gmra.mrb[140].mxu0 %v11129_v20 }
0x1259   :  { %13805 = vmatpush3.bf16.msra.mxu0 %v14495_v6  ;;  %13820 = vmatprep.mubr.msk.bf16.mxu0 %vm15048_vm0, %v17419_v55 }
0x125a   :  { %13806 = vmatprep.subr.bf16.mxu0 %v17419_v55 }
0x125d   :  { %13807 = vmatpush3.bf16.msra.mxu0 %v14496_v61  ;;  %v14536_v61 = vld [vmem:[#allocation13 + $0x30] sm:$0xff]  }
0x125e   :  { %13808 = vmatprep.subr.bf16.mxu0 %v17419_v55 }
0x1261   :  { %13809 = vmatpush3.bf16.msra.mxu0 %v14497_v53 }
0x1262   :  { %13810 = vmatprep.subr.bf16.mxu0 %v17419_v55 }
0x1265   :  { %13811 = vmatpush3.bf16.msra.mxu0 %v14498_v30 }
0x1266   :  { %13812 = vmatprep.subr.bf16.mxu0 %v17419_v55 }
0x1269   :  { %13813 = vmatpush3.bf16.msra.mxu0 %v14499_v59 }
0x126a   :  { %13814 = vmatprep.subr.bf16.mxu0 %v17419_v55 }
0x126d   :  { %13815 = vmatpush3.bf16.msra.mxu0 %v14500_v46 }
0x126e   :  { %13816 = vmatprep.subr.bf16.mxu0 %v17419_v55 }
0x1271   :  { %13817 = vmatpush3.bf16.msra.mxu0 %v14501_v42 }
0x1272   :  { %13818 = vmatprep.subr.bf16.mxu0 %v17419_v55 }
0x1275   :  { %13819 = vmatpush3.bf16.msra.mxu0 %v14502_v51  ;;  %v10433_v51 = vld [vmem:[#allocation6] sm:$0x3] }
0x1276   :  { %13844 = vmatprep.subr.bf16.mxu0 %v17419_v55 }
0x1278   :  { %13821 = vmatmul.mubr.bf16.vlgmr.msra.gmra.mrb[144].mxu0 %v11356_v43 }
0x1279   :  { %13845 = vmatpush3.bf16.msra.mxu0 %v14503_v0  ;;  %13860 = vmatprep.mubr.msk.bf16.mxu0 %vm15048_vm0, %v17419_v55 }
0x127a   :  { %13846 = vmatprep.subr.bf16.mxu0 %v17419_v55 }
0x127d   :  { %13847 = vmatpush3.bf16.msra.mxu0 %v14504_v31  ;;  %v14538_v31 = vld [vmem:[#allocation13 + $0x38] sm:$0xff]  }
0x127e   :  { %13848 = vmatprep.subr.bf16.mxu0 %v17419_v55 }
0x1281   :  { %13849 = vmatpush3.bf16.msra.mxu0 %v14505_v21 }
0x1282   :  { %13850 = vmatprep.subr.bf16.mxu0 %v17419_v55 }
0x1285   :  { %13851 = vmatpush3.bf16.msra.mxu0 %v14506_v1  ;;  %v14563_v1 = vld [vmem:[#allocation15 + $0x20] sm:$0xff]  }
0x1286   :  { %13852 = vmatprep.subr.bf16.mxu0 %v17419_v55 }
0x1289   :  { %13853 = vmatpush3.bf16.msra.mxu0 %v14507_v22 }
0x128a   :  { %13854 = vmatprep.subr.bf16.mxu0 %v17419_v55 }
0x128d   :  { %13855 = vmatpush3.bf16.msra.mxu0 %v14508_v50 }
0x128e   :  { %13856 = vmatprep.subr.bf16.mxu0 %v17419_v55 }
0x1291   :  { %13857 = vmatpush3.bf16.msra.mxu0 %v14509_v24  ;;  %v14531_v24 = vld [vmem:[#allocation15] sm:$0xff]  }
0x1292   :  { %13858 = vmatprep.subr.bf16.mxu0 %v17419_v55 }
0x1295   :  { %13859 = vmatpush3.bf16.msra.mxu0 %v14510_v19 }
0x1296   :  { %13884 = vmatprep.subr.bf16.mxu0 %v17419_v55 }
0x1298   :  { %13861 = vmatmul.mubr.bf16.vlgmr.msra.gmra.mrb[148].mxu0 %v11583_v9 }
0x1299   :  { %13885 = vmatpush3.bf16.msra.mxu0 %v14511_v29  ;;  %13900 = vmatprep.mubr.msk.bf16.mxu0 %vm15048_vm0, %v17419_v55  ;;  %v14533_v29 = vld [vmem:[#allocation15 + $0x8] sm:$0xff]  }
0x129a   :  { %13886 = vmatprep.subr.bf16.mxu0 %v17419_v55 }
0x129d   :  { %13887 = vmatpush3.bf16.msra.mxu0 %v14512_v37 }
0x129e   :  { %13888 = vmatprep.subr.bf16.mxu0 %v17419_v55 }
0x12a1   :  { %13889 = vmatpush3.bf16.msra.mxu0 %v14513_v11 }
0x12a2   :  { %13890 = vmatprep.subr.bf16.mxu0 %v17419_v55 }
0x12a5   :  { %13891 = vmatpush3.bf16.msra.mxu0 %v14514_v39  ;;  %v14535_v39 = vld [vmem:[#allocation15 + $0x10] sm:$0xff]  }
0x12a6   :  { %13892 = vmatprep.subr.bf16.mxu0 %v17419_v55 }
0x12a9   :  { %13893 = vmatpush3.bf16.msra.mxu0 %v14515_v13  ;;  %v10441_v13 = vld [vmem:[#allocation4] sm:$0x3] }
0x12aa   :  { %13894 = vmatprep.subr.bf16.mxu0 %v17419_v55 }
0x12ab   :  { %v10336_v4 = vpop.f32.mrb[124].mxu0  ;;  %v10377_v5 = vpop.f32.mrb[124].mxu1 }
0x12ac   :  { %v10338_v32 = vpop.f32.mrb[125].mxu0  ;;  %v10379_v41 = vpop.f32.mrb[125].mxu1 }
0x12ad   :  { %v10388_v35 = vcombine.low %v10336_v4, %v10338_v32  ;;  %v10389_v44 = vcombine.low %v10377_v5, %v10379_v41  ;;  %13895 = vmatpush3.bf16.msra.mxu0 %v14516_v15  ;;  %v10340_v52 = vpop.f32.mrb[126].mxu0  ;;  %v10381_v40 = vpop.f32.mrb[126].mxu1  ;;  %v14537_v41 = vld [vmem:[#allocation15 + $0x18] sm:$0xff]  }
0x12ae   :  { %v10341_v38 = vpop.f32.mrb[127].mxu0  ;;  %v10382_v7 = vpop.f32.mrb[127].mxu1  ;;  %13896 = vmatprep.subr.bf16.mxu0 %v17419_v55 }
0x12af   :  { %v10396_v8 = vrot.slane %v10388_v35, %v15558_v62  ;;  %v10403_v48 = vrot.slane %v10389_v44, %v15558_v62  ;;  %v14526_v62 = vld [vmem:[#allocation13 + $0x8] sm:$0xff]   ;;  %v14539_v35 = vld [vmem:[#allocation15 + $0x20] sm:$0xff]  }
0x12b0   :  { %v14540_v38 = vld [vmem:[#allocation15 + $0x28] sm:$0xff]  }
0x12b1   :  { %v10404_v58 = vcombine.low %v10396_v8, %v10403_v48  ;;  %13897 = vmatpush3.bf16.msra.mxu0 %v14517_v63  ;;  %v14541_v48 = vld [vmem:[#allocation15 + $0x30] sm:$0xff]  }
0x12b2   :  { %13898 = vmatprep.subr.bf16.mxu0 %v17419_v55 }
0x12b3   :  { %v10406_v14 = vadd.f32 %v10404_v58, %v17423_v45  ;;  %v14542_v58 = vld [vmem:[#allocation15 + $0x38] sm:$0xff]   ;;  %v14543_v45 = vld [vmem:[#allocation15] sm:$0xff]  }
0x12b5   :  { %v13353_v23 = vmul.f32 -1.442695, %v10406_v14  ;;  %v10414_v10 = vrot.slane %v10406_v14, 2  ;;  %13899 = vmatpush3.bf16.msra.mxu0 %v14518_v3  ;;  %v10425_v2 = vrot.slane %v10406_v14, 6  ;;  %v10422_v18 = vrot.slane %v10406_v14, 4 }
0x12b6   :  { %13924 = vmatprep.subr.bf16.mxu0 %v17419_v55 }
0x12b7   :  { %14831 = vpow2.f32 %v13353_v23  ;;  %v13354_v34 = vmul.f32 -1.442695, %v10414_v10  ;;  %v13355_v57 = vmul.f32 -1.442695, %v10425_v2  ;;  %v14544_v23 = vld [vmem:[#allocation15 + $0x8] sm:$0xff]   ;;  %v14545_v10 = vld [vmem:[#allocation15 + $0x10] sm:$0xff]  }
0x12b8   :  { %13901 = vmatmul.mubr.bf16.vlgmr.msra.gmra.mrb[152].mxu0 %v11810_v56 }
0x12b9   :  { %14833 = vpow2.f32 %v13354_v34  ;;  %13925 = vmatpush3.bf16.msra.mxu0 %v14524_v33  ;;  %13940 = vmatprep.mubr.msk.bf16.mxu0 %vm15048_vm0, %v17419_v55  ;;  %v14546_v33 = vld [vmem:[#allocation15 + $0x18] sm:$0xff]   ;;  %v14547_v34 = vld [vmem:[#allocation15 + $0x20] sm:$0xff]  }
0x12ba   :  { %13926 = vmatprep.subr.bf16.mxu0 %v17419_v55  ;;  %14835 = vpow2.f32 %v13355_v57 }
0x12bd   :  { %13927 = vmatpush3.bf16.msra.mxu0 %v14526_v62 }
0x12be   :  { %13928 = vmatprep.subr.bf16.mxu0 %v17419_v55 }
0x12c1   :  { %v14832_v16 = vpop.eup %14831  ;;  %13929 = vmatpush3.bf16.msra.mxu0 %v14528_v54  ;;  %v14548_v54 = vld [vmem:[#allocation15 + $0x28] sm:$0xff]  }
0x12c2   :  { %v10410_v28 = vadd.f32 1.0, %v14832_v16  ;;  %13930 = vmatprep.subr.bf16.mxu0 %v17419_v55 }
0x12c3   :  { %v14834_v12 = vpop.eup %14833 }
0x12c4   :  { %14837 = vrcp.f32 %v10410_v28  ;;  %v10419_v36 = vadd.f32 1.0, %v14834_v12  ;;  %v14836_v47 = vpop.eup %14835  ;;  %v14551_v12 = vld [vmem:[#allocation15] sm:$0xff]  }
0x12c5   :  { %14839 = vtanh.f32 %v10422_v18  ;;  %13931 = vmatpush3.bf16.msra.mxu0 %v14530_v26  ;;  %v10430_v42 = vadd.f32 1.0, %v14836_v47  ;;  %v14549_v18 = vld [vmem:[#allocation15 + $0x30] sm:$0xff]   ;;  %v14550_v26 = vld [vmem:[#allocation15 + $0x38] sm:$0xff]  }
0x12c6   :  { %14841 = vrcp.f32 %v10419_v36  ;;  %13932 = vmatprep.subr.bf16.mxu0 %v17419_v55 }
0x12c9   :  { %13933 = vmatpush3.bf16.msra.mxu0 %v14532_v60  ;;  %v14552_v60 = vld [vmem:[#allocation15 + $0x8] sm:$0xff]  }
0x12ca   :  { %13934 = vmatprep.subr.bf16.mxu0 %v17419_v55 }
0x12cb   :  { %v10555_v17 = vpop.f32.mrb[128].mxu0 }
0x12cc   :  { %v10556_v27 = vadd.f32 %v17225_v49, %v10555_v17  ;;  %v13662_v6 = vpop.f32.mrb[129].mxu0  ;;  %v14554_v17 = vld [vmem:[#allocation15 + $0x18] sm:$0xff]  }
0x12cd   :  { %v10558_v20 = vpop.f32.mrb[130].mxu0  ;;  %13935 = vmatpush3.bf16.msra.mxu0 %v14534_v25  ;;  %v14553_v25 = vld [vmem:[#allocation15 + $0x10] sm:$0xff]  }
0x12ce   :  { %v14838_v53 = vpop.eup %14837  ;;  %14843 = vtanh.f32 %v10556_v27  ;;  %v13663_v30 = vpop.f32.mrb[131].mxu0  ;;  %13936 = vmatprep.subr.bf16.mxu0 %v17419_v55  ;;  %v14555_v27 = vld [vmem:[#allocation15 + $0x20] sm:$0xff]  }
0x12cf   :  { %v14840_v59 = vpop.eup %14839  ;;  %14845 = vrcp.f32 %v10430_v42 }
0x12d0   :  { %v14842_v46 = vpop.eup %14841  ;;  %v10435_v43 = vmul.f32 %v14840_v59, %v14838_v53  ;;  %v14557_v59 = vld [vmem:[#allocation15 + $0x30] sm:$0xff]  }
0x12d1   :  { %v10434_v0 = vmul.f32 %v14842_v46, %v10433_v51  ;;  %13937 = vmatpush3.bf16.msra.mxu0 %v14536_v61  ;;  %v14556_v61 = vld [vmem:[#allocation15 + $0x28] sm:$0xff]   ;;  %v14558_v46 = vld [vmem:[#allocation15 + $0x38] sm:$0xff]  }
0x12d2   :  { %13938 = vmatprep.subr.bf16.mxu0 %v17419_v55 }
0x12d3   :  { %v10436_v21 = vadd.f32 %v10435_v43, %v10434_v0  ;;  %v14560_v43 = vld [vmem:[#allocation15 + $0x8] sm:$0xff]  }
0x12d5   :  { %14847 = vtanh.f32 %v10436_v21  ;;  %v10439_v22 = vsel %vm5297_vm15, %v10436_v21, %v10433_v51  ;;  %13939 = vmatpush3.bf16.msra.mxu0 %v14538_v31  ;;  %v14559_v51 = vld [vmem:[#allocation15] sm:$0xff]   ;;  %v14561_v31 = vld [vmem:[#allocation15 + $0x10] sm:$0xff]   ;;  %v14562_v21 = vld [vmem:[#allocation15 + $0x18] sm:$0xff]  }
0x12d6   :  { %10440 = vst [vmem:[#allocation6] sm:$0x3] %v10439_v22 }
0x12d8   :  { %v14844_v50 = vpop.eup %14843 }
0x12d9   :  { %v10562_v19 = vpack.c.bf16 %v14844_v50, %v14844_v50  ;;  %v14846_v9 = vpop.eup %14845 }
0x12db   :  { %13681 = vmatmul.mubr.bf16.vlgmr.msra.gmra.mrb[128].mxu1 %v10562_v19  ;;  %v14564_v19 = vld [vmem:[#allocation15 + $0x28] sm:$0xff]  }
0x12dc   :  { %13705 = vmatpush3.bf16.msra.mxu1 %v14531_v24  ;;  %13720 = vmatprep.mubr.msk.bf16.mxu1 %vm15048_vm0, %v17419_v55 }
0x12dd   :  { %13706 = vmatprep.subr.bf16.mxu1 %v17419_v55 }
0x12df   :  { %v14848_v37 = vpop.eup %14847 }
0x12e0   :  { %v10438_v11 = vmul.f32 %v14848_v37, %v14846_v9  ;;  %13707 = vmatpush3.bf16.msra.mxu1 %v14533_v29  ;;  %v14565_v37 = vld [vmem:[#allocation15 + $0x30] sm:$0xff]  }
0x12e1   :  { %13708 = vmatprep.subr.bf16.mxu1 %v17419_v55 }
0x12e2   :  { %v10442_v15 = vsel %vm5297_vm15, %v10438_v11, %v10441_v13  ;;  %v10446_v4 = vsel %vm5297_vm15, %v10438_v11, 0.0  ;;  %v14566_v11 = vld [vmem:[#allocation15 + $0x38] sm:$0xff]   ;;  %v14567_v13 = vld [vmem:[#allocation15] sm:$0xff]  }
0x12e3   :  { %10443 = vst [vmem:[#allocation4] sm:$0x3] %v10442_v15  ;;  %v10444_v5 = vpack.c.bf16 %v10442_v15, %v10442_v15  ;;  %v10447_v32 = vpack.c.bf16 %v10446_v4, %v10446_v4  ;;  %v14568_v4 = vld [vmem:[#allocation15 + $0x8] sm:$0xff]  }
0x12e4   :  { %13709 = vmatpush3.bf16.msra.mxu1 %v14535_v39 }
0x12e5   :  { %10445 = vst [vmem:[#allocation5] sm:$0x1] %v10444_v5  ;;  %10448 = vst [vmem:[#allocation2 + $0x7] sm:$0x1] %v10447_v32  ;;  %13710 = vmatprep.subr.bf16.mxu1 %v17419_v55  ;;  %v14569_v5 = vld [vmem:[#allocation15 + $0x10] sm:$0xff]   ;;  %v14570_v32 = vld [vmem:[#allocation15 + $0x18] sm:$0xff]  }
0x12e8   :  { %13711 = vmatpush3.bf16.msra.mxu1 %v14537_v41  ;;  %v14571_v41 = vld [vmem:[#allocation15 + $0x20] sm:$0xff]  }
0x12e9   :  { %13712 = vmatprep.subr.bf16.mxu1 %v17419_v55 }
0x12eb   :  { %v10781_v44 = vpop.f32.mrb[132].mxu0 }
0x12ec   :  { %v10782_v52 = vadd.f32 %v17225_v49, %v10781_v44  ;;  %v13702_v40 = vpop.f32.mrb[133].mxu0  ;;  %13713 = vmatpush3.bf16.msra.mxu1 %v14539_v35  ;;  %v12037_v63 = vld [vmem:[#allocation2 + $0x7] sm:$0x1] }
0x12ed   :  { %v10784_v7 = vpop.f32.mrb[134].mxu0  ;;  %13941 = vmatmul.mubr.bf16.vlgmr.msra.gmra.mrb[156].mxu0 %v12037_v63  ;;  %13714 = vmatprep.subr.bf16.mxu1 %v17419_v55  ;;  %v14572_v40 = vld [vmem:[#allocation15 + $0x28] sm:$0xff]  }
0x12ee   :  { %14849 = vtanh.f32 %v10782_v52  ;;  %v13703_v8 = vpop.f32.mrb[135].mxu0  ;;  %v14573_v7 = vld [vmem:[#allocation15 + $0x30] sm:$0xff]  }
0x12ef   :  { %v14574_v8 = vld [vmem:[#allocation15 + $0x38] sm:$0xff]  }
0x12f0   :  { %13715 = vmatpush3.bf16.msra.mxu1 %v14540_v38 }
0x12f1   :  { %13716 = vmatprep.subr.bf16.mxu1 %v17419_v55 }
0x12f4   :  { %13717 = vmatpush3.bf16.msra.mxu1 %v14541_v48 }
0x12f5   :  { %13718 = vmatprep.subr.bf16.mxu1 %v17419_v55 }
0x12f8   :  { %v14850_v3 = vpop.eup %14849  ;;  %13719 = vmatpush3.bf16.msra.mxu1 %v14542_v58  ;;  %v14575_v58 = vld [vmem:[#allocation15] sm:$0xff]  }
0x12f9   :  { %v10788_v14 = vpack.c.bf16 %v14850_v3, %v14850_v3  ;;  %13744 = vmatprep.subr.bf16.mxu1 %v17419_v55 }
0x12fb   :  { %13721 = vmatmul.mubr.bf16.vlgmr.msra.gmra.mrb[132].mxu1 %v10788_v14  ;;  %v14577_v14 = vld [vmem:[#allocation15 + $0x10] sm:$0xff]  }
0x12fc   :  { %13745 = vmatpush3.bf16.msra.mxu1 %v14543_v45  ;;  %13760 = vmatprep.mubr.msk.bf16.mxu1 %vm15048_vm0, %v17419_v55  ;;  %v14576_v45 = vld [vmem:[#allocation15 + $0x8] sm:$0xff]  }
0x12fd   :  { %13746 = vmatprep.subr.bf16.mxu1 %v17419_v55 }
0x1300   :  { %13747 = vmatpush3.bf16.msra.mxu1 %v14544_v23  ;;  %v14578_v23 = vld [vmem:[#allocation15 + $0x18] sm:$0xff]  }
0x1301   :  { %13748 = vmatprep.subr.bf16.mxu1 %v17419_v55 }
0x1304   :  { %13749 = vmatpush3.bf16.msra.mxu1 %v14545_v10  ;;  %v14579_v10 = vld [vmem:[#allocation15 + $0x20] sm:$0xff]  }
0x1305   :  { %13750 = vmatprep.subr.bf16.mxu1 %v17419_v55 }
0x1308   :  { %13751 = vmatpush3.bf16.msra.mxu1 %v14546_v33 }
0x1309   :  { %13752 = vmatprep.subr.bf16.mxu1 %v17419_v55 }
0x130b   :  { %v11008_v56 = vpop.f32.mrb[136].mxu0 }
0x130c   :  { %v11009_v62 = vadd.f32 %v17225_v49, %v11008_v56  ;;  %v13742_v2 = vpop.f32.mrb[137].mxu0  ;;  %13753 = vmatpush3.bf16.msra.mxu1 %v14547_v34 }
0x130d   :  { %v11011_v57 = vpop.f32.mrb[138].mxu0  ;;  %13754 = vmatprep.subr.bf16.mxu1 %v17419_v55 }
0x130e   :  { %14851 = vtanh.f32 %v11009_v62  ;;  %v13743_v16 = vpop.f32.mrb[139].mxu0  ;;  %v14580_v62 = vld [vmem:[#allocation15 + $0x28] sm:$0xff]   ;;  %v14581_v57 = vld [vmem:[#allocation15 + $0x30] sm:$0xff]  }
0x130f   :  { %v14582_v16 = vld [vmem:[#allocation15 + $0x38] sm:$0xff]  }
0x1310   :  { %13755 = vmatpush3.bf16.msra.mxu1 %v14548_v54 }
0x1311   :  { %13756 = vmatprep.subr.bf16.mxu1 %v17419_v55 }
0x1314   :  { %13757 = vmatpush3.bf16.msra.mxu1 %v14549_v18 }
0x1315   :  { %13758 = vmatprep.subr.bf16.mxu1 %v17419_v55 }
0x1318   :  { %v14852_v28 = vpop.eup %14851  ;;  %13759 = vmatpush3.bf16.msra.mxu1 %v14550_v26  ;;  %v14583_v26 = vld [vmem:[#allocation15] sm:$0xff]  }
0x1319   :  { %v11015_v36 = vpack.c.bf16 %v14852_v28, %v14852_v28  ;;  %13784 = vmatprep.subr.bf16.mxu1 %v17419_v55 }
0x131b   :  { %13761 = vmatmul.mubr.bf16.vlgmr.msra.gmra.mrb[136].mxu1 %v11015_v36  ;;  %v14585_v36 = vld [vmem:[#allocation15 + $0x10] sm:$0xff]  }
0x131c   :  { %13785 = vmatpush3.bf16.msra.mxu1 %v14551_v12  ;;  %13800 = vmatprep.mubr.msk.bf16.mxu1 %vm15048_vm0, %v17419_v55  ;;  %v14584_v12 = vld [vmem:[#allocation15 + $0x8] sm:$0xff]  }
0x131d   :  { %13786 = vmatprep.subr.bf16.mxu1 %v17419_v55 }
0x1320   :  { %13787 = vmatpush3.bf16.msra.mxu1 %v14552_v60  ;;  %v14586_v60 = vld [vmem:[#allocation15 + $0x18] sm:$0xff]  }
0x1321   :  { %13788 = vmatprep.subr.bf16.mxu1 %v17419_v55 }
0x1324   :  { %13789 = vmatpush3.bf16.msra.mxu1 %v14553_v25  ;;  %v14587_v25 = vld [vmem:[#allocation15 + $0x20] sm:$0xff]  }
0x1325   :  { %13790 = vmatprep.subr.bf16.mxu1 %v17419_v55 }
0x1328   :  { %13791 = vmatpush3.bf16.msra.mxu1 %v14554_v17  ;;  %v17312_v17 = vld [vmem:[%s17346_s8] ss:$0 sm:$0xff]  ;;  %s15049_s8 = smov [#allocation16]  }
0x1329   :  { %13792 = vmatprep.subr.bf16.mxu1 %v17419_v55  ;;  %s12269_s14 = sshll.u32 %s15049_s8, 4  ;;  %s12270_s14 = int_to_ptr.vmem [resolvable:$true] %s12269_s14 }
0x132a   :  { %s15005_s15 = scalar_lea.vmem %s12270_s14, 256  ;;  %p15010_p13 = scmp.lt.s32.totalorder %s12270_s14, %s12270_s14 }
0x132b   :  { %v11235_v6 = vpop.f32.mrb[140].mxu0  ;;  %p15006_p12 = scmp.ne.s32.totalorder %s12270_s14, %s15005_s15  ;;  %p15011_p0 = scmp.lt.s32.totalorder %s15005_s15, %s15005_s15 }
0x132c   :  { %v11236_v47 = vadd.f32 %v17225_v49, %v11235_v6  ;;  %v13782_v20 = vpop.f32.mrb[141].mxu0  ;;  %13793 = vmatpush3.bf16.msra.mxu1 %v14555_v27  ;;  %v14588_v27 = vld [vmem:[#allocation15 + $0x28] sm:$0xff]  }
0x132d   :  { %v11238_v53 = vpop.f32.mrb[142].mxu0  ;;  %13794 = vmatprep.subr.bf16.mxu1 %v17419_v55  ;;  %p15012_p1 = por %p15011_p0, %p15010_p13 }
0x132e   :  { %14853 = vtanh.f32 %v11236_v47  ;;  %v13783_v30 = vpop.f32.mrb[143].mxu0  ;;  %v14589_v53 = vld [vmem:[#allocation15 + $0x30] sm:$0xff]  }
0x132f   :  { %p15013_p2 = pnand %p15012_p1, %p15006_p12 }
0x1330   :  { %13795 = vmatpush3.bf16.msra.mxu1 %v14556_v61 }
0x1331   :  { %13796 = vmatprep.subr.bf16.mxu1 %v17419_v55 }
0x1334   :  { %13797 = vmatpush3.bf16.msra.mxu1 %v14557_v59  ;;  %v14590_v59 = vld [vmem:[#allocation15 + $0x38] sm:$0xff]  }
0x1335   :  { %13798 = vmatprep.subr.bf16.mxu1 %v17419_v55 }
0x1338   :  { %v14854_v42 = vpop.eup %14853  ;;  %13799 = vmatpush3.bf16.msra.mxu1 %v14558_v46 }
0x1339   :  { %v11242_v0 = vpack.c.bf16 %v14854_v42, %v14854_v42  ;;  %13824 = vmatprep.subr.bf16.mxu1 %v17419_v55 }
0x133b   :  { %13801 = vmatmul.mubr.bf16.vlgmr.msra.gmra.mrb[140].mxu1 %v11242_v0 }
0x133c   :  { %13825 = vmatpush3.bf16.msra.mxu1 %v14559_v51  ;;  %13840 = vmatprep.mubr.msk.bf16.mxu1 %vm15048_vm0, %v17419_v55 }
0x133d   :  { %13826 = vmatprep.subr.bf16.mxu1 %v17419_v55 }
0x1340   :  { %13827 = vmatpush3.bf16.msra.mxu1 %v14560_v43 }
0x1341   :  { %13828 = vmatprep.subr.bf16.mxu1 %v17419_v55 }
0x1344   :  { %13829 = vmatpush3.bf16.msra.mxu1 %v14561_v31 }
0x1345   :  { %13830 = vmatprep.subr.bf16.mxu1 %v17419_v55 }
0x1348   :  { %13831 = vmatpush3.bf16.msra.mxu1 %v14562_v21 }
0x1349   :  { %13832 = vmatprep.subr.bf16.mxu1 %v17419_v55 }
0x134b   :  { %v11462_v22 = vpop.f32.mrb[144].mxu0 }
0x134c   :  { %v11463_v50 = vadd.f32 %v17225_v49, %v11462_v22  ;;  %v13822_v24 = vpop.f32.mrb[145].mxu0  ;;  %13833 = vmatpush3.bf16.msra.mxu1 %v14563_v1 }
0x134d   :  { %v11465_v29 = vpop.f32.mrb[146].mxu0  ;;  %13834 = vmatprep.subr.bf16.mxu1 %v17419_v55 }
0x134e   :  { %14855 = vtanh.f32 %v11463_v50  ;;  %v13823_v9 = vpop.f32.mrb[147].mxu0 }
0x1350   :  { %13835 = vmatpush3.bf16.msra.mxu1 %v14564_v19 }
0x1351   :  { %13836 = vmatprep.subr.bf16.mxu1 %v17419_v55 }
0x1354   :  { %13837 = vmatpush3.bf16.msra.mxu1 %v14565_v37 }
0x1355   :  { %13838 = vmatprep.subr.bf16.mxu1 %v17419_v55 }
0x1358   :  { %v14856_v39 = vpop.eup %14855  ;;  %13839 = vmatpush3.bf16.msra.mxu1 %v14566_v11 }
0x1359   :  { %v11469_v15 = vpack.c.bf16 %v14856_v39, %v14856_v39  ;;  %13864 = vmatprep.subr.bf16.mxu1 %v17419_v55 }
0x135b   :  { %13841 = vmatmul.mubr.bf16.vlgmr.msra.gmra.mrb[144].mxu1 %v11469_v15 }
0x135c   :  { %13865 = vmatpush3.bf16.msra.mxu1 %v14567_v13  ;;  %13880 = vmatprep.mubr.msk.bf16.mxu1 %vm15048_vm0, %v17419_v55 }
0x135d   :  { %13866 = vmatprep.subr.bf16.mxu1 %v17419_v55 }
0x1360   :  { %13867 = vmatpush3.bf16.msra.mxu1 %v14568_v4 }
0x1361   :  { %13868 = vmatprep.subr.bf16.mxu1 %v17419_v55 }
0x1364   :  { %13869 = vmatpush3.bf16.msra.mxu1 %v14569_v5 }
0x1365   :  { %13870 = vmatprep.subr.bf16.mxu1 %v17419_v55 }
0x1368   :  { %13871 = vmatpush3.bf16.msra.mxu1 %v14570_v32 }
0x1369   :  { %13872 = vmatprep.subr.bf16.mxu1 %v17419_v55 }
0x136b   :  { %v11689_v35 = vpop.f32.mrb[148].mxu0 }
0x136c   :  { %v11690_v44 = vadd.f32 %v17225_v49, %v11689_v35  ;;  %v13862_v52 = vpop.f32.mrb[149].mxu0  ;;  %13873 = vmatpush3.bf16.msra.mxu1 %v14571_v41 }
0x136d   :  { %v11692_v63 = vpop.f32.mrb[150].mxu0  ;;  %13874 = vmatprep.subr.bf16.mxu1 %v17419_v55 }
0x136e   :  { %14857 = vtanh.f32 %v11690_v44  ;;  %v13863_v38 = vpop.f32.mrb[151].mxu0 }
0x1370   :  { %13875 = vmatpush3.bf16.msra.mxu1 %v14572_v40 }
0x1371   :  { %13876 = vmatprep.subr.bf16.mxu1 %v17419_v55 }
0x1374   :  { %13877 = vmatpush3.bf16.msra.mxu1 %v14573_v7 }
0x1375   :  { %13878 = vmatprep.subr.bf16.mxu1 %v17419_v55 }
0x1378   :  { %v14858_v48 = vpop.eup %14857  ;;  %13879 = vmatpush3.bf16.msra.mxu1 %v14574_v8 }
0x1379   :  { %v11696_v3 = vpack.c.bf16 %v14858_v48, %v14858_v48  ;;  %13904 = vmatprep.subr.bf16.mxu1 %v17419_v55 }
0x137b   :  { %13881 = vmatmul.mubr.bf16.vlgmr.msra.gmra.mrb[148].mxu1 %v11696_v3 }
0x137c   :  { %13905 = vmatpush3.bf16.msra.mxu1 %v14575_v58  ;;  %13920 = vmatprep.mubr.msk.bf16.mxu1 %vm15048_vm0, %v17419_v55 }
0x137d   :  { %13906 = vmatprep.subr.bf16.mxu1 %v17419_v55 }
0x1380   :  { %13907 = vmatpush3.bf16.msra.mxu1 %v14576_v45 }
0x1381   :  { %13908 = vmatprep.subr.bf16.mxu1 %v17419_v55 }
0x1384   :  { %13909 = vmatpush3.bf16.msra.mxu1 %v14577_v14 }
0x1385   :  { %13910 = vmatprep.subr.bf16.mxu1 %v17419_v55 }
0x1388   :  { %13911 = vmatpush3.bf16.msra.mxu1 %v14578_v23 }
0x1389   :  { %13912 = vmatprep.subr.bf16.mxu1 %v17419_v55 }
0x138b   :  { %v11916_v33 = vpop.f32.mrb[152].mxu0 }
0x138c   :  { %v11917_v34 = vadd.f32 %v17225_v49, %v11916_v33  ;;  %v13902_v56 = vpop.f32.mrb[153].mxu0  ;;  %13913 = vmatpush3.bf16.msra.mxu1 %v14579_v10 }
0x138d   :  { %v11919_v2 = vpop.f32.mrb[154].mxu0  ;;  %13914 = vmatprep.subr.bf16.mxu1 %v17419_v55 }
0x138e   :  { %14859 = vtanh.f32 %v11917_v34  ;;  %v13903_v54 = vpop.f32.mrb[155].mxu0 }
0x1390   :  { %13915 = vmatpush3.bf16.msra.mxu1 %v14580_v62 }
0x1391   :  { %13916 = vmatprep.subr.bf16.mxu1 %v17419_v55 }
0x1394   :  { %13917 = vmatpush3.bf16.msra.mxu1 %v14581_v57 }
0x1395   :  { %13918 = vmatprep.subr.bf16.mxu1 %v17419_v55 }
0x1398   :  { %v14860_v18 = vpop.eup %14859  ;;  %13919 = vmatpush3.bf16.msra.mxu1 %v14582_v16 }
0x1399   :  { %v11923_v28 = vpack.c.bf16 %v14860_v18, %v14860_v18  ;;  %13944 = vmatprep.subr.bf16.mxu1 %v17419_v55 }
0x139b   :  { %13921 = vmatmul.mubr.bf16.vlgmr.msra.gmra.mrb[152].mxu1 %v11923_v28 }
0x139c   :  { %13945 = vmatpush3.bf16.msra.mxu1 %v14583_v26  ;;  %13960 = vmatprep.mubr.msk.bf16.mxu1 %vm15048_vm0, %v17419_v55 }
0x139d   :  { %13946 = vmatprep.subr.bf16.mxu1 %v17419_v55 }
0x13a0   :  { %13947 = vmatpush3.bf16.msra.mxu1 %v14584_v12 }
0x13a1   :  { %13948 = vmatprep.subr.bf16.mxu1 %v17419_v55 }
0x13a4   :  { %13949 = vmatpush3.bf16.msra.mxu1 %v14585_v36 }
0x13a5   :  { %13950 = vmatprep.subr.bf16.mxu1 %v17419_v55 }
0x13a8   :  { %13951 = vmatpush3.bf16.msra.mxu1 %v14586_v60 }
0x13a9   :  { %13952 = vmatprep.subr.bf16.mxu1 %v17419_v55 }
0x13ac   :  { %13953 = vmatpush3.bf16.msra.mxu1 %v14587_v25 }
0x13ad   :  { %13954 = vmatprep.subr.bf16.mxu1 %v17419_v55 }
0x13ae   :  { %v10668_v6 = vpop.f32.mrb[128].mxu1 }
0x13af   :  { %v10669_v47 = vadd.f32 %v17312_v17, %v10668_v6  ;;  %v13682_v20 = vpop.f32.mrb[129].mxu1 }
0x13b0   :  { %v10671_v61 = vpop.f32.mrb[130].mxu1  ;;  %13955 = vmatpush3.bf16.msra.mxu1 %v14588_v27 }
0x13b1   :  { %10674 = vst [vmem:[#allocation16] sm:$0x3] %v10669_v47  ;;  %v13683_v30 = vpop.f32.mrb[131].mxu1  ;;  %13956 = vmatprep.subr.bf16.mxu1 %v17419_v55 }
0x13b4   :  { %13957 = vmatpush3.bf16.msra.mxu1 %v14589_v53 }
0x13b5   :  { %13958 = vmatprep.subr.bf16.mxu1 %v17419_v55 }
0x13b8   :  { %13959 = vmatpush3.bf16.msra.mxu1 %v14590_v59 }
0x13c0   :  { %v12143_v46 = vpop.f32.mrb[156].mxu0 }
0x13c1   :  { %v12144_v42 = vadd.f32 %v17225_v49, %v12143_v46  ;;  %v13942_v51 = vpop.f32.mrb[157].mxu0 }
0x13c2   :  { %v12146_v0 = vpop.f32.mrb[158].mxu0 }
0x13c3   :  { %14861 = vtanh.f32 %v12144_v42  ;;  %v13943_v43 = vpop.f32.mrb[159].mxu0 }
0x13cd   :  { %v14862_v31 = vpop.eup %14861 }
0x13ce   :  { %v12150_v21 = vpack.c.bf16 %v14862_v31, %v14862_v31  ;;  %v10894_v1 = vpop.f32.mrb[132].mxu1 }
0x13cf   :  { %v10895_v22 = vadd.f32 %v17312_v17, %v10894_v1  ;;  %v13722_v50 = vpop.f32.mrb[133].mxu1 }
0x13d0   :  { %v10897_v24 = vpop.f32.mrb[134].mxu1  ;;  %13961 = vmatmul.mubr.bf16.vlgmr.msra.gmra.mrb[156].mxu1 %v12150_v21 }
0x13d1   :  { %10901 = vst [vmem:[#allocation16 + $0x2] sm:$0x3] %v10895_v22  ;;  %v13723_v19 = vpop.f32.mrb[135].mxu1 }
0x13ee   :  { %v11121_v29 = vpop.f32.mrb[136].mxu1 }
0x13ef   :  { %v11122_v55 = vadd.f32 %v17312_v17, %v11121_v29  ;;  %v13762_v9 = vpop.f32.mrb[137].mxu1 }
0x13f0   :  { %v11124_v37 = vpop.f32.mrb[138].mxu1 }
0x13f1   :  { %11128 = vst [vmem:[#allocation16 + $0x4] sm:$0x3] %v11122_v55  ;;  %v13763_v49 = vpop.f32.mrb[139].mxu1 }
0x140e   :  { %v11348_v11 = vpop.f32.mrb[140].mxu1 }
0x140f   :  { %v11349_v39 = vadd.f32 %v17312_v17, %v11348_v11  ;;  %v13802_v13 = vpop.f32.mrb[141].mxu1 }
0x1410   :  { %v11351_v15 = vpop.f32.mrb[142].mxu1 }
0x1411   :  { %11355 = vst [vmem:[#allocation16 + $0x6] sm:$0x3] %v11349_v39  ;;  %v13803_v4 = vpop.f32.mrb[143].mxu1 }
0x142e   :  { %v11575_v5 = vpop.f32.mrb[144].mxu1 }
0x142f   :  { %v11576_v32 = vadd.f32 %v17312_v17, %v11575_v5  ;;  %v13842_v41 = vpop.f32.mrb[145].mxu1 }
0x1430   :  { %v11578_v35 = vpop.f32.mrb[146].mxu1 }
0x1431   :  { %11582 = vst [vmem:[#allocation16 + $0x8] sm:$0x3] %v11576_v32  ;;  %v13843_v44 = vpop.f32.mrb[147].mxu1 }
0x144e   :  { %v11802_v52 = vpop.f32.mrb[148].mxu1 }
0x144f   :  { %v11803_v40 = vadd.f32 %v17312_v17, %v11802_v52  ;;  %v13882_v63 = vpop.f32.mrb[149].mxu1 }
0x1450   :  { %v11805_v38 = vpop.f32.mrb[150].mxu1 }
0x1451   :  { %11809 = vst [vmem:[#allocation16 + $0xa] sm:$0x3] %v11803_v40  ;;  %v13883_v7 = vpop.f32.mrb[151].mxu1 }
0x146e   :  { %v12029_v8 = vpop.f32.mrb[152].mxu1 }
0x146f   :  { %v12030_v48 = vadd.f32 %v17312_v17, %v12029_v8  ;;  %v13922_v58 = vpop.f32.mrb[153].mxu1 }
0x1470   :  { %v12032_v3 = vpop.f32.mrb[154].mxu1 }
0x1471   :  { %12036 = vst [vmem:[#allocation16 + $0xc] sm:$0x3] %v12030_v48  ;;  %v13923_v45 = vpop.f32.mrb[155].mxu1 }
0x14a3   :  { %v12256_v14 = vpop.f32.mrb[156].mxu1 }
0x14a4   :  { %v12257_v23 = vadd.f32 %v17312_v17, %v12256_v14  ;;  %v13962_v10 = vpop.f32.mrb[157].mxu1 }
0x14a5   :  { %v12259_v33 = vpop.f32.mrb[158].mxu1 }
0x14a6   :  { %12263 = vst [vmem:[#allocation16 + $0xe] sm:$0x3] %v12257_v23  ;;  %v13963_v34 = vpop.f32.mrb[159].mxu1 }
0x14a7   :  { %15016 = shalt.err (!%p15013_p2)
}
0x14a8   :  { %s15017_s22 = scalar_lea.hbm %s17347_s9, 256 }
0x14a9   :  { %p15018_p3 = scmp.ne.s32.totalorder %s17347_s9, %s15017_s22  ;;  %p15021_p4 = scmp.lt.u32.totalorder %s15017_s22, %s17347_s9 }
0x14ab   :  { %p15023_p5 = pnand %p15021_p4, %p15018_p3 }
0x14ad   :  { %15026 = shalt.err (!%p15023_p5)
}
0x14ae   :  { %s15050_s26 = smov 32   ;;  %s15051_s27 = smov 2  }
0x14af   :  { %12275 = dma.vmem_to_hbm [thread:$0]  %s12270_s14, 256, %s17347_s9, [#allocation9], %s15050_s26, %s15050_s26, %s15051_s27  }
0x14b0   :  { %15033 = dma.done.wait [#allocation9], 256  }
0x14b1   :  { %15034 = vsyncadd [#allocation9], 4294967040 }
0x14b2   :  { %12279 = vsyncpa [#allocation8], 1 }
0x14b3   :  { %12280 = vsyncpa [#allocation11], 1 }
0x14b4   :  { %12281 = vsyncpa [#allocation14], 1 }
0x14b5   :  { %12282 = vsyncpa [#allocation9], 1 }

</bundles_post_ra>
